<compile_context>
chip_gen: v7x
topology: tpu7x:2x2x1
jax: 0.10.0
libtpu: 0.0.40
codegen_flags: <defaults>
</compile_context>

<pallas_src>
import functools

import jax
import jax.numpy as jnp
from jax.experimental import pallas as pl
from jax.experimental.pallas import tpu as pltpu


# ----------------------------------------------------------------------------
# helpers
# ----------------------------------------------------------------------------
def _round_up(x, m):
    return ((x + m - 1) // m) * m


def _tpu_generation():
    """Best-effort TPU generation (5, 6, 7). Defaults to 6."""
    try:
        kind = jax.devices()[0].device_kind.lower()
    except Exception:
        return 6
    if "v5" in kind:
        return 5
    if "v7" in kind:
        return 7
    return 6


def _vmem_budget_bytes(gen):
    """Target VMEM working-set budget: 3/4 of physical capacity."""
    try:
        cap = int(pltpu.get_tpu_info().vmem_capacity_bytes)
    except Exception:
        cap = (64 << 20) if gen >= 7 else (128 << 20)
    return (cap * 3) // 4


def _unroll_for(tc, cap=8):
    """Largest divisor of tc that is <= cap (caps vreg pressure in the body)."""
    for u in range(min(cap, tc), 0, -1):
        if tc % u == 0:
            return u
    return 1


def _choose_tiles(T, Bp, dp, hp, op, n_cores, budget):
    """Pick (time chunk TC, batch tile BT, padded T) from a VMEM budget."""
    # Splitting the batch only buys anything with 2 TensorCores (v7x), and only
    # when each half keeps the per-step matmul out of the drain-dominated regime.
    if n_cores >= 2 and Bp % 16 == 0 and Bp // 2 >= 64:
        bt = Bp // 2
    else:
        bt = Bp

    h3 = 3 * hp
    # Per-grid-step VMEM (conservative: includes the fused-FC layer's extras).
    fixed = (dp * h3 * 2          # W_ih  (bf16, single-buffered)
             + h3 * 4             # b_fold
             + hp * h3 * 2        # W_hh
             + hp * 4             # b_hn
             + hp * op * 2        # W_fc
             + op * 4             # b_fc
             + bt * hp * 4        # h scratch
             + 2 * bt * op * 4)   # fused-FC output (double-buffered)
    per_tc = (2 * bt * dp * 2     # x chunk  (bf16, double-buffered)
              + 2 * bt * hp * 2   # seq out  (bf16, double-buffered)
              + bt * h3 * 4)      # gi scratch (f32)
    tc_max = max(1, int((budget - fixed) // per_tc))
    tc_max = max(1, min(tc_max, 64, T))
    # Prefer a divisor of T near tc_max (no padded timesteps); otherwise pad T.
    tc = None
    for cand in range(tc_max, max(tc_max // 2, 1) - 1, -1):
        if T % cand == 0:
            tc = cand
            break
    if tc is None:
        tc = tc_max
    return tc, bt, _round_up(T, tc)


def _const_spec(shape, single_buffer):
    """BlockSpec for an operand whose block index never changes (weights)."""
    idx = lambda bi, ti: (0, 0)          # all constants here are rank-2
    if single_buffer:
        # Second pipeline buffer is dead VMEM for a constant-index block.
        return pl.BlockSpec(shape, idx, pipeline_mode=pl.Buffered(1))
    return pl.BlockSpec(shape, idx)


# ----------------------------------------------------------------------------
# GRU step (PyTorch gate order r, z, n).  gi already contains x@W_i* + b_i*
# (+ b_h{r,z} folded); only b_hn stays separate (it sits inside r * (...)).
# ----------------------------------------------------------------------------
def _gru_step(gi, h, whh, bhn, hp):
    gh = jnp.dot(h.astype(jnp.bfloat16), whh, preferred_element_type=jnp.float32)
    r = jax.nn.sigmoid(gi[:, 0:hp] + gh[:, 0:hp])
    z = jax.nn.sigmoid(gi[:, hp:2 * hp] + gh[:, hp:2 * hp])
    n = jnp.tanh(gi[:, 2 * hp:3 * hp] + r * (gh[:, 2 * hp:3 * hp] + bhn))
    return n + z * (h - n)               # == (1-z)*n + z*h, one fewer VPU op


# ----------------------------------------------------------------------------
# Fused kernels: per time chunk, one big input-projection matmul into a VMEM
# scratch, then the serial recurrence over the chunk.
# ----------------------------------------------------------------------------
def _gru_layer_kernel(x_ref, wih_ref, bfold_ref, whh_ref, bhn_ref, out_ref,
                      gi_ref, h_ref, *, hp, tc, bt, t_real, t_pad, unroll):
    tci = pl.program_id(1)               # time-chunk index (sequential axis)

    @pl.when(tci == 0)
    def _():
        h_ref[...] = jnp.zeros_like(h_ref)        # h0 = 0 per batch tile

    # Hoisted input projection for the whole chunk: (TC*BT, Dp) @ (Dp, 3Hp).
    dp = x_ref.shape[2]
    x2d = x_ref[...].reshape(tc * bt, dp)
    gi_ref[...] = (jnp.dot(x2d, wih_ref[...], preferred_element_type=jnp.float32)
                   + bfold_ref[...])

    whh = whh_ref[...]                                   # (Hp, 3Hp) bf16
    bhn = jnp.broadcast_to(bhn_ref[...], (bt, hp))       # hoisted broadcast

    def body(i, h):
        off = pl.multiple_of(i * bt, bt)
        gi = gi_ref[pl.ds(off, bt), :]
        h_new = _gru_step(gi, h, whh, bhn, hp)
        if t_pad != t_real:              # static: only when T was padded
            h_new = jnp.where(tci * tc + i < t_real, h_new, h)
        out_ref[i] = h_new.astype(out_ref.dtype)
        return h_new

    h_ref[...] = jax.lax.fori_loop(0, tc, body, h_ref[...], unroll=unroll)


def _gru_last_fc_kernel(x_ref, wih_ref, bfold_ref, whh_ref, bhn_ref,
                        wfc_ref, bfc_ref, out_ref, gi_ref, h_ref,
                        *, hp, tc, bt, t_real, t_pad, unroll):
    tci = pl.program_id(1)

    @pl.when(tci == 0)
    def _():
        h_ref[...] = jnp.zeros_like(h_ref)

    dp = x_ref.shape[2]
    x2d = x_ref[...].reshape(tc * bt, dp)
    gi_ref[...] = (jnp.dot(x2d, wih_ref[...], preferred_element_type=jnp.float32)
                   + bfold_ref[...])

    whh = whh_ref[...]
    bhn = jnp.broadcast_to(bhn_ref[...], (bt, hp))

    def body(i, h):
        off = pl.multiple_of(i * bt, bt)
        gi = gi_ref[pl.ds(off, bt), :]
        h_new = _gru_step(gi, h, whh, bhn, hp)
        if t_pad != t_real:
            h_new = jnp.where(tci * tc + i < t_real, h_new, h)
        return h_new

    h_final = jax.lax.fori_loop(0, tc, body, h_ref[...], unroll=unroll)
    h_ref[...] = h_final

    # Only the final hidden state feeds the FC; no (T,B,H) sequence writeback.
    @pl.when(tci == pl.num_programs(1) - 1)
    def _():
        out_ref[...] = (jnp.dot(h_final.astype(jnp.bfloat16), wfc_ref[...],
                                preferred_element_type=jnp.float32)
                        + bfc_ref[...]).astype(out_ref.dtype)


# ----------------------------------------------------------------------------
# pallas_call wrappers
# ----------------------------------------------------------------------------
def gru_layer_seq(seq, w_ih, b_fold, w_hh, b_hn, *, hp, tc, bt, t_real,
                  single_buffer_weights, vmem_limit):
    """One (non-final) GRU layer. seq: (T_pad, Bp, Dp) bf16 -> (T_pad, Bp, Hp) bf16."""
    t_pad, Bp, dp = seq.shape
    h3 = 3 * hp
    kernel = functools.partial(
        _gru_layer_kernel, hp=hp, tc=tc, bt=bt, t_real=t_real, t_pad=t_pad,
        unroll=_unroll_for(tc))
    cost = pl.CostEstimate(
        flops=2 * t_pad * Bp * (dp + hp) * h3,
        transcendentals=3 * t_pad * Bp * hp,
        bytes_accessed=t_pad * Bp * (dp + hp) * 2 + (dp + hp) * h3 * 2 + (h3 + hp) * 4)
    return pl.pallas_call(
        kernel,
        out_shape=jax.ShapeDtypeStruct((t_pad, Bp, hp), jnp.bfloat16),
        grid_spec=pltpu.PrefetchScalarGridSpec(
            num_scalar_prefetch=0,
            grid=(Bp // bt, t_pad // tc),
            in_specs=[
                pl.BlockSpec((tc, bt, dp), lambda bi, ti: (ti, bi, 0)),
                _const_spec((dp, h3), single_buffer_weights),
                _const_spec((1, h3), single_buffer_weights),
                _const_spec((hp, h3), single_buffer_weights),
                _const_spec((1, hp), single_buffer_weights),
            ],
            out_specs=pl.BlockSpec((tc, bt, hp), lambda bi, ti: (ti, bi, 0)),
            scratch_shapes=[pltpu.VMEM((tc * bt, h3), jnp.float32),   # gi
                            pltpu.VMEM((bt, hp), jnp.float32)],       # carried h
        ),
        compiler_params=pltpu.CompilerParams(
            dimension_semantics=("parallel", "arbitrary"),
            vmem_limit_bytes=int(vmem_limit)),
        cost_estimate=cost,
    )(seq, w_ih, b_fold, w_hh, b_hn)


def gru_layer_last_fc(seq, w_ih, b_fold, w_hh, b_hn, w_fc, b_fc, *,
                      hp, tc, bt, t_real, single_buffer_weights, vmem_limit):
    """Final GRU layer fused with the Linear head. Returns (Bp, Op) f32."""
    t_pad, Bp, dp = seq.shape
    h3 = 3 * hp
    op = w_fc.shape[1]
    kernel = functools.partial(
        _gru_last_fc_kernel, hp=hp, tc=tc, bt=bt, t_real=t_real, t_pad=t_pad,
        unroll=_unroll_for(tc))
    cost = pl.CostEstimate(
        flops=2 * t_pad * Bp * (dp + hp) * h3 + 2 * Bp * hp * op,
        transcendentals=3 * t_pad * Bp * hp,
        bytes_accessed=(t_pad * Bp * dp * 2 + Bp * op * 4
                        + (dp + hp) * h3 * 2 + hp * op * 2 + (h3 + hp + op) * 4))
    return pl.pallas_call(
        kernel,
        out_shape=jax.ShapeDtypeStruct((Bp, op), jnp.float32),
        grid_spec=pltpu.PrefetchScalarGridSpec(
            num_scalar_prefetch=0,
            grid=(Bp // bt, t_pad // tc),
            in_specs=[
                pl.BlockSpec((tc, bt, dp), lambda bi, ti: (ti, bi, 0)),
                _const_spec((dp, h3), single_buffer_weights),
                _const_spec((1, h3), single_buffer_weights),
                _const_spec((hp, h3), single_buffer_weights),
                _const_spec((1, hp), single_buffer_weights),
                _const_spec((hp, op), single_buffer_weights),
                _const_spec((1, op), single_buffer_weights),
            ],
            out_specs=pl.BlockSpec((bt, op), lambda bi, ti: (bi, 0)),
            scratch_shapes=[pltpu.VMEM((tc * bt, h3), jnp.float32),
                            pltpu.VMEM((bt, hp), jnp.float32)],
        ),
        compiler_params=pltpu.CompilerParams(
            dimension_semantics=("parallel", "arbitrary"),
            vmem_limit_bytes=int(vmem_limit)),
        cost_estimate=cost,
    )(seq, w_ih, b_fold, w_hh, b_hn, w_fc, b_fc)


# ----------------------------------------------------------------------------
# Parameters: PyTorch-layout init + conversion to padded/bf16 kernel layout
# ----------------------------------------------------------------------------
def init_params(key, input_dim, hidden_dim, output_dim, num_layers):
    """PyTorch nn.GRU / nn.Linear layout, U(-1/sqrt(H), 1/sqrt(H)) init."""
    bound = hidden_dim ** -0.5
    params = {"gru": [], "fc": None}
    for layer in range(num_layers):
        in_dim = input_dim if layer == 0 else hidden_dim
        key, k1, k2, k3, k4 = jax.random.split(key, 5)
        w_ih = jax.random.uniform(k1, (3 * hidden_dim, in_dim), jnp.float32, -bound, bound)
        w_hh = jax.random.uniform(k2, (3 * hidden_dim, hidden_dim), jnp.float32, -bound, bound)
        b_ih = jax.random.uniform(k3, (3 * hidden_dim,), jnp.float32, -bound, bound)
        b_hh = jax.random.uniform(k4, (3 * hidden_dim,), jnp.float32, -bound, bound)
        params["gru"].append((w_ih, w_hh, b_ih, b_hh))
    key, k1, k2 = jax.random.split(key, 3)
    w_fc = jax.random.uniform(k1, (output_dim, hidden_dim), jnp.float32, -bound, bound)
    b_fc = jax.random.uniform(k2, (output_dim,), jnp.float32, -bound, bound)
    params["fc"] = (w_fc, b_fc)
    return params


def prepare_kernel_params(params, hidden_dim):
    """Transpose, split per gate, pad to MXU-friendly shapes, fold biases, cast bf16."""
    gen = _tpu_generation()

    def lane_pad(n):
        # 256-wide padding on v6e/v7x (2x256 MXU) once past one 128-lane tile.
        mult = 256 if (gen >= 6 and n > 128) else 128
        return _round_up(n, mult)

    H = hidden_dim
    Hp = lane_pad(H)
    kp = {"gru": [], "fc": None}

    def pack_w(w, rows_p):          # w: (3H, in) -> (rows_p, 3*Hp), gate-blocked
        gates = [w[g * H:(g + 1) * H, :].T for g in range(3)]        # (in, H) each
        gates = [jnp.pad(g, ((0, rows_p - g.shape[0]), (0, Hp - H))) for g in gates]
        return jnp.concatenate(gates, axis=1)

    def pack_b(b):                  # (3H,) -> (1, 3*Hp), zero-padded per gate
        gates = [jnp.pad(b[g * H:(g + 1) * H], (0, Hp - H)) for g in range(3)]
        return jnp.concatenate(gates)[None, :]

    for li, (w_ih, w_hh, b_ih, b_hh) in enumerate(params["gru"]):
        in_dim = w_ih.shape[1]
        din_p = lane_pad(in_dim) if li == 0 else Hp
        w_ih_k = pack_w(w_ih, din_p).astype(jnp.bfloat16)
        w_hh_k = pack_w(w_hh, Hp).astype(jnp.bfloat16)
        b_ih_p = pack_b(b_ih)
        b_hh_p = pack_b(b_hh)
        # fold b_hr, b_hz into the input-projection bias; keep b_hn separate
        b_fold = b_ih_p.at[:, :2 * Hp].add(b_hh_p[:, :2 * Hp])
        b_hn = b_hh_p[:, 2 * Hp:]
        kp["gru"].append((w_ih_k, w_hh_k, b_fold, b_hn))

    w_fc, b_fc = params["fc"]
    O = w_fc.shape[0]
    Op = _round_up(O, 128)
    w_fc_k = jnp.pad(w_fc.T, ((0, Hp - H), (0, Op - O))).astype(jnp.bfloat16)
    b_fc_k = jnp.pad(b_fc, (0, Op - O))[None, :]
    kp["fc"] = (w_fc_k, b_fc_k)
    return kp


# ----------------------------------------------------------------------------
# Full GRUNet forward
# ----------------------------------------------------------------------------
@functools.partial(jax.jit, static_argnames=("output_dim", "single_buffer_weights"))
def grunet_forward(x, kparams, *, output_dim, single_buffer_weights=True):
    B, T, D = x.shape
    layers = kparams["gru"]
    w_fc, b_fc = kparams["fc"]
    hp = layers[0][1].shape[0]        # W_hh: (Hp, 3Hp)
    dp0 = layers[0][0].shape[0]       # padded layer-0 input dim
    op = w_fc.shape[1]
    Bp = _round_up(B, 8)

    gen = _tpu_generation()
    n_cores = 2 if gen >= 7 else 1    # only v7x has 2 TensorCores per chip
    budget = _vmem_budget_bytes(gen)
    tc, bt, t_pad = _choose_tiles(T, Bp, max(dp0, hp), hp, op, n_cores, budget)
    # TODO(synk): for Hp so large that the weights alone exceed the VMEM budget,
    # the W_ih / W_hh blocks would additionally need N-tiling.

    # (B,T,D) -> time-major, padded, bf16 — once, outside the kernels.
    x_tm = jnp.transpose(x, (1, 0, 2))                                # (T, B, D)
    seq = jnp.pad(x_tm, ((0, t_pad - T), (0, Bp - B), (0, dp0 - D))).astype(jnp.bfloat16)

    n_layers = len(layers)
    out_p = None
    for li, (w_ih, w_hh, b_fold, b_hn) in enumerate(layers):
        if li < n_layers - 1:
            seq = gru_layer_seq(seq, w_ih, b_fold, w_hh, b_hn,
                                hp=hp, tc=tc, bt=bt, t_real=T,
                                single_buffer_weights=single_buffer_weights,
                                vmem_limit=budget)                    # (T_pad, Bp, Hp)
        else:
            out_p = gru_layer_last_fc(seq, w_ih, b_fold, w_hh, b_hn, w_fc, b_fc,
                                      hp=hp, tc=tc, bt=bt, t_real=T,
                                      single_buffer_weights=single_buffer_weights,
                                      vmem_limit=budget)              # (Bp, Op)

    return out_p[:B, :output_dim]


# ----------------------------------------------------------------------------
# Pure-JAX reference (emulates the kernel's bf16-MXU / f32-accumulate math)
# ----------------------------------------------------------------------------
def grunet_reference(x, params, hidden_dim):
    def bdot(a, b):
        return jnp.dot(a.astype(jnp.bfloat16), b.astype(jnp.bfloat16),
                       preferred_element_type=jnp.float32)

    B, T, _ = x.shape
    H = hidden_dim
    seq = x
    for (w_ih, w_hh, b_ih, b_hh) in params["gru"]:
        h = jnp.zeros((B, H), jnp.float32)
        outs = []
        for t in range(T):
            gi = bdot(seq[:, t, :], w_ih.T) + b_ih
            gh = bdot(h, w_hh.T) + b_hh
            r = jax.nn.sigmoid(gi[:, :H] + gh[:, :H])
            z = jax.nn.sigmoid(gi[:, H:2 * H] + gh[:, H:2 * H])
            n = jnp.tanh(gi[:, 2 * H:] + r * gh[:, 2 * H:])
            h = (1.0 - z) * n + z * h
            outs.append(h)
        seq = jnp.stack(outs, axis=1)
    w_fc, b_fc = params["fc"]
    return bdot(seq[:, -1, :], w_fc.T) + b_fc


if __name__ == "__main__":
    input_dim, hidden_dim, output_dim, num_layers = 16, 32, 8, 2
    batch, seq_len = 2, 8

    key = jax.random.PRNGKey(0)
    key, kx = jax.random.split(key)
    x = jax.random.normal(kx, (batch, seq_len, input_dim), jnp.float32)

    params = init_params(key, input_dim, hidden_dim, output_dim, num_layers)
    kparams = prepare_kernel_params(params, hidden_dim)

    try:
        out = grunet_forward(x, kparams, output_dim=output_dim,
                             single_buffer_weights=True)
        out = jax.block_until_ready(out)
    except Exception:
        # Installed jax may not accept pipeline_mode=pl.Buffered(1) on
        # pallas_call BlockSpecs; fall back to default double buffering.
        out = grunet_forward(x, kparams, output_dim=output_dim,
                             single_buffer_weights=False)
        out = jax.block_until_ready(out)
    assert out.shape == (batch, output_dim)

    ref = grunet_reference(x, params, hidden_dim)
    max_err = jnp.max(jnp.abs(out - ref))
    assert jnp.allclose(out, ref, rtol=2e-3, atol=2e-3), f"mismatch vs reference: {max_err}"

    print("KERNEL_OK")
</pallas_src>

<mosaic_0001>
module attributes {stable_mosaic.version = 11 : i64} {
  func.func @_gru_layer_kernel(%arg0: i32, %arg1: i32, %arg2: memref<8x8x128xbf16, #tpu.memory_space<vmem>>, %arg3: memref<128x384xbf16, #tpu.memory_space<vmem>>, %arg4: memref<1x384xf32, #tpu.memory_space<vmem>>, %arg5: memref<128x384xbf16, #tpu.memory_space<vmem>>, %arg6: memref<1x128xf32, #tpu.memory_space<vmem>>, %arg7: memref<8x8x128xbf16, #tpu.memory_space<vmem>>, %arg8: memref<64x384xf32, #tpu.memory_space<vmem>>, %arg9: memref<8x128xf32, #tpu.memory_space<vmem>>) attributes {dimension_semantics = [#tpu.dimension_semantics<parallel>, #tpu.dimension_semantics<arbitrary>], iteration_bounds = array<i64: 1, 1>, scalar_prefetch = 0 : i64, scratch_operands = 2 : i64, tpu.core_type = #tpu.core_type<tc>, window_params = [{transform_indices = @transform_0, window_bounds = array<i64: 8, 8, 128>}, {pipeline_mode = #tpu.pipeline_mode<synchronous>, transform_indices = @transform_1, window_bounds = array<i64: 128, 384>}, {pipeline_mode = #tpu.pipeline_mode<synchronous>, transform_indices = @transform_2, window_bounds = array<i64: 1, 384>}, {pipeline_mode = #tpu.pipeline_mode<synchronous>, transform_indices = @transform_3, window_bounds = array<i64: 128, 384>}, {pipeline_mode = #tpu.pipeline_mode<synchronous>, transform_indices = @transform_4, window_bounds = array<i64: 1, 128>}, {transform_indices = @transform_5, window_bounds = array<i64: 8, 8, 128>}]} {
    %c0_i32 = arith.constant 0 : i32
    %0 = arith.cmpi eq, %arg1, %c0_i32 : i32
    %1 = arith.extui %0 : i1 to i32
    %c0_i32_0 = arith.constant 0 : i32
    %2 = arith.cmpi ne, %1, %c0_i32_0 : i32
    scf.if %2 {
      %cst_74 = arith.constant 0.000000e+00 : f32
      %305 = vector.broadcast %cst_74 : f32 to vector<8x128xf32>
      %c0_75 = arith.constant 0 : index
      %c0_76 = arith.constant 0 : index
      %306 = vector.load %arg9[%c0_75, %c0_76] : memref<8x128xf32, #tpu.memory_space<vmem>>, vector<8x128xf32>
      tpu.vector_store %arg9[%c0_75, %c0_76], %305 {strides = array<i32>} : memref<8x128xf32, #tpu.memory_space<vmem>>, vector<8x128xf32>,
    } else {
    }
    %c0 = arith.constant 0 : index
    %c0_1 = arith.constant 0 : index
    %c0_2 = arith.constant 0 : index
    %3 = vector.load %arg2[%c0, %c0_1, %c0_2] : memref<8x8x128xbf16, #tpu.memory_space<vmem>>, vector<8x8x128xbf16>
    %4 = vector.shape_cast %3 : vector<8x8x128xbf16> to vector<64x128xbf16>
    %c0_3 = arith.constant 0 : index
    %c0_4 = arith.constant 0 : index
    %5 = vector.load %arg3[%c0_3, %c0_4] : memref<128x384xbf16, #tpu.memory_space<vmem>>, vector<128x384xbf16>
    %cst = arith.constant dense<0.000000e+00> : vector<64x384xf32>
    %6 = tpu.matmul %4, %5, %cst {dimension_numbers = #tpu.dot_dimension_numbers<[1], [0], [0], [1], [0, 0, 1, 1], [], []>} : vector<64x128xbf16>, vector<128x384xbf16>, vector<64x384xf32> -> vector<64x384xf32>
    %c0_5 = arith.constant 0 : index
    %c0_6 = arith.constant 0 : index
    %7 = vector.load %arg4[%c0_5, %c0_6] : memref<1x384xf32, #tpu.memory_space<vmem>>, vector<1x384xf32>
    %8 = vector.broadcast %7 : vector<1x384xf32> to vector<64x384xf32>
    %9 = arith.addf %6, %8 : vector<64x384xf32>
    %c0_7 = arith.constant 0 : index
    %c0_8 = arith.constant 0 : index
    %10 = vector.load %arg8[%c0_7, %c0_8] : memref<64x384xf32, #tpu.memory_space<vmem>>, vector<64x384xf32>
    tpu.vector_store %arg8[%c0_7, %c0_8], %9 {strides = array<i32>} : memref<64x384xf32, #tpu.memory_space<vmem>>, vector<64x384xf32>,
    %c0_9 = arith.constant 0 : index
    %c0_10 = arith.constant 0 : index
    %11 = vector.load %arg5[%c0_9, %c0_10] : memref<128x384xbf16, #tpu.memory_space<vmem>>, vector<128x384xbf16>
    %c0_11 = arith.constant 0 : index
    %c0_12 = arith.constant 0 : index
    %12 = vector.load %arg6[%c0_11, %c0_12] : memref<1x128xf32, #tpu.memory_space<vmem>>, vector<1x128xf32>
    %13 = vector.shape_cast %12 : vector<1x128xf32> to vector<1x128xf32>
    %14 = vector.broadcast %13 : vector<1x128xf32> to vector<8x128xf32>
    %c0_13 = arith.constant 0 : index
    %c0_14 = arith.constant 0 : index
    %15 = vector.load %arg9[%c0_13, %c0_14] : memref<8x128xf32, #tpu.memory_space<vmem>>, vector<8x128xf32>
    %c0_i32_15 = arith.constant 0 : i32
    %c8_i32 = arith.constant 8 : i32
    %16 = arith.muli %c0_i32_15, %c8_i32 : i32
    %17 = tpu.assume_multiple %16, 8 : i32
    %18 = arith.index_cast %17 : i32 to index
    %c0_16 = arith.constant 0 : index
    %19 = vector.load %arg8[%18, %c0_16] : memref<64x384xf32, #tpu.memory_space<vmem>>, vector<8x384xf32>
    %20 = arith.truncf %15 : vector<8x128xf32> to vector<8x128xbf16>
    %cst_17 = arith.constant dense<0.000000e+00> : vector<8x384xf32>
    %21 = tpu.matmul %20, %11, %cst_17 {dimension_numbers = #tpu.dot_dimension_numbers<[1], [0], [0], [1], [0, 0, 1, 1], [], []>} : vector<8x128xbf16>, vector<128x384xbf16>, vector<8x384xf32> -> vector<8x384xf32>
    %22 = vector.extract_strided_slice %19 {offsets = [0, 0], sizes = [8, 128], strides = [1, 1]} : vector<8x384xf32> to vector<8x128xf32>
    %23 = vector.extract_strided_slice %21 {offsets = [0, 0], sizes = [8, 128], strides = [1, 1]} : vector<8x384xf32> to vector<8x128xf32>
    %24 = arith.addf %22, %23 : vector<8x128xf32>
    %25 = arith.negf %24 : vector<8x128xf32>
    %26 = math.exp %25 : vector<8x128xf32>
    %cst_18 = arith.constant 1.000000e+00 : f32
    %27 = vector.broadcast %cst_18 : f32 to vector<8x128xf32>
    %28 = arith.addf %27, %26 : vector<8x128xf32>
    %29 = arith.divf %27, %28 : vector<8x128xf32>
    %30 = vector.extract_strided_slice %19 {offsets = [0, 128], sizes = [8, 128], strides = [1, 1]} : vector<8x384xf32> to vector<8x128xf32>
    %31 = vector.extract_strided_slice %21 {offsets = [0, 128], sizes = [8, 128], strides = [1, 1]} : vector<8x384xf32> to vector<8x128xf32>
    %32 = arith.addf %30, %31 : vector<8x128xf32>
    %33 = arith.negf %32 : vector<8x128xf32>
    %34 = math.exp %33 : vector<8x128xf32>
    %cst_19 = arith.constant 1.000000e+00 : f32
    %35 = vector.broadcast %cst_19 : f32 to vector<8x128xf32>
    %36 = arith.addf %35, %34 : vector<8x128xf32>
    %37 = arith.divf %35, %36 : vector<8x128xf32>
    %38 = vector.extract_strided_slice %19 {offsets = [0, 256], sizes = [8, 128], strides = [1, 1]} : vector<8x384xf32> to vector<8x128xf32>
    %39 = vector.extract_strided_slice %21 {offsets = [0, 256], sizes = [8, 128], strides = [1, 1]} : vector<8x384xf32> to vector<8x128xf32>
    %40 = arith.addf %39, %14 : vector<8x128xf32>
    %41 = arith.mulf %29, %40 : vector<8x128xf32>
    %42 = arith.addf %38, %41 : vector<8x128xf32>
    %43 = math.tanh %42 : vector<8x128xf32>
    %44 = arith.subf %15, %43 : vector<8x128xf32>
    %45 = arith.mulf %37, %44 : vector<8x128xf32>
    %46 = arith.addf %43, %45 : vector<8x128xf32>
    %47 = arith.truncf %46 : vector<8x128xf32> to vector<8x128xbf16>
    %48 = arith.index_cast %c0_i32_15 : i32 to index
    %c0_20 = arith.constant 0 : index
    %c0_21 = arith.constant 0 : index
    %49 = vector.load %arg7[%48, %c0_20, %c0_21] : memref<8x8x128xbf16, #tpu.memory_space<vmem>>, vector<1x8x128xbf16>
    %50 = vector.shape_cast %49 : vector<1x8x128xbf16> to vector<8x128xbf16>
    %51 = vector.shape_cast %47 : vector<8x128xbf16> to vector<1x8x128xbf16>
    tpu.vector_store %arg7[%48, %c0_20, %c0_21], %51 {strides = array<i32>} : memref<8x8x128xbf16, #tpu.memory_space<vmem>>, vector<1x8x128xbf16>,
    %c1_i32 = arith.constant 1 : i32
    %c8_i32_22 = arith.constant 8 : i32
    %52 = arith.muli %c1_i32, %c8_i32_22 : i32
    %53 = tpu.assume_multiple %52, 8 : i32
    %54 = arith.index_cast %53 : i32 to index
    %c0_23 = arith.constant 0 : index
    %55 = vector.load %arg8[%54, %c0_23] : memref<64x384xf32, #tpu.memory_space<vmem>>, vector<8x384xf32>
    %56 = arith.truncf %46 : vector<8x128xf32> to vector<8x128xbf16>
    %cst_24 = arith.constant dense<0.000000e+00> : vector<8x384xf32>
    %57 = tpu.matmul %56, %11, %cst_24 {dimension_numbers = #tpu.dot_dimension_numbers<[1], [0], [0], [1], [0, 0, 1, 1], [], []>} : vector<8x128xbf16>, vector<128x384xbf16>, vector<8x384xf32> -> vector<8x384xf32>
    %58 = vector.extract_strided_slice %55 {offsets = [0, 0], sizes = [8, 128], strides = [1, 1]} : vector<8x384xf32> to vector<8x128xf32>
    %59 = vector.extract_strided_slice %57 {offsets = [0, 0], sizes = [8, 128], strides = [1, 1]} : vector<8x384xf32> to vector<8x128xf32>
    %60 = arith.addf %58, %59 : vector<8x128xf32>
    %61 = arith.negf %60 : vector<8x128xf32>
    %62 = math.exp %61 : vector<8x128xf32>
    %cst_25 = arith.constant 1.000000e+00 : f32
    %63 = vector.broadcast %cst_25 : f32 to vector<8x128xf32>
    %64 = arith.addf %63, %62 : vector<8x128xf32>
    %65 = arith.divf %63, %64 : vector<8x128xf32>
    %66 = vector.extract_strided_slice %55 {offsets = [0, 128], sizes = [8, 128], strides = [1, 1]} : vector<8x384xf32> to vector<8x128xf32>
    %67 = vector.extract_strided_slice %57 {offsets = [0, 128], sizes = [8, 128], strides = [1, 1]} : vector<8x384xf32> to vector<8x128xf32>
    %68 = arith.addf %66, %67 : vector<8x128xf32>
    %69 = arith.negf %68 : vector<8x128xf32>
    %70 = math.exp %69 : vector<8x128xf32>
    %cst_26 = arith.constant 1.000000e+00 : f32
    %71 = vector.broadcast %cst_26 : f32 to vector<8x128xf32>
    %72 = arith.addf %71, %70 : vector<8x128xf32>
    %73 = arith.divf %71, %72 : vector<8x128xf32>
    %74 = vector.extract_strided_slice %55 {offsets = [0, 256], sizes = [8, 128], strides = [1, 1]} : vector<8x384xf32> to vector<8x128xf32>
    %75 = vector.extract_strided_slice %57 {offsets = [0, 256], sizes = [8, 128], strides = [1, 1]} : vector<8x384xf32> to vector<8x128xf32>
    %76 = arith.addf %75, %14 : vector<8x128xf32>
    %77 = arith.mulf %65, %76 : vector<8x128xf32>
    %78 = arith.addf %74, %77 : vector<8x128xf32>
    %79 = math.tanh %78 : vector<8x128xf32>
    %80 = arith.subf %46, %79 : vector<8x128xf32>
    %81 = arith.mulf %73, %80 : vector<8x128xf32>
    %82 = arith.addf %79, %81 : vector<8x128xf32>
    %83 = arith.truncf %82 : vector<8x128xf32> to vector<8x128xbf16>
    %84 = arith.index_cast %c1_i32 : i32 to index
    %c0_27 = arith.constant 0 : index
    %c0_28 = arith.constant 0 : index
    %85 = vector.load %arg7[%84, %c0_27, %c0_28] : memref<8x8x128xbf16, #tpu.memory_space<vmem>>, vector<1x8x128xbf16>
    %86 = vector.shape_cast %85 : vector<1x8x128xbf16> to vector<8x128xbf16>
    %87 = vector.shape_cast %83 : vector<8x128xbf16> to vector<1x8x128xbf16>
    tpu.vector_store %arg7[%84, %c0_27, %c0_28], %87 {strides = array<i32>} : memref<8x8x128xbf16, #tpu.memory_space<vmem>>, vector<1x8x128xbf16>,
    %c2_i32 = arith.constant 2 : i32
    %c8_i32_29 = arith.constant 8 : i32
    %88 = arith.muli %c2_i32, %c8_i32_29 : i32
    %89 = tpu.assume_multiple %88, 8 : i32
    %90 = arith.index_cast %89 : i32 to index
    %c0_30 = arith.constant 0 : index
    %91 = vector.load %arg8[%90, %c0_30] : memref<64x384xf32, #tpu.memory_space<vmem>>, vector<8x384xf32>
    %92 = arith.truncf %82 : vector<8x128xf32> to vector<8x128xbf16>
    %cst_31 = arith.constant dense<0.000000e+00> : vector<8x384xf32>
    %93 = tpu.matmul %92, %11, %cst_31 {dimension_numbers = #tpu.dot_dimension_numbers<[1], [0], [0], [1], [0, 0, 1, 1], [], []>} : vector<8x128xbf16>, vector<128x384xbf16>, vector<8x384xf32> -> vector<8x384xf32>
    %94 = vector.extract_strided_slice %91 {offsets = [0, 0], sizes = [8, 128], strides = [1, 1]} : vector<8x384xf32> to vector<8x128xf32>
    %95 = vector.extract_strided_slice %93 {offsets = [0, 0], sizes = [8, 128], strides = [1, 1]} : vector<8x384xf32> to vector<8x128xf32>
    %96 = arith.addf %94, %95 : vector<8x128xf32>
    %97 = arith.negf %96 : vector<8x128xf32>
    %98 = math.exp %97 : vector<8x128xf32>
    %cst_32 = arith.constant 1.000000e+00 : f32
    %99 = vector.broadcast %cst_32 : f32 to vector<8x128xf32>
    %100 = arith.addf %99, %98 : vector<8x128xf32>
    %101 = arith.divf %99, %100 : vector<8x128xf32>
    %102 = vector.extract_strided_slice %91 {offsets = [0, 128], sizes = [8, 128], strides = [1, 1]} : vector<8x384xf32> to vector<8x128xf32>
    %103 = vector.extract_strided_slice %93 {offsets = [0, 128], sizes = [8, 128], strides = [1, 1]} : vector<8x384xf32> to vector<8x128xf32>
    %104 = arith.addf %102, %103 : vector<8x128xf32>
    %105 = arith.negf %104 : vector<8x128xf32>
    %106 = math.exp %105 : vector<8x128xf32>
    %cst_33 = arith.constant 1.000000e+00 : f32
    %107 = vector.broadcast %cst_33 : f32 to vector<8x128xf32>
    %108 = arith.addf %107, %106 : vector<8x128xf32>
    %109 = arith.divf %107, %108 : vector<8x128xf32>
    %110 = vector.extract_strided_slice %91 {offsets = [0, 256], sizes = [8, 128], strides = [1, 1]} : vector<8x384xf32> to vector<8x128xf32>
    %111 = vector.extract_strided_slice %93 {offsets = [0, 256], sizes = [8, 128], strides = [1, 1]} : vector<8x384xf32> to vector<8x128xf32>
    %112 = arith.addf %111, %14 : vector<8x128xf32>
    %113 = arith.mulf %101, %112 : vector<8x128xf32>
    %114 = arith.addf %110, %113 : vector<8x128xf32>
    %115 = math.tanh %114 : vector<8x128xf32>
    %116 = arith.subf %82, %115 : vector<8x128xf32>
    %117 = arith.mulf %109, %116 : vector<8x128xf32>
    %118 = arith.addf %115, %117 : vector<8x128xf32>
    %119 = arith.truncf %118 : vector<8x128xf32> to vector<8x128xbf16>
    %120 = arith.index_cast %c2_i32 : i32 to index
    %c0_34 = arith.constant 0 : index
    %c0_35 = arith.constant 0 : index
    %121 = vector.load %arg7[%120, %c0_34, %c0_35] : memref<8x8x128xbf16, #tpu.memory_space<vmem>>, vector<1x8x128xbf16>
    %122 = vector.shape_cast %121 : vector<1x8x128xbf16> to vector<8x128xbf16>
    %123 = vector.shape_cast %119 : vector<8x128xbf16> to vector<1x8x128xbf16>
    tpu.vector_store %arg7[%120, %c0_34, %c0_35], %123 {strides = array<i32>} : memref<8x8x128xbf16, #tpu.memory_space<vmem>>, vector<1x8x128xbf16>,
    %c3_i32 = arith.constant 3 : i32
    %c8_i32_36 = arith.constant 8 : i32
    %124 = arith.muli %c3_i32, %c8_i32_36 : i32
    %125 = tpu.assume_multiple %124, 8 : i32
    %126 = arith.index_cast %125 : i32 to index
    %c0_37 = arith.constant 0 : index
    %127 = vector.load %arg8[%126, %c0_37] : memref<64x384xf32, #tpu.memory_space<vmem>>, vector<8x384xf32>
    %128 = arith.truncf %118 : vector<8x128xf32> to vector<8x128xbf16>
    %cst_38 = arith.constant dense<0.000000e+00> : vector<8x384xf32>
    %129 = tpu.matmul %128, %11, %cst_38 {dimension_numbers = #tpu.dot_dimension_numbers<[1], [0], [0], [1], [0, 0, 1, 1], [], []>} : vector<8x128xbf16>, vector<128x384xbf16>, vector<8x384xf32> -> vector<8x384xf32>
    %130 = vector.extract_strided_slice %127 {offsets = [0, 0], sizes = [8, 128], strides = [1, 1]} : vector<8x384xf32> to vector<8x128xf32>
    %131 = vector.extract_strided_slice %129 {offsets = [0, 0], sizes = [8, 128], strides = [1, 1]} : vector<8x384xf32> to vector<8x128xf32>
    %132 = arith.addf %130, %131 : vector<8x128xf32>
    %133 = arith.negf %132 : vector<8x128xf32>
    %134 = math.exp %133 : vector<8x128xf32>
    %cst_39 = arith.constant 1.000000e+00 : f32
    %135 = vector.broadcast %cst_39 : f32 to vector<8x128xf32>
    %136 = arith.addf %135, %134 : vector<8x128xf32>
    %137 = arith.divf %135, %136 : vector<8x128xf32>
    %138 = vector.extract_strided_slice %127 {offsets = [0, 128], sizes = [8, 128], strides = [1, 1]} : vector<8x384xf32> to vector<8x128xf32>
    %139 = vector.extract_strided_slice %129 {offsets = [0, 128], sizes = [8, 128], strides = [1, 1]} : vector<8x384xf32> to vector<8x128xf32>
    %140 = arith.addf %138, %139 : vector<8x128xf32>
    %141 = arith.negf %140 : vector<8x128xf32>
    %142 = math.exp %141 : vector<8x128xf32>
    %cst_40 = arith.constant 1.000000e+00 : f32
    %143 = vector.broadcast %cst_40 : f32 to vector<8x128xf32>
    %144 = arith.addf %143, %142 : vector<8x128xf32>
    %145 = arith.divf %143, %144 : vector<8x128xf32>
    %146 = vector.extract_strided_slice %127 {offsets = [0, 256], sizes = [8, 128], strides = [1, 1]} : vector<8x384xf32> to vector<8x128xf32>
    %147 = vector.extract_strided_slice %129 {offsets = [0, 256], sizes = [8, 128], strides = [1, 1]} : vector<8x384xf32> to vector<8x128xf32>
    %148 = arith.addf %147, %14 : vector<8x128xf32>
    %149 = arith.mulf %137, %148 : vector<8x128xf32>
    %150 = arith.addf %146, %149 : vector<8x128xf32>
    %151 = math.tanh %150 : vector<8x128xf32>
    %152 = arith.subf %118, %151 : vector<8x128xf32>
    %153 = arith.mulf %145, %152 : vector<8x128xf32>
    %154 = arith.addf %151, %153 : vector<8x128xf32>
    %155 = arith.truncf %154 : vector<8x128xf32> to vector<8x128xbf16>
    %156 = arith.index_cast %c3_i32 : i32 to index
    %c0_41 = arith.constant 0 : index
    %c0_42 = arith.constant 0 : index
    %157 = vector.load %arg7[%156, %c0_41, %c0_42] : memref<8x8x128xbf16, #tpu.memory_space<vmem>>, vector<1x8x128xbf16>
    %158 = vector.shape_cast %157 : vector<1x8x128xbf16> to vector<8x128xbf16>
    %159 = vector.shape_cast %155 : vector<8x128xbf16> to vector<1x8x128xbf16>
    tpu.vector_store %arg7[%156, %c0_41, %c0_42], %159 {strides = array<i32>} : memref<8x8x128xbf16, #tpu.memory_space<vmem>>, vector<1x8x128xbf16>,
    %c4_i32 = arith.constant 4 : i32
    %c8_i32_43 = arith.constant 8 : i32
    %160 = arith.muli %c4_i32, %c8_i32_43 : i32
    %161 = tpu.assume_multiple %160, 8 : i32
    %162 = arith.index_cast %161 : i32 to index
    %c0_44 = arith.constant 0 : index
    %163 = vector.load %arg8[%162, %c0_44] : memref<64x384xf32, #tpu.memory_space<vmem>>, vector<8x384xf32>
    %164 = arith.truncf %154 : vector<8x128xf32> to vector<8x128xbf16>
    %cst_45 = arith.constant dense<0.000000e+00> : vector<8x384xf32>
    %165 = tpu.matmul %164, %11, %cst_45 {dimension_numbers = #tpu.dot_dimension_numbers<[1], [0], [0], [1], [0, 0, 1, 1], [], []>} : vector<8x128xbf16>, vector<128x384xbf16>, vector<8x384xf32> -> vector<8x384xf32>
    %166 = vector.extract_strided_slice %163 {offsets = [0, 0], sizes = [8, 128], strides = [1, 1]} : vector<8x384xf32> to vector<8x128xf32>
    %167 = vector.extract_strided_slice %165 {offsets = [0, 0], sizes = [8, 128], strides = [1, 1]} : vector<8x384xf32> to vector<8x128xf32>
    %168 = arith.addf %166, %167 : vector<8x128xf32>
    %169 = arith.negf %168 : vector<8x128xf32>
    %170 = math.exp %169 : vector<8x128xf32>
    %cst_46 = arith.constant 1.000000e+00 : f32
    %171 = vector.broadcast %cst_46 : f32 to vector<8x128xf32>
    %172 = arith.addf %171, %170 : vector<8x128xf32>
    %173 = arith.divf %171, %172 : vector<8x128xf32>
    %174 = vector.extract_strided_slice %163 {offsets = [0, 128], sizes = [8, 128], strides = [1, 1]} : vector<8x384xf32> to vector<8x128xf32>
    %175 = vector.extract_strided_slice %165 {offsets = [0, 128], sizes = [8, 128], strides = [1, 1]} : vector<8x384xf32> to vector<8x128xf32>
    %176 = arith.addf %174, %175 : vector<8x128xf32>
    %177 = arith.negf %176 : vector<8x128xf32>
    %178 = math.exp %177 : vector<8x128xf32>
    %cst_47 = arith.constant 1.000000e+00 : f32
    %179 = vector.broadcast %cst_47 : f32 to vector<8x128xf32>
    %180 = arith.addf %179, %178 : vector<8x128xf32>
    %181 = arith.divf %179, %180 : vector<8x128xf32>
    %182 = vector.extract_strided_slice %163 {offsets = [0, 256], sizes = [8, 128], strides = [1, 1]} : vector<8x384xf32> to vector<8x128xf32>
    %183 = vector.extract_strided_slice %165 {offsets = [0, 256], sizes = [8, 128], strides = [1, 1]} : vector<8x384xf32> to vector<8x128xf32>
    %184 = arith.addf %183, %14 : vector<8x128xf32>
    %185 = arith.mulf %173, %184 : vector<8x128xf32>
    %186 = arith.addf %182, %185 : vector<8x128xf32>
    %187 = math.tanh %186 : vector<8x128xf32>
    %188 = arith.subf %154, %187 : vector<8x128xf32>
    %189 = arith.mulf %181, %188 : vector<8x128xf32>
    %190 = arith.addf %187, %189 : vector<8x128xf32>
    %191 = arith.truncf %190 : vector<8x128xf32> to vector<8x128xbf16>
    %192 = arith.index_cast %c4_i32 : i32 to index
    %c0_48 = arith.constant 0 : index
    %c0_49 = arith.constant 0 : index
    %193 = vector.load %arg7[%192, %c0_48, %c0_49] : memref<8x8x128xbf16, #tpu.memory_space<vmem>>, vector<1x8x128xbf16>
    %194 = vector.shape_cast %193 : vector<1x8x128xbf16> to vector<8x128xbf16>
    %195 = vector.shape_cast %191 : vector<8x128xbf16> to vector<1x8x128xbf16>
    tpu.vector_store %arg7[%192, %c0_48, %c0_49], %195 {strides = array<i32>} : memref<8x8x128xbf16, #tpu.memory_space<vmem>>, vector<1x8x128xbf16>,
    %c5_i32 = arith.constant 5 : i32
    %c8_i32_50 = arith.constant 8 : i32
    %196 = arith.muli %c5_i32, %c8_i32_50 : i32
    %197 = tpu.assume_multiple %196, 8 : i32
    %198 = arith.index_cast %197 : i32 to index
    %c0_51 = arith.constant 0 : index
    %199 = vector.load %arg8[%198, %c0_51] : memref<64x384xf32, #tpu.memory_space<vmem>>, vector<8x384xf32>
    %200 = arith.truncf %190 : vector<8x128xf32> to vector<8x128xbf16>
    %cst_52 = arith.constant dense<0.000000e+00> : vector<8x384xf32>
    %201 = tpu.matmul %200, %11, %cst_52 {dimension_numbers = #tpu.dot_dimension_numbers<[1], [0], [0], [1], [0, 0, 1, 1], [], []>} : vector<8x128xbf16>, vector<128x384xbf16>, vector<8x384xf32> -> vector<8x384xf32>
    %202 = vector.extract_strided_slice %199 {offsets = [0, 0], sizes = [8, 128], strides = [1, 1]} : vector<8x384xf32> to vector<8x128xf32>
    %203 = vector.extract_strided_slice %201 {offsets = [0, 0], sizes = [8, 128], strides = [1, 1]} : vector<8x384xf32> to vector<8x128xf32>
    %204 = arith.addf %202, %203 : vector<8x128xf32>
    %205 = arith.negf %204 : vector<8x128xf32>
    %206 = math.exp %205 : vector<8x128xf32>
    %cst_53 = arith.constant 1.000000e+00 : f32
    %207 = vector.broadcast %cst_53 : f32 to vector<8x128xf32>
    %208 = arith.addf %207, %206 : vector<8x128xf32>
    %209 = arith.divf %207, %208 : vector<8x128xf32>
    %210 = vector.extract_strided_slice %199 {offsets = [0, 128], sizes = [8, 128], strides = [1, 1]} : vector<8x384xf32> to vector<8x128xf32>
    %211 = vector.extract_strided_slice %201 {offsets = [0, 128], sizes = [8, 128], strides = [1, 1]} : vector<8x384xf32> to vector<8x128xf32>
    %212 = arith.addf %210, %211 : vector<8x128xf32>
    %213 = arith.negf %212 : vector<8x128xf32>
    %214 = math.exp %213 : vector<8x128xf32>
    %cst_54 = arith.constant 1.000000e+00 : f32
    %215 = vector.broadcast %cst_54 : f32 to vector<8x128xf32>
    %216 = arith.addf %215, %214 : vector<8x128xf32>
    %217 = arith.divf %215, %216 : vector<8x128xf32>
    %218 = vector.extract_strided_slice %199 {offsets = [0, 256], sizes = [8, 128], strides = [1, 1]} : vector<8x384xf32> to vector<8x128xf32>
    %219 = vector.extract_strided_slice %201 {offsets = [0, 256], sizes = [8, 128], strides = [1, 1]} : vector<8x384xf32> to vector<8x128xf32>
    %220 = arith.addf %219, %14 : vector<8x128xf32>
    %221 = arith.mulf %209, %220 : vector<8x128xf32>
    %222 = arith.addf %218, %221 : vector<8x128xf32>
    %223 = math.tanh %222 : vector<8x128xf32>
    %224 = arith.subf %190, %223 : vector<8x128xf32>
    %225 = arith.mulf %217, %224 : vector<8x128xf32>
    %226 = arith.addf %223, %225 : vector<8x128xf32>
    %227 = arith.truncf %226 : vector<8x128xf32> to vector<8x128xbf16>
    %228 = arith.index_cast %c5_i32 : i32 to index
    %c0_55 = arith.constant 0 : index
    %c0_56 = arith.constant 0 : index
    %229 = vector.load %arg7[%228, %c0_55, %c0_56] : memref<8x8x128xbf16, #tpu.memory_space<vmem>>, vector<1x8x128xbf16>
    %230 = vector.shape_cast %229 : vector<1x8x128xbf16> to vector<8x128xbf16>
    %231 = vector.shape_cast %227 : vector<8x128xbf16> to vector<1x8x128xbf16>
    tpu.vector_store %arg7[%228, %c0_55, %c0_56], %231 {strides = array<i32>} : memref<8x8x128xbf16, #tpu.memory_space<vmem>>, vector<1x8x128xbf16>,
    %c6_i32 = arith.constant 6 : i32
    %c8_i32_57 = arith.constant 8 : i32
    %232 = arith.muli %c6_i32, %c8_i32_57 : i32
    %233 = tpu.assume_multiple %232, 8 : i32
    %234 = arith.index_cast %233 : i32 to index
    %c0_58 = arith.constant 0 : index
    %235 = vector.load %arg8[%234, %c0_58] : memref<64x384xf32, #tpu.memory_space<vmem>>, vector<8x384xf32>
    %236 = arith.truncf %226 : vector<8x128xf32> to vector<8x128xbf16>
    %cst_59 = arith.constant dense<0.000000e+00> : vector<8x384xf32>
    %237 = tpu.matmul %236, %11, %cst_59 {dimension_numbers = #tpu.dot_dimension_numbers<[1], [0], [0], [1], [0, 0, 1, 1], [], []>} : vector<8x128xbf16>, vector<128x384xbf16>, vector<8x384xf32> -> vector<8x384xf32>
    %238 = vector.extract_strided_slice %235 {offsets = [0, 0], sizes = [8, 128], strides = [1, 1]} : vector<8x384xf32> to vector<8x128xf32>
    %239 = vector.extract_strided_slice %237 {offsets = [0, 0], sizes = [8, 128], strides = [1, 1]} : vector<8x384xf32> to vector<8x128xf32>
    %240 = arith.addf %238, %239 : vector<8x128xf32>
    %241 = arith.negf %240 : vector<8x128xf32>
    %242 = math.exp %241 : vector<8x128xf32>
    %cst_60 = arith.constant 1.000000e+00 : f32
    %243 = vector.broadcast %cst_60 : f32 to vector<8x128xf32>
    %244 = arith.addf %243, %242 : vector<8x128xf32>
    %245 = arith.divf %243, %244 : vector<8x128xf32>
    %246 = vector.extract_strided_slice %235 {offsets = [0, 128], sizes = [8, 128], strides = [1, 1]} : vector<8x384xf32> to vector<8x128xf32>
    %247 = vector.extract_strided_slice %237 {offsets = [0, 128], sizes = [8, 128], strides = [1, 1]} : vector<8x384xf32> to vector<8x128xf32>
    %248 = arith.addf %246, %247 : vector<8x128xf32>
    %249 = arith.negf %248 : vector<8x128xf32>
    %250 = math.exp %249 : vector<8x128xf32>
    %cst_61 = arith.constant 1.000000e+00 : f32
    %251 = vector.broadcast %cst_61 : f32 to vector<8x128xf32>
    %252 = arith.addf %251, %250 : vector<8x128xf32>
    %253 = arith.divf %251, %252 : vector<8x128xf32>
    %254 = vector.extract_strided_slice %235 {offsets = [0, 256], sizes = [8, 128], strides = [1, 1]} : vector<8x384xf32> to vector<8x128xf32>
    %255 = vector.extract_strided_slice %237 {offsets = [0, 256], sizes = [8, 128], strides = [1, 1]} : vector<8x384xf32> to vector<8x128xf32>
    %256 = arith.addf %255, %14 : vector<8x128xf32>
    %257 = arith.mulf %245, %256 : vector<8x128xf32>
    %258 = arith.addf %254, %257 : vector<8x128xf32>
    %259 = math.tanh %258 : vector<8x128xf32>
    %260 = arith.subf %226, %259 : vector<8x128xf32>
    %261 = arith.mulf %253, %260 : vector<8x128xf32>
    %262 = arith.addf %259, %261 : vector<8x128xf32>
    %263 = arith.truncf %262 : vector<8x128xf32> to vector<8x128xbf16>
    %264 = arith.index_cast %c6_i32 : i32 to index
    %c0_62 = arith.constant 0 : index
    %c0_63 = arith.constant 0 : index
    %265 = vector.load %arg7[%264, %c0_62, %c0_63] : memref<8x8x128xbf16, #tpu.memory_space<vmem>>, vector<1x8x128xbf16>
    %266 = vector.shape_cast %265 : vector<1x8x128xbf16> to vector<8x128xbf16>
    %267 = vector.shape_cast %263 : vector<8x128xbf16> to vector<1x8x128xbf16>
    tpu.vector_store %arg7[%264, %c0_62, %c0_63], %267 {strides = array<i32>} : memref<8x8x128xbf16, #tpu.memory_space<vmem>>, vector<1x8x128xbf16>,
    %c7_i32 = arith.constant 7 : i32
    %c8_i32_64 = arith.constant 8 : i32
    %268 = arith.muli %c7_i32, %c8_i32_64 : i32
    %269 = tpu.assume_multiple %268, 8 : i32
    %270 = arith.index_cast %269 : i32 to index
    %c0_65 = arith.constant 0 : index
    %271 = vector.load %arg8[%270, %c0_65] : memref<64x384xf32, #tpu.memory_space<vmem>>, vector<8x384xf32>
    %272 = arith.truncf %262 : vector<8x128xf32> to vector<8x128xbf16>
    %cst_66 = arith.constant dense<0.000000e+00> : vector<8x384xf32>
    %273 = tpu.matmul %272, %11, %cst_66 {dimension_numbers = #tpu.dot_dimension_numbers<[1], [0], [0], [1], [0, 0, 1, 1], [], []>} : vector<8x128xbf16>, vector<128x384xbf16>, vector<8x384xf32> -> vector<8x384xf32>
    %274 = vector.extract_strided_slice %271 {offsets = [0, 0], sizes = [8, 128], strides = [1, 1]} : vector<8x384xf32> to vector<8x128xf32>
    %275 = vector.extract_strided_slice %273 {offsets = [0, 0], sizes = [8, 128], strides = [1, 1]} : vector<8x384xf32> to vector<8x128xf32>
    %276 = arith.addf %274, %275 : vector<8x128xf32>
    %277 = arith.negf %276 : vector<8x128xf32>
    %278 = math.exp %277 : vector<8x128xf32>
    %cst_67 = arith.constant 1.000000e+00 : f32
    %279 = vector.broadcast %cst_67 : f32 to vector<8x128xf32>
    %280 = arith.addf %279, %278 : vector<8x128xf32>
    %281 = arith.divf %279, %280 : vector<8x128xf32>
    %282 = vector.extract_strided_slice %271 {offsets = [0, 128], sizes = [8, 128], strides = [1, 1]} : vector<8x384xf32> to vector<8x128xf32>
    %283 = vector.extract_strided_slice %273 {offsets = [0, 128], sizes = [8, 128], strides = [1, 1]} : vector<8x384xf32> to vector<8x128xf32>
    %284 = arith.addf %282, %283 : vector<8x128xf32>
    %285 = arith.negf %284 : vector<8x128xf32>
    %286 = math.exp %285 : vector<8x128xf32>
    %cst_68 = arith.constant 1.000000e+00 : f32
    %287 = vector.broadcast %cst_68 : f32 to vector<8x128xf32>
    %288 = arith.addf %287, %286 : vector<8x128xf32>
    %289 = arith.divf %287, %288 : vector<8x128xf32>
    %290 = vector.extract_strided_slice %271 {offsets = [0, 256], sizes = [8, 128], strides = [1, 1]} : vector<8x384xf32> to vector<8x128xf32>
    %291 = vector.extract_strided_slice %273 {offsets = [0, 256], sizes = [8, 128], strides = [1, 1]} : vector<8x384xf32> to vector<8x128xf32>
    %292 = arith.addf %291, %14 : vector<8x128xf32>
    %293 = arith.mulf %281, %292 : vector<8x128xf32>
    %294 = arith.addf %290, %293 : vector<8x128xf32>
    %295 = math.tanh %294 : vector<8x128xf32>
    %296 = arith.subf %262, %295 : vector<8x128xf32>
    %297 = arith.mulf %289, %296 : vector<8x128xf32>
    %298 = arith.addf %295, %297 : vector<8x128xf32>
    %299 = arith.truncf %298 : vector<8x128xf32> to vector<8x128xbf16>
    %300 = arith.index_cast %c7_i32 : i32 to index
    %c0_69 = arith.constant 0 : index
    %c0_70 = arith.constant 0 : index
    %301 = vector.load %arg7[%300, %c0_69, %c0_70] : memref<8x8x128xbf16, #tpu.memory_space<vmem>>, vector<1x8x128xbf16>
    %302 = vector.shape_cast %301 : vector<1x8x128xbf16> to vector<8x128xbf16>
    %303 = vector.shape_cast %299 : vector<8x128xbf16> to vector<1x8x128xbf16>
    tpu.vector_store %arg7[%300, %c0_69, %c0_70], %303 {strides = array<i32>} : memref<8x8x128xbf16, #tpu.memory_space<vmem>>, vector<1x8x128xbf16>,
    %c8_i32_71 = arith.constant 8 : i32
    %c0_72 = arith.constant 0 : index
    %c0_73 = arith.constant 0 : index
    %304 = vector.load %arg9[%c0_72, %c0_73] : memref<8x128xf32, #tpu.memory_space<vmem>>, vector<8x128xf32>
    tpu.vector_store %arg9[%c0_72, %c0_73], %298 {strides = array<i32>} : memref<8x128xf32, #tpu.memory_space<vmem>>, vector<8x128xf32>,
    return
  }
  func.func @transform_0(%arg0: i32, %arg1: i32) -> (i32, i32, i32) {
    %c0_i32 = arith.constant 0 : i32
    %c0_i32_0 = arith.constant 0 : i32
    return %arg1, %arg0, %c0_i32 : i32, i32, i32
  }
  func.func @transform_1(%arg0: i32, %arg1: i32) -> (i32, i32) {
    %c0_i32 = arith.constant 0 : i32
    %c0_i32_0 = arith.constant 0 : i32
    %c0_i32_1 = arith.constant 0 : i32
    return %c0_i32, %c0_i32_0 : i32, i32
  }
  func.func @transform_2(%arg0: i32, %arg1: i32) -> (i32, i32) {
    %c0_i32 = arith.constant 0 : i32
    %c0_i32_0 = arith.constant 0 : i32
    %c0_i32_1 = arith.constant 0 : i32
    return %c0_i32, %c0_i32_0 : i32, i32
  }
  func.func @transform_3(%arg0: i32, %arg1: i32) -> (i32, i32) {
    %c0_i32 = arith.constant 0 : i32
    %c0_i32_0 = arith.constant 0 : i32
    %c0_i32_1 = arith.constant 0 : i32
    return %c0_i32, %c0_i32_0 : i32, i32
  }
  func.func @transform_4(%arg0: i32, %arg1: i32) -> (i32, i32) {
    %c0_i32 = arith.constant 0 : i32
    %c0_i32_0 = arith.constant 0 : i32
    %c0_i32_1 = arith.constant 0 : i32
    return %c0_i32, %c0_i32_0 : i32, i32
  }
  func.func @transform_5(%arg0: i32, %arg1: i32) -> (i32, i32, i32) {
    %c0_i32 = arith.constant 0 : i32
    %c0_i32_0 = arith.constant 0 : i32
    return %arg1, %arg0, %c0_i32 : i32, i32, i32
  }
}

module attributes {stable_mosaic.version = 11 : i64} {
  func.func @_gru_last_fc_kernel(%arg0: i32, %arg1: i32, %arg2: memref<8x8x128xbf16, #tpu.memory_space<vmem>>, %arg3: memref<128x384xbf16, #tpu.memory_space<vmem>>, %arg4: memref<1x384xf32, #tpu.memory_space<vmem>>, %arg5: memref<128x384xbf16, #tpu.memory_space<vmem>>, %arg6: memref<1x128xf32, #tpu.memory_space<vmem>>, %arg7: memref<128x128xbf16, #tpu.memory_space<vmem>>, %arg8: memref<1x128xf32, #tpu.memory_space<vmem>>, %arg9: memref<8x128xf32, #tpu.memory_space<vmem>>, %arg10: memref<64x384xf32, #tpu.memory_space<vmem>>, %arg11: memref<8x128xf32, #tpu.memory_space<vmem>>) attributes {dimension_semantics = [#tpu.dimension_semantics<parallel>, #tpu.dimension_semantics<arbitrary>], iteration_bounds = array<i64: 1, 1>, scalar_prefetch = 0 : i64, scratch_operands = 2 : i64, tpu.core_type = #tpu.core_type<tc>, window_params = [{transform_indices = @transform_0, window_bounds = array<i64: 8, 8, 128>}, {pipeline_mode = #tpu.pipeline_mode<synchronous>, transform_indices = @transform_1, window_bounds = array<i64: 128, 384>}, {pipeline_mode = #tpu.pipeline_mode<synchronous>, transform_indices = @transform_2, window_bounds = array<i64: 1, 384>}, {pipeline_mode = #tpu.pipeline_mode<synchronous>, transform_indices = @transform_3, window_bounds = array<i64: 128, 384>}, {pipeline_mode = #tpu.pipeline_mode<synchronous>, transform_indices = @transform_4, window_bounds = array<i64: 1, 128>}, {pipeline_mode = #tpu.pipeline_mode<synchronous>, transform_indices = @transform_5, window_bounds = array<i64: 128, 128>}, {pipeline_mode = #tpu.pipeline_mode<synchronous>, transform_indices = @transform_6, window_bounds = array<i64: 1, 128>}, {transform_indices = @transform_7, window_bounds = array<i64: 8, 128>}]} {
    %c0_i32 = arith.constant 0 : i32
    %0 = arith.cmpi eq, %arg1, %c0_i32 : i32
    %1 = arith.extui %0 : i1 to i32
    %c0_i32_0 = arith.constant 0 : i32
    %2 = arith.cmpi ne, %1, %c0_i32_0 : i32
    scf.if %2 {
      %cst_60 = arith.constant 0.000000e+00 : f32
      %268 = vector.broadcast %cst_60 : f32 to vector<8x128xf32>
      %c0_61 = arith.constant 0 : index
      %c0_62 = arith.constant 0 : index
      %269 = vector.load %arg11[%c0_61, %c0_62] : memref<8x128xf32, #tpu.memory_space<vmem>>, vector<8x128xf32>
      tpu.vector_store %arg11[%c0_61, %c0_62], %268 {strides = array<i32>} : memref<8x128xf32, #tpu.memory_space<vmem>>, vector<8x128xf32>,
    } else {
    }
    %c0 = arith.constant 0 : index
    %c0_1 = arith.constant 0 : index
    %c0_2 = arith.constant 0 : index
    %3 = vector.load %arg2[%c0, %c0_1, %c0_2] : memref<8x8x128xbf16, #tpu.memory_space<vmem>>, vector<8x8x128xbf16>
    %4 = vector.shape_cast %3 : vector<8x8x128xbf16> to vector<64x128xbf16>
    %c0_3 = arith.constant 0 : index
    %c0_4 = arith.constant 0 : index
    %5 = vector.load %arg3[%c0_3, %c0_4] : memref<128x384xbf16, #tpu.memory_space<vmem>>, vector<128x384xbf16>
    %cst = arith.constant dense<0.000000e+00> : vector<64x384xf32>
    %6 = tpu.matmul %4, %5, %cst {dimension_numbers = #tpu.dot_dimension_numbers<[1], [0], [0], [1], [0, 0, 1, 1], [], []>} : vector<64x128xbf16>, vector<128x384xbf16>, vector<64x384xf32> -> vector<64x384xf32>
    %c0_5 = arith.constant 0 : index
    %c0_6 = arith.constant 0 : index
    %7 = vector.load %arg4[%c0_5, %c0_6] : memref<1x384xf32, #tpu.memory_space<vmem>>, vector<1x384xf32>
    %8 = vector.broadcast %7 : vector<1x384xf32> to vector<64x384xf32>
    %9 = arith.addf %6, %8 : vector<64x384xf32>
    %c0_7 = arith.constant 0 : index
    %c0_8 = arith.constant 0 : index
    %10 = vector.load %arg10[%c0_7, %c0_8] : memref<64x384xf32, #tpu.memory_space<vmem>>, vector<64x384xf32>
    tpu.vector_store %arg10[%c0_7, %c0_8], %9 {strides = array<i32>} : memref<64x384xf32, #tpu.memory_space<vmem>>, vector<64x384xf32>,
    %c0_9 = arith.constant 0 : index
    %c0_10 = arith.constant 0 : index
    %11 = vector.load %arg5[%c0_9, %c0_10] : memref<128x384xbf16, #tpu.memory_space<vmem>>, vector<128x384xbf16>
    %c0_11 = arith.constant 0 : index
    %c0_12 = arith.constant 0 : index
    %12 = vector.load %arg6[%c0_11, %c0_12] : memref<1x128xf32, #tpu.memory_space<vmem>>, vector<1x128xf32>
    %13 = vector.shape_cast %12 : vector<1x128xf32> to vector<1x128xf32>
    %14 = vector.broadcast %13 : vector<1x128xf32> to vector<8x128xf32>
    %c0_13 = arith.constant 0 : index
    %c0_14 = arith.constant 0 : index
    %15 = vector.load %arg11[%c0_13, %c0_14] : memref<8x128xf32, #tpu.memory_space<vmem>>, vector<8x128xf32>
    %c0_i32_15 = arith.constant 0 : i32
    %c8_i32 = arith.constant 8 : i32
    %16 = arith.muli %c0_i32_15, %c8_i32 : i32
    %17 = tpu.assume_multiple %16, 8 : i32
    %18 = arith.index_cast %17 : i32 to index
    %c0_16 = arith.constant 0 : index
    %19 = vector.load %arg10[%18, %c0_16] : memref<64x384xf32, #tpu.memory_space<vmem>>, vector<8x384xf32>
    %20 = arith.truncf %15 : vector<8x128xf32> to vector<8x128xbf16>
    %cst_17 = arith.constant dense<0.000000e+00> : vector<8x384xf32>
    %21 = tpu.matmul %20, %11, %cst_17 {dimension_numbers = #tpu.dot_dimension_numbers<[1], [0], [0], [1], [0, 0, 1, 1], [], []>} : vector<8x128xbf16>, vector<128x384xbf16>, vector<8x384xf32> -> vector<8x384xf32>
    %22 = vector.extract_strided_slice %19 {offsets = [0, 0], sizes = [8, 128], strides = [1, 1]} : vector<8x384xf32> to vector<8x128xf32>
    %23 = vector.extract_strided_slice %21 {offsets = [0, 0], sizes = [8, 128], strides = [1, 1]} : vector<8x384xf32> to vector<8x128xf32>
    %24 = arith.addf %22, %23 : vector<8x128xf32>
    %25 = arith.negf %24 : vector<8x128xf32>
    %26 = math.exp %25 : vector<8x128xf32>
    %cst_18 = arith.constant 1.000000e+00 : f32
    %27 = vector.broadcast %cst_18 : f32 to vector<8x128xf32>
    %28 = arith.addf %27, %26 : vector<8x128xf32>
    %29 = arith.divf %27, %28 : vector<8x128xf32>
    %30 = vector.extract_strided_slice %19 {offsets = [0, 128], sizes = [8, 128], strides = [1, 1]} : vector<8x384xf32> to vector<8x128xf32>
    %31 = vector.extract_strided_slice %21 {offsets = [0, 128], sizes = [8, 128], strides = [1, 1]} : vector<8x384xf32> to vector<8x128xf32>
    %32 = arith.addf %30, %31 : vector<8x128xf32>
    %33 = arith.negf %32 : vector<8x128xf32>
    %34 = math.exp %33 : vector<8x128xf32>
    %cst_19 = arith.constant 1.000000e+00 : f32
    %35 = vector.broadcast %cst_19 : f32 to vector<8x128xf32>
    %36 = arith.addf %35, %34 : vector<8x128xf32>
    %37 = arith.divf %35, %36 : vector<8x128xf32>
    %38 = vector.extract_strided_slice %19 {offsets = [0, 256], sizes = [8, 128], strides = [1, 1]} : vector<8x384xf32> to vector<8x128xf32>
    %39 = vector.extract_strided_slice %21 {offsets = [0, 256], sizes = [8, 128], strides = [1, 1]} : vector<8x384xf32> to vector<8x128xf32>
    %40 = arith.addf %39, %14 : vector<8x128xf32>
    %41 = arith.mulf %29, %40 : vector<8x128xf32>
    %42 = arith.addf %38, %41 : vector<8x128xf32>
    %43 = math.tanh %42 : vector<8x128xf32>
    %44 = arith.subf %15, %43 : vector<8x128xf32>
    %45 = arith.mulf %37, %44 : vector<8x128xf32>
    %46 = arith.addf %43, %45 : vector<8x128xf32>
    %c1_i32 = arith.constant 1 : i32
    %c8_i32_20 = arith.constant 8 : i32
    %47 = arith.muli %c1_i32, %c8_i32_20 : i32
    %48 = tpu.assume_multiple %47, 8 : i32
    %49 = arith.index_cast %48 : i32 to index
    %c0_21 = arith.constant 0 : index
    %50 = vector.load %arg10[%49, %c0_21] : memref<64x384xf32, #tpu.memory_space<vmem>>, vector<8x384xf32>
    %51 = arith.truncf %46 : vector<8x128xf32> to vector<8x128xbf16>
    %cst_22 = arith.constant dense<0.000000e+00> : vector<8x384xf32>
    %52 = tpu.matmul %51, %11, %cst_22 {dimension_numbers = #tpu.dot_dimension_numbers<[1], [0], [0], [1], [0, 0, 1, 1], [], []>} : vector<8x128xbf16>, vector<128x384xbf16>, vector<8x384xf32> -> vector<8x384xf32>
    %53 = vector.extract_strided_slice %50 {offsets = [0, 0], sizes = [8, 128], strides = [1, 1]} : vector<8x384xf32> to vector<8x128xf32>
    %54 = vector.extract_strided_slice %52 {offsets = [0, 0], sizes = [8, 128], strides = [1, 1]} : vector<8x384xf32> to vector<8x128xf32>
    %55 = arith.addf %53, %54 : vector<8x128xf32>
    %56 = arith.negf %55 : vector<8x128xf32>
    %57 = math.exp %56 : vector<8x128xf32>
    %cst_23 = arith.constant 1.000000e+00 : f32
    %58 = vector.broadcast %cst_23 : f32 to vector<8x128xf32>
    %59 = arith.addf %58, %57 : vector<8x128xf32>
    %60 = arith.divf %58, %59 : vector<8x128xf32>
    %61 = vector.extract_strided_slice %50 {offsets = [0, 128], sizes = [8, 128], strides = [1, 1]} : vector<8x384xf32> to vector<8x128xf32>
    %62 = vector.extract_strided_slice %52 {offsets = [0, 128], sizes = [8, 128], strides = [1, 1]} : vector<8x384xf32> to vector<8x128xf32>
    %63 = arith.addf %61, %62 : vector<8x128xf32>
    %64 = arith.negf %63 : vector<8x128xf32>
    %65 = math.exp %64 : vector<8x128xf32>
    %cst_24 = arith.constant 1.000000e+00 : f32
    %66 = vector.broadcast %cst_24 : f32 to vector<8x128xf32>
    %67 = arith.addf %66, %65 : vector<8x128xf32>
    %68 = arith.divf %66, %67 : vector<8x128xf32>
    %69 = vector.extract_strided_slice %50 {offsets = [0, 256], sizes = [8, 128], strides = [1, 1]} : vector<8x384xf32> to vector<8x128xf32>
    %70 = vector.extract_strided_slice %52 {offsets = [0, 256], sizes = [8, 128], strides = [1, 1]} : vector<8x384xf32> to vector<8x128xf32>
    %71 = arith.addf %70, %14 : vector<8x128xf32>
    %72 = arith.mulf %60, %71 : vector<8x128xf32>
    %73 = arith.addf %69, %72 : vector<8x128xf32>
    %74 = math.tanh %73 : vector<8x128xf32>
    %75 = arith.subf %46, %74 : vector<8x128xf32>
    %76 = arith.mulf %68, %75 : vector<8x128xf32>
    %77 = arith.addf %74, %76 : vector<8x128xf32>
    %c2_i32 = arith.constant 2 : i32
    %c8_i32_25 = arith.constant 8 : i32
    %78 = arith.muli %c2_i32, %c8_i32_25 : i32
    %79 = tpu.assume_multiple %78, 8 : i32
    %80 = arith.index_cast %79 : i32 to index
    %c0_26 = arith.constant 0 : index
    %81 = vector.load %arg10[%80, %c0_26] : memref<64x384xf32, #tpu.memory_space<vmem>>, vector<8x384xf32>
    %82 = arith.truncf %77 : vector<8x128xf32> to vector<8x128xbf16>
    %cst_27 = arith.constant dense<0.000000e+00> : vector<8x384xf32>
    %83 = tpu.matmul %82, %11, %cst_27 {dimension_numbers = #tpu.dot_dimension_numbers<[1], [0], [0], [1], [0, 0, 1, 1], [], []>} : vector<8x128xbf16>, vector<128x384xbf16>, vector<8x384xf32> -> vector<8x384xf32>
    %84 = vector.extract_strided_slice %81 {offsets = [0, 0], sizes = [8, 128], strides = [1, 1]} : vector<8x384xf32> to vector<8x128xf32>
    %85 = vector.extract_strided_slice %83 {offsets = [0, 0], sizes = [8, 128], strides = [1, 1]} : vector<8x384xf32> to vector<8x128xf32>
    %86 = arith.addf %84, %85 : vector<8x128xf32>
    %87 = arith.negf %86 : vector<8x128xf32>
    %88 = math.exp %87 : vector<8x128xf32>
    %cst_28 = arith.constant 1.000000e+00 : f32
    %89 = vector.broadcast %cst_28 : f32 to vector<8x128xf32>
    %90 = arith.addf %89, %88 : vector<8x128xf32>
    %91 = arith.divf %89, %90 : vector<8x128xf32>
    %92 = vector.extract_strided_slice %81 {offsets = [0, 128], sizes = [8, 128], strides = [1, 1]} : vector<8x384xf32> to vector<8x128xf32>
    %93 = vector.extract_strided_slice %83 {offsets = [0, 128], sizes = [8, 128], strides = [1, 1]} : vector<8x384xf32> to vector<8x128xf32>
    %94 = arith.addf %92, %93 : vector<8x128xf32>
    %95 = arith.negf %94 : vector<8x128xf32>
    %96 = math.exp %95 : vector<8x128xf32>
    %cst_29 = arith.constant 1.000000e+00 : f32
    %97 = vector.broadcast %cst_29 : f32 to vector<8x128xf32>
    %98 = arith.addf %97, %96 : vector<8x128xf32>
    %99 = arith.divf %97, %98 : vector<8x128xf32>
    %100 = vector.extract_strided_slice %81 {offsets = [0, 256], sizes = [8, 128], strides = [1, 1]} : vector<8x384xf32> to vector<8x128xf32>
    %101 = vector.extract_strided_slice %83 {offsets = [0, 256], sizes = [8, 128], strides = [1, 1]} : vector<8x384xf32> to vector<8x128xf32>
    %102 = arith.addf %101, %14 : vector<8x128xf32>
    %103 = arith.mulf %91, %102 : vector<8x128xf32>
    %104 = arith.addf %100, %103 : vector<8x128xf32>
    %105 = math.tanh %104 : vector<8x128xf32>
    %106 = arith.subf %77, %105 : vector<8x128xf32>
    %107 = arith.mulf %99, %106 : vector<8x128xf32>
    %108 = arith.addf %105, %107 : vector<8x128xf32>
    %c3_i32 = arith.constant 3 : i32
    %c8_i32_30 = arith.constant 8 : i32
    %109 = arith.muli %c3_i32, %c8_i32_30 : i32
    %110 = tpu.assume_multiple %109, 8 : i32
    %111 = arith.index_cast %110 : i32 to index
    %c0_31 = arith.constant 0 : index
    %112 = vector.load %arg10[%111, %c0_31] : memref<64x384xf32, #tpu.memory_space<vmem>>, vector<8x384xf32>
    %113 = arith.truncf %108 : vector<8x128xf32> to vector<8x128xbf16>
    %cst_32 = arith.constant dense<0.000000e+00> : vector<8x384xf32>
    %114 = tpu.matmul %113, %11, %cst_32 {dimension_numbers = #tpu.dot_dimension_numbers<[1], [0], [0], [1], [0, 0, 1, 1], [], []>} : vector<8x128xbf16>, vector<128x384xbf16>, vector<8x384xf32> -> vector<8x384xf32>
    %115 = vector.extract_strided_slice %112 {offsets = [0, 0], sizes = [8, 128], strides = [1, 1]} : vector<8x384xf32> to vector<8x128xf32>
    %116 = vector.extract_strided_slice %114 {offsets = [0, 0], sizes = [8, 128], strides = [1, 1]} : vector<8x384xf32> to vector<8x128xf32>
    %117 = arith.addf %115, %116 : vector<8x128xf32>
    %118 = arith.negf %117 : vector<8x128xf32>
    %119 = math.exp %118 : vector<8x128xf32>
    %cst_33 = arith.constant 1.000000e+00 : f32
    %120 = vector.broadcast %cst_33 : f32 to vector<8x128xf32>
    %121 = arith.addf %120, %119 : vector<8x128xf32>
    %122 = arith.divf %120, %121 : vector<8x128xf32>
    %123 = vector.extract_strided_slice %112 {offsets = [0, 128], sizes = [8, 128], strides = [1, 1]} : vector<8x384xf32> to vector<8x128xf32>
    %124 = vector.extract_strided_slice %114 {offsets = [0, 128], sizes = [8, 128], strides = [1, 1]} : vector<8x384xf32> to vector<8x128xf32>
    %125 = arith.addf %123, %124 : vector<8x128xf32>
    %126 = arith.negf %125 : vector<8x128xf32>
    %127 = math.exp %126 : vector<8x128xf32>
    %cst_34 = arith.constant 1.000000e+00 : f32
    %128 = vector.broadcast %cst_34 : f32 to vector<8x128xf32>
    %129 = arith.addf %128, %127 : vector<8x128xf32>
    %130 = arith.divf %128, %129 : vector<8x128xf32>
    %131 = vector.extract_strided_slice %112 {offsets = [0, 256], sizes = [8, 128], strides = [1, 1]} : vector<8x384xf32> to vector<8x128xf32>
    %132 = vector.extract_strided_slice %114 {offsets = [0, 256], sizes = [8, 128], strides = [1, 1]} : vector<8x384xf32> to vector<8x128xf32>
    %133 = arith.addf %132, %14 : vector<8x128xf32>
    %134 = arith.mulf %122, %133 : vector<8x128xf32>
    %135 = arith.addf %131, %134 : vector<8x128xf32>
    %136 = math.tanh %135 : vector<8x128xf32>
    %137 = arith.subf %108, %136 : vector<8x128xf32>
    %138 = arith.mulf %130, %137 : vector<8x128xf32>
    %139 = arith.addf %136, %138 : vector<8x128xf32>
    %c4_i32 = arith.constant 4 : i32
    %c8_i32_35 = arith.constant 8 : i32
    %140 = arith.muli %c4_i32, %c8_i32_35 : i32
    %141 = tpu.assume_multiple %140, 8 : i32
    %142 = arith.index_cast %141 : i32 to index
    %c0_36 = arith.constant 0 : index
    %143 = vector.load %arg10[%142, %c0_36] : memref<64x384xf32, #tpu.memory_space<vmem>>, vector<8x384xf32>
    %144 = arith.truncf %139 : vector<8x128xf32> to vector<8x128xbf16>
    %cst_37 = arith.constant dense<0.000000e+00> : vector<8x384xf32>
    %145 = tpu.matmul %144, %11, %cst_37 {dimension_numbers = #tpu.dot_dimension_numbers<[1], [0], [0], [1], [0, 0, 1, 1], [], []>} : vector<8x128xbf16>, vector<128x384xbf16>, vector<8x384xf32> -> vector<8x384xf32>
    %146 = vector.extract_strided_slice %143 {offsets = [0, 0], sizes = [8, 128], strides = [1, 1]} : vector<8x384xf32> to vector<8x128xf32>
    %147 = vector.extract_strided_slice %145 {offsets = [0, 0], sizes = [8, 128], strides = [1, 1]} : vector<8x384xf32> to vector<8x128xf32>
    %148 = arith.addf %146, %147 : vector<8x128xf32>
    %149 = arith.negf %148 : vector<8x128xf32>
    %150 = math.exp %149 : vector<8x128xf32>
    %cst_38 = arith.constant 1.000000e+00 : f32
    %151 = vector.broadcast %cst_38 : f32 to vector<8x128xf32>
    %152 = arith.addf %151, %150 : vector<8x128xf32>
    %153 = arith.divf %151, %152 : vector<8x128xf32>
    %154 = vector.extract_strided_slice %143 {offsets = [0, 128], sizes = [8, 128], strides = [1, 1]} : vector<8x384xf32> to vector<8x128xf32>
    %155 = vector.extract_strided_slice %145 {offsets = [0, 128], sizes = [8, 128], strides = [1, 1]} : vector<8x384xf32> to vector<8x128xf32>
    %156 = arith.addf %154, %155 : vector<8x128xf32>
    %157 = arith.negf %156 : vector<8x128xf32>
    %158 = math.exp %157 : vector<8x128xf32>
    %cst_39 = arith.constant 1.000000e+00 : f32
    %159 = vector.broadcast %cst_39 : f32 to vector<8x128xf32>
    %160 = arith.addf %159, %158 : vector<8x128xf32>
    %161 = arith.divf %159, %160 : vector<8x128xf32>
    %162 = vector.extract_strided_slice %143 {offsets = [0, 256], sizes = [8, 128], strides = [1, 1]} : vector<8x384xf32> to vector<8x128xf32>
    %163 = vector.extract_strided_slice %145 {offsets = [0, 256], sizes = [8, 128], strides = [1, 1]} : vector<8x384xf32> to vector<8x128xf32>
    %164 = arith.addf %163, %14 : vector<8x128xf32>
    %165 = arith.mulf %153, %164 : vector<8x128xf32>
    %166 = arith.addf %162, %165 : vector<8x128xf32>
    %167 = math.tanh %166 : vector<8x128xf32>
    %168 = arith.subf %139, %167 : vector<8x128xf32>
    %169 = arith.mulf %161, %168 : vector<8x128xf32>
    %170 = arith.addf %167, %169 : vector<8x128xf32>
    %c5_i32 = arith.constant 5 : i32
    %c8_i32_40 = arith.constant 8 : i32
    %171 = arith.muli %c5_i32, %c8_i32_40 : i32
    %172 = tpu.assume_multiple %171, 8 : i32
    %173 = arith.index_cast %172 : i32 to index
    %c0_41 = arith.constant 0 : index
    %174 = vector.load %arg10[%173, %c0_41] : memref<64x384xf32, #tpu.memory_space<vmem>>, vector<8x384xf32>
    %175 = arith.truncf %170 : vector<8x128xf32> to vector<8x128xbf16>
    %cst_42 = arith.constant dense<0.000000e+00> : vector<8x384xf32>
    %176 = tpu.matmul %175, %11, %cst_42 {dimension_numbers = #tpu.dot_dimension_numbers<[1], [0], [0], [1], [0, 0, 1, 1], [], []>} : vector<8x128xbf16>, vector<128x384xbf16>, vector<8x384xf32> -> vector<8x384xf32>
    %177 = vector.extract_strided_slice %174 {offsets = [0, 0], sizes = [8, 128], strides = [1, 1]} : vector<8x384xf32> to vector<8x128xf32>
    %178 = vector.extract_strided_slice %176 {offsets = [0, 0], sizes = [8, 128], strides = [1, 1]} : vector<8x384xf32> to vector<8x128xf32>
    %179 = arith.addf %177, %178 : vector<8x128xf32>
    %180 = arith.negf %179 : vector<8x128xf32>
    %181 = math.exp %180 : vector<8x128xf32>
    %cst_43 = arith.constant 1.000000e+00 : f32
    %182 = vector.broadcast %cst_43 : f32 to vector<8x128xf32>
    %183 = arith.addf %182, %181 : vector<8x128xf32>
    %184 = arith.divf %182, %183 : vector<8x128xf32>
    %185 = vector.extract_strided_slice %174 {offsets = [0, 128], sizes = [8, 128], strides = [1, 1]} : vector<8x384xf32> to vector<8x128xf32>
    %186 = vector.extract_strided_slice %176 {offsets = [0, 128], sizes = [8, 128], strides = [1, 1]} : vector<8x384xf32> to vector<8x128xf32>
    %187 = arith.addf %185, %186 : vector<8x128xf32>
    %188 = arith.negf %187 : vector<8x128xf32>
    %189 = math.exp %188 : vector<8x128xf32>
    %cst_44 = arith.constant 1.000000e+00 : f32
    %190 = vector.broadcast %cst_44 : f32 to vector<8x128xf32>
    %191 = arith.addf %190, %189 : vector<8x128xf32>
    %192 = arith.divf %190, %191 : vector<8x128xf32>
    %193 = vector.extract_strided_slice %174 {offsets = [0, 256], sizes = [8, 128], strides = [1, 1]} : vector<8x384xf32> to vector<8x128xf32>
    %194 = vector.extract_strided_slice %176 {offsets = [0, 256], sizes = [8, 128], strides = [1, 1]} : vector<8x384xf32> to vector<8x128xf32>
    %195 = arith.addf %194, %14 : vector<8x128xf32>
    %196 = arith.mulf %184, %195 : vector<8x128xf32>
    %197 = arith.addf %193, %196 : vector<8x128xf32>
    %198 = math.tanh %197 : vector<8x128xf32>
    %199 = arith.subf %170, %198 : vector<8x128xf32>
    %200 = arith.mulf %192, %199 : vector<8x128xf32>
    %201 = arith.addf %198, %200 : vector<8x128xf32>
    %c6_i32 = arith.constant 6 : i32
    %c8_i32_45 = arith.constant 8 : i32
    %202 = arith.muli %c6_i32, %c8_i32_45 : i32
    %203 = tpu.assume_multiple %202, 8 : i32
    %204 = arith.index_cast %203 : i32 to index
    %c0_46 = arith.constant 0 : index
    %205 = vector.load %arg10[%204, %c0_46] : memref<64x384xf32, #tpu.memory_space<vmem>>, vector<8x384xf32>
    %206 = arith.truncf %201 : vector<8x128xf32> to vector<8x128xbf16>
    %cst_47 = arith.constant dense<0.000000e+00> : vector<8x384xf32>
    %207 = tpu.matmul %206, %11, %cst_47 {dimension_numbers = #tpu.dot_dimension_numbers<[1], [0], [0], [1], [0, 0, 1, 1], [], []>} : vector<8x128xbf16>, vector<128x384xbf16>, vector<8x384xf32> -> vector<8x384xf32>
    %208 = vector.extract_strided_slice %205 {offsets = [0, 0], sizes = [8, 128], strides = [1, 1]} : vector<8x384xf32> to vector<8x128xf32>
    %209 = vector.extract_strided_slice %207 {offsets = [0, 0], sizes = [8, 128], strides = [1, 1]} : vector<8x384xf32> to vector<8x128xf32>
    %210 = arith.addf %208, %209 : vector<8x128xf32>
    %211 = arith.negf %210 : vector<8x128xf32>
    %212 = math.exp %211 : vector<8x128xf32>
    %cst_48 = arith.constant 1.000000e+00 : f32
    %213 = vector.broadcast %cst_48 : f32 to vector<8x128xf32>
    %214 = arith.addf %213, %212 : vector<8x128xf32>
    %215 = arith.divf %213, %214 : vector<8x128xf32>
    %216 = vector.extract_strided_slice %205 {offsets = [0, 128], sizes = [8, 128], strides = [1, 1]} : vector<8x384xf32> to vector<8x128xf32>
    %217 = vector.extract_strided_slice %207 {offsets = [0, 128], sizes = [8, 128], strides = [1, 1]} : vector<8x384xf32> to vector<8x128xf32>
    %218 = arith.addf %216, %217 : vector<8x128xf32>
    %219 = arith.negf %218 : vector<8x128xf32>
    %220 = math.exp %219 : vector<8x128xf32>
    %cst_49 = arith.constant 1.000000e+00 : f32
    %221 = vector.broadcast %cst_49 : f32 to vector<8x128xf32>
    %222 = arith.addf %221, %220 : vector<8x128xf32>
    %223 = arith.divf %221, %222 : vector<8x128xf32>
    %224 = vector.extract_strided_slice %205 {offsets = [0, 256], sizes = [8, 128], strides = [1, 1]} : vector<8x384xf32> to vector<8x128xf32>
    %225 = vector.extract_strided_slice %207 {offsets = [0, 256], sizes = [8, 128], strides = [1, 1]} : vector<8x384xf32> to vector<8x128xf32>
    %226 = arith.addf %225, %14 : vector<8x128xf32>
    %227 = arith.mulf %215, %226 : vector<8x128xf32>
    %228 = arith.addf %224, %227 : vector<8x128xf32>
    %229 = math.tanh %228 : vector<8x128xf32>
    %230 = arith.subf %201, %229 : vector<8x128xf32>
    %231 = arith.mulf %223, %230 : vector<8x128xf32>
    %232 = arith.addf %229, %231 : vector<8x128xf32>
    %c7_i32 = arith.constant 7 : i32
    %c8_i32_50 = arith.constant 8 : i32
    %233 = arith.muli %c7_i32, %c8_i32_50 : i32
    %234 = tpu.assume_multiple %233, 8 : i32
    %235 = arith.index_cast %234 : i32 to index
    %c0_51 = arith.constant 0 : index
    %236 = vector.load %arg10[%235, %c0_51] : memref<64x384xf32, #tpu.memory_space<vmem>>, vector<8x384xf32>
    %237 = arith.truncf %232 : vector<8x128xf32> to vector<8x128xbf16>
    %cst_52 = arith.constant dense<0.000000e+00> : vector<8x384xf32>
    %238 = tpu.matmul %237, %11, %cst_52 {dimension_numbers = #tpu.dot_dimension_numbers<[1], [0], [0], [1], [0, 0, 1, 1], [], []>} : vector<8x128xbf16>, vector<128x384xbf16>, vector<8x384xf32> -> vector<8x384xf32>
    %239 = vector.extract_strided_slice %236 {offsets = [0, 0], sizes = [8, 128], strides = [1, 1]} : vector<8x384xf32> to vector<8x128xf32>
    %240 = vector.extract_strided_slice %238 {offsets = [0, 0], sizes = [8, 128], strides = [1, 1]} : vector<8x384xf32> to vector<8x128xf32>
    %241 = arith.addf %239, %240 : vector<8x128xf32>
    %242 = arith.negf %241 : vector<8x128xf32>
    %243 = math.exp %242 : vector<8x128xf32>
    %cst_53 = arith.constant 1.000000e+00 : f32
    %244 = vector.broadcast %cst_53 : f32 to vector<8x128xf32>
    %245 = arith.addf %244, %243 : vector<8x128xf32>
    %246 = arith.divf %244, %245 : vector<8x128xf32>
    %247 = vector.extract_strided_slice %236 {offsets = [0, 128], sizes = [8, 128], strides = [1, 1]} : vector<8x384xf32> to vector<8x128xf32>
    %248 = vector.extract_strided_slice %238 {offsets = [0, 128], sizes = [8, 128], strides = [1, 1]} : vector<8x384xf32> to vector<8x128xf32>
    %249 = arith.addf %247, %248 : vector<8x128xf32>
    %250 = arith.negf %249 : vector<8x128xf32>
    %251 = math.exp %250 : vector<8x128xf32>
    %cst_54 = arith.constant 1.000000e+00 : f32
    %252 = vector.broadcast %cst_54 : f32 to vector<8x128xf32>
    %253 = arith.addf %252, %251 : vector<8x128xf32>
    %254 = arith.divf %252, %253 : vector<8x128xf32>
    %255 = vector.extract_strided_slice %236 {offsets = [0, 256], sizes = [8, 128], strides = [1, 1]} : vector<8x384xf32> to vector<8x128xf32>
    %256 = vector.extract_strided_slice %238 {offsets = [0, 256], sizes = [8, 128], strides = [1, 1]} : vector<8x384xf32> to vector<8x128xf32>
    %257 = arith.addf %256, %14 : vector<8x128xf32>
    %258 = arith.mulf %246, %257 : vector<8x128xf32>
    %259 = arith.addf %255, %258 : vector<8x128xf32>
    %260 = math.tanh %259 : vector<8x128xf32>
    %261 = arith.subf %232, %260 : vector<8x128xf32>
    %262 = arith.mulf %254, %261 : vector<8x128xf32>
    %263 = arith.addf %260, %262 : vector<8x128xf32>
    %c8_i32_55 = arith.constant 8 : i32
    %c0_56 = arith.constant 0 : index
    %c0_57 = arith.constant 0 : index
    %264 = vector.load %arg11[%c0_56, %c0_57] : memref<8x128xf32, #tpu.memory_space<vmem>>, vector<8x128xf32>
    tpu.vector_store %arg11[%c0_56, %c0_57], %263 {strides = array<i32>} : memref<8x128xf32, #tpu.memory_space<vmem>>, vector<8x128xf32>,
    %c0_i32_58 = arith.constant 0 : i32
    %265 = arith.cmpi eq, %arg1, %c0_i32_58 : i32
    %266 = arith.extui %265 : i1 to i32
    %c0_i32_59 = arith.constant 0 : i32
    %267 = arith.cmpi ne, %266, %c0_i32_59 : i32
    scf.if %267 {
      %268 = arith.truncf %263 : vector<8x128xf32> to vector<8x128xbf16>
      %c0_60 = arith.constant 0 : index
      %c0_61 = arith.constant 0 : index
      %269 = vector.load %arg7[%c0_60, %c0_61] : memref<128x128xbf16, #tpu.memory_space<vmem>>, vector<128x128xbf16>
      %cst_62 = arith.constant dense<0.000000e+00> : vector<8x128xf32>
      %270 = tpu.matmul %268, %269, %cst_62 {dimension_numbers = #tpu.dot_dimension_numbers<[1], [0], [0], [1], [0, 0, 1, 1], [], []>} : vector<8x128xbf16>, vector<128x128xbf16>, vector<8x128xf32> -> vector<8x128xf32>
      %c0_63 = arith.constant 0 : index
      %c0_64 = arith.constant 0 : index
      %271 = vector.load %arg8[%c0_63, %c0_64] : memref<1x128xf32, #tpu.memory_space<vmem>>, vector<1x128xf32>
      %272 = vector.broadcast %271 : vector<1x128xf32> to vector<8x128xf32>
      %273 = arith.addf %270, %272 : vector<8x128xf32>
      %c0_65 = arith.constant 0 : index
      %c0_66 = arith.constant 0 : index
      %274 = vector.load %arg9[%c0_65, %c0_66] : memref<8x128xf32, #tpu.memory_space<vmem>>, vector<8x128xf32>
      tpu.vector_store %arg9[%c0_65, %c0_66], %273 {strides = array<i32>} : memref<8x128xf32, #tpu.memory_space<vmem>>, vector<8x128xf32>,
    } else {
    }
    return
  }
  func.func @transform_0(%arg0: i32, %arg1: i32) -> (i32, i32, i32) {
    %c0_i32 = arith.constant 0 : i32
    %c0_i32_0 = arith.constant 0 : i32
    return %arg1, %arg0, %c0_i32 : i32, i32, i32
  }
  func.func @transform_1(%arg0: i32, %arg1: i32) -> (i32, i32) {
    %c0_i32 = arith.constant 0 : i32
    %c0_i32_0 = arith.constant 0 : i32
    %c0_i32_1 = arith.constant 0 : i32
    return %c0_i32, %c0_i32_0 : i32, i32
  }
  func.func @transform_2(%arg0: i32, %arg1: i32) -> (i32, i32) {
    %c0_i32 = arith.constant 0 : i32
    %c0_i32_0 = arith.constant 0 : i32
    %c0_i32_1 = arith.constant 0 : i32
    return %c0_i32, %c0_i32_0 : i32, i32
  }
  func.func @transform_3(%arg0: i32, %arg1: i32) -> (i32, i32) {
    %c0_i32 = arith.constant 0 : i32
    %c0_i32_0 = arith.constant 0 : i32
    %c0_i32_1 = arith.constant 0 : i32
    return %c0_i32, %c0_i32_0 : i32, i32
  }
  func.func @transform_4(%arg0: i32, %arg1: i32) -> (i32, i32) {
    %c0_i32 = arith.constant 0 : i32
    %c0_i32_0 = arith.constant 0 : i32
    %c0_i32_1 = arith.constant 0 : i32
    return %c0_i32, %c0_i32_0 : i32, i32
  }
  func.func @transform_5(%arg0: i32, %arg1: i32) -> (i32, i32) {
    %c0_i32 = arith.constant 0 : i32
    %c0_i32_0 = arith.constant 0 : i32
    %c0_i32_1 = arith.constant 0 : i32
    return %c0_i32, %c0_i32_0 : i32, i32
  }
  func.func @transform_6(%arg0: i32, %arg1: i32) -> (i32, i32) {
    %c0_i32 = arith.constant 0 : i32
    %c0_i32_0 = arith.constant 0 : i32
    %c0_i32_1 = arith.constant 0 : i32
    return %c0_i32, %c0_i32_0 : i32, i32
  }
  func.func @transform_7(%arg0: i32, %arg1: i32) -> (i32, i32) {
    %c0_i32 = arith.constant 0 : i32
    %c0_i32_0 = arith.constant 0 : i32
    return %arg0, %c0_i32 : i32, i32
  }
}

module attributes {stable_mosaic.version = 11 : i64} {
  func.func @_gru_last_fc_kernel(%arg0: i32, %arg1: i32, %arg2: memref<8x8x128xbf16, #tpu.memory_space<vmem>>, %arg3: memref<128x384xbf16, #tpu.memory_space<vmem>>, %arg4: memref<1x384xf32, #tpu.memory_space<vmem>>, %arg5: memref<128x384xbf16, #tpu.memory_space<vmem>>, %arg6: memref<1x128xf32, #tpu.memory_space<vmem>>, %arg7: memref<128x128xbf16, #tpu.memory_space<vmem>>, %arg8: memref<1x128xf32, #tpu.memory_space<vmem>>, %arg9: memref<8x128xf32, #tpu.memory_space<vmem>>, %arg10: memref<64x384xf32, #tpu.memory_space<vmem>>, %arg11: memref<8x128xf32, #tpu.memory_space<vmem>>) attributes {dimension_semantics = [#tpu.dimension_semantics<parallel>, #tpu.dimension_semantics<arbitrary>], iteration_bounds = array<i64: 1, 1>, scalar_prefetch = 0 : i64, scratch_operands = 2 : i64, tpu.core_type = #tpu.core_type<tc>, window_params = [{transform_indices = @transform_0, window_bounds = array<i64: 8, 8, 128>}, {pipeline_mode = #tpu.pipeline_mode<synchronous>, transform_indices = @transform_1, window_bounds = array<i64: 128, 384>}, {pipeline_mode = #tpu.pipeline_mode<synchronous>, transform_indices = @transform_2, window_bounds = array<i64: 1, 384>}, {pipeline_mode = #tpu.pipeline_mode<synchronous>, transform_indices = @transform_3, window_bounds = array<i64: 128, 384>}, {pipeline_mode = #tpu.pipeline_mode<synchronous>, transform_indices = @transform_4, window_bounds = array<i64: 1, 128>}, {pipeline_mode = #tpu.pipeline_mode<synchronous>, transform_indices = @transform_5, window_bounds = array<i64: 128, 128>}, {pipeline_mode = #tpu.pipeline_mode<synchronous>, transform_indices = @transform_6, window_bounds = array<i64: 1, 128>}, {transform_indices = @transform_7, window_bounds = array<i64: 8, 128>}]} {
    %c0_i32 = arith.constant 0 : i32
    %0 = arith.cmpi eq, %arg1, %c0_i32 : i32
    %1 = arith.extui %0 : i1 to i32
    %c0_i32_0 = arith.constant 0 : i32
    %2 = arith.cmpi ne, %1, %c0_i32_0 : i32
    scf.if %2 {
      %cst_60 = arith.constant 0.000000e+00 : f32
      %268 = vector.broadcast %cst_60 : f32 to vector<8x128xf32>
      %c0_61 = arith.constant 0 : index
      %c0_62 = arith.constant 0 : index
      %269 = vector.load %arg11[%c0_61, %c0_62] : memref<8x128xf32, #tpu.memory_space<vmem>>, vector<8x128xf32>
      tpu.vector_store %arg11[%c0_61, %c0_62], %268 {strides = array<i32>} : memref<8x128xf32, #tpu.memory_space<vmem>>, vector<8x128xf32>,
    } else {
    }
    %c0 = arith.constant 0 : index
    %c0_1 = arith.constant 0 : index
    %c0_2 = arith.constant 0 : index
    %3 = vector.load %arg2[%c0, %c0_1, %c0_2] : memref<8x8x128xbf16, #tpu.memory_space<vmem>>, vector<8x8x128xbf16>
    %4 = vector.shape_cast %3 : vector<8x8x128xbf16> to vector<64x128xbf16>
    %c0_3 = arith.constant 0 : index
    %c0_4 = arith.constant 0 : index
    %5 = vector.load %arg3[%c0_3, %c0_4] : memref<128x384xbf16, #tpu.memory_space<vmem>>, vector<128x384xbf16>
    %cst = arith.constant dense<0.000000e+00> : vector<64x384xf32>
    %6 = tpu.matmul %4, %5, %cst {dimension_numbers = #tpu.dot_dimension_numbers<[1], [0], [0], [1], [0, 0, 1, 1], [], []>} : vector<64x128xbf16>, vector<128x384xbf16>, vector<64x384xf32> -> vector<64x384xf32>
    %c0_5 = arith.constant 0 : index
    %c0_6 = arith.constant 0 : index
    %7 = vector.load %arg4[%c0_5, %c0_6] : memref<1x384xf32, #tpu.memory_space<vmem>>, vector<1x384xf32>
    %8 = vector.broadcast %7 : vector<1x384xf32> to vector<64x384xf32>
    %9 = arith.addf %6, %8 : vector<64x384xf32>
    %c0_7 = arith.constant 0 : index
    %c0_8 = arith.constant 0 : index
    %10 = vector.load %arg10[%c0_7, %c0_8] : memref<64x384xf32, #tpu.memory_space<vmem>>, vector<64x384xf32>
    tpu.vector_store %arg10[%c0_7, %c0_8], %9 {strides = array<i32>} : memref<64x384xf32, #tpu.memory_space<vmem>>, vector<64x384xf32>,
    %c0_9 = arith.constant 0 : index
    %c0_10 = arith.constant 0 : index
    %11 = vector.load %arg5[%c0_9, %c0_10] : memref<128x384xbf16, #tpu.memory_space<vmem>>, vector<128x384xbf16>
    %c0_11 = arith.constant 0 : index
    %c0_12 = arith.constant 0 : index
    %12 = vector.load %arg6[%c0_11, %c0_12] : memref<1x128xf32, #tpu.memory_space<vmem>>, vector<1x128xf32>
    %13 = vector.shape_cast %12 : vector<1x128xf32> to vector<1x128xf32>
    %14 = vector.broadcast %13 : vector<1x128xf32> to vector<8x128xf32>
    %c0_13 = arith.constant 0 : index
    %c0_14 = arith.constant 0 : index
    %15 = vector.load %arg11[%c0_13, %c0_14] : memref<8x128xf32, #tpu.memory_space<vmem>>, vector<8x128xf32>
    %c0_i32_15 = arith.constant 0 : i32
    %c8_i32 = arith.constant 8 : i32
    %16 = arith.muli %c0_i32_15, %c8_i32 : i32
    %17 = tpu.assume_multiple %16, 8 : i32
    %18 = arith.index_cast %17 : i32 to index
    %c0_16 = arith.constant 0 : index
    %19 = vector.load %arg10[%18, %c0_16] : memref<64x384xf32, #tpu.memory_space<vmem>>, vector<8x384xf32>
    %20 = arith.truncf %15 : vector<8x128xf32> to vector<8x128xbf16>
    %cst_17 = arith.constant dense<0.000000e+00> : vector<8x384xf32>
    %21 = tpu.matmul %20, %11, %cst_17 {dimension_numbers = #tpu.dot_dimension_numbers<[1], [0], [0], [1], [0, 0, 1, 1], [], []>} : vector<8x128xbf16>, vector<128x384xbf16>, vector<8x384xf32> -> vector<8x384xf32>
    %22 = vector.extract_strided_slice %19 {offsets = [0, 0], sizes = [8, 128], strides = [1, 1]} : vector<8x384xf32> to vector<8x128xf32>
    %23 = vector.extract_strided_slice %21 {offsets = [0, 0], sizes = [8, 128], strides = [1, 1]} : vector<8x384xf32> to vector<8x128xf32>
    %24 = arith.addf %22, %23 : vector<8x128xf32>
    %25 = arith.negf %24 : vector<8x128xf32>
    %26 = math.exp %25 : vector<8x128xf32>
    %cst_18 = arith.constant 1.000000e+00 : f32
    %27 = vector.broadcast %cst_18 : f32 to vector<8x128xf32>
    %28 = arith.addf %27, %26 : vector<8x128xf32>
    %29 = arith.divf %27, %28 : vector<8x128xf32>
    %30 = vector.extract_strided_slice %19 {offsets = [0, 128], sizes = [8, 128], strides = [1, 1]} : vector<8x384xf32> to vector<8x128xf32>
    %31 = vector.extract_strided_slice %21 {offsets = [0, 128], sizes = [8, 128], strides = [1, 1]} : vector<8x384xf32> to vector<8x128xf32>
    %32 = arith.addf %30, %31 : vector<8x128xf32>
    %33 = arith.negf %32 : vector<8x128xf32>
    %34 = math.exp %33 : vector<8x128xf32>
    %cst_19 = arith.constant 1.000000e+00 : f32
    %35 = vector.broadcast %cst_19 : f32 to vector<8x128xf32>
    %36 = arith.addf %35, %34 : vector<8x128xf32>
    %37 = arith.divf %35, %36 : vector<8x128xf32>
    %38 = vector.extract_strided_slice %19 {offsets = [0, 256], sizes = [8, 128], strides = [1, 1]} : vector<8x384xf32> to vector<8x128xf32>
    %39 = vector.extract_strided_slice %21 {offsets = [0, 256], sizes = [8, 128], strides = [1, 1]} : vector<8x384xf32> to vector<8x128xf32>
    %40 = arith.addf %39, %14 : vector<8x128xf32>
    %41 = arith.mulf %29, %40 : vector<8x128xf32>
    %42 = arith.addf %38, %41 : vector<8x128xf32>
    %43 = math.tanh %42 : vector<8x128xf32>
    %44 = arith.subf %15, %43 : vector<8x128xf32>
    %45 = arith.mulf %37, %44 : vector<8x128xf32>
    %46 = arith.addf %43, %45 : vector<8x128xf32>
    %c1_i32 = arith.constant 1 : i32
    %c8_i32_20 = arith.constant 8 : i32
    %47 = arith.muli %c1_i32, %c8_i32_20 : i32
    %48 = tpu.assume_multiple %47, 8 : i32
    %49 = arith.index_cast %48 : i32 to index
    %c0_21 = arith.constant 0 : index
    %50 = vector.load %arg10[%49, %c0_21] : memref<64x384xf32, #tpu.memory_space<vmem>>, vector<8x384xf32>
    %51 = arith.truncf %46 : vector<8x128xf32> to vector<8x128xbf16>
    %cst_22 = arith.constant dense<0.000000e+00> : vector<8x384xf32>
    %52 = tpu.matmul %51, %11, %cst_22 {dimension_numbers = #tpu.dot_dimension_numbers<[1], [0], [0], [1], [0, 0, 1, 1], [], []>} : vector<8x128xbf16>, vector<128x384xbf16>, vector<8x384xf32> -> vector<8x384xf32>
    %53 = vector.extract_strided_slice %50 {offsets = [0, 0], sizes = [8, 128], strides = [1, 1]} : vector<8x384xf32> to vector<8x128xf32>
    %54 = vector.extract_strided_slice %52 {offsets = [0, 0], sizes = [8, 128], strides = [1, 1]} : vector<8x384xf32> to vector<8x128xf32>
    %55 = arith.addf %53, %54 : vector<8x128xf32>
    %56 = arith.negf %55 : vector<8x128xf32>
    %57 = math.exp %56 : vector<8x128xf32>
    %cst_23 = arith.constant 1.000000e+00 : f32
    %58 = vector.broadcast %cst_23 : f32 to vector<8x128xf32>
    %59 = arith.addf %58, %57 : vector<8x128xf32>
    %60 = arith.divf %58, %59 : vector<8x128xf32>
    %61 = vector.extract_strided_slice %50 {offsets = [0, 128], sizes = [8, 128], strides = [1, 1]} : vector<8x384xf32> to vector<8x128xf32>
    %62 = vector.extract_strided_slice %52 {offsets = [0, 128], sizes = [8, 128], strides = [1, 1]} : vector<8x384xf32> to vector<8x128xf32>
    %63 = arith.addf %61, %62 : vector<8x128xf32>
    %64 = arith.negf %63 : vector<8x128xf32>
    %65 = math.exp %64 : vector<8x128xf32>
    %cst_24 = arith.constant 1.000000e+00 : f32
    %66 = vector.broadcast %cst_24 : f32 to vector<8x128xf32>
    %67 = arith.addf %66, %65 : vector<8x128xf32>
    %68 = arith.divf %66, %67 : vector<8x128xf32>
    %69 = vector.extract_strided_slice %50 {offsets = [0, 256], sizes = [8, 128], strides = [1, 1]} : vector<8x384xf32> to vector<8x128xf32>
    %70 = vector.extract_strided_slice %52 {offsets = [0, 256], sizes = [8, 128], strides = [1, 1]} : vector<8x384xf32> to vector<8x128xf32>
    %71 = arith.addf %70, %14 : vector<8x128xf32>
    %72 = arith.mulf %60, %71 : vector<8x128xf32>
    %73 = arith.addf %69, %72 : vector<8x128xf32>
    %74 = math.tanh %73 : vector<8x128xf32>
    %75 = arith.subf %46, %74 : vector<8x128xf32>
    %76 = arith.mulf %68, %75 : vector<8x128xf32>
    %77 = arith.addf %74, %76 : vector<8x128xf32>
    %c2_i32 = arith.constant 2 : i32
    %c8_i32_25 = arith.constant 8 : i32
    %78 = arith.muli %c2_i32, %c8_i32_25 : i32
    %79 = tpu.assume_multiple %78, 8 : i32
    %80 = arith.index_cast %79 : i32 to index
    %c0_26 = arith.constant 0 : index
    %81 = vector.load %arg10[%80, %c0_26] : memref<64x384xf32, #tpu.memory_space<vmem>>, vector<8x384xf32>
    %82 = arith.truncf %77 : vector<8x128xf32> to vector<8x128xbf16>
    %cst_27 = arith.constant dense<0.000000e+00> : vector<8x384xf32>
    %83 = tpu.matmul %82, %11, %cst_27 {dimension_numbers = #tpu.dot_dimension_numbers<[1], [0], [0], [1], [0, 0, 1, 1], [], []>} : vector<8x128xbf16>, vector<128x384xbf16>, vector<8x384xf32> -> vector<8x384xf32>
    %84 = vector.extract_strided_slice %81 {offsets = [0, 0], sizes = [8, 128], strides = [1, 1]} : vector<8x384xf32> to vector<8x128xf32>
    %85 = vector.extract_strided_slice %83 {offsets = [0, 0], sizes = [8, 128], strides = [1, 1]} : vector<8x384xf32> to vector<8x128xf32>
    %86 = arith.addf %84, %85 : vector<8x128xf32>
    %87 = arith.negf %86 : vector<8x128xf32>
    %88 = math.exp %87 : vector<8x128xf32>
    %cst_28 = arith.constant 1.000000e+00 : f32
    %89 = vector.broadcast %cst_28 : f32 to vector<8x128xf32>
    %90 = arith.addf %89, %88 : vector<8x128xf32>
    %91 = arith.divf %89, %90 : vector<8x128xf32>
    %92 = vector.extract_strided_slice %81 {offsets = [0, 128], sizes = [8, 128], strides = [1, 1]} : vector<8x384xf32> to vector<8x128xf32>
    %93 = vector.extract_strided_slice %83 {offsets = [0, 128], sizes = [8, 128], strides = [1, 1]} : vector<8x384xf32> to vector<8x128xf32>
    %94 = arith.addf %92, %93 : vector<8x128xf32>
    %95 = arith.negf %94 : vector<8x128xf32>
    %96 = math.exp %95 : vector<8x128xf32>
    %cst_29 = arith.constant 1.000000e+00 : f32
    %97 = vector.broadcast %cst_29 : f32 to vector<8x128xf32>
    %98 = arith.addf %97, %96 : vector<8x128xf32>
    %99 = arith.divf %97, %98 : vector<8x128xf32>
    %100 = vector.extract_strided_slice %81 {offsets = [0, 256], sizes = [8, 128], strides = [1, 1]} : vector<8x384xf32> to vector<8x128xf32>
    %101 = vector.extract_strided_slice %83 {offsets = [0, 256], sizes = [8, 128], strides = [1, 1]} : vector<8x384xf32> to vector<8x128xf32>
    %102 = arith.addf %101, %14 : vector<8x128xf32>
    %103 = arith.mulf %91, %102 : vector<8x128xf32>
    %104 = arith.addf %100, %103 : vector<8x128xf32>
    %105 = math.tanh %104 : vector<8x128xf32>
    %106 = arith.subf %77, %105 : vector<8x128xf32>
    %107 = arith.mulf %99, %106 : vector<8x128xf32>
    %108 = arith.addf %105, %107 : vector<8x128xf32>
    %c3_i32 = arith.constant 3 : i32
    %c8_i32_30 = arith.constant 8 : i32
    %109 = arith.muli %c3_i32, %c8_i32_30 : i32
    %110 = tpu.assume_multiple %109, 8 : i32
    %111 = arith.index_cast %110 : i32 to index
    %c0_31 = arith.constant 0 : index
    %112 = vector.load %arg10[%111, %c0_31] : memref<64x384xf32, #tpu.memory_space<vmem>>, vector<8x384xf32>
    %113 = arith.truncf %108 : vector<8x128xf32> to vector<8x128xbf16>
    %cst_32 = arith.constant dense<0.000000e+00> : vector<8x384xf32>
    %114 = tpu.matmul %113, %11, %cst_32 {dimension_numbers = #tpu.dot_dimension_numbers<[1], [0], [0], [1], [0, 0, 1, 1], [], []>} : vector<8x128xbf16>, vector<128x384xbf16>, vector<8x384xf32> -> vector<8x384xf32>
    %115 = vector.extract_strided_slice %112 {offsets = [0, 0], sizes = [8, 128], strides = [1, 1]} : vector<8x384xf32> to vector<8x128xf32>
    %116 = vector.extract_strided_slice %114 {offsets = [0, 0], sizes = [8, 128], strides = [1, 1]} : vector<8x384xf32> to vector<8x128xf32>
    %117 = arith.addf %115, %116 : vector<8x128xf32>
    %118 = arith.negf %117 : vector<8x128xf32>
    %119 = math.exp %118 : vector<8x128xf32>
    %cst_33 = arith.constant 1.000000e+00 : f32
    %120 = vector.broadcast %cst_33 : f32 to vector<8x128xf32>
    %121 = arith.addf %120, %119 : vector<8x128xf32>
    %122 = arith.divf %120, %121 : vector<8x128xf32>
    %123 = vector.extract_strided_slice %112 {offsets = [0, 128], sizes = [8, 128], strides = [1, 1]} : vector<8x384xf32> to vector<8x128xf32>
    %124 = vector.extract_strided_slice %114 {offsets = [0, 128], sizes = [8, 128], strides = [1, 1]} : vector<8x384xf32> to vector<8x128xf32>
    %125 = arith.addf %123, %124 : vector<8x128xf32>
    %126 = arith.negf %125 : vector<8x128xf32>
    %127 = math.exp %126 : vector<8x128xf32>
    %cst_34 = arith.constant 1.000000e+00 : f32
    %128 = vector.broadcast %cst_34 : f32 to vector<8x128xf32>
    %129 = arith.addf %128, %127 : vector<8x128xf32>
    %130 = arith.divf %128, %129 : vector<8x128xf32>
    %131 = vector.extract_strided_slice %112 {offsets = [0, 256], sizes = [8, 128], strides = [1, 1]} : vector<8x384xf32> to vector<8x128xf32>
    %132 = vector.extract_strided_slice %114 {offsets = [0, 256], sizes = [8, 128], strides = [1, 1]} : vector<8x384xf32> to vector<8x128xf32>
    %133 = arith.addf %132, %14 : vector<8x128xf32>
    %134 = arith.mulf %122, %133 : vector<8x128xf32>
    %135 = arith.addf %131, %134 : vector<8x128xf32>
    %136 = math.tanh %135 : vector<8x128xf32>
    %137 = arith.subf %108, %136 : vector<8x128xf32>
    %138 = arith.mulf %130, %137 : vector<8x128xf32>
    %139 = arith.addf %136, %138 : vector<8x128xf32>
    %c4_i32 = arith.constant 4 : i32
    %c8_i32_35 = arith.constant 8 : i32
    %140 = arith.muli %c4_i32, %c8_i32_35 : i32
    %141 = tpu.assume_multiple %140, 8 : i32
    %142 = arith.index_cast %141 : i32 to index
    %c0_36 = arith.constant 0 : index
    %143 = vector.load %arg10[%142, %c0_36] : memref<64x384xf32, #tpu.memory_space<vmem>>, vector<8x384xf32>
    %144 = arith.truncf %139 : vector<8x128xf32> to vector<8x128xbf16>
    %cst_37 = arith.constant dense<0.000000e+00> : vector<8x384xf32>
    %145 = tpu.matmul %144, %11, %cst_37 {dimension_numbers = #tpu.dot_dimension_numbers<[1], [0], [0], [1], [0, 0, 1, 1], [], []>} : vector<8x128xbf16>, vector<128x384xbf16>, vector<8x384xf32> -> vector<8x384xf32>
    %146 = vector.extract_strided_slice %143 {offsets = [0, 0], sizes = [8, 128], strides = [1, 1]} : vector<8x384xf32> to vector<8x128xf32>
    %147 = vector.extract_strided_slice %145 {offsets = [0, 0], sizes = [8, 128], strides = [1, 1]} : vector<8x384xf32> to vector<8x128xf32>
    %148 = arith.addf %146, %147 : vector<8x128xf32>
    %149 = arith.negf %148 : vector<8x128xf32>
    %150 = math.exp %149 : vector<8x128xf32>
    %cst_38 = arith.constant 1.000000e+00 : f32
    %151 = vector.broadcast %cst_38 : f32 to vector<8x128xf32>
    %152 = arith.addf %151, %150 : vector<8x128xf32>
    %153 = arith.divf %151, %152 : vector<8x128xf32>
    %154 = vector.extract_strided_slice %143 {offsets = [0, 128], sizes = [8, 128], strides = [1, 1]} : vector<8x384xf32> to vector<8x128xf32>
    %155 = vector.extract_strided_slice %145 {offsets = [0, 128], sizes = [8, 128], strides = [1, 1]} : vector<8x384xf32> to vector<8x128xf32>
    %156 = arith.addf %154, %155 : vector<8x128xf32>
    %157 = arith.negf %156 : vector<8x128xf32>
    %158 = math.exp %157 : vector<8x128xf32>
    %cst_39 = arith.constant 1.000000e+00 : f32
    %159 = vector.broadcast %cst_39 : f32 to vector<8x128xf32>
    %160 = arith.addf %159, %158 : vector<8x128xf32>
    %161 = arith.divf %159, %160 : vector<8x128xf32>
    %162 = vector.extract_strided_slice %143 {offsets = [0, 256], sizes = [8, 128], strides = [1, 1]} : vector<8x384xf32> to vector<8x128xf32>
    %163 = vector.extract_strided_slice %145 {offsets = [0, 256], sizes = [8, 128], strides = [1, 1]} : vector<8x384xf32> to vector<8x128xf32>
    %164 = arith.addf %163, %14 : vector<8x128xf32>
    %165 = arith.mulf %153, %164 : vector<8x128xf32>
    %166 = arith.addf %162, %165 : vector<8x128xf32>
    %167 = math.tanh %166 : vector<8x128xf32>
    %168 = arith.subf %139, %167 : vector<8x128xf32>
    %169 = arith.mulf %161, %168 : vector<8x128xf32>
    %170 = arith.addf %167, %169 : vector<8x128xf32>
    %c5_i32 = arith.constant 5 : i32
    %c8_i32_40 = arith.constant 8 : i32
    %171 = arith.muli %c5_i32, %c8_i32_40 : i32
    %172 = tpu.assume_multiple %171, 8 : i32
    %173 = arith.index_cast %172 : i32 to index
    %c0_41 = arith.constant 0 : index
    %174 = vector.load %arg10[%173, %c0_41] : memref<64x384xf32, #tpu.memory_space<vmem>>, vector<8x384xf32>
    %175 = arith.truncf %170 : vector<8x128xf32> to vector<8x128xbf16>
    %cst_42 = arith.constant dense<0.000000e+00> : vector<8x384xf32>
    %176 = tpu.matmul %175, %11, %cst_42 {dimension_numbers = #tpu.dot_dimension_numbers<[1], [0], [0], [1], [0, 0, 1, 1], [], []>} : vector<8x128xbf16>, vector<128x384xbf16>, vector<8x384xf32> -> vector<8x384xf32>
    %177 = vector.extract_strided_slice %174 {offsets = [0, 0], sizes = [8, 128], strides = [1, 1]} : vector<8x384xf32> to vector<8x128xf32>
    %178 = vector.extract_strided_slice %176 {offsets = [0, 0], sizes = [8, 128], strides = [1, 1]} : vector<8x384xf32> to vector<8x128xf32>
    %179 = arith.addf %177, %178 : vector<8x128xf32>
    %180 = arith.negf %179 : vector<8x128xf32>
    %181 = math.exp %180 : vector<8x128xf32>
    %cst_43 = arith.constant 1.000000e+00 : f32
    %182 = vector.broadcast %cst_43 : f32 to vector<8x128xf32>
    %183 = arith.addf %182, %181 : vector<8x128xf32>
    %184 = arith.divf %182, %183 : vector<8x128xf32>
    %185 = vector.extract_strided_slice %174 {offsets = [0, 128], sizes = [8, 128], strides = [1, 1]} : vector<8x384xf32> to vector<8x128xf32>
    %186 = vector.extract_strided_slice %176 {offsets = [0, 128], sizes = [8, 128], strides = [1, 1]} : vector<8x384xf32> to vector<8x128xf32>
    %187 = arith.addf %185, %186 : vector<8x128xf32>
    %188 = arith.negf %187 : vector<8x128xf32>
    %189 = math.exp %188 : vector<8x128xf32>
    %cst_44 = arith.constant 1.000000e+00 : f32
    %190 = vector.broadcast %cst_44 : f32 to vector<8x128xf32>
    %191 = arith.addf %190, %189 : vector<8x128xf32>
    %192 = arith.divf %190, %191 : vector<8x128xf32>
    %193 = vector.extract_strided_slice %174 {offsets = [0, 256], sizes = [8, 128], strides = [1, 1]} : vector<8x384xf32> to vector<8x128xf32>
    %194 = vector.extract_strided_slice %176 {offsets = [0, 256], sizes = [8, 128], strides = [1, 1]} : vector<8x384xf32> to vector<8x128xf32>
    %195 = arith.addf %194, %14 : vector<8x128xf32>
    %196 = arith.mulf %184, %195 : vector<8x128xf32>
    %197 = arith.addf %193, %196 : vector<8x128xf32>
    %198 = math.tanh %197 : vector<8x128xf32>
    %199 = arith.subf %170, %198 : vector<8x128xf32>
    %200 = arith.mulf %192, %199 : vector<8x128xf32>
    %201 = arith.addf %198, %200 : vector<8x128xf32>
    %c6_i32 = arith.constant 6 : i32
    %c8_i32_45 = arith.constant 8 : i32
    %202 = arith.muli %c6_i32, %c8_i32_45 : i32
    %203 = tpu.assume_multiple %202, 8 : i32
    %204 = arith.index_cast %203 : i32 to index
    %c0_46 = arith.constant 0 : index
    %205 = vector.load %arg10[%204, %c0_46] : memref<64x384xf32, #tpu.memory_space<vmem>>, vector<8x384xf32>
    %206 = arith.truncf %201 : vector<8x128xf32> to vector<8x128xbf16>
    %cst_47 = arith.constant dense<0.000000e+00> : vector<8x384xf32>
    %207 = tpu.matmul %206, %11, %cst_47 {dimension_numbers = #tpu.dot_dimension_numbers<[1], [0], [0], [1], [0, 0, 1, 1], [], []>} : vector<8x128xbf16>, vector<128x384xbf16>, vector<8x384xf32> -> vector<8x384xf32>
    %208 = vector.extract_strided_slice %205 {offsets = [0, 0], sizes = [8, 128], strides = [1, 1]} : vector<8x384xf32> to vector<8x128xf32>
    %209 = vector.extract_strided_slice %207 {offsets = [0, 0], sizes = [8, 128], strides = [1, 1]} : vector<8x384xf32> to vector<8x128xf32>
    %210 = arith.addf %208, %209 : vector<8x128xf32>
    %211 = arith.negf %210 : vector<8x128xf32>
    %212 = math.exp %211 : vector<8x128xf32>
    %cst_48 = arith.constant 1.000000e+00 : f32
    %213 = vector.broadcast %cst_48 : f32 to vector<8x128xf32>
    %214 = arith.addf %213, %212 : vector<8x128xf32>
    %215 = arith.divf %213, %214 : vector<8x128xf32>
    %216 = vector.extract_strided_slice %205 {offsets = [0, 128], sizes = [8, 128], strides = [1, 1]} : vector<8x384xf32> to vector<8x128xf32>
    %217 = vector.extract_strided_slice %207 {offsets = [0, 128], sizes = [8, 128], strides = [1, 1]} : vector<8x384xf32> to vector<8x128xf32>
    %218 = arith.addf %216, %217 : vector<8x128xf32>
    %219 = arith.negf %218 : vector<8x128xf32>
    %220 = math.exp %219 : vector<8x128xf32>
    %cst_49 = arith.constant 1.000000e+00 : f32
    %221 = vector.broadcast %cst_49 : f32 to vector<8x128xf32>
    %222 = arith.addf %221, %220 : vector<8x128xf32>
    %223 = arith.divf %221, %222 : vector<8x128xf32>
    %224 = vector.extract_strided_slice %205 {offsets = [0, 256], sizes = [8, 128], strides = [1, 1]} : vector<8x384xf32> to vector<8x128xf32>
    %225 = vector.extract_strided_slice %207 {offsets = [0, 256], sizes = [8, 128], strides = [1, 1]} : vector<8x384xf32> to vector<8x128xf32>
    %226 = arith.addf %225, %14 : vector<8x128xf32>
    %227 = arith.mulf %215, %226 : vector<8x128xf32>
    %228 = arith.addf %224, %227 : vector<8x128xf32>
    %229 = math.tanh %228 : vector<8x128xf32>
    %230 = arith.subf %201, %229 : vector<8x128xf32>
    %231 = arith.mulf %223, %230 : vector<8x128xf32>
    %232 = arith.addf %229, %231 : vector<8x128xf32>
    %c7_i32 = arith.constant 7 : i32
    %c8_i32_50 = arith.constant 8 : i32
    %233 = arith.muli %c7_i32, %c8_i32_50 : i32
    %234 = tpu.assume_multiple %233, 8 : i32
    %235 = arith.index_cast %234 : i32 to index
    %c0_51 = arith.constant 0 : index
    %236 = vector.load %arg10[%235, %c0_51] : memref<64x384xf32, #tpu.memory_space<vmem>>, vector<8x384xf32>
    %237 = arith.truncf %232 : vector<8x128xf32> to vector<8x128xbf16>
    %cst_52 = arith.constant dense<0.000000e+00> : vector<8x384xf32>
    %238 = tpu.matmul %237, %11, %cst_52 {dimension_numbers = #tpu.dot_dimension_numbers<[1], [0], [0], [1], [0, 0, 1, 1], [], []>} : vector<8x128xbf16>, vector<128x384xbf16>, vector<8x384xf32> -> vector<8x384xf32>
    %239 = vector.extract_strided_slice %236 {offsets = [0, 0], sizes = [8, 128], strides = [1, 1]} : vector<8x384xf32> to vector<8x128xf32>
    %240 = vector.extract_strided_slice %238 {offsets = [0, 0], sizes = [8, 128], strides = [1, 1]} : vector<8x384xf32> to vector<8x128xf32>
    %241 = arith.addf %239, %240 : vector<8x128xf32>
    %242 = arith.negf %241 : vector<8x128xf32>
    %243 = math.exp %242 : vector<8x128xf32>
    %cst_53 = arith.constant 1.000000e+00 : f32
    %244 = vector.broadcast %cst_53 : f32 to vector<8x128xf32>
    %245 = arith.addf %244, %243 : vector<8x128xf32>
    %246 = arith.divf %244, %245 : vector<8x128xf32>
    %247 = vector.extract_strided_slice %236 {offsets = [0, 128], sizes = [8, 128], strides = [1, 1]} : vector<8x384xf32> to vector<8x128xf32>
    %248 = vector.extract_strided_slice %238 {offsets = [0, 128], sizes = [8, 128], strides = [1, 1]} : vector<8x384xf32> to vector<8x128xf32>
    %249 = arith.addf %247, %248 : vector<8x128xf32>
    %250 = arith.negf %249 : vector<8x128xf32>
    %251 = math.exp %250 : vector<8x128xf32>
    %cst_54 = arith.constant 1.000000e+00 : f32
    %252 = vector.broadcast %cst_54 : f32 to vector<8x128xf32>
    %253 = arith.addf %252, %251 : vector<8x128xf32>
    %254 = arith.divf %252, %253 : vector<8x128xf32>
    %255 = vector.extract_strided_slice %236 {offsets = [0, 256], sizes = [8, 128], strides = [1, 1]} : vector<8x384xf32> to vector<8x128xf32>
    %256 = vector.extract_strided_slice %238 {offsets = [0, 256], sizes = [8, 128], strides = [1, 1]} : vector<8x384xf32> to vector<8x128xf32>
    %257 = arith.addf %256, %14 : vector<8x128xf32>
    %258 = arith.mulf %246, %257 : vector<8x128xf32>
    %259 = arith.addf %255, %258 : vector<8x128xf32>
    %260 = math.tanh %259 : vector<8x128xf32>
    %261 = arith.subf %232, %260 : vector<8x128xf32>
    %262 = arith.mulf %254, %261 : vector<8x128xf32>
    %263 = arith.addf %260, %262 : vector<8x128xf32>
    %c8_i32_55 = arith.constant 8 : i32
    %c0_56 = arith.constant 0 : index
    %c0_57 = arith.constant 0 : index
    %264 = vector.load %arg11[%c0_56, %c0_57] : memref<8x128xf32, #tpu.memory_space<vmem>>, vector<8x128xf32>
    tpu.vector_store %arg11[%c0_56, %c0_57], %263 {strides = array<i32>} : memref<8x128xf32, #tpu.memory_space<vmem>>, vector<8x128xf32>,
    %c0_i32_58 = arith.constant 0 : i32
    %265 = arith.cmpi eq, %arg1, %c0_i32_58 : i32
    %266 = arith.extui %265 : i1 to i32
    %c0_i32_59 = arith.constant 0 : i32
    %267 = arith.cmpi ne, %266, %c0_i32_59 : i32
    scf.if %267 {
      %268 = arith.truncf %263 : vector<8x128xf32> to vector<8x128xbf16>
      %c0_60 = arith.constant 0 : index
      %c0_61 = arith.constant 0 : index
      %269 = vector.load %arg7[%c0_60, %c0_61] : memref<128x128xbf16, #tpu.memory_space<vmem>>, vector<128x128xbf16>
      %cst_62 = arith.constant dense<0.000000e+00> : vector<8x128xf32>
      %270 = tpu.matmul %268, %269, %cst_62 {dimension_numbers = #tpu.dot_dimension_numbers<[1], [0], [0], [1], [0, 0, 1, 1], [], []>} : vector<8x128xbf16>, vector<128x128xbf16>, vector<8x128xf32> -> vector<8x128xf32>
      %c0_63 = arith.constant 0 : index
      %c0_64 = arith.constant 0 : index
      %271 = vector.load %arg8[%c0_63, %c0_64] : memref<1x128xf32, #tpu.memory_space<vmem>>, vector<1x128xf32>
      %272 = vector.broadcast %271 : vector<1x128xf32> to vector<8x128xf32>
      %273 = arith.addf %270, %272 : vector<8x128xf32>
      %c0_65 = arith.constant 0 : index
      %c0_66 = arith.constant 0 : index
      %274 = vector.load %arg9[%c0_65, %c0_66] : memref<8x128xf32, #tpu.memory_space<vmem>>, vector<8x128xf32>
      tpu.vector_store %arg9[%c0_65, %c0_66], %273 {strides = array<i32>} : memref<8x128xf32, #tpu.memory_space<vmem>>, vector<8x128xf32>,
    } else {
    }
    return
  }
  func.func @transform_0(%arg0: i32, %arg1: i32) -> (i32, i32, i32) {
    %c0_i32 = arith.constant 0 : i32
    %c0_i32_0 = arith.constant 0 : i32
    return %arg1, %arg0, %c0_i32 : i32, i32, i32
  }
  func.func @transform_1(%arg0: i32, %arg1: i32) -> (i32, i32) {
    %c0_i32 = arith.constant 0 : i32
    %c0_i32_0 = arith.constant 0 : i32
    %c0_i32_1 = arith.constant 0 : i32
    return %c0_i32, %c0_i32_0 : i32, i32
  }
  func.func @transform_2(%arg0: i32, %arg1: i32) -> (i32, i32) {
    %c0_i32 = arith.constant 0 : i32
    %c0_i32_0 = arith.constant 0 : i32
    %c0_i32_1 = arith.constant 0 : i32
    return %c0_i32, %c0_i32_0 : i32, i32
  }
  func.func @transform_3(%arg0: i32, %arg1: i32) -> (i32, i32) {
    %c0_i32 = arith.constant 0 : i32
    %c0_i32_0 = arith.constant 0 : i32
    %c0_i32_1 = arith.constant 0 : i32
    return %c0_i32, %c0_i32_0 : i32, i32
  }
  func.func @transform_4(%arg0: i32, %arg1: i32) -> (i32, i32) {
    %c0_i32 = arith.constant 0 : i32
    %c0_i32_0 = arith.constant 0 : i32
    %c0_i32_1 = arith.constant 0 : i32
    return %c0_i32, %c0_i32_0 : i32, i32
  }
  func.func @transform_5(%arg0: i32, %arg1: i32) -> (i32, i32) {
    %c0_i32 = arith.constant 0 : i32
    %c0_i32_0 = arith.constant 0 : i32
    %c0_i32_1 = arith.constant 0 : i32
    return %c0_i32, %c0_i32_0 : i32, i32
  }
  func.func @transform_6(%arg0: i32, %arg1: i32) -> (i32, i32) {
    %c0_i32 = arith.constant 0 : i32
    %c0_i32_0 = arith.constant 0 : i32
    %c0_i32_1 = arith.constant 0 : i32
    return %c0_i32, %c0_i32_0 : i32, i32
  }
  func.func @transform_7(%arg0: i32, %arg1: i32) -> (i32, i32) {
    %c0_i32 = arith.constant 0 : i32
    %c0_i32_0 = arith.constant 0 : i32
    return %arg0, %c0_i32 : i32, i32
  }
}

module attributes {stable_mosaic.version = 11 : i64} {
  func.func @_gru_layer_kernel(%arg0: i32, %arg1: i32, %arg2: memref<8x8x128xbf16, #tpu.memory_space<vmem>>, %arg3: memref<128x384xbf16, #tpu.memory_space<vmem>>, %arg4: memref<1x384xf32, #tpu.memory_space<vmem>>, %arg5: memref<128x384xbf16, #tpu.memory_space<vmem>>, %arg6: memref<1x128xf32, #tpu.memory_space<vmem>>, %arg7: memref<8x8x128xbf16, #tpu.memory_space<vmem>>, %arg8: memref<64x384xf32, #tpu.memory_space<vmem>>, %arg9: memref<8x128xf32, #tpu.memory_space<vmem>>) attributes {dimension_semantics = [#tpu.dimension_semantics<parallel>, #tpu.dimension_semantics<arbitrary>], iteration_bounds = array<i64: 1, 1>, scalar_prefetch = 0 : i64, scratch_operands = 2 : i64, tpu.core_type = #tpu.core_type<tc>, window_params = [{transform_indices = @transform_0, window_bounds = array<i64: 8, 8, 128>}, {pipeline_mode = #tpu.pipeline_mode<synchronous>, transform_indices = @transform_1, window_bounds = array<i64: 128, 384>}, {pipeline_mode = #tpu.pipeline_mode<synchronous>, transform_indices = @transform_2, window_bounds = array<i64: 1, 384>}, {pipeline_mode = #tpu.pipeline_mode<synchronous>, transform_indices = @transform_3, window_bounds = array<i64: 128, 384>}, {pipeline_mode = #tpu.pipeline_mode<synchronous>, transform_indices = @transform_4, window_bounds = array<i64: 1, 128>}, {transform_indices = @transform_5, window_bounds = array<i64: 8, 8, 128>}]} {
    %c0_i32 = arith.constant 0 : i32
    %0 = arith.cmpi eq, %arg1, %c0_i32 : i32
    %1 = arith.extui %0 : i1 to i32
    %c0_i32_0 = arith.constant 0 : i32
    %2 = arith.cmpi ne, %1, %c0_i32_0 : i32
    scf.if %2 {
      %cst_74 = arith.constant 0.000000e+00 : f32
      %305 = vector.broadcast %cst_74 : f32 to vector<8x128xf32>
      %c0_75 = arith.constant 0 : index
      %c0_76 = arith.constant 0 : index
      %306 = vector.load %arg9[%c0_75, %c0_76] : memref<8x128xf32, #tpu.memory_space<vmem>>, vector<8x128xf32>
      tpu.vector_store %arg9[%c0_75, %c0_76], %305 {strides = array<i32>} : memref<8x128xf32, #tpu.memory_space<vmem>>, vector<8x128xf32>,
    } else {
    }
    %c0 = arith.constant 0 : index
    %c0_1 = arith.constant 0 : index
    %c0_2 = arith.constant 0 : index
    %3 = vector.load %arg2[%c0, %c0_1, %c0_2] : memref<8x8x128xbf16, #tpu.memory_space<vmem>>, vector<8x8x128xbf16>
    %4 = vector.shape_cast %3 : vector<8x8x128xbf16> to vector<64x128xbf16>
    %c0_3 = arith.constant 0 : index
    %c0_4 = arith.constant 0 : index
    %5 = vector.load %arg3[%c0_3, %c0_4] : memref<128x384xbf16, #tpu.memory_space<vmem>>, vector<128x384xbf16>
    %cst = arith.constant dense<0.000000e+00> : vector<64x384xf32>
    %6 = tpu.matmul %4, %5, %cst {dimension_numbers = #tpu.dot_dimension_numbers<[1], [0], [0], [1], [0, 0, 1, 1], [], []>} : vector<64x128xbf16>, vector<128x384xbf16>, vector<64x384xf32> -> vector<64x384xf32>
    %c0_5 = arith.constant 0 : index
    %c0_6 = arith.constant 0 : index
    %7 = vector.load %arg4[%c0_5, %c0_6] : memref<1x384xf32, #tpu.memory_space<vmem>>, vector<1x384xf32>
    %8 = vector.broadcast %7 : vector<1x384xf32> to vector<64x384xf32>
    %9 = arith.addf %6, %8 : vector<64x384xf32>
    %c0_7 = arith.constant 0 : index
    %c0_8 = arith.constant 0 : index
    %10 = vector.load %arg8[%c0_7, %c0_8] : memref<64x384xf32, #tpu.memory_space<vmem>>, vector<64x384xf32>
    tpu.vector_store %arg8[%c0_7, %c0_8], %9 {strides = array<i32>} : memref<64x384xf32, #tpu.memory_space<vmem>>, vector<64x384xf32>,
    %c0_9 = arith.constant 0 : index
    %c0_10 = arith.constant 0 : index
    %11 = vector.load %arg5[%c0_9, %c0_10] : memref<128x384xbf16, #tpu.memory_space<vmem>>, vector<128x384xbf16>
    %c0_11 = arith.constant 0 : index
    %c0_12 = arith.constant 0 : index
    %12 = vector.load %arg6[%c0_11, %c0_12] : memref<1x128xf32, #tpu.memory_space<vmem>>, vector<1x128xf32>
    %13 = vector.shape_cast %12 : vector<1x128xf32> to vector<1x128xf32>
    %14 = vector.broadcast %13 : vector<1x128xf32> to vector<8x128xf32>
    %c0_13 = arith.constant 0 : index
    %c0_14 = arith.constant 0 : index
    %15 = vector.load %arg9[%c0_13, %c0_14] : memref<8x128xf32, #tpu.memory_space<vmem>>, vector<8x128xf32>
    %c0_i32_15 = arith.constant 0 : i32
    %c8_i32 = arith.constant 8 : i32
    %16 = arith.muli %c0_i32_15, %c8_i32 : i32
    %17 = tpu.assume_multiple %16, 8 : i32
    %18 = arith.index_cast %17 : i32 to index
    %c0_16 = arith.constant 0 : index
    %19 = vector.load %arg8[%18, %c0_16] : memref<64x384xf32, #tpu.memory_space<vmem>>, vector<8x384xf32>
    %20 = arith.truncf %15 : vector<8x128xf32> to vector<8x128xbf16>
    %cst_17 = arith.constant dense<0.000000e+00> : vector<8x384xf32>
    %21 = tpu.matmul %20, %11, %cst_17 {dimension_numbers = #tpu.dot_dimension_numbers<[1], [0], [0], [1], [0, 0, 1, 1], [], []>} : vector<8x128xbf16>, vector<128x384xbf16>, vector<8x384xf32> -> vector<8x384xf32>
    %22 = vector.extract_strided_slice %19 {offsets = [0, 0], sizes = [8, 128], strides = [1, 1]} : vector<8x384xf32> to vector<8x128xf32>
    %23 = vector.extract_strided_slice %21 {offsets = [0, 0], sizes = [8, 128], strides = [1, 1]} : vector<8x384xf32> to vector<8x128xf32>
    %24 = arith.addf %22, %23 : vector<8x128xf32>
    %25 = arith.negf %24 : vector<8x128xf32>
    %26 = math.exp %25 : vector<8x128xf32>
    %cst_18 = arith.constant 1.000000e+00 : f32
    %27 = vector.broadcast %cst_18 : f32 to vector<8x128xf32>
    %28 = arith.addf %27, %26 : vector<8x128xf32>
    %29 = arith.divf %27, %28 : vector<8x128xf32>
    %30 = vector.extract_strided_slice %19 {offsets = [0, 128], sizes = [8, 128], strides = [1, 1]} : vector<8x384xf32> to vector<8x128xf32>
    %31 = vector.extract_strided_slice %21 {offsets = [0, 128], sizes = [8, 128], strides = [1, 1]} : vector<8x384xf32> to vector<8x128xf32>
    %32 = arith.addf %30, %31 : vector<8x128xf32>
    %33 = arith.negf %32 : vector<8x128xf32>
    %34 = math.exp %33 : vector<8x128xf32>
    %cst_19 = arith.constant 1.000000e+00 : f32
    %35 = vector.broadcast %cst_19 : f32 to vector<8x128xf32>
    %36 = arith.addf %35, %34 : vector<8x128xf32>
    %37 = arith.divf %35, %36 : vector<8x128xf32>
    %38 = vector.extract_strided_slice %19 {offsets = [0, 256], sizes = [8, 128], strides = [1, 1]} : vector<8x384xf32> to vector<8x128xf32>
    %39 = vector.extract_strided_slice %21 {offsets = [0, 256], sizes = [8, 128], strides = [1, 1]} : vector<8x384xf32> to vector<8x128xf32>
    %40 = arith.addf %39, %14 : vector<8x128xf32>
    %41 = arith.mulf %29, %40 : vector<8x128xf32>
    %42 = arith.addf %38, %41 : vector<8x128xf32>
    %43 = math.tanh %42 : vector<8x128xf32>
    %44 = arith.subf %15, %43 : vector<8x128xf32>
    %45 = arith.mulf %37, %44 : vector<8x128xf32>
    %46 = arith.addf %43, %45 : vector<8x128xf32>
    %47 = arith.truncf %46 : vector<8x128xf32> to vector<8x128xbf16>
    %48 = arith.index_cast %c0_i32_15 : i32 to index
    %c0_20 = arith.constant 0 : index
    %c0_21 = arith.constant 0 : index
    %49 = vector.load %arg7[%48, %c0_20, %c0_21] : memref<8x8x128xbf16, #tpu.memory_space<vmem>>, vector<1x8x128xbf16>
    %50 = vector.shape_cast %49 : vector<1x8x128xbf16> to vector<8x128xbf16>
    %51 = vector.shape_cast %47 : vector<8x128xbf16> to vector<1x8x128xbf16>
    tpu.vector_store %arg7[%48, %c0_20, %c0_21], %51 {strides = array<i32>} : memref<8x8x128xbf16, #tpu.memory_space<vmem>>, vector<1x8x128xbf16>,
    %c1_i32 = arith.constant 1 : i32
    %c8_i32_22 = arith.constant 8 : i32
    %52 = arith.muli %c1_i32, %c8_i32_22 : i32
    %53 = tpu.assume_multiple %52, 8 : i32
    %54 = arith.index_cast %53 : i32 to index
    %c0_23 = arith.constant 0 : index
    %55 = vector.load %arg8[%54, %c0_23] : memref<64x384xf32, #tpu.memory_space<vmem>>, vector<8x384xf32>
    %56 = arith.truncf %46 : vector<8x128xf32> to vector<8x128xbf16>
    %cst_24 = arith.constant dense<0.000000e+00> : vector<8x384xf32>
    %57 = tpu.matmul %56, %11, %cst_24 {dimension_numbers = #tpu.dot_dimension_numbers<[1], [0], [0], [1], [0, 0, 1, 1], [], []>} : vector<8x128xbf16>, vector<128x384xbf16>, vector<8x384xf32> -> vector<8x384xf32>
    %58 = vector.extract_strided_slice %55 {offsets = [0, 0], sizes = [8, 128], strides = [1, 1]} : vector<8x384xf32> to vector<8x128xf32>
    %59 = vector.extract_strided_slice %57 {offsets = [0, 0], sizes = [8, 128], strides = [1, 1]} : vector<8x384xf32> to vector<8x128xf32>
    %60 = arith.addf %58, %59 : vector<8x128xf32>
    %61 = arith.negf %60 : vector<8x128xf32>
    %62 = math.exp %61 : vector<8x128xf32>
    %cst_25 = arith.constant 1.000000e+00 : f32
    %63 = vector.broadcast %cst_25 : f32 to vector<8x128xf32>
    %64 = arith.addf %63, %62 : vector<8x128xf32>
    %65 = arith.divf %63, %64 : vector<8x128xf32>
    %66 = vector.extract_strided_slice %55 {offsets = [0, 128], sizes = [8, 128], strides = [1, 1]} : vector<8x384xf32> to vector<8x128xf32>
    %67 = vector.extract_strided_slice %57 {offsets = [0, 128], sizes = [8, 128], strides = [1, 1]} : vector<8x384xf32> to vector<8x128xf32>
    %68 = arith.addf %66, %67 : vector<8x128xf32>
    %69 = arith.negf %68 : vector<8x128xf32>
    %70 = math.exp %69 : vector<8x128xf32>
    %cst_26 = arith.constant 1.000000e+00 : f32
    %71 = vector.broadcast %cst_26 : f32 to vector<8x128xf32>
    %72 = arith.addf %71, %70 : vector<8x128xf32>
    %73 = arith.divf %71, %72 : vector<8x128xf32>
    %74 = vector.extract_strided_slice %55 {offsets = [0, 256], sizes = [8, 128], strides = [1, 1]} : vector<8x384xf32> to vector<8x128xf32>
    %75 = vector.extract_strided_slice %57 {offsets = [0, 256], sizes = [8, 128], strides = [1, 1]} : vector<8x384xf32> to vector<8x128xf32>
    %76 = arith.addf %75, %14 : vector<8x128xf32>
    %77 = arith.mulf %65, %76 : vector<8x128xf32>
    %78 = arith.addf %74, %77 : vector<8x128xf32>
    %79 = math.tanh %78 : vector<8x128xf32>
    %80 = arith.subf %46, %79 : vector<8x128xf32>
    %81 = arith.mulf %73, %80 : vector<8x128xf32>
    %82 = arith.addf %79, %81 : vector<8x128xf32>
    %83 = arith.truncf %82 : vector<8x128xf32> to vector<8x128xbf16>
    %84 = arith.index_cast %c1_i32 : i32 to index
    %c0_27 = arith.constant 0 : index
    %c0_28 = arith.constant 0 : index
    %85 = vector.load %arg7[%84, %c0_27, %c0_28] : memref<8x8x128xbf16, #tpu.memory_space<vmem>>, vector<1x8x128xbf16>
    %86 = vector.shape_cast %85 : vector<1x8x128xbf16> to vector<8x128xbf16>
    %87 = vector.shape_cast %83 : vector<8x128xbf16> to vector<1x8x128xbf16>
    tpu.vector_store %arg7[%84, %c0_27, %c0_28], %87 {strides = array<i32>} : memref<8x8x128xbf16, #tpu.memory_space<vmem>>, vector<1x8x128xbf16>,
    %c2_i32 = arith.constant 2 : i32
    %c8_i32_29 = arith.constant 8 : i32
    %88 = arith.muli %c2_i32, %c8_i32_29 : i32
    %89 = tpu.assume_multiple %88, 8 : i32
    %90 = arith.index_cast %89 : i32 to index
    %c0_30 = arith.constant 0 : index
    %91 = vector.load %arg8[%90, %c0_30] : memref<64x384xf32, #tpu.memory_space<vmem>>, vector<8x384xf32>
    %92 = arith.truncf %82 : vector<8x128xf32> to vector<8x128xbf16>
    %cst_31 = arith.constant dense<0.000000e+00> : vector<8x384xf32>
    %93 = tpu.matmul %92, %11, %cst_31 {dimension_numbers = #tpu.dot_dimension_numbers<[1], [0], [0], [1], [0, 0, 1, 1], [], []>} : vector<8x128xbf16>, vector<128x384xbf16>, vector<8x384xf32> -> vector<8x384xf32>
    %94 = vector.extract_strided_slice %91 {offsets = [0, 0], sizes = [8, 128], strides = [1, 1]} : vector<8x384xf32> to vector<8x128xf32>
    %95 = vector.extract_strided_slice %93 {offsets = [0, 0], sizes = [8, 128], strides = [1, 1]} : vector<8x384xf32> to vector<8x128xf32>
    %96 = arith.addf %94, %95 : vector<8x128xf32>
    %97 = arith.negf %96 : vector<8x128xf32>
    %98 = math.exp %97 : vector<8x128xf32>
    %cst_32 = arith.constant 1.000000e+00 : f32
    %99 = vector.broadcast %cst_32 : f32 to vector<8x128xf32>
    %100 = arith.addf %99, %98 : vector<8x128xf32>
    %101 = arith.divf %99, %100 : vector<8x128xf32>
    %102 = vector.extract_strided_slice %91 {offsets = [0, 128], sizes = [8, 128], strides = [1, 1]} : vector<8x384xf32> to vector<8x128xf32>
    %103 = vector.extract_strided_slice %93 {offsets = [0, 128], sizes = [8, 128], strides = [1, 1]} : vector<8x384xf32> to vector<8x128xf32>
    %104 = arith.addf %102, %103 : vector<8x128xf32>
    %105 = arith.negf %104 : vector<8x128xf32>
    %106 = math.exp %105 : vector<8x128xf32>
    %cst_33 = arith.constant 1.000000e+00 : f32
    %107 = vector.broadcast %cst_33 : f32 to vector<8x128xf32>
    %108 = arith.addf %107, %106 : vector<8x128xf32>
    %109 = arith.divf %107, %108 : vector<8x128xf32>
    %110 = vector.extract_strided_slice %91 {offsets = [0, 256], sizes = [8, 128], strides = [1, 1]} : vector<8x384xf32> to vector<8x128xf32>
    %111 = vector.extract_strided_slice %93 {offsets = [0, 256], sizes = [8, 128], strides = [1, 1]} : vector<8x384xf32> to vector<8x128xf32>
    %112 = arith.addf %111, %14 : vector<8x128xf32>
    %113 = arith.mulf %101, %112 : vector<8x128xf32>
    %114 = arith.addf %110, %113 : vector<8x128xf32>
    %115 = math.tanh %114 : vector<8x128xf32>
    %116 = arith.subf %82, %115 : vector<8x128xf32>
    %117 = arith.mulf %109, %116 : vector<8x128xf32>
    %118 = arith.addf %115, %117 : vector<8x128xf32>
    %119 = arith.truncf %118 : vector<8x128xf32> to vector<8x128xbf16>
    %120 = arith.index_cast %c2_i32 : i32 to index
    %c0_34 = arith.constant 0 : index
    %c0_35 = arith.constant 0 : index
    %121 = vector.load %arg7[%120, %c0_34, %c0_35] : memref<8x8x128xbf16, #tpu.memory_space<vmem>>, vector<1x8x128xbf16>
    %122 = vector.shape_cast %121 : vector<1x8x128xbf16> to vector<8x128xbf16>
    %123 = vector.shape_cast %119 : vector<8x128xbf16> to vector<1x8x128xbf16>
    tpu.vector_store %arg7[%120, %c0_34, %c0_35], %123 {strides = array<i32>} : memref<8x8x128xbf16, #tpu.memory_space<vmem>>, vector<1x8x128xbf16>,
    %c3_i32 = arith.constant 3 : i32
    %c8_i32_36 = arith.constant 8 : i32
    %124 = arith.muli %c3_i32, %c8_i32_36 : i32
    %125 = tpu.assume_multiple %124, 8 : i32
    %126 = arith.index_cast %125 : i32 to index
    %c0_37 = arith.constant 0 : index
    %127 = vector.load %arg8[%126, %c0_37] : memref<64x384xf32, #tpu.memory_space<vmem>>, vector<8x384xf32>
    %128 = arith.truncf %118 : vector<8x128xf32> to vector<8x128xbf16>
    %cst_38 = arith.constant dense<0.000000e+00> : vector<8x384xf32>
    %129 = tpu.matmul %128, %11, %cst_38 {dimension_numbers = #tpu.dot_dimension_numbers<[1], [0], [0], [1], [0, 0, 1, 1], [], []>} : vector<8x128xbf16>, vector<128x384xbf16>, vector<8x384xf32> -> vector<8x384xf32>
    %130 = vector.extract_strided_slice %127 {offsets = [0, 0], sizes = [8, 128], strides = [1, 1]} : vector<8x384xf32> to vector<8x128xf32>
    %131 = vector.extract_strided_slice %129 {offsets = [0, 0], sizes = [8, 128], strides = [1, 1]} : vector<8x384xf32> to vector<8x128xf32>
    %132 = arith.addf %130, %131 : vector<8x128xf32>
    %133 = arith.negf %132 : vector<8x128xf32>
    %134 = math.exp %133 : vector<8x128xf32>
    %cst_39 = arith.constant 1.000000e+00 : f32
    %135 = vector.broadcast %cst_39 : f32 to vector<8x128xf32>
    %136 = arith.addf %135, %134 : vector<8x128xf32>
    %137 = arith.divf %135, %136 : vector<8x128xf32>
    %138 = vector.extract_strided_slice %127 {offsets = [0, 128], sizes = [8, 128], strides = [1, 1]} : vector<8x384xf32> to vector<8x128xf32>
    %139 = vector.extract_strided_slice %129 {offsets = [0, 128], sizes = [8, 128], strides = [1, 1]} : vector<8x384xf32> to vector<8x128xf32>
    %140 = arith.addf %138, %139 : vector<8x128xf32>
    %141 = arith.negf %140 : vector<8x128xf32>
    %142 = math.exp %141 : vector<8x128xf32>
    %cst_40 = arith.constant 1.000000e+00 : f32
    %143 = vector.broadcast %cst_40 : f32 to vector<8x128xf32>
    %144 = arith.addf %143, %142 : vector<8x128xf32>
    %145 = arith.divf %143, %144 : vector<8x128xf32>
    %146 = vector.extract_strided_slice %127 {offsets = [0, 256], sizes = [8, 128], strides = [1, 1]} : vector<8x384xf32> to vector<8x128xf32>
    %147 = vector.extract_strided_slice %129 {offsets = [0, 256], sizes = [8, 128], strides = [1, 1]} : vector<8x384xf32> to vector<8x128xf32>
    %148 = arith.addf %147, %14 : vector<8x128xf32>
    %149 = arith.mulf %137, %148 : vector<8x128xf32>
    %150 = arith.addf %146, %149 : vector<8x128xf32>
    %151 = math.tanh %150 : vector<8x128xf32>
    %152 = arith.subf %118, %151 : vector<8x128xf32>
    %153 = arith.mulf %145, %152 : vector<8x128xf32>
    %154 = arith.addf %151, %153 : vector<8x128xf32>
    %155 = arith.truncf %154 : vector<8x128xf32> to vector<8x128xbf16>
    %156 = arith.index_cast %c3_i32 : i32 to index
    %c0_41 = arith.constant 0 : index
    %c0_42 = arith.constant 0 : index
    %157 = vector.load %arg7[%156, %c0_41, %c0_42] : memref<8x8x128xbf16, #tpu.memory_space<vmem>>, vector<1x8x128xbf16>
    %158 = vector.shape_cast %157 : vector<1x8x128xbf16> to vector<8x128xbf16>
    %159 = vector.shape_cast %155 : vector<8x128xbf16> to vector<1x8x128xbf16>
    tpu.vector_store %arg7[%156, %c0_41, %c0_42], %159 {strides = array<i32>} : memref<8x8x128xbf16, #tpu.memory_space<vmem>>, vector<1x8x128xbf16>,
    %c4_i32 = arith.constant 4 : i32
    %c8_i32_43 = arith.constant 8 : i32
    %160 = arith.muli %c4_i32, %c8_i32_43 : i32
    %161 = tpu.assume_multiple %160, 8 : i32
    %162 = arith.index_cast %161 : i32 to index
    %c0_44 = arith.constant 0 : index
    %163 = vector.load %arg8[%162, %c0_44] : memref<64x384xf32, #tpu.memory_space<vmem>>, vector<8x384xf32>
    %164 = arith.truncf %154 : vector<8x128xf32> to vector<8x128xbf16>
    %cst_45 = arith.constant dense<0.000000e+00> : vector<8x384xf32>
    %165 = tpu.matmul %164, %11, %cst_45 {dimension_numbers = #tpu.dot_dimension_numbers<[1], [0], [0], [1], [0, 0, 1, 1], [], []>} : vector<8x128xbf16>, vector<128x384xbf16>, vector<8x384xf32> -> vector<8x384xf32>
    %166 = vector.extract_strided_slice %163 {offsets = [0, 0], sizes = [8, 128], strides = [1, 1]} : vector<8x384xf32> to vector<8x128xf32>
    %167 = vector.extract_strided_slice %165 {offsets = [0, 0], sizes = [8, 128], strides = [1, 1]} : vector<8x384xf32> to vector<8x128xf32>
    %168 = arith.addf %166, %167 : vector<8x128xf32>
    %169 = arith.negf %168 : vector<8x128xf32>
    %170 = math.exp %169 : vector<8x128xf32>
    %cst_46 = arith.constant 1.000000e+00 : f32
    %171 = vector.broadcast %cst_46 : f32 to vector<8x128xf32>
    %172 = arith.addf %171, %170 : vector<8x128xf32>
    %173 = arith.divf %171, %172 : vector<8x128xf32>
    %174 = vector.extract_strided_slice %163 {offsets = [0, 128], sizes = [8, 128], strides = [1, 1]} : vector<8x384xf32> to vector<8x128xf32>
    %175 = vector.extract_strided_slice %165 {offsets = [0, 128], sizes = [8, 128], strides = [1, 1]} : vector<8x384xf32> to vector<8x128xf32>
    %176 = arith.addf %174, %175 : vector<8x128xf32>
    %177 = arith.negf %176 : vector<8x128xf32>
    %178 = math.exp %177 : vector<8x128xf32>
    %cst_47 = arith.constant 1.000000e+00 : f32
    %179 = vector.broadcast %cst_47 : f32 to vector<8x128xf32>
    %180 = arith.addf %179, %178 : vector<8x128xf32>
    %181 = arith.divf %179, %180 : vector<8x128xf32>
    %182 = vector.extract_strided_slice %163 {offsets = [0, 256], sizes = [8, 128], strides = [1, 1]} : vector<8x384xf32> to vector<8x128xf32>
    %183 = vector.extract_strided_slice %165 {offsets = [0, 256], sizes = [8, 128], strides = [1, 1]} : vector<8x384xf32> to vector<8x128xf32>
    %184 = arith.addf %183, %14 : vector<8x128xf32>
    %185 = arith.mulf %173, %184 : vector<8x128xf32>
    %186 = arith.addf %182, %185 : vector<8x128xf32>
    %187 = math.tanh %186 : vector<8x128xf32>
    %188 = arith.subf %154, %187 : vector<8x128xf32>
    %189 = arith.mulf %181, %188 : vector<8x128xf32>
    %190 = arith.addf %187, %189 : vector<8x128xf32>
    %191 = arith.truncf %190 : vector<8x128xf32> to vector<8x128xbf16>
    %192 = arith.index_cast %c4_i32 : i32 to index
    %c0_48 = arith.constant 0 : index
    %c0_49 = arith.constant 0 : index
    %193 = vector.load %arg7[%192, %c0_48, %c0_49] : memref<8x8x128xbf16, #tpu.memory_space<vmem>>, vector<1x8x128xbf16>
    %194 = vector.shape_cast %193 : vector<1x8x128xbf16> to vector<8x128xbf16>
    %195 = vector.shape_cast %191 : vector<8x128xbf16> to vector<1x8x128xbf16>
    tpu.vector_store %arg7[%192, %c0_48, %c0_49], %195 {strides = array<i32>} : memref<8x8x128xbf16, #tpu.memory_space<vmem>>, vector<1x8x128xbf16>,
    %c5_i32 = arith.constant 5 : i32
    %c8_i32_50 = arith.constant 8 : i32
    %196 = arith.muli %c5_i32, %c8_i32_50 : i32
    %197 = tpu.assume_multiple %196, 8 : i32
    %198 = arith.index_cast %197 : i32 to index
    %c0_51 = arith.constant 0 : index
    %199 = vector.load %arg8[%198, %c0_51] : memref<64x384xf32, #tpu.memory_space<vmem>>, vector<8x384xf32>
    %200 = arith.truncf %190 : vector<8x128xf32> to vector<8x128xbf16>
    %cst_52 = arith.constant dense<0.000000e+00> : vector<8x384xf32>
    %201 = tpu.matmul %200, %11, %cst_52 {dimension_numbers = #tpu.dot_dimension_numbers<[1], [0], [0], [1], [0, 0, 1, 1], [], []>} : vector<8x128xbf16>, vector<128x384xbf16>, vector<8x384xf32> -> vector<8x384xf32>
    %202 = vector.extract_strided_slice %199 {offsets = [0, 0], sizes = [8, 128], strides = [1, 1]} : vector<8x384xf32> to vector<8x128xf32>
    %203 = vector.extract_strided_slice %201 {offsets = [0, 0], sizes = [8, 128], strides = [1, 1]} : vector<8x384xf32> to vector<8x128xf32>
    %204 = arith.addf %202, %203 : vector<8x128xf32>
    %205 = arith.negf %204 : vector<8x128xf32>
    %206 = math.exp %205 : vector<8x128xf32>
    %cst_53 = arith.constant 1.000000e+00 : f32
    %207 = vector.broadcast %cst_53 : f32 to vector<8x128xf32>
    %208 = arith.addf %207, %206 : vector<8x128xf32>
    %209 = arith.divf %207, %208 : vector<8x128xf32>
    %210 = vector.extract_strided_slice %199 {offsets = [0, 128], sizes = [8, 128], strides = [1, 1]} : vector<8x384xf32> to vector<8x128xf32>
    %211 = vector.extract_strided_slice %201 {offsets = [0, 128], sizes = [8, 128], strides = [1, 1]} : vector<8x384xf32> to vector<8x128xf32>
    %212 = arith.addf %210, %211 : vector<8x128xf32>
    %213 = arith.negf %212 : vector<8x128xf32>
    %214 = math.exp %213 : vector<8x128xf32>
    %cst_54 = arith.constant 1.000000e+00 : f32
    %215 = vector.broadcast %cst_54 : f32 to vector<8x128xf32>
    %216 = arith.addf %215, %214 : vector<8x128xf32>
    %217 = arith.divf %215, %216 : vector<8x128xf32>
    %218 = vector.extract_strided_slice %199 {offsets = [0, 256], sizes = [8, 128], strides = [1, 1]} : vector<8x384xf32> to vector<8x128xf32>
    %219 = vector.extract_strided_slice %201 {offsets = [0, 256], sizes = [8, 128], strides = [1, 1]} : vector<8x384xf32> to vector<8x128xf32>
    %220 = arith.addf %219, %14 : vector<8x128xf32>
    %221 = arith.mulf %209, %220 : vector<8x128xf32>
    %222 = arith.addf %218, %221 : vector<8x128xf32>
    %223 = math.tanh %222 : vector<8x128xf32>
    %224 = arith.subf %190, %223 : vector<8x128xf32>
    %225 = arith.mulf %217, %224 : vector<8x128xf32>
    %226 = arith.addf %223, %225 : vector<8x128xf32>
    %227 = arith.truncf %226 : vector<8x128xf32> to vector<8x128xbf16>
    %228 = arith.index_cast %c5_i32 : i32 to index
    %c0_55 = arith.constant 0 : index
    %c0_56 = arith.constant 0 : index
    %229 = vector.load %arg7[%228, %c0_55, %c0_56] : memref<8x8x128xbf16, #tpu.memory_space<vmem>>, vector<1x8x128xbf16>
    %230 = vector.shape_cast %229 : vector<1x8x128xbf16> to vector<8x128xbf16>
    %231 = vector.shape_cast %227 : vector<8x128xbf16> to vector<1x8x128xbf16>
    tpu.vector_store %arg7[%228, %c0_55, %c0_56], %231 {strides = array<i32>} : memref<8x8x128xbf16, #tpu.memory_space<vmem>>, vector<1x8x128xbf16>,
    %c6_i32 = arith.constant 6 : i32
    %c8_i32_57 = arith.constant 8 : i32
    %232 = arith.muli %c6_i32, %c8_i32_57 : i32
    %233 = tpu.assume_multiple %232, 8 : i32
    %234 = arith.index_cast %233 : i32 to index
    %c0_58 = arith.constant 0 : index
    %235 = vector.load %arg8[%234, %c0_58] : memref<64x384xf32, #tpu.memory_space<vmem>>, vector<8x384xf32>
    %236 = arith.truncf %226 : vector<8x128xf32> to vector<8x128xbf16>
    %cst_59 = arith.constant dense<0.000000e+00> : vector<8x384xf32>
    %237 = tpu.matmul %236, %11, %cst_59 {dimension_numbers = #tpu.dot_dimension_numbers<[1], [0], [0], [1], [0, 0, 1, 1], [], []>} : vector<8x128xbf16>, vector<128x384xbf16>, vector<8x384xf32> -> vector<8x384xf32>
    %238 = vector.extract_strided_slice %235 {offsets = [0, 0], sizes = [8, 128], strides = [1, 1]} : vector<8x384xf32> to vector<8x128xf32>
    %239 = vector.extract_strided_slice %237 {offsets = [0, 0], sizes = [8, 128], strides = [1, 1]} : vector<8x384xf32> to vector<8x128xf32>
    %240 = arith.addf %238, %239 : vector<8x128xf32>
    %241 = arith.negf %240 : vector<8x128xf32>
    %242 = math.exp %241 : vector<8x128xf32>
    %cst_60 = arith.constant 1.000000e+00 : f32
    %243 = vector.broadcast %cst_60 : f32 to vector<8x128xf32>
    %244 = arith.addf %243, %242 : vector<8x128xf32>
    %245 = arith.divf %243, %244 : vector<8x128xf32>
    %246 = vector.extract_strided_slice %235 {offsets = [0, 128], sizes = [8, 128], strides = [1, 1]} : vector<8x384xf32> to vector<8x128xf32>
    %247 = vector.extract_strided_slice %237 {offsets = [0, 128], sizes = [8, 128], strides = [1, 1]} : vector<8x384xf32> to vector<8x128xf32>
    %248 = arith.addf %246, %247 : vector<8x128xf32>
    %249 = arith.negf %248 : vector<8x128xf32>
    %250 = math.exp %249 : vector<8x128xf32>
    %cst_61 = arith.constant 1.000000e+00 : f32
    %251 = vector.broadcast %cst_61 : f32 to vector<8x128xf32>
    %252 = arith.addf %251, %250 : vector<8x128xf32>
    %253 = arith.divf %251, %252 : vector<8x128xf32>
    %254 = vector.extract_strided_slice %235 {offsets = [0, 256], sizes = [8, 128], strides = [1, 1]} : vector<8x384xf32> to vector<8x128xf32>
    %255 = vector.extract_strided_slice %237 {offsets = [0, 256], sizes = [8, 128], strides = [1, 1]} : vector<8x384xf32> to vector<8x128xf32>
    %256 = arith.addf %255, %14 : vector<8x128xf32>
    %257 = arith.mulf %245, %256 : vector<8x128xf32>
    %258 = arith.addf %254, %257 : vector<8x128xf32>
    %259 = math.tanh %258 : vector<8x128xf32>
    %260 = arith.subf %226, %259 : vector<8x128xf32>
    %261 = arith.mulf %253, %260 : vector<8x128xf32>
    %262 = arith.addf %259, %261 : vector<8x128xf32>
    %263 = arith.truncf %262 : vector<8x128xf32> to vector<8x128xbf16>
    %264 = arith.index_cast %c6_i32 : i32 to index
    %c0_62 = arith.constant 0 : index
    %c0_63 = arith.constant 0 : index
    %265 = vector.load %arg7[%264, %c0_62, %c0_63] : memref<8x8x128xbf16, #tpu.memory_space<vmem>>, vector<1x8x128xbf16>
    %266 = vector.shape_cast %265 : vector<1x8x128xbf16> to vector<8x128xbf16>
    %267 = vector.shape_cast %263 : vector<8x128xbf16> to vector<1x8x128xbf16>
    tpu.vector_store %arg7[%264, %c0_62, %c0_63], %267 {strides = array<i32>} : memref<8x8x128xbf16, #tpu.memory_space<vmem>>, vector<1x8x128xbf16>,
    %c7_i32 = arith.constant 7 : i32
    %c8_i32_64 = arith.constant 8 : i32
    %268 = arith.muli %c7_i32, %c8_i32_64 : i32
    %269 = tpu.assume_multiple %268, 8 : i32
    %270 = arith.index_cast %269 : i32 to index
    %c0_65 = arith.constant 0 : index
    %271 = vector.load %arg8[%270, %c0_65] : memref<64x384xf32, #tpu.memory_space<vmem>>, vector<8x384xf32>
    %272 = arith.truncf %262 : vector<8x128xf32> to vector<8x128xbf16>
    %cst_66 = arith.constant dense<0.000000e+00> : vector<8x384xf32>
    %273 = tpu.matmul %272, %11, %cst_66 {dimension_numbers = #tpu.dot_dimension_numbers<[1], [0], [0], [1], [0, 0, 1, 1], [], []>} : vector<8x128xbf16>, vector<128x384xbf16>, vector<8x384xf32> -> vector<8x384xf32>
    %274 = vector.extract_strided_slice %271 {offsets = [0, 0], sizes = [8, 128], strides = [1, 1]} : vector<8x384xf32> to vector<8x128xf32>
    %275 = vector.extract_strided_slice %273 {offsets = [0, 0], sizes = [8, 128], strides = [1, 1]} : vector<8x384xf32> to vector<8x128xf32>
    %276 = arith.addf %274, %275 : vector<8x128xf32>
    %277 = arith.negf %276 : vector<8x128xf32>
    %278 = math.exp %277 : vector<8x128xf32>
    %cst_67 = arith.constant 1.000000e+00 : f32
    %279 = vector.broadcast %cst_67 : f32 to vector<8x128xf32>
    %280 = arith.addf %279, %278 : vector<8x128xf32>
    %281 = arith.divf %279, %280 : vector<8x128xf32>
    %282 = vector.extract_strided_slice %271 {offsets = [0, 128], sizes = [8, 128], strides = [1, 1]} : vector<8x384xf32> to vector<8x128xf32>
    %283 = vector.extract_strided_slice %273 {offsets = [0, 128], sizes = [8, 128], strides = [1, 1]} : vector<8x384xf32> to vector<8x128xf32>
    %284 = arith.addf %282, %283 : vector<8x128xf32>
    %285 = arith.negf %284 : vector<8x128xf32>
    %286 = math.exp %285 : vector<8x128xf32>
    %cst_68 = arith.constant 1.000000e+00 : f32
    %287 = vector.broadcast %cst_68 : f32 to vector<8x128xf32>
    %288 = arith.addf %287, %286 : vector<8x128xf32>
    %289 = arith.divf %287, %288 : vector<8x128xf32>
    %290 = vector.extract_strided_slice %271 {offsets = [0, 256], sizes = [8, 128], strides = [1, 1]} : vector<8x384xf32> to vector<8x128xf32>
    %291 = vector.extract_strided_slice %273 {offsets = [0, 256], sizes = [8, 128], strides = [1, 1]} : vector<8x384xf32> to vector<8x128xf32>
    %292 = arith.addf %291, %14 : vector<8x128xf32>
    %293 = arith.mulf %281, %292 : vector<8x128xf32>
    %294 = arith.addf %290, %293 : vector<8x128xf32>
    %295 = math.tanh %294 : vector<8x128xf32>
    %296 = arith.subf %262, %295 : vector<8x128xf32>
    %297 = arith.mulf %289, %296 : vector<8x128xf32>
    %298 = arith.addf %295, %297 : vector<8x128xf32>
    %299 = arith.truncf %298 : vector<8x128xf32> to vector<8x128xbf16>
    %300 = arith.index_cast %c7_i32 : i32 to index
    %c0_69 = arith.constant 0 : index
    %c0_70 = arith.constant 0 : index
    %301 = vector.load %arg7[%300, %c0_69, %c0_70] : memref<8x8x128xbf16, #tpu.memory_space<vmem>>, vector<1x8x128xbf16>
    %302 = vector.shape_cast %301 : vector<1x8x128xbf16> to vector<8x128xbf16>
    %303 = vector.shape_cast %299 : vector<8x128xbf16> to vector<1x8x128xbf16>
    tpu.vector_store %arg7[%300, %c0_69, %c0_70], %303 {strides = array<i32>} : memref<8x8x128xbf16, #tpu.memory_space<vmem>>, vector<1x8x128xbf16>,
    %c8_i32_71 = arith.constant 8 : i32
    %c0_72 = arith.constant 0 : index
    %c0_73 = arith.constant 0 : index
    %304 = vector.load %arg9[%c0_72, %c0_73] : memref<8x128xf32, #tpu.memory_space<vmem>>, vector<8x128xf32>
    tpu.vector_store %arg9[%c0_72, %c0_73], %298 {strides = array<i32>} : memref<8x128xf32, #tpu.memory_space<vmem>>, vector<8x128xf32>,
    return
  }
  func.func @transform_0(%arg0: i32, %arg1: i32) -> (i32, i32, i32) {
    %c0_i32 = arith.constant 0 : i32
    %c0_i32_0 = arith.constant 0 : i32
    return %arg1, %arg0, %c0_i32 : i32, i32, i32
  }
  func.func @transform_1(%arg0: i32, %arg1: i32) -> (i32, i32) {
    %c0_i32 = arith.constant 0 : i32
    %c0_i32_0 = arith.constant 0 : i32
    %c0_i32_1 = arith.constant 0 : i32
    return %c0_i32, %c0_i32_0 : i32, i32
  }
  func.func @transform_2(%arg0: i32, %arg1: i32) -> (i32, i32) {
    %c0_i32 = arith.constant 0 : i32
    %c0_i32_0 = arith.constant 0 : i32
    %c0_i32_1 = arith.constant 0 : i32
    return %c0_i32, %c0_i32_0 : i32, i32
  }
  func.func @transform_3(%arg0: i32, %arg1: i32) -> (i32, i32) {
    %c0_i32 = arith.constant 0 : i32
    %c0_i32_0 = arith.constant 0 : i32
    %c0_i32_1 = arith.constant 0 : i32
    return %c0_i32, %c0_i32_0 : i32, i32
  }
  func.func @transform_4(%arg0: i32, %arg1: i32) -> (i32, i32) {
    %c0_i32 = arith.constant 0 : i32
    %c0_i32_0 = arith.constant 0 : i32
    %c0_i32_1 = arith.constant 0 : i32
    return %c0_i32, %c0_i32_0 : i32, i32
  }
  func.func @transform_5(%arg0: i32, %arg1: i32) -> (i32, i32, i32) {
    %c0_i32 = arith.constant 0 : i32
    %c0_i32_0 = arith.constant 0 : i32
    return %arg1, %arg0, %c0_i32 : i32, i32, i32
  }
}

</mosaic_0001>

<bundles_post_ra>
// kernel: grunet_forward.2
= control target key start
LH: loop header
LB: loop body
LE: loop exit
PB: predicated region body
PF: predicated region fallthrough
CT: control target
= control target key end

     0   :  { %10 = vsyncpa [#allocation5], 0  ;;  %s2751_s0 = inlined_call_operand.hbm [shape: bf16[8,8,128], index: 0, kind: input, shape index: {}]   ;;  %s2752_s1 = inlined_call_operand.hbm [shape: bf16[128,384], index: 1, kind: input, shape index: {}]   ;;  %s2753_s2 = inlined_call_operand.hbm [shape: f32[1,384], index: 2, kind: input, shape index: {}]   ;;  %s2754_s3 = inlined_call_operand.hbm [shape: bf16[128,384], index: 3, kind: input, shape index: {}]   ;;  %s2755_s4 = inlined_call_operand.hbm [shape: f32[1,128], index: 4, kind: input, shape index: {}]   ;;  %s2756_s5 = inlined_call_operand.hbm [shape: bf16[8,8,128], index: 5, kind: output, shape index: {}]  }
   0x1   :  { %11 = vsyncpa [#allocation8], 0 }
   0x2   :  { %12 = vsyncpa [#allocation11], 0 }
   0x3   :  { %13 = vsyncpa [#allocation6], 0  ;;  %s2204_s18 = smov [#allocation7]   ;;  %s2064_s22 = scalar_lea.hbm %s2752_s1, 3072 }
   0x4   :  { %s31_s19 = sshll.u32 %s2204_s18, 4  ;;  %p2065_p0 = scmp.ne.s32.totalorder %s2752_s1, %s2064_s22  ;;  %s32_s19 = int_to_ptr.vmem [resolvable:$true] %s31_s19 }
   0x5   :  { %p2068_p1 = scmp.lt.u32.totalorder %s2064_s22, %s2752_s1 }
   0x7   :  { %p2070_p2 = pnand %p2068_p1, %p2065_p0 }
   0x9   :  { %2073 = shalt.err (!%p2070_p2)
}
   0xa   :  { %s2074_s27 = scalar_lea.vmem %s32_s19, 3072  ;;  %p2079_p4 = scmp.lt.s32.totalorder %s32_s19, %s32_s19 }
   0xb   :  { %p2075_p3 = scmp.ne.s32.totalorder %s32_s19, %s2074_s27  ;;  %p2080_p5 = scmp.lt.s32.totalorder %s2074_s27, %s2074_s27 }
   0xd   :  { %p2081_p6 = por %p2080_p5, %p2079_p4 }
   0xf   :  { %p2082_p7 = pnand %p2081_p6, %p2075_p3 }
  0x11   :  { %2085 = shalt.err (!%p2082_p7)
}
  0x12   :  { %s2205_s28 = smov 192   ;;  %s2206_s29 = smov 12  }
  0x13   :  { %37 = dma.hbm_to_vmem [thread:$0]  %s2752_s1, 3072, %s32_s19, [#allocation8], %s2205_s28, %s2205_s28, %s2206_s29  }
  0x14   :  { %s2207_s7 = smov [#allocation10]   ;;  %s2208_s9 = smov [#allocation4]  }
  0x15   :  { %s53_s8 = sshll.u32 %s2207_s7, 4  ;;  %s19_s10 = sshll.u32 %s2208_s9, 4  ;;  %s54_s8 = int_to_ptr.vmem [resolvable:$true] %s53_s8  ;;  %s20_s10 = int_to_ptr.vmem [resolvable:$true] %s19_s10 }
  0x16   :  { %s2086_s13 = scalar_lea.hbm %s2754_s3, 3072 }
  0x17   :  { %p2087_p8 = scmp.ne.s32.totalorder %s2754_s3, %s2086_s13  ;;  %p2090_p9 = scmp.lt.u32.totalorder %s2086_s13, %s2754_s3 }
  0x19   :  { %p2092_p10 = pnand %p2090_p9, %p2087_p8 }
  0x1b   :  { %2095 = shalt.err (!%p2092_p10)
}
  0x1c   :  { %s2096_s1 = scalar_lea.vmem %s54_s8, 3072  ;;  %p2101_p12 = scmp.lt.s32.totalorder %s54_s8, %s54_s8 }
  0x1d   :  { %p2097_p11 = scmp.ne.s32.totalorder %s54_s8, %s2096_s1  ;;  %p2102_p13 = scmp.lt.s32.totalorder %s2096_s1, %s2096_s1 }
  0x1f   :  { %p2103_p0 = por %p2102_p13, %p2101_p12 }
  0x21   :  { %p2104_p1 = pnand %p2103_p0, %p2097_p11 }
  0x23   :  { %2107 = shalt.err (!%p2104_p1)
}
  0x24   :  { %59 = dma.hbm_to_vmem [thread:$0]  %s2754_s3, 3072, %s54_s8, [#allocation11], %s2205_s28, %s2205_s28, %s2206_s29  }
  0x25   :  { %s2108_s22 = scalar_lea.hbm %s2751_s0, 512 }
  0x26   :  { %p2109_p2 = scmp.ne.s32.totalorder %s2751_s0, %s2108_s22  ;;  %p2112_p3 = scmp.lt.u32.totalorder %s2108_s22, %s2751_s0 }
  0x28   :  { %p2114_p4 = pnand %p2112_p3, %p2109_p2 }
  0x2a   :  { %2117 = shalt.err (!%p2114_p4)
}
  0x2b   :  { %s2118_s27 = scalar_lea.vmem %s20_s10, 512  ;;  %p2123_p6 = scmp.lt.s32.totalorder %s20_s10, %s20_s10 }
  0x2c   :  { %p2119_p5 = scmp.ne.s32.totalorder %s20_s10, %s2118_s27  ;;  %p2124_p7 = scmp.lt.s32.totalorder %s2118_s27, %s2118_s27 }
  0x2e   :  { %p2125_p8 = por %p2124_p7, %p2123_p6 }
  0x30   :  { %p2126_p9 = pnand %p2125_p8, %p2119_p5 }
  0x32   :  { %2129 = shalt.err (!%p2126_p9)
}
  0x33   :  { %s2209_s3 = smov 64   ;;  %s2210_s28 = smov 4  }
  0x34   :  { %25 = dma.hbm_to_vmem [thread:$0]  %s2751_s0, 512, %s20_s10, [#allocation5], %s2209_s3, %s2209_s3, %s2210_s28  }
  0x35   :  { %s2211_s6 = smov [#allocation9]   ;;  %s2212_s8 = smov [#allocation12]  }
  0x36   :  { %s44_s7 = sshll.u32 %s2211_s6, 4  ;;  %s66_s9 = sshll.u32 %s2212_s8, 4  ;;  %s45_s7 = int_to_ptr.vmem [resolvable:$true] %s44_s7  ;;  %s67_s9 = int_to_ptr.vmem [resolvable:$true] %s66_s9 }
  0x37   :  { %s2130_s13 = scalar_lea.hbm %s2753_s2, 48 }
  0x38   :  { %p2131_p10 = scmp.ne.s32.totalorder %s2753_s2, %s2130_s13  ;;  %p2134_p11 = scmp.lt.u32.totalorder %s2130_s13, %s2753_s2 }
  0x3a   :  { %p2136_p12 = pnand %p2134_p11, %p2131_p10 }
  0x3c   :  { %2139 = shalt.err (!%p2136_p12)
}
  0x3d   :  { %s2140_s0 = scalar_lea.vmem %s45_s7, 48  ;;  %s2144_s10 = scalar_lea.vmem %s45_s7, 64 }
  0x3e   :  { %p2141_p13 = scmp.ne.s32.totalorder %s45_s7, %s2140_s0  ;;  %p2145_p0 = scmp.lt.s32.totalorder %s45_s7, %s45_s7 }
  0x3f   :  { %p2146_p1 = scmp.lt.s32.totalorder %s2144_s10, %s2140_s0 }
  0x41   :  { %p2147_p2 = por %p2146_p1, %p2145_p0 }
  0x43   :  { %p2148_p3 = pnand %p2147_p2, %p2141_p13 }
  0x45   :  { %2151 = shalt.err (!%p2148_p3)
}
  0x46   :  { %47 = dma.hbm_to_vmem [thread:$0]  %s2753_s2, 48, %s45_s7, [#allocation8]  }
  0x47   :  { %s2152_s21 = scalar_lea.hbm %s2755_s4, 16 }
  0x48   :  { %p2153_p4 = scmp.ne.s32.totalorder %s2755_s4, %s2152_s21  ;;  %p2156_p5 = scmp.lt.u32.totalorder %s2152_s21, %s2755_s4 }
  0x4a   :  { %p2158_p6 = pnand %p2156_p5, %p2153_p4 }
  0x4c   :  { %2161 = shalt.err (!%p2158_p6)
}
  0x4d   :  { %s2162_s26 = scalar_lea.vmem %s67_s9, 16  ;;  %s2166_s27 = scalar_lea.vmem %s67_s9, 32 }
  0x4e   :  { %p2163_p7 = scmp.ne.s32.totalorder %s67_s9, %s2162_s26  ;;  %p2167_p8 = scmp.lt.s32.totalorder %s67_s9, %s67_s9 }
  0x4f   :  { %p2168_p9 = scmp.lt.s32.totalorder %s2166_s27, %s2162_s26 }
  0x51   :  { %p2169_p10 = por %p2168_p9, %p2167_p8 }
  0x53   :  { %p2170_p11 = pnand %p2169_p10, %p2163_p7 }
  0x55   :  { %2173 = shalt.err (!%p2170_p11)
}
  0x56   :  { %69 = dma.hbm_to_vmem [thread:$0]  %s2755_s4, 16, %s67_s9, [#allocation11]  }
  0x57   :  { %2196 = dma.done.wait [#allocation5], 512  }
  0x58   :  { %2197 = vsyncadd [#allocation5], 4294966784 }
  0x59   :  { %2198 = dma.done.wait [#allocation8], 3120  }
  0x5a   :  { %2199 = vsyncadd [#allocation8], 4294964176 }
  0x5b   :  { %2200 = dma.done.wait [#allocation11], 3088  }
  0x5c   :  { %2201 = vsyncadd [#allocation11], 4294964208  ;;  %v2757_v0 = vmov 0   ;;  %v1896_v1 = vld [vmem:[#allocation7 + $0x4] ss:$12 sps:$4 sm:$0xff]   ;;  %v1931_v31 = vld [vmem:[#allocation4 + $0x8] sm:$0xff]   ;;  %v133_v55 = vlaneseq }
  0x5d   :  { %332 = vmatprep.mubr.bf16.mxu0 %v2757_v0  ;;  %v1898_v2 = vld [vmem:[#allocation7] ss:$12 sps:$4 sm:$0xff]   ;;  %300 = vmatprep.subr.bf16.mxu0 %v1896_v1  ;;  %v1899_v3 = vld [vmem:[#allocation7 + $0x1c] ss:$12 sps:$4 sm:$0xff]   ;;  %v1901_v4 = vld [vmem:[#allocation7 + $0x18] ss:$12 sps:$4 sm:$0xff]  }
  0x5e   :  { %301 = vmatpush1.bf16.msra.mxu0 %v1898_v2  ;;  %v1902_v5 = vld [vmem:[#allocation7 + $0x34] ss:$12 sps:$4 sm:$0xff]   ;;  %v1904_v6 = vld [vmem:[#allocation7 + $0x30] ss:$12 sps:$4 sm:$0xff]   ;;  %v1905_v7 = vld [vmem:[#allocation7 + $0x4c] ss:$12 sps:$4 sm:$0xff]  }
  0x5f   :  { %302 = vmatprep.subr.bf16.mxu0 %v1899_v3  ;;  %v1916_v8 = vld [vmem:[#allocation7 + $0x8] ss:$12 sps:$4 sm:$0xff]   ;;  %v1908_v10 = vld [vmem:[#allocation7 + $0x64] ss:$12 sps:$4 sm:$0xff]   ;;  %v1920_v11 = vld [vmem:[#allocation7 + $0x20] ss:$12 sps:$4 sm:$0xff]  }
  0x60   :  { %v1907_v9 = vld [vmem:[#allocation7 + $0x48] ss:$12 sps:$4 sm:$0xff]   ;;  %1698 = vmatprep.subr.bf16.mxu1 %v1916_v8  ;;  %v1922_v12 = vld [vmem:[#allocation4] sm:$0xff]   ;;  %v1927_v16 = vld [vmem:[#allocation7 + $0x50] ss:$12 sps:$4 sm:$0xff]   ;;  %v2759_v34 = vmov 0.0  }
  0x61   :  { %1699 = vmatpush3.bf16.msra.mxu1 %v1916_v8  ;;  %v1923_v13 = vld [vmem:[#allocation7 + $0x38] ss:$12 sps:$4 sm:$0xff]   ;;  %v1910_v14 = vld [vmem:[#allocation7 + $0x60] ss:$12 sps:$4 sm:$0xff]   ;;  %1714 = vmatprep.mubr.bf16.mxu1 %v1922_v12  ;;  %v1911_v15 = vld [vmem:[#allocation7 + $0x7c] ss:$12 sps:$4 sm:$0xff]  }
  0x62   :  { %303 = vmatpush1.bf16.msra.mxu0 %v1901_v4  ;;  %1700 = vmatprep.subr.bf16.mxu1 %v1920_v11  ;;  %v1913_v17 = vld [vmem:[#allocation7 + $0x78] ss:$12 sps:$4 sm:$0xff]   ;;  %v1914_v18 = vld [vmem:[#allocation7 + $0x94] ss:$12 sps:$4 sm:$0xff]   ;;  %v1917_v20 = vld [vmem:[#allocation7 + $0x90] ss:$12 sps:$4 sm:$0xff]  }
  0x63   :  { %304 = vmatprep.subr.bf16.mxu0 %v1902_v5  ;;  %v1932_v19 = vld [vmem:[#allocation7 + $0x68] ss:$12 sps:$4 sm:$0xff]   ;;  %v1918_v21 = vld [vmem:[#allocation7 + $0xac] ss:$12 sps:$4 sm:$0xff]   ;;  %v2314_v26 = vld [vmem:[#allocation10] ss:$12 sps:$4 sm:$0xff]  }
  0x64   :  { %v1936_v22 = vld [vmem:[#allocation7 + $0x80] ss:$12 sps:$4 sm:$0xff]   ;;  %v1921_v23 = vld [vmem:[#allocation7 + $0xa8] ss:$12 sps:$4 sm:$0xff]   ;;  %v1941_v25 = vld [vmem:[#allocation7 + $0x98] ss:$12 sps:$4 sm:$0xff]  }
  0x65   :  { %1701 = vmatpush3.bf16.msra.mxu1 %v1920_v11  ;;  %v2312_v24 = vld [vmem:[#allocation10 + $0x4] ss:$12 sps:$4 sm:$0xff]   ;;  %v2317_v27 = vld [vmem:[#allocation10 + $0x1c] ss:$12 sps:$4 sm:$0xff]   ;;  %v1945_v28 = vld [vmem:[#allocation7 + $0xb0] ss:$12 sps:$4 sm:$0xff]  }
  0x66   :  { %305 = vmatpush1.bf16.msra.mxu0 %v1904_v6  ;;  %1702 = vmatprep.subr.bf16.mxu1 %v1923_v13  ;;  %v2320_v29 = vld [vmem:[#allocation10 + $0x18] ss:$12 sps:$4 sm:$0xff]   ;;  %v2324_v30 = vld [vmem:[#allocation10 + $0x34] ss:$12 sps:$4 sm:$0xff]   ;;  %v2327_v32 = vld [vmem:[#allocation10 + $0x30] ss:$12 sps:$4 sm:$0xff]  }
  0x67   :  { %306 = vmatprep.subr.bf16.mxu0 %v1905_v7  ;;  %v2330_v33 = vld [vmem:[#allocation10 + $0x4c] ss:$12 sps:$4 sm:$0xff]   ;;  %v2333_v35 = vld [vmem:[#allocation10 + $0x8] ss:$12 sps:$4 sm:$0xff]   ;;  %v2340_v38 = vld [vmem:[#allocation10 + $0x64] ss:$12 sps:$4 sm:$0xff]  }
  0x68   :  { %v2336_v36 = vld [vmem:[#allocation10 + $0x48] ss:$12 sps:$4 sm:$0xff]   ;;  %v1940_v37 = vld [vmem:[#allocation4 + $0x10] sm:$0xff]   ;;  %v2353_v42 = vld [vmem:[#allocation10 + $0x38] ss:$12 sps:$4 sm:$0xff]   ;;  %vm2215_vm0 = vmmov 0  }
  0x69   :  { %1703 = vmatpush3.bf16.msra.mxu1 %v1923_v13  ;;  %v2343_v39 = vld [vmem:[#allocation10 + $0x20] ss:$12 sps:$4 sm:$0xff]   ;;  %v2350_v41 = vld [vmem:[#allocation10 + $0x7c] ss:$12 sps:$4 sm:$0xff]   ;;  %v1949_v43 = vld [vmem:[#allocation4 + $0x18] sm:$0xff]   ;;  %v2216_v53 = vmov 0.0|0.0  }
  0x6a   :  { %307 = vmatpush1.bf16.msra.mxu0 %v1907_v9  ;;  %1704 = vmatprep.subr.bf16.mxu1 %v1927_v16  ;;  %v2347_v40 = vld [vmem:[#allocation10 + $0x60] ss:$12 sps:$4 sm:$0xff]   ;;  %v2357_v44 = vld [vmem:[#allocation10 + $0x78] ss:$12 sps:$4 sm:$0xff]   ;;  %v2364_v46 = vld [vmem:[#allocation10 + $0x50] ss:$12 sps:$4 sm:$0xff]  }
  0x6b   :  { %308 = vmatprep.subr.bf16.mxu0 %v1908_v10  ;;  %v2361_v45 = vld [vmem:[#allocation10 + $0x94] ss:$12 sps:$4 sm:$0xff]   ;;  %v2370_v47 = vld [vmem:[#allocation10 + $0x90] ss:$12 sps:$4 sm:$0xff]   ;;  %v2373_v48 = vld [vmem:[#allocation10 + $0xac] ss:$12 sps:$4 sm:$0xff]  }
  0x6c   :  { %v2376_v49 = vld [vmem:[#allocation10 + $0x68] ss:$12 sps:$4 sm:$0xff]   ;;  %v2385_v51 = vld [vmem:[#allocation10 + $0x80] ss:$12 sps:$4 sm:$0xff]   ;;  %v2391_v52 = vld [vmem:[#allocation10 + $0x98] ss:$12 sps:$4 sm:$0xff]  }
  0x6d   :  { %1705 = vmatpush3.bf16.msra.mxu1 %v1927_v16  ;;  %v2380_v50 = vld [vmem:[#allocation10 + $0xa8] ss:$12 sps:$4 sm:$0xff]   ;;  %v2398_v54 = vld [vmem:[#allocation10 + $0xb0] ss:$12 sps:$4 sm:$0xff]   ;;  %v134_v56 = vshrl.u32 %v133_v55, 7  ;;  %s2217_s4 = smov [#allocation13]  }
  0x6e   :  { %309 = vmatpush1.bf16.msra.mxu0 %v1910_v14  ;;  %1706 = vmatprep.subr.bf16.mxu1 %v1932_v19  ;;  %v131_v58 = vld [vmem:[#allocation9] sm:$0x7]  ;;  %s1524_s30 = sshll.u32 %s2217_s4, 4  ;;  %s1525_s30 = int_to_ptr.vmem [resolvable:$true] %s1524_s30 }
  0x6f   :  { %310 = vmatprep.subr.bf16.mxu0 %v1911_v15  ;;  %v135_v57 = vsub.s32 0, %v134_v56  ;;  %v139_v59 = vsub.s32 1, %v134_v56  ;;  %v143_v4 = vsub.s32 2, %v134_v56  ;;  %s2174_s6 = scalar_lea.vmem %s1525_s30, 512  ;;  %p2179_p13 = scmp.lt.s32.totalorder %s1525_s30, %s1525_s30 }
  0x70   :  { %p2175_p12 = scmp.ne.s32.totalorder %s1525_s30, %s2174_s6  ;;  %p2180_p0 = scmp.lt.s32.totalorder %s2174_s6, %s2174_s6 }
  0x71   :  { %1707 = vmatpush3.bf16.msra.mxu1 %v1932_v19  ;;  %v136_v61 = vrot.slane %v131_v58, %v135_v57  ;;  %v140_v63 = vrot.slane %v131_v58, %v139_v59  ;;  %v2439_v6 = vrot.slane %v131_v58, %v143_v4 }
  0x72   :  { %311 = vmatpush1.bf16.msra.mxu0 %v1913_v17  ;;  %1708 = vmatprep.subr.bf16.mxu1 %v1936_v22  ;;  %p2181_p1 = por %p2180_p0, %p2179_p13 }
  0x73   :  { %312 = vmatprep.subr.bf16.mxu0 %v1914_v18 }
  0x74   :  { %p2182_p2 = pnand %p2181_p1, %p2175_p12 }
  0x75   :  { %1709 = vmatpush3.bf16.msra.mxu1 %v1936_v22 }
  0x76   :  { %313 = vmatpush1.bf16.msra.mxu0 %v1917_v20  ;;  %1710 = vmatprep.subr.bf16.mxu1 %v1941_v25 }
  0x77   :  { %314 = vmatprep.subr.bf16.mxu0 %v1918_v21 }
  0x79   :  { %1711 = vmatpush3.bf16.msra.mxu1 %v1941_v25 }
  0x7a   :  { %315 = vmatpush1.bf16.msra.mxu0 %v1921_v23  ;;  %1712 = vmatprep.subr.bf16.mxu1 %v1945_v28 }
  0x7b   :  { %637 = vmatprep.subr.bf16.mxu0 %v2312_v24 }
  0x7d   :  { %333 = vmatmul.mubr.bf16.vlgmr.msra.gmra.mrb[0].mxu0 %v1922_v12  ;;  %1713 = vmatpush3.bf16.msra.mxu1 %v1945_v28 }
  0x7e   :  { %638 = vmatpush1.bf16.msra.mxu0 %v2314_v26  ;;  %342 = vmatprep.mubr.bf16.mxu0 %v2757_v0 }
  0x7f   :  { %639 = vmatprep.subr.bf16.mxu0 %v2317_v27  ;;  %1722 = vmatprep.subr.bf16.mxu1 %v2759_v34 }
  0x80   :  { %1715 = vmatmul.mubr.bf16.vlgmr.msra.gmra.mrb[0].mxu1 %v1931_v31 }
  0x81   :  { %1723 = vmatpush3.bf16.msra.mxu1 %v2333_v35  ;;  %1718 = vmatprep.mubr.bf16.mxu1 %v1940_v37 }
  0x82   :  { %640 = vmatpush1.bf16.msra.mxu0 %v2320_v29  ;;  %1724 = vmatprep.subr.bf16.mxu1 %v2759_v34 }
  0x83   :  { %641 = vmatprep.subr.bf16.mxu0 %v2324_v30 }
  0x85   :  { %343 = vmatmul.mubr.bf16.gmra.mrb[4].mxu0 %v1931_v31  ;;  %1725 = vmatpush3.bf16.msra.mxu1 %v2343_v39 }
  0x86   :  { %642 = vmatpush1.bf16.msra.mxu0 %v2327_v32  ;;  %352 = vmatprep.mubr.bf16.mxu0 %v2757_v0 }
  0x87   :  { %643 = vmatprep.subr.bf16.mxu0 %v2330_v33  ;;  %1726 = vmatprep.subr.bf16.mxu1 %v2759_v34 }
  0x88   :  { %1719 = vmatmul.mubr.bf16.gmra.mrb[4].mxu1 %v1949_v43 }
  0x89   :  { %1727 = vmatpush3.bf16.msra.mxu1 %v2353_v42  ;;  %1738 = vmatprep.mubr.msk.bf16.mxu1 %vm2215_vm0, %v2759_v34 }
  0x8a   :  { %644 = vmatpush1.bf16.msra.mxu0 %v2336_v36  ;;  %1728 = vmatprep.subr.bf16.mxu1 %v2759_v34 }
  0x8b   :  { %645 = vmatprep.subr.bf16.mxu0 %v2340_v38 }
  0x8d   :  { %353 = vmatmul.mubr.bf16.gmra.mrb[8].mxu0 %v1940_v37  ;;  %1729 = vmatpush3.bf16.msra.mxu1 %v2364_v46 }
  0x8e   :  { %646 = vmatpush1.bf16.msra.mxu0 %v2347_v40  ;;  %362 = vmatprep.mubr.bf16.mxu0 %v2757_v0 }
  0x8f   :  { %647 = vmatprep.subr.bf16.mxu0 %v2350_v41  ;;  %1730 = vmatprep.subr.bf16.mxu1 %v2759_v34 }
  0x91   :  { %1731 = vmatpush3.bf16.msra.mxu1 %v2376_v49 }
  0x92   :  { %648 = vmatpush1.bf16.msra.mxu0 %v2357_v44  ;;  %1732 = vmatprep.subr.bf16.mxu1 %v2759_v34 }
  0x93   :  { %649 = vmatprep.subr.bf16.mxu0 %v2361_v45 }
  0x95   :  { %363 = vmatmul.mubr.bf16.gmra.mrb[12].mxu0 %v1949_v43  ;;  %1733 = vmatpush3.bf16.msra.mxu1 %v2385_v51 }
  0x96   :  { %650 = vmatpush1.bf16.msra.mxu0 %v2370_v47  ;;  %669 = vmatprep.mubr.bf16.mxu0 %v2757_v0 }
  0x97   :  { %651 = vmatprep.subr.bf16.mxu0 %v2373_v48  ;;  %1734 = vmatprep.subr.bf16.mxu1 %v2759_v34 }
  0x99   :  { %1735 = vmatpush3.bf16.msra.mxu1 %v2391_v52 }
  0x9a   :  { %652 = vmatpush1.bf16.msra.mxu0 %v2380_v50  ;;  %1736 = vmatprep.subr.bf16.mxu1 %v2759_v34 }
  0x9b   :  { %747 = vmatprep.subr.bf16.mxu0 %v2312_v24 }
  0x9d   :  { %670 = vmatmul.mubr.bf16.vlgmr.msra.gmra.mrb[16].mxu0 %v2216_v53  ;;  %1737 = vmatpush3.bf16.msra.mxu1 %v2398_v54 }
  0x9e   :  { %748 = vmatpush1.bf16.msra.mxu0 %v2314_v26  ;;  %779 = vmatprep.mubr.bf16.mxu0 %v2757_v0 }
  0x9f   :  { %749 = vmatprep.subr.bf16.mxu0 %v2317_v27  ;;  %1742 = vmatprep.subr.bf16.mxu1 %v2759_v34 }
  0xa0   :  { %1739 = vmatmul.mubr.bf16.vlgmr.msra.gmra.mrb[8].mxu1 %v2216_v53 }
  0xa1   :  { %1743 = vmatpush3.bf16.msra.mxu1 %v2333_v35  ;;  %1758 = vmatprep.mubr.msk.bf16.mxu1 %vm2215_vm0, %v2759_v34 }
  0xa2   :  { %750 = vmatpush1.bf16.msra.mxu0 %v2320_v29  ;;  %1744 = vmatprep.subr.bf16.mxu1 %v2759_v34 }
  0xa3   :  { %751 = vmatprep.subr.bf16.mxu0 %v2324_v30 }
  0xa5   :  { %1745 = vmatpush3.bf16.msra.mxu1 %v2343_v39 }
  0xa6   :  { %752 = vmatpush1.bf16.msra.mxu0 %v2327_v32  ;;  %1746 = vmatprep.subr.bf16.mxu1 %v2759_v34 }
  0xa7   :  { %753 = vmatprep.subr.bf16.mxu0 %v2330_v33 }
  0xa9   :  { %1747 = vmatpush3.bf16.msra.mxu1 %v2353_v42 }
  0xaa   :  { %754 = vmatpush1.bf16.msra.mxu0 %v2336_v36  ;;  %1748 = vmatprep.subr.bf16.mxu1 %v2759_v34 }
  0xab   :  { %755 = vmatprep.subr.bf16.mxu0 %v2340_v38 }
  0xad   :  { %1749 = vmatpush3.bf16.msra.mxu1 %v2364_v46 }
  0xae   :  { %756 = vmatpush1.bf16.msra.mxu0 %v2347_v40  ;;  %1750 = vmatprep.subr.bf16.mxu1 %v2759_v34 }
  0xaf   :  { %757 = vmatprep.subr.bf16.mxu0 %v2350_v41 }
  0xb1   :  { %1751 = vmatpush3.bf16.msra.mxu1 %v2376_v49 }
  0xb2   :  { %758 = vmatpush1.bf16.msra.mxu0 %v2357_v44  ;;  %1752 = vmatprep.subr.bf16.mxu1 %v2759_v34 }
  0xb3   :  { %759 = vmatprep.subr.bf16.mxu0 %v2361_v45 }
  0xb5   :  { %1753 = vmatpush3.bf16.msra.mxu1 %v2385_v51 }
  0xb6   :  { %760 = vmatpush1.bf16.msra.mxu0 %v2370_v47  ;;  %1754 = vmatprep.subr.bf16.mxu1 %v2759_v34 }
  0xb7   :  { %761 = vmatprep.subr.bf16.mxu0 %v2373_v48 }
  0xb9   :  { %1755 = vmatpush3.bf16.msra.mxu1 %v2391_v52 }
  0xba   :  { %762 = vmatpush1.bf16.msra.mxu0 %v2380_v50  ;;  %1756 = vmatprep.subr.bf16.mxu1 %v2759_v34 }
  0xbb   :  { %858 = vmatprep.subr.bf16.mxu0 %v2312_v24 }
  0xbd   :  { %1757 = vmatpush3.bf16.msra.mxu1 %v2398_v54 }
  0xbe   :  { %1762 = vmatprep.subr.bf16.mxu1 %v2759_v34 }
 0x150   :  { %v334_v60 = vpop.f32.mrb[0].mxu0 }
 0x151   :  { %v336_v62 = vpop.f32.mrb[1].mxu0 }
 0x152   :  { %v338_v1 = vpop.f32.mrb[2].mxu0 }
 0x153   :  { %v2435_v2 = vadd.f32 %v338_v1, %v136_v61  ;;  %v340_v3 = vpop.f32.mrb[3].mxu0  ;;  %v1716_v12 = vpop.f32.mrb[0].mxu1 }
 0x154   :  { %v2437_v5 = vadd.f32 %v340_v3, %v140_v63  ;;  %v2448_v15 = vadd.f32 %v1716_v12, %v2439_v6  ;;  %v407_v16 = vpop.f32.mrb[1].mxu1 }
 0x155   :  { %v1717_v18 = vpop.f32.mrb[2].mxu1 }
 0x156   :  { %v2453_v19 = vadd.f32 %v1717_v18, %v2439_v6  ;;  %v410_v20 = vpop.f32.mrb[3].mxu1 }
 0x157   :  { %v2456_v21 = vadd.f32 %v410_v20, %v2439_v6 }
 0x158   :  { %v344_v7 = vpop.f32.mrb[4].mxu0 }
 0x159   :  { %v2441_v8 = vadd.f32 %v344_v7, %v136_v61  ;;  %v346_v9 = vpop.f32.mrb[5].mxu0 }
 0x15a   :  { %v2443_v10 = vadd.f32 %v346_v9, %v140_v63  ;;  %v348_v11 = vpop.f32.mrb[6].mxu0 }
 0x15b   :  { %v2445_v13 = vadd.f32 %v348_v11, %v136_v61  ;;  %v350_v14 = vpop.f32.mrb[7].mxu0  ;;  %v1720_v37 = vpop.f32.mrb[4].mxu1 }
 0x15c   :  { %v2450_v17 = vadd.f32 %v350_v14, %v140_v63  ;;  %v2465_v55 = vadd.f32 %v1720_v37, %v2439_v6  ;;  %v423_v56 = vpop.f32.mrb[5].mxu1 }
 0x15d   :  { %v2470_v58 = vadd.f32 %v423_v56, %v2439_v6  ;;  %v1721_v59 = vpop.f32.mrb[6].mxu1 }
 0x15e   :  { %2761 = vst [vmem:[#allocation18_spill] sm:$0xff] %v2465_v55  ;;  %v2473_v1 = vadd.f32 %v1721_v59, %v2439_v6  ;;  %v426_v3 = vpop.f32.mrb[7].mxu1 }
 0x15f   :  { %v2476_v4 = vadd.f32 %v426_v3, %v2439_v6 }
 0x160   :  { %v354_v22 = vpop.f32.mrb[8].mxu0  ;;  %2762 = vst [vmem:[#allocation19_spill] sm:$0xff] %v2473_v1 }
 0x161   :  { %v2458_v23 = vadd.f32 %v354_v22, %v136_v61  ;;  %v356_v25 = vpop.f32.mrb[9].mxu0 }
 0x162   :  { %v2460_v28 = vadd.f32 %v356_v25, %v140_v63  ;;  %v358_v31 = vpop.f32.mrb[10].mxu0  ;;  %v335_v25 = vadd.f32 %v334_v60, %v136_v61 }
 0x163   :  { %v2462_v43 = vadd.f32 %v358_v31, %v136_v61  ;;  %v360_v53 = vpop.f32.mrb[11].mxu0  ;;  %v337_v31 = vadd.f32 %v336_v62, %v140_v63 }
 0x164   :  { %v2467_v57 = vadd.f32 %v360_v53, %v140_v63 }
 0x168   :  { %v364_v7 = vpop.f32.mrb[12].mxu0 }
 0x169   :  { %v2478_v9 = vadd.f32 %v364_v7, %v136_v61  ;;  %v366_v11 = vpop.f32.mrb[13].mxu0 }
 0x16a   :  { %v2480_v12 = vadd.f32 %v366_v11, %v140_v63  ;;  %v368_v14 = vpop.f32.mrb[14].mxu0 }
 0x16b   :  { %v2482_v18 = vadd.f32 %v368_v14, %v136_v61  ;;  %v370_v20 = vpop.f32.mrb[15].mxu0 }
 0x16c   :  { %2763 = vst [vmem:[#allocation20_spill] sm:$0xff] %v2480_v12  ;;  %v2484_v22 = vadd.f32 %v370_v20, %v140_v63  ;;  %v2486_v20 = vld [vmem:[#allocation12] ss:$0 sm:$0xff]  ;;  %v408_v63 = vadd.f32 %v407_v16, %v2439_v6  ;;  %v2765_v6 = vmov 0.0   ;;  %v2766_v16 = vmov 0  }
 0x16d   :  { %2764 = vst [vmem:[#allocation21_spill] sm:$0xff] %v2482_v18 }
 0x170   :  { %v671_v37 = vpop.f32.mrb[16].mxu0 }
 0x171   :  { %v718_v53 = vadd.f32 %v671_v37, %v335_v25  ;;  %v673_v56 = vpop.f32.mrb[17].mxu0 }
 0x172   :  { %v725_v59 = vadd.f32 %v673_v56, %v337_v31  ;;  %v675_v3 = vpop.f32.mrb[18].mxu0 }
 0x173   :  { %v1598_v0 = vmul.f32 -1.442695, %v718_v53  ;;  %v676_v34 = vpop.f32.mrb[19].mxu0  ;;  %v712_v7 = vpop.f32.mrb[8].mxu1 }
 0x174   :  { %v1740_v1 = vpop.f32.mrb[9].mxu1  ;;  %v1599_v55 = vmul.f32 -1.442695, %v725_v59  ;;  %v732_v60 = vadd.f32 %v2486_v20, %v712_v7 }
 0x175   :  { %1964 = vpow2.f32 %v1598_v0  ;;  %v715_v11 = vpop.f32.mrb[10].mxu1 }
 0x176   :  { %v1741_v12 = vpop.f32.mrb[11].mxu1  ;;  %1966 = vpow2.f32 %v1599_v55 }
 0x17f   :  { %v1965_v14 = vpop.eup %1964 }
 0x180   :  { %v722_v18 = vadd.f32 1.0, %v1965_v14  ;;  %v1967_v61 = vpop.eup %1966 }
 0x181   :  { %v729_v34 = vadd.f32 1.0, %v1967_v61 }
 0x182   :  { %1968 = vrcp.f32 %v722_v18 }
 0x18c   :  { %v1969_v62 = vpop.eup %1968 }
 0x18d   :  { %v733_v25 = vmul.f32 %v1969_v62, %v732_v60 }
 0x18f   :  { %v734_v0 = vadd.f32 %v733_v25, %v408_v63 }
 0x191   :  { %1970 = vtanh.f32 %v734_v0 }
 0x192   :  { %1972 = vrcp.f32 %v729_v34 }
 0x19b   :  { %v1971_v1 = vpop.eup %1970 }
 0x19c   :  { %v736_v31 = vsub.f32 0.0, %v1971_v1  ;;  %v1973_v12 = vpop.eup %1972 }
 0x19e   :  { %v737_v37 = vmul.f32 %v1973_v12, %v736_v31 }
 0x1a0   :  { %v2490_v53 = vadd.f32 %v1971_v1, %v737_v37 }
 0x1a2   :  { %v739_v55 = vpack.c.bf16 %v2490_v53, %v2490_v53 }
 0x1a4   :  { %740 = vst [vmem:[#allocation13] sm:$0xf] %v739_v55  ;;  %780 = vmatmul.mubr.bf16.vlgmr.msra.gmra.mrb[20].mxu0 %v739_v55  ;;  %1759 = vmatmul.mubr.bf16.vlgmr.msra.gmra.mrb[12].mxu1 %v739_v55 }
 0x1a5   :  { %859 = vmatpush1.bf16.msra.mxu0 %v2314_v26  ;;  %1763 = vmatpush3.bf16.msra.mxu1 %v2333_v35 }
 0x1a6   :  { %860 = vmatprep.subr.bf16.mxu0 %v2317_v27  ;;  %1764 = vmatprep.subr.bf16.mxu1 %v2765_v6 }
 0x1a7   :  { %890 = vmatprep.mubr.bf16.mxu0 %v2766_v16  ;;  %1778 = vmatprep.mubr.msk.bf16.mxu1 %vm2215_vm0, %v2765_v6 }
 0x1a9   :  { %861 = vmatpush1.bf16.msra.mxu0 %v2320_v29  ;;  %1765 = vmatpush3.bf16.msra.mxu1 %v2343_v39 }
 0x1aa   :  { %862 = vmatprep.subr.bf16.mxu0 %v2324_v30  ;;  %1766 = vmatprep.subr.bf16.mxu1 %v2765_v6 }
 0x1ad   :  { %863 = vmatpush1.bf16.msra.mxu0 %v2327_v32  ;;  %1767 = vmatpush3.bf16.msra.mxu1 %v2353_v42 }
 0x1ae   :  { %864 = vmatprep.subr.bf16.mxu0 %v2330_v33  ;;  %1768 = vmatprep.subr.bf16.mxu1 %v2765_v6 }
 0x1b1   :  { %865 = vmatpush1.bf16.msra.mxu0 %v2336_v36  ;;  %1769 = vmatpush3.bf16.msra.mxu1 %v2364_v46 }
 0x1b2   :  { %866 = vmatprep.subr.bf16.mxu0 %v2340_v38  ;;  %1770 = vmatprep.subr.bf16.mxu1 %v2765_v6 }
 0x1b5   :  { %867 = vmatpush1.bf16.msra.mxu0 %v2347_v40  ;;  %1771 = vmatpush3.bf16.msra.mxu1 %v2376_v49 }
 0x1b6   :  { %868 = vmatprep.subr.bf16.mxu0 %v2350_v41  ;;  %1772 = vmatprep.subr.bf16.mxu1 %v2765_v6 }
 0x1b9   :  { %869 = vmatpush1.bf16.msra.mxu0 %v2357_v44  ;;  %1773 = vmatpush3.bf16.msra.mxu1 %v2385_v51 }
 0x1ba   :  { %870 = vmatprep.subr.bf16.mxu0 %v2361_v45  ;;  %1774 = vmatprep.subr.bf16.mxu1 %v2765_v6 }
 0x1bd   :  { %871 = vmatpush1.bf16.msra.mxu0 %v2370_v47  ;;  %1775 = vmatpush3.bf16.msra.mxu1 %v2391_v52 }
 0x1be   :  { %872 = vmatprep.subr.bf16.mxu0 %v2373_v48  ;;  %1776 = vmatprep.subr.bf16.mxu1 %v2765_v6 }
 0x1c1   :  { %873 = vmatpush1.bf16.msra.mxu0 %v2380_v50  ;;  %1777 = vmatpush3.bf16.msra.mxu1 %v2398_v54 }
 0x1c2   :  { %969 = vmatprep.subr.bf16.mxu0 %v2312_v24  ;;  %1782 = vmatprep.subr.bf16.mxu1 %v2765_v6 }
 0x277   :  { %v781_v18 = vpop.f32.mrb[20].mxu0  ;;  %v822_v56 = vpop.f32.mrb[12].mxu1 }
 0x278   :  { %v828_v59 = vadd.f32 %v781_v18, %v2435_v2  ;;  %v783_v3 = vpop.f32.mrb[21].mxu0  ;;  %v1760_v7 = vpop.f32.mrb[13].mxu1  ;;  %v842_v31 = vadd.f32 %v2486_v20, %v822_v56 }
 0x279   :  { %v835_v11 = vadd.f32 %v783_v3, %v2437_v5  ;;  %v785_v14 = vpop.f32.mrb[22].mxu0  ;;  %v825_v60 = vpop.f32.mrb[14].mxu1 }
 0x27a   :  { %v1600_v61 = vmul.f32 -1.442695, %v828_v59  ;;  %v786_v62 = vpop.f32.mrb[23].mxu0  ;;  %v1761_v63 = vpop.f32.mrb[15].mxu1 }
 0x27b   :  { %v1601_v25 = vmul.f32 -1.442695, %v835_v11 }
 0x27c   :  { %1974 = vpow2.f32 %v1600_v61 }
 0x27d   :  { %1976 = vpow2.f32 %v1601_v25 }
 0x286   :  { %v1975_v34 = vpop.eup %1974 }
 0x287   :  { %v832_v0 = vadd.f32 1.0, %v1975_v34  ;;  %v1977_v1 = vpop.eup %1976 }
 0x288   :  { %v839_v55 = vadd.f32 1.0, %v1977_v1 }
 0x289   :  { %1978 = vrcp.f32 %v832_v0 }
 0x293   :  { %v1979_v12 = vpop.eup %1978 }
 0x294   :  { %v843_v2 = vmul.f32 %v1979_v12, %v842_v31 }
 0x296   :  { %v844_v37 = vadd.f32 %v843_v2, %v2456_v21 }
 0x298   :  { %1980 = vtanh.f32 %v844_v37 }
 0x299   :  { %1982 = vrcp.f32 %v839_v55 }
 0x2a2   :  { %v1981_v5 = vpop.eup %1980 }
 0x2a3   :  { %v846_v18 = vsub.f32 %v2490_v53, %v1981_v5  ;;  %v1983_v59 = vpop.eup %1982 }
 0x2a5   :  { %v847_v3 = vmul.f32 %v1983_v59, %v846_v18 }
 0x2a7   :  { %v2534_v7 = vadd.f32 %v1981_v5, %v847_v3 }
 0x2a9   :  { %v849_v11 = vpack.c.bf16 %v2534_v7, %v2534_v7 }
 0x2ab   :  { %851 = vst [vmem:[#allocation13 + $0x4] sm:$0xf] %v849_v11  ;;  %891 = vmatmul.mubr.bf16.vlgmr.msra.gmra.mrb[24].mxu0 %v849_v11  ;;  %1779 = vmatmul.mubr.bf16.vlgmr.msra.gmra.mrb[16].mxu1 %v849_v11 }
 0x2ac   :  { %970 = vmatpush1.bf16.msra.mxu0 %v2314_v26  ;;  %1783 = vmatpush3.bf16.msra.mxu1 %v2333_v35 }
 0x2ad   :  { %971 = vmatprep.subr.bf16.mxu0 %v2317_v27  ;;  %1784 = vmatprep.subr.bf16.mxu1 %v2765_v6 }
 0x2ae   :  { %1001 = vmatprep.mubr.bf16.mxu0 %v2766_v16  ;;  %1798 = vmatprep.mubr.msk.bf16.mxu1 %vm2215_vm0, %v2765_v6 }
 0x2b0   :  { %972 = vmatpush1.bf16.msra.mxu0 %v2320_v29  ;;  %1785 = vmatpush3.bf16.msra.mxu1 %v2343_v39 }
 0x2b1   :  { %973 = vmatprep.subr.bf16.mxu0 %v2324_v30  ;;  %1786 = vmatprep.subr.bf16.mxu1 %v2765_v6 }
 0x2b4   :  { %974 = vmatpush1.bf16.msra.mxu0 %v2327_v32  ;;  %1787 = vmatpush3.bf16.msra.mxu1 %v2353_v42 }
 0x2b5   :  { %975 = vmatprep.subr.bf16.mxu0 %v2330_v33  ;;  %1788 = vmatprep.subr.bf16.mxu1 %v2765_v6 }
 0x2b8   :  { %976 = vmatpush1.bf16.msra.mxu0 %v2336_v36  ;;  %1789 = vmatpush3.bf16.msra.mxu1 %v2364_v46 }
 0x2b9   :  { %977 = vmatprep.subr.bf16.mxu0 %v2340_v38  ;;  %1790 = vmatprep.subr.bf16.mxu1 %v2765_v6 }
 0x2bc   :  { %978 = vmatpush1.bf16.msra.mxu0 %v2347_v40  ;;  %1791 = vmatpush3.bf16.msra.mxu1 %v2376_v49 }
 0x2bd   :  { %979 = vmatprep.subr.bf16.mxu0 %v2350_v41  ;;  %1792 = vmatprep.subr.bf16.mxu1 %v2765_v6 }
 0x2c0   :  { %980 = vmatpush1.bf16.msra.mxu0 %v2357_v44  ;;  %1793 = vmatpush3.bf16.msra.mxu1 %v2385_v51 }
 0x2c1   :  { %981 = vmatprep.subr.bf16.mxu0 %v2361_v45  ;;  %1794 = vmatprep.subr.bf16.mxu1 %v2765_v6 }
 0x2c4   :  { %982 = vmatpush1.bf16.msra.mxu0 %v2370_v47  ;;  %1795 = vmatpush3.bf16.msra.mxu1 %v2391_v52 }
 0x2c5   :  { %983 = vmatprep.subr.bf16.mxu0 %v2373_v48  ;;  %1796 = vmatprep.subr.bf16.mxu1 %v2765_v6 }
 0x2c8   :  { %984 = vmatpush1.bf16.msra.mxu0 %v2380_v50  ;;  %1797 = vmatpush3.bf16.msra.mxu1 %v2398_v54 }
 0x2c9   :  { %1080 = vmatprep.subr.bf16.mxu0 %v2312_v24  ;;  %1802 = vmatprep.subr.bf16.mxu1 %v2765_v6 }
 0x37e   :  { %v892_v21 = vpop.f32.mrb[24].mxu0  ;;  %v933_v53 = vpop.f32.mrb[16].mxu1 }
 0x37f   :  { %v939_v56 = vadd.f32 %v892_v21, %v2441_v8  ;;  %v894_v14 = vpop.f32.mrb[25].mxu0  ;;  %v1780_v60 = vpop.f32.mrb[17].mxu1  ;;  %v953_v37 = vadd.f32 %v2486_v20, %v933_v53 }
 0x380   :  { %v946_v61 = vadd.f32 %v894_v14, %v2443_v10  ;;  %v896_v62 = vpop.f32.mrb[26].mxu0  ;;  %v936_v63 = vpop.f32.mrb[18].mxu1 }
 0x381   :  { %v1602_v25 = vmul.f32 -1.442695, %v939_v56  ;;  %v897_v34 = vpop.f32.mrb[27].mxu0  ;;  %v1781_v0 = vpop.f32.mrb[19].mxu1 }
 0x382   :  { %v1603_v1 = vmul.f32 -1.442695, %v946_v61 }
 0x383   :  { %1984 = vpow2.f32 %v1602_v25 }
 0x384   :  { %1986 = vpow2.f32 %v1603_v1 }
 0x38d   :  { %v1985_v31 = vpop.eup %1984 }
 0x38e   :  { %v943_v12 = vadd.f32 1.0, %v1985_v31  ;;  %v1987_v2 = vpop.eup %1986 }
 0x38f   :  { %v950_v18 = vadd.f32 1.0, %v1987_v2 }
 0x390   :  { %1988 = vrcp.f32 %v943_v12 }
 0x39a   :  { %v1989_v55 = vpop.eup %1988 }
 0x39b   :  { %v954_v8 = vmul.f32 %v1989_v55, %v953_v37 }
 0x39d   :  { %v955_v5 = vadd.f32 %v954_v8, %v2448_v15 }
 0x39f   :  { %1990 = vtanh.f32 %v955_v5 }
 0x3a0   :  { %1992 = vrcp.f32 %v950_v18 }
 0x3a9   :  { %v1991_v10 = vpop.eup %1990 }
 0x3aa   :  { %v957_v59 = vsub.f32 %v2534_v7, %v1991_v10  ;;  %v1993_v3 = vpop.eup %1992 }
 0x3ac   :  { %v958_v11 = vmul.f32 %v1993_v3, %v957_v59 }
 0x3ae   :  { %v2578_v21 = vadd.f32 %v1991_v10, %v958_v11 }
 0x3b0   :  { %v960_v56 = vpack.c.bf16 %v2578_v21, %v2578_v21 }
 0x3b2   :  { %962 = vst [vmem:[#allocation13 + $0x8] sm:$0xf] %v960_v56  ;;  %1002 = vmatmul.mubr.bf16.vlgmr.msra.gmra.mrb[28].mxu0 %v960_v56  ;;  %1799 = vmatmul.mubr.bf16.vlgmr.msra.gmra.mrb[20].mxu1 %v960_v56 }
 0x3b3   :  { %1081 = vmatpush1.bf16.msra.mxu0 %v2314_v26  ;;  %1803 = vmatpush3.bf16.msra.mxu1 %v2333_v35 }
 0x3b4   :  { %1082 = vmatprep.subr.bf16.mxu0 %v2317_v27  ;;  %1804 = vmatprep.subr.bf16.mxu1 %v2765_v6 }
 0x3b5   :  { %1112 = vmatprep.mubr.bf16.mxu0 %v2766_v16  ;;  %1818 = vmatprep.mubr.msk.bf16.mxu1 %vm2215_vm0, %v2765_v6 }
 0x3b7   :  { %1083 = vmatpush1.bf16.msra.mxu0 %v2320_v29  ;;  %1805 = vmatpush3.bf16.msra.mxu1 %v2343_v39 }
 0x3b8   :  { %1084 = vmatprep.subr.bf16.mxu0 %v2324_v30  ;;  %1806 = vmatprep.subr.bf16.mxu1 %v2765_v6 }
 0x3bb   :  { %1085 = vmatpush1.bf16.msra.mxu0 %v2327_v32  ;;  %1807 = vmatpush3.bf16.msra.mxu1 %v2353_v42 }
 0x3bc   :  { %1086 = vmatprep.subr.bf16.mxu0 %v2330_v33  ;;  %1808 = vmatprep.subr.bf16.mxu1 %v2765_v6 }
 0x3bf   :  { %1087 = vmatpush1.bf16.msra.mxu0 %v2336_v36  ;;  %1809 = vmatpush3.bf16.msra.mxu1 %v2364_v46 }
 0x3c0   :  { %1088 = vmatprep.subr.bf16.mxu0 %v2340_v38  ;;  %1810 = vmatprep.subr.bf16.mxu1 %v2765_v6 }
 0x3c3   :  { %1089 = vmatpush1.bf16.msra.mxu0 %v2347_v40  ;;  %1811 = vmatpush3.bf16.msra.mxu1 %v2376_v49 }
 0x3c4   :  { %1090 = vmatprep.subr.bf16.mxu0 %v2350_v41  ;;  %1812 = vmatprep.subr.bf16.mxu1 %v2765_v6 }
 0x3c7   :  { %1091 = vmatpush1.bf16.msra.mxu0 %v2357_v44  ;;  %1813 = vmatpush3.bf16.msra.mxu1 %v2385_v51 }
 0x3c8   :  { %1092 = vmatprep.subr.bf16.mxu0 %v2361_v45  ;;  %1814 = vmatprep.subr.bf16.mxu1 %v2765_v6 }
 0x3cb   :  { %1093 = vmatpush1.bf16.msra.mxu0 %v2370_v47  ;;  %1815 = vmatpush3.bf16.msra.mxu1 %v2391_v52 }
 0x3cc   :  { %1094 = vmatprep.subr.bf16.mxu0 %v2373_v48  ;;  %1816 = vmatprep.subr.bf16.mxu1 %v2765_v6 }
 0x3cf   :  { %1095 = vmatpush1.bf16.msra.mxu0 %v2380_v50  ;;  %1817 = vmatpush3.bf16.msra.mxu1 %v2398_v54 }
 0x3d0   :  { %1191 = vmatprep.subr.bf16.mxu0 %v2312_v24  ;;  %1822 = vmatprep.subr.bf16.mxu1 %v2765_v6 }
 0x485   :  { %v1003_v15 = vpop.f32.mrb[28].mxu0  ;;  %v1044_v7 = vpop.f32.mrb[20].mxu1 }
 0x486   :  { %v1050_v53 = vadd.f32 %v1003_v15, %v2445_v13  ;;  %v1005_v14 = vpop.f32.mrb[29].mxu0  ;;  %v1800_v60 = vpop.f32.mrb[21].mxu1  ;;  %v1064_v37 = vadd.f32 %v2486_v20, %v1044_v7 }
 0x487   :  { %v1057_v61 = vadd.f32 %v1005_v14, %v2450_v17  ;;  %v1007_v62 = vpop.f32.mrb[30].mxu0  ;;  %v1047_v63 = vpop.f32.mrb[22].mxu1 }
 0x488   :  { %v1604_v25 = vmul.f32 -1.442695, %v1050_v53  ;;  %v1008_v34 = vpop.f32.mrb[31].mxu0  ;;  %v1801_v0 = vpop.f32.mrb[23].mxu1 }
 0x489   :  { %v1605_v1 = vmul.f32 -1.442695, %v1057_v61 }
 0x48a   :  { %1994 = vpow2.f32 %v1604_v25 }
 0x48b   :  { %1996 = vpow2.f32 %v1605_v1 }
 0x494   :  { %v1995_v31 = vpop.eup %1994 }
 0x495   :  { %v1054_v12 = vadd.f32 1.0, %v1995_v31  ;;  %v1997_v2 = vpop.eup %1996 }
 0x496   :  { %v1061_v5 = vadd.f32 1.0, %v1997_v2 }
 0x497   :  { %1998 = vrcp.f32 %v1054_v12 }
 0x4a1   :  { %v1999_v55 = vpop.eup %1998 }
 0x4a2   :  { %v1065_v13 = vmul.f32 %v1999_v55, %v1064_v37 }
 0x4a4   :  { %v1066_v8 = vadd.f32 %v1065_v13, %v2453_v19 }
 0x4a6   :  { %2000 = vtanh.f32 %v1066_v8 }
 0x4a7   :  { %2002 = vrcp.f32 %v1061_v5 }
 0x4b0   :  { %v2001_v17 = vpop.eup %2000 }
 0x4b1   :  { %v1068_v18 = vsub.f32 %v2578_v21, %v2001_v17  ;;  %v2003_v10 = vpop.eup %2002 }
 0x4b3   :  { %v1069_v59 = vmul.f32 %v2003_v10, %v1068_v18 }
 0x4b5   :  { %v2622_v3 = vadd.f32 %v2001_v17, %v1069_v59 }
 0x4b7   :  { %v1071_v11 = vpack.c.bf16 %v2622_v3, %v2622_v3 }
 0x4b9   :  { %1073 = vst [vmem:[#allocation13 + $0xc] sm:$0xf] %v1071_v11  ;;  %1113 = vmatmul.mubr.bf16.vlgmr.msra.gmra.mrb[32].mxu0 %v1071_v11  ;;  %1819 = vmatmul.mubr.bf16.vlgmr.msra.gmra.mrb[24].mxu1 %v1071_v11  ;;  %v2045_v11 = vld [vmem:[#allocation10] ss:$12 sps:$4 sm:$0xff]  }
 0x4ba   :  { %1192 = vmatpush1.bf16.msra.mxu0 %v2314_v26  ;;  %1823 = vmatpush3.bf16.msra.mxu1 %v2333_v35 }
 0x4bb   :  { %1193 = vmatprep.subr.bf16.mxu0 %v2317_v27  ;;  %1824 = vmatprep.subr.bf16.mxu1 %v2765_v6 }
 0x4bc   :  { %1223 = vmatprep.mubr.bf16.mxu0 %v2766_v16  ;;  %1838 = vmatprep.mubr.msk.bf16.mxu1 %vm2215_vm0, %v2765_v6 }
 0x4be   :  { %1194 = vmatpush1.bf16.msra.mxu0 %v2320_v29  ;;  %1825 = vmatpush3.bf16.msra.mxu1 %v2343_v39 }
 0x4bf   :  { %1195 = vmatprep.subr.bf16.mxu0 %v2324_v30  ;;  %1826 = vmatprep.subr.bf16.mxu1 %v2765_v6 }
 0x4c2   :  { %1196 = vmatpush1.bf16.msra.mxu0 %v2327_v32  ;;  %1827 = vmatpush3.bf16.msra.mxu1 %v2353_v42 }
 0x4c3   :  { %1197 = vmatprep.subr.bf16.mxu0 %v2330_v33  ;;  %1828 = vmatprep.subr.bf16.mxu1 %v2765_v6 }
 0x4c6   :  { %1198 = vmatpush1.bf16.msra.mxu0 %v2336_v36  ;;  %1829 = vmatpush3.bf16.msra.mxu1 %v2364_v46 }
 0x4c7   :  { %1199 = vmatprep.subr.bf16.mxu0 %v2340_v38  ;;  %1830 = vmatprep.subr.bf16.mxu1 %v2765_v6 }
 0x4ca   :  { %1200 = vmatpush1.bf16.msra.mxu0 %v2347_v40  ;;  %1831 = vmatpush3.bf16.msra.mxu1 %v2376_v49 }
 0x4cb   :  { %1201 = vmatprep.subr.bf16.mxu0 %v2350_v41  ;;  %1832 = vmatprep.subr.bf16.mxu1 %v2765_v6 }
 0x4ce   :  { %1202 = vmatpush1.bf16.msra.mxu0 %v2357_v44  ;;  %1833 = vmatpush3.bf16.msra.mxu1 %v2385_v51 }
 0x4cf   :  { %1203 = vmatprep.subr.bf16.mxu0 %v2361_v45  ;;  %1834 = vmatprep.subr.bf16.mxu1 %v2765_v6 }
 0x4d2   :  { %1204 = vmatpush1.bf16.msra.mxu0 %v2370_v47  ;;  %1835 = vmatpush3.bf16.msra.mxu1 %v2391_v52 }
 0x4d3   :  { %1205 = vmatprep.subr.bf16.mxu0 %v2373_v48  ;;  %1836 = vmatprep.subr.bf16.mxu1 %v2765_v6 }
 0x4d6   :  { %1206 = vmatpush1.bf16.msra.mxu0 %v2380_v50  ;;  %1837 = vmatpush3.bf16.msra.mxu1 %v2398_v54 }
 0x4d7   :  { %1302 = vmatprep.subr.bf16.mxu0 %v2312_v24  ;;  %1842 = vmatprep.subr.bf16.mxu1 %v2765_v6 }
 0x58c   :  { %v1114_v19 = vpop.f32.mrb[32].mxu0  ;;  %v1155_v21 = vpop.f32.mrb[24].mxu1 }
 0x58d   :  { %v1161_v56 = vadd.f32 %v1114_v19, %v2458_v23  ;;  %v1116_v15 = vpop.f32.mrb[33].mxu0  ;;  %v1820_v7 = vpop.f32.mrb[25].mxu1  ;;  %v1175_v1 = vadd.f32 %v2486_v20, %v1155_v21  ;;  %v2046_v19 = vld [vmem:[#allocation10 + $0x8] ss:$12 sps:$4 sm:$0xff]   ;;  %v2048_v21 = vld [vmem:[#allocation10 + $0x18] ss:$12 sps:$4 sm:$0xff]  }
 0x58e   :  { %v1168_v53 = vadd.f32 %v1116_v15, %v2460_v28  ;;  %v1118_v14 = vpop.f32.mrb[34].mxu0  ;;  %v1158_v60 = vpop.f32.mrb[26].mxu1  ;;  %v2050_v15 = vld [vmem:[#allocation10 + $0x34] ss:$12 sps:$4 sm:$0xff]   ;;  %v2051_v7 = vld [vmem:[#allocation10 + $0x30] ss:$12 sps:$4 sm:$0xff]  }
 0x58f   :  { %v1606_v61 = vmul.f32 -1.442695, %v1161_v56  ;;  %v1119_v62 = vpop.f32.mrb[35].mxu0  ;;  %v1821_v63 = vpop.f32.mrb[27].mxu1  ;;  %v2049_v56 = vld [vmem:[#allocation10 + $0x20] ss:$12 sps:$4 sm:$0xff]  }
 0x590   :  { %v1607_v25 = vmul.f32 -1.442695, %v1168_v53  ;;  %v2052_v53 = vld [vmem:[#allocation10 + $0x38] ss:$12 sps:$4 sm:$0xff]   ;;  %v2055_v60 = vld [vmem:[#allocation10 + $0x50] ss:$12 sps:$4 sm:$0xff]  }
 0x591   :  { %2004 = vpow2.f32 %v1606_v61  ;;  %v2053_v14 = vld [vmem:[#allocation10 + $0x4c] ss:$12 sps:$4 sm:$0xff]   ;;  %v2056_v61 = vld [vmem:[#allocation10 + $0x64] ss:$12 sps:$4 sm:$0xff]   ;;  %v2058_v63 = vld [vmem:[#allocation10 + $0x7c] ss:$12 sps:$4 sm:$0xff]  }
 0x592   :  { %2006 = vpow2.f32 %v1607_v25  ;;  %v2057_v62 = vld [vmem:[#allocation10 + $0x60] ss:$12 sps:$4 sm:$0xff]   ;;  %v2059_v25 = vld [vmem:[#allocation10 + $0x78] ss:$12 sps:$4 sm:$0xff]  }
 0x59b   :  { %v2005_v34 = vpop.eup %2004 }
 0x59c   :  { %v1165_v0 = vadd.f32 1.0, %v2005_v34  ;;  %v2007_v24 = vpop.eup %2006  ;;  %v2060_v34 = vld [vmem:[#allocation10 + $0x94] ss:$12 sps:$4 sm:$0xff]  }
 0x59d   :  { %v1172_v2 = vadd.f32 1.0, %v2007_v24  ;;  %v2062_v24 = vld [vmem:[#allocation10 + $0xac] ss:$12 sps:$4 sm:$0xff]  }
 0x59e   :  { %2008 = vrcp.f32 %v1165_v0  ;;  %v2061_v0 = vld [vmem:[#allocation10 + $0x90] ss:$12 sps:$4 sm:$0xff]  }
 0x5a8   :  { %v2009_v31 = vpop.eup %2008 }
 0x5a9   :  { %v1176_v23 = vmul.f32 %v2009_v31, %v1175_v1 }
 0x5ab   :  { %v1177_v12 = vadd.f32 %v1176_v23, %v2470_v58 }
 0x5ad   :  { %2010 = vtanh.f32 %v1177_v12 }
 0x5ae   :  { %2012 = vrcp.f32 %v1172_v2  ;;  %v2767_v2 = vld [vmem:[#allocation20_spill] sm:$0xff] }
 0x5b7   :  { %v2011_v28 = vpop.eup %2010 }
 0x5b8   :  { %v1179_v37 = vsub.f32 %v2622_v3, %v2011_v28  ;;  %v2013_v55 = vpop.eup %2012 }
 0x5ba   :  { %v1180_v13 = vmul.f32 %v2013_v55, %v1179_v37 }
 0x5bc   :  { %v2666_v8 = vadd.f32 %v2011_v28, %v1180_v13 }
 0x5be   :  { %v1182_v5 = vpack.c.bf16 %v2666_v8, %v2666_v8 }
 0x5c0   :  { %1184 = vst [vmem:[#allocation13 + $0x10] sm:$0xf] %v1182_v5  ;;  %1224 = vmatmul.mubr.bf16.vlgmr.msra.gmra.mrb[36].mxu0 %v1182_v5  ;;  %1839 = vmatmul.mubr.bf16.vlgmr.msra.gmra.mrb[28].mxu1 %v1182_v5 }
 0x5c1   :  { %1303 = vmatpush1.bf16.msra.mxu0 %v2314_v26  ;;  %1843 = vmatpush3.bf16.msra.mxu1 %v2333_v35  ;;  %v2044_v26 = vld [vmem:[#allocation10 + $0x4] ss:$12 sps:$4 sm:$0xff]  }
 0x5c2   :  { %1304 = vmatprep.subr.bf16.mxu0 %v2317_v27  ;;  %1844 = vmatprep.subr.bf16.mxu1 %v2765_v6 }
 0x5c3   :  { %1334 = vmatprep.mubr.bf16.mxu0 %v2766_v16  ;;  %1858 = vmatprep.mubr.msk.bf16.mxu1 %vm2215_vm0, %v2765_v6 }
 0x5c5   :  { %1305 = vmatpush1.bf16.msra.mxu0 %v2320_v29  ;;  %1845 = vmatpush3.bf16.msra.mxu1 %v2343_v39 }
 0x5c6   :  { %1306 = vmatprep.subr.bf16.mxu0 %v2324_v30  ;;  %1846 = vmatprep.subr.bf16.mxu1 %v2765_v6 }
 0x5c9   :  { %1307 = vmatpush1.bf16.msra.mxu0 %v2327_v32  ;;  %1847 = vmatpush3.bf16.msra.mxu1 %v2353_v42 }
 0x5ca   :  { %1308 = vmatprep.subr.bf16.mxu0 %v2330_v33  ;;  %1848 = vmatprep.subr.bf16.mxu1 %v2765_v6 }
 0x5cd   :  { %1309 = vmatpush1.bf16.msra.mxu0 %v2336_v36  ;;  %1849 = vmatpush3.bf16.msra.mxu1 %v2364_v46 }
 0x5ce   :  { %1310 = vmatprep.subr.bf16.mxu0 %v2340_v38  ;;  %1850 = vmatprep.subr.bf16.mxu1 %v2765_v6 }
 0x5d1   :  { %1311 = vmatpush1.bf16.msra.mxu0 %v2347_v40  ;;  %1851 = vmatpush3.bf16.msra.mxu1 %v2376_v49 }
 0x5d2   :  { %1312 = vmatprep.subr.bf16.mxu0 %v2350_v41  ;;  %1852 = vmatprep.subr.bf16.mxu1 %v2765_v6 }
 0x5d5   :  { %1313 = vmatpush1.bf16.msra.mxu0 %v2357_v44  ;;  %1853 = vmatpush3.bf16.msra.mxu1 %v2385_v51 }
 0x5d6   :  { %1314 = vmatprep.subr.bf16.mxu0 %v2361_v45  ;;  %1854 = vmatprep.subr.bf16.mxu1 %v2765_v6 }
 0x5d9   :  { %1315 = vmatpush1.bf16.msra.mxu0 %v2370_v47  ;;  %1855 = vmatpush3.bf16.msra.mxu1 %v2391_v52 }
 0x5da   :  { %1316 = vmatprep.subr.bf16.mxu0 %v2373_v48  ;;  %1856 = vmatprep.subr.bf16.mxu1 %v2765_v6 }
 0x5dd   :  { %1317 = vmatpush1.bf16.msra.mxu0 %v2380_v50  ;;  %1857 = vmatpush3.bf16.msra.mxu1 %v2398_v54 }
 0x5de   :  { %1413 = vmatprep.subr.bf16.mxu0 %v2044_v26  ;;  %1862 = vmatprep.subr.bf16.mxu1 %v2765_v6 }
 0x693   :  { %v1225_v27 = vpop.f32.mrb[36].mxu0  ;;  %v1266_v29 = vpop.f32.mrb[28].mxu1 }
 0x694   :  { %v1272_v30 = vadd.f32 %v1225_v27, %v2462_v43  ;;  %v1227_v32 = vpop.f32.mrb[37].mxu0  ;;  %v1840_v33 = vpop.f32.mrb[29].mxu1  ;;  %v1286_v47 = vadd.f32 %v2486_v20, %v1266_v29 }
 0x695   :  { %v1279_v35 = vadd.f32 %v1227_v32, %v2467_v57  ;;  %v1229_v36 = vpop.f32.mrb[38].mxu0  ;;  %v1269_v38 = vpop.f32.mrb[30].mxu1 }
 0x696   :  { %v1608_v39 = vmul.f32 -1.442695, %v1272_v30  ;;  %v1230_v40 = vpop.f32.mrb[39].mxu0  ;;  %v1841_v41 = vpop.f32.mrb[31].mxu1  ;;  %v2768_v30 = vld [vmem:[#allocation18_spill] sm:$0xff] }
 0x697   :  { %v1609_v42 = vmul.f32 -1.442695, %v1279_v35 }
 0x698   :  { %2014 = vpow2.f32 %v1608_v39 }
 0x699   :  { %2016 = vpow2.f32 %v1609_v42 }
 0x6a2   :  { %v2015_v44 = vpop.eup %2014 }
 0x6a3   :  { %v1276_v45 = vadd.f32 1.0, %v2015_v44  ;;  %v2017_v46 = vpop.eup %2016 }
 0x6a4   :  { %v1283_v58 = vadd.f32 1.0, %v2017_v46 }
 0x6a5   :  { %2018 = vrcp.f32 %v1276_v45  ;;  %v2769_v45 = vld [vmem:[#allocation21_spill] sm:$0xff] }
 0x6af   :  { %v2019_v48 = vpop.eup %2018 }
 0x6b0   :  { %v1287_v50 = vmul.f32 %v2019_v48, %v1286_v47 }
 0x6b2   :  { %v1288_v43 = vadd.f32 %v1287_v50, %v2476_v4  ;;  %v2047_v4 = vld [vmem:[#allocation10 + $0x1c] ss:$12 sps:$4 sm:$0xff]  }
 0x6b4   :  { %2020 = vtanh.f32 %v1288_v43 }
 0x6b5   :  { %2022 = vrcp.f32 %v1283_v58 }
 0x6be   :  { %v2021_v57 = vpop.eup %2020 }
 0x6bf   :  { %v1290_v17 = vsub.f32 %v2666_v8, %v2021_v57  ;;  %v2023_v18 = vpop.eup %2022 }
 0x6c1   :  { %v1291_v10 = vmul.f32 %v2023_v18, %v1290_v17 }
 0x6c3   :  { %v2709_v59 = vadd.f32 %v2021_v57, %v1291_v10 }
 0x6c5   :  { %v1293_v3 = vpack.c.bf16 %v2709_v59, %v2709_v59 }
 0x6c7   :  { %1295 = vst [vmem:[#allocation13 + $0x14] sm:$0xf] %v1293_v3  ;;  %1335 = vmatmul.mubr.bf16.vlgmr.msra.gmra.mrb[40].mxu0 %v1293_v3  ;;  %1859 = vmatmul.mubr.bf16.vlgmr.msra.gmra.mrb[32].mxu1 %v1293_v3 }
 0x6c8   :  { %1414 = vmatpush1.bf16.msra.mxu0 %v2045_v11  ;;  %1863 = vmatpush3.bf16.msra.mxu1 %v2046_v19 }
 0x6c9   :  { %1415 = vmatprep.subr.bf16.mxu0 %v2047_v4  ;;  %1864 = vmatprep.subr.bf16.mxu1 %v2765_v6 }
 0x6ca   :  { %1445 = vmatprep.mubr.bf16.mxu0 %v2766_v16  ;;  %1878 = vmatprep.mubr.msk.bf16.mxu1 %vm2215_vm0, %v2765_v6  ;;  %v2054_v16 = vld [vmem:[#allocation10 + $0x48] ss:$12 sps:$4 sm:$0xff]  }
 0x6cc   :  { %1416 = vmatpush1.bf16.msra.mxu0 %v2048_v21  ;;  %1865 = vmatpush3.bf16.msra.mxu1 %v2049_v56  ;;  %v2770_v56 = vld [vmem:[#allocation19_spill] sm:$0xff] }
 0x6cd   :  { %1417 = vmatprep.subr.bf16.mxu0 %v2050_v15  ;;  %1866 = vmatprep.subr.bf16.mxu1 %v2765_v6 }
 0x6d0   :  { %1418 = vmatpush1.bf16.msra.mxu0 %v2051_v7  ;;  %1867 = vmatpush3.bf16.msra.mxu1 %v2052_v53 }
 0x6d1   :  { %1419 = vmatprep.subr.bf16.mxu0 %v2053_v14  ;;  %1868 = vmatprep.subr.bf16.mxu1 %v2765_v6 }
 0x6d4   :  { %1420 = vmatpush1.bf16.msra.mxu0 %v2054_v16  ;;  %1869 = vmatpush3.bf16.msra.mxu1 %v2055_v60 }
 0x6d5   :  { %1421 = vmatprep.subr.bf16.mxu0 %v2056_v61  ;;  %1870 = vmatprep.subr.bf16.mxu1 %v2765_v6 }
 0x6d8   :  { %1422 = vmatpush1.bf16.msra.mxu0 %v2057_v62  ;;  %1871 = vmatpush3.bf16.msra.mxu1 %v2376_v49  ;;  %v2063_v49 = vld [vmem:[#allocation10 + $0xa8] ss:$12 sps:$4 sm:$0xff]  }
 0x6d9   :  { %1423 = vmatprep.subr.bf16.mxu0 %v2058_v63  ;;  %1872 = vmatprep.subr.bf16.mxu1 %v2765_v6 }
 0x6dc   :  { %1424 = vmatpush1.bf16.msra.mxu0 %v2059_v25  ;;  %1873 = vmatpush3.bf16.msra.mxu1 %v2385_v51 }
 0x6dd   :  { %1425 = vmatprep.subr.bf16.mxu0 %v2060_v34  ;;  %1874 = vmatprep.subr.bf16.mxu1 %v2765_v6 }
 0x6e0   :  { %1426 = vmatpush1.bf16.msra.mxu0 %v2061_v0  ;;  %1875 = vmatpush3.bf16.msra.mxu1 %v2391_v52 }
 0x6e1   :  { %1427 = vmatprep.subr.bf16.mxu0 %v2062_v24  ;;  %1876 = vmatprep.subr.bf16.mxu1 %v2765_v6 }
 0x6e4   :  { %1428 = vmatpush1.bf16.msra.mxu0 %v2063_v49  ;;  %1877 = vmatpush3.bf16.msra.mxu1 %v2398_v54 }
 0x79a   :  { %v1336_v1 = vpop.f32.mrb[40].mxu0  ;;  %v1377_v31 = vpop.f32.mrb[32].mxu1 }
 0x79b   :  { %v1383_v51 = vadd.f32 %v1336_v1, %v2478_v9  ;;  %v1338_v23 = vpop.f32.mrb[41].mxu0  ;;  %v1860_v12 = vpop.f32.mrb[33].mxu1  ;;  %v1397_v27 = vadd.f32 %v2486_v20, %v1377_v31 }
 0x79c   :  { %v1390_v28 = vadd.f32 %v1338_v23, %v2767_v2  ;;  %v1340_v37 = vpop.f32.mrb[42].mxu0  ;;  %v1380_v55 = vpop.f32.mrb[34].mxu1 }
 0x79d   :  { %v1610_v13 = vmul.f32 -1.442695, %v1383_v51  ;;  %v1341_v52 = vpop.f32.mrb[43].mxu0  ;;  %v1861_v8 = vpop.f32.mrb[35].mxu1 }
 0x79e   :  { %v1611_v5 = vmul.f32 -1.442695, %v1390_v28 }
 0x79f   :  { %2024 = vpow2.f32 %v1610_v13 }
 0x7a0   :  { %2026 = vpow2.f32 %v1611_v5 }
 0x7a9   :  { %v2025_v6 = vpop.eup %2024 }
 0x7aa   :  { %v1387_v26 = vadd.f32 1.0, %v2025_v6  ;;  %v2027_v54 = vpop.eup %2026 }
 0x7ab   :  { %v1394_v33 = vadd.f32 1.0, %v2027_v54 }
 0x7ac   :  { %2028 = vrcp.f32 %v1387_v26 }
 0x7b6   :  { %v2029_v29 = vpop.eup %2028 }
 0x7b7   :  { %v1398_v9 = vmul.f32 %v2029_v29, %v1397_v27 }
 0x7b9   :  { %v1399_v32 = vadd.f32 %v1398_v9, %v2768_v30 }
 0x7bb   :  { %2030 = vtanh.f32 %v1399_v32 }
 0x7bc   :  { %2032 = vrcp.f32 %v1394_v33 }
 0x7c5   :  { %v2031_v35 = vpop.eup %2030 }
 0x7c6   :  { %v1401_v36 = vsub.f32 %v2709_v59, %v2031_v35  ;;  %v2033_v38 = vpop.eup %2032 }
 0x7c8   :  { %v1402_v39 = vmul.f32 %v2033_v38, %v1401_v36 }
 0x7ca   :  { %v1403_v40 = vadd.f32 %v2031_v35, %v1402_v39 }
 0x7cc   :  { %v1404_v41 = vpack.c.bf16 %v1403_v40, %v1403_v40 }
 0x7ce   :  { %1406 = vst [vmem:[#allocation13 + $0x18] sm:$0xf] %v1404_v41  ;;  %1446 = vmatmul.mubr.bf16.vlgmr.msra.gmra.mrb[44].mxu0 %v1404_v41  ;;  %1879 = vmatmul.mubr.bf16.vlgmr.msra.gmra.mrb[36].mxu1 %v1404_v41 }
 0x8a1   :  { %v1447_v42 = vpop.f32.mrb[44].mxu0  ;;  %v1488_v44 = vpop.f32.mrb[36].mxu1 }
 0x8a2   :  { %v1494_v46 = vadd.f32 %v1447_v42, %v2769_v45  ;;  %v1449_v47 = vpop.f32.mrb[45].mxu0  ;;  %v1880_v48 = vpop.f32.mrb[37].mxu1  ;;  %v1508_v19 = vadd.f32 %v2486_v20, %v1488_v44 }
 0x8a3   :  { %v1501_v50 = vadd.f32 %v1449_v47, %v2484_v22  ;;  %v1451_v43 = vpop.f32.mrb[46].mxu0  ;;  %v1491_v58 = vpop.f32.mrb[38].mxu1 }
 0x8a4   :  { %v1612_v57 = vmul.f32 -1.442695, %v1494_v46  ;;  %v1452_v17 = vpop.f32.mrb[47].mxu0  ;;  %v1881_v18 = vpop.f32.mrb[39].mxu1 }
 0x8a5   :  { %v1613_v10 = vmul.f32 -1.442695, %v1501_v50 }
 0x8a6   :  { %2034 = vpow2.f32 %v1612_v57 }
 0x8a7   :  { %2036 = vpow2.f32 %v1613_v10 }
 0x8b0   :  { %v2035_v59 = vpop.eup %2034 }
 0x8b1   :  { %v1498_v3 = vadd.f32 1.0, %v2035_v59  ;;  %v2037_v11 = vpop.eup %2036 }
 0x8b2   :  { %v1505_v7 = vadd.f32 1.0, %v2037_v11 }
 0x8b3   :  { %2038 = vrcp.f32 %v1498_v3 }
 0x8bd   :  { %v2039_v4 = vpop.eup %2038 }
 0x8be   :  { %v1509_v21 = vmul.f32 %v2039_v4, %v1508_v19 }
 0x8c0   :  { %v1510_v15 = vadd.f32 %v1509_v21, %v2770_v56 }
 0x8c2   :  { %2040 = vtanh.f32 %v1510_v15 }
 0x8c3   :  { %2042 = vrcp.f32 %v1505_v7 }
 0x8cc   :  { %v2041_v22 = vpop.eup %2040 }
 0x8cd   :  { %v1512_v53 = vsub.f32 %v1403_v40, %v2041_v22  ;;  %v2043_v14 = vpop.eup %2042 }
 0x8cf   :  { %v1513_v16 = vmul.f32 %v2043_v14, %v1512_v53 }
 0x8d1   :  { %v1514_v60 = vadd.f32 %v2041_v22, %v1513_v16 }
 0x8d3   :  { %v1515_v61 = vpack.c.bf16 %v1514_v60, %v1514_v60 }
 0x8d5   :  { %1517 = vst [vmem:[#allocation13 + $0x1c] sm:$0xf] %v1515_v61 }
 0x8d6   :  { %2185 = shalt.err (!%p2182_p2)
}
 0x8d7   :  { %s2186_s9 = scalar_lea.hbm %s2756_s5, 512 }
 0x8d8   :  { %p2187_p3 = scmp.ne.s32.totalorder %s2756_s5, %s2186_s9  ;;  %p2190_p4 = scmp.lt.u32.totalorder %s2186_s9, %s2756_s5 }
 0x8da   :  { %p2192_p5 = pnand %p2190_p4, %p2187_p3 }
 0x8dc   :  { %2195 = shalt.err (!%p2192_p5)
}
 0x8dd   :  { %1530 = dma.vmem_to_hbm [thread:$0]  %s1525_s30, 512, %s2756_s5, [#allocation6], %s2209_s3, %s2209_s3, %s2210_s28  }
 0x8de   :  { %2202 = dma.done.wait [#allocation6], 512  }
 0x8df   :  { %2203 = vsyncadd [#allocation6], 4294966784 }
 0x8e0   :  { %1534 = vsyncpa [#allocation5], 1 }
 0x8e1   :  { %1535 = vsyncpa [#allocation8], 1 }
 0x8e2   :  { %1536 = vsyncpa [#allocation11], 1 }
 0x8e3   :  { %1537 = vsyncpa [#allocation6], 1 }

// kernel: grunet_forward.3
= control target key start
LH: loop header
LB: loop body
LE: loop exit
PB: predicated region body
PF: predicated region fallthrough
CT: control target
= control target key end

     0   :  { %12 = vsyncpa [#allocation5], 0  ;;  %s3022_s0 = inlined_call_operand.hbm [shape: bf16[8,8,128], index: 0, kind: input, shape index: {}]   ;;  %s3023_s1 = inlined_call_operand.hbm [shape: bf16[128,384], index: 1, kind: input, shape index: {}]   ;;  %s3024_s2 = inlined_call_operand.hbm [shape: f32[1,384], index: 2, kind: input, shape index: {}]   ;;  %s3025_s3 = inlined_call_operand.hbm [shape: bf16[128,384], index: 3, kind: input, shape index: {}]   ;;  %s3026_s4 = inlined_call_operand.hbm [shape: f32[1,128], index: 4, kind: input, shape index: {}]   ;;  %s3027_s5 = inlined_call_operand.hbm [shape: bf16[128,128], index: 5, kind: input, shape index: {}]   ;;  %s3028_s6 = inlined_call_operand.hbm [shape: f32[1,128], index: 6, kind: input, shape index: {}]   ;;  %s3029_s7 = inlined_call_operand.hbm [shape: f32[8,128], index: 7, kind: output, shape index: {}]  }
   0x1   :  { %13 = vsyncpa [#allocation8], 0 }
   0x2   :  { %14 = vsyncpa [#allocation11], 0 }
   0x3   :  { %15 = vsyncpa [#allocation14], 0 }
   0x4   :  { %16 = vsyncpa [#allocation6], 0  ;;  %s2426_s24 = smov [#allocation7]   ;;  %s2240_s28 = scalar_lea.hbm %s3023_s1, 3072 }
   0x5   :  { %s34_s25 = sshll.u32 %s2426_s24, 4  ;;  %p2241_p0 = scmp.ne.s32.totalorder %s3023_s1, %s2240_s28  ;;  %s35_s25 = int_to_ptr.vmem [resolvable:$true] %s34_s25 }
   0x6   :  { %p2244_p1 = scmp.lt.u32.totalorder %s2240_s28, %s3023_s1 }
   0x8   :  { %p2246_p2 = pnand %p2244_p1, %p2241_p0 }
   0xa   :  { %2249 = shalt.err (!%p2246_p2)
}
   0xb   :  { %s2250_s10 = scalar_lea.vmem %s35_s25, 3072  ;;  %p2255_p4 = scmp.lt.s32.totalorder %s35_s25, %s35_s25 }
   0xc   :  { %p2251_p3 = scmp.ne.s32.totalorder %s35_s25, %s2250_s10  ;;  %p2256_p5 = scmp.lt.s32.totalorder %s2250_s10, %s2250_s10 }
   0xe   :  { %p2257_p6 = por %p2256_p5, %p2255_p4 }
  0x10   :  { %p2258_p7 = pnand %p2257_p6, %p2251_p3 }
  0x12   :  { %2261 = shalt.err (!%p2258_p7)
}
  0x13   :  { %s2427_s11 = smov 192   ;;  %s2428_s12 = smov 12  }
  0x14   :  { %40 = dma.hbm_to_vmem [thread:$0]  %s3023_s1, 3072, %s35_s25, [#allocation8], %s2427_s11, %s2427_s11, %s2428_s12  }
  0x15   :  { %s2429_s15 = smov [#allocation10]   ;;  %s2262_s19 = scalar_lea.hbm %s3025_s3, 3072 }
  0x16   :  { %s56_s16 = sshll.u32 %s2429_s15, 4  ;;  %p2263_p8 = scmp.ne.s32.totalorder %s3025_s3, %s2262_s19  ;;  %s57_s16 = int_to_ptr.vmem [resolvable:$true] %s56_s16 }
  0x17   :  { %p2266_p9 = scmp.lt.u32.totalorder %s2262_s19, %s3025_s3 }
  0x19   :  { %p2268_p10 = pnand %p2266_p9, %p2263_p8 }
  0x1b   :  { %2271 = shalt.err (!%p2268_p10)
}
  0x1c   :  { %s2272_s24 = scalar_lea.vmem %s57_s16, 3072  ;;  %p2277_p12 = scmp.lt.s32.totalorder %s57_s16, %s57_s16 }
  0x1d   :  { %p2273_p11 = scmp.ne.s32.totalorder %s57_s16, %s2272_s24  ;;  %p2278_p13 = scmp.lt.s32.totalorder %s2272_s24, %s2272_s24 }
  0x1f   :  { %p2279_p0 = por %p2278_p13, %p2277_p12 }
  0x21   :  { %p2280_p1 = pnand %p2279_p0, %p2273_p11 }
  0x23   :  { %2283 = shalt.err (!%p2280_p1)
}
  0x24   :  { %62 = dma.hbm_to_vmem [thread:$0]  %s3025_s3, 3072, %s57_s16, [#allocation11], %s2427_s11, %s2427_s11, %s2428_s12  }
  0x25   :  { %s2430_s26 = smov [#allocation13]   ;;  %s2431_s28 = smov [#allocation4]  }
  0x26   :  { %s78_s27 = sshll.u32 %s2430_s26, 4  ;;  %s22_s29 = sshll.u32 %s2431_s28, 4  ;;  %s79_s27 = int_to_ptr.vmem [resolvable:$true] %s78_s27  ;;  %s2506_s29 = int_to_ptr.vmem [resolvable:$true] %s22_s29 }
  0x27   :  { %s2284_s9 = scalar_lea.hbm %s3027_s5, 1024 }
  0x28   :  { %p2285_p2 = scmp.ne.s32.totalorder %s3027_s5, %s2284_s9  ;;  %p2288_p3 = scmp.lt.u32.totalorder %s2284_s9, %s3027_s5 }
  0x2a   :  { %p2290_p4 = pnand %p2288_p3, %p2285_p2 }
  0x2c   :  { %2293 = shalt.err (!%p2290_p4)
}
  0x2d   :  { %s2294_s3 = scalar_lea.vmem %s79_s27, 1024  ;;  %p2299_p6 = scmp.lt.s32.totalorder %s79_s27, %s79_s27 }
  0x2e   :  { %p2295_p5 = scmp.ne.s32.totalorder %s79_s27, %s2294_s3  ;;  %p2300_p7 = scmp.lt.s32.totalorder %s2294_s3, %s2294_s3 }
  0x30   :  { %p2301_p8 = por %p2300_p7, %p2299_p6 }
  0x32   :  { %p2302_p9 = pnand %p2301_p8, %p2295_p5 }
  0x34   :  { %2305 = shalt.err (!%p2302_p9)
}
  0x35   :  { %s2432_s11 = smov 64   ;;  %s2433_s12 = smov 4  }
  0x36   :  { %84 = dma.hbm_to_vmem [thread:$0]  %s3027_s5, 1024, %s79_s27, [#allocation14], %s2432_s11, %s2432_s11, %s2433_s12  }
  0x37   :  { %s2306_s20 = scalar_lea.hbm %s3022_s0, 512 }
  0x38   :  { %p2307_p10 = scmp.ne.s32.totalorder %s3022_s0, %s2306_s20  ;;  %p2310_p11 = scmp.lt.u32.totalorder %s2306_s20, %s3022_s0 }
  0x3a   :  { %p2312_p12 = pnand %p2310_p11, %p2307_p10 }
  0x3c   :  { %2315 = shalt.err (!%p2312_p12)
}
  0x3d   :  { %s2316_s1 = scalar_lea.vmem %s2506_s29, 512  ;;  %p2321_p0 = scmp.lt.s32.totalorder %s2506_s29, %s2506_s29 }
  0x3e   :  { %p2317_p13 = scmp.ne.s32.totalorder %s2506_s29, %s2316_s1  ;;  %p2322_p1 = scmp.lt.s32.totalorder %s2316_s1, %s2316_s1 }
  0x40   :  { %p2323_p2 = por %p2322_p1, %p2321_p0 }
  0x42   :  { %p2324_p3 = pnand %p2323_p2, %p2317_p13 }
  0x44   :  { %2327 = shalt.err (!%p2324_p3)
}
  0x45   :  { %28 = dma.hbm_to_vmem [thread:$0]  %s3022_s0, 512, %s2506_s29, [#allocation5], %s2432_s11, %s2432_s11, %s2433_s12  }
  0x46   :  { %s2434_s26 = smov [#allocation9]   ;;  %s2435_s28 = smov [#allocation12]  }
  0x47   :  { %s47_s27 = sshll.u32 %s2434_s26, 4  ;;  %s69_s30 = sshll.u32 %s2435_s28, 4  ;;  %s48_s27 = int_to_ptr.vmem [resolvable:$true] %s47_s27  ;;  %s70_s30 = int_to_ptr.vmem [resolvable:$true] %s69_s30 }
  0x48   :  { %s2328_s10 = scalar_lea.hbm %s3024_s2, 48 }
  0x49   :  { %p2329_p4 = scmp.ne.s32.totalorder %s3024_s2, %s2328_s10  ;;  %p2332_p5 = scmp.lt.u32.totalorder %s2328_s10, %s3024_s2 }
  0x4b   :  { %p2334_p6 = pnand %p2332_p5, %p2329_p4 }
  0x4d   :  { %2337 = shalt.err (!%p2334_p6)
}
  0x4e   :  { %s2338_s0 = scalar_lea.vmem %s48_s27, 48  ;;  %s2342_s29 = scalar_lea.vmem %s48_s27, 64 }
  0x4f   :  { %p2339_p7 = scmp.ne.s32.totalorder %s48_s27, %s2338_s0  ;;  %p2343_p8 = scmp.lt.s32.totalorder %s48_s27, %s48_s27 }
  0x50   :  { %p2344_p9 = scmp.lt.s32.totalorder %s2342_s29, %s2338_s0 }
  0x52   :  { %p2345_p10 = por %p2344_p9, %p2343_p8 }
  0x54   :  { %p2346_p11 = pnand %p2345_p10, %p2339_p7 }
  0x56   :  { %2349 = shalt.err (!%p2346_p11)
}
  0x57   :  { %50 = dma.hbm_to_vmem [thread:$0]  %s3024_s2, 48, %s48_s27, [#allocation8]  }
  0x58   :  { %s2350_s18 = scalar_lea.hbm %s3026_s4, 16 }
  0x59   :  { %p2351_p12 = scmp.ne.s32.totalorder %s3026_s4, %s2350_s18  ;;  %p2354_p13 = scmp.lt.u32.totalorder %s2350_s18, %s3026_s4 }
  0x5b   :  { %p2356_p0 = pnand %p2354_p13, %p2351_p12 }
  0x5d   :  { %2359 = shalt.err (!%p2356_p0)
}
  0x5e   :  { %s2360_s23 = scalar_lea.vmem %s70_s30, 16  ;;  %s2364_s24 = scalar_lea.vmem %s70_s30, 32 }
  0x5f   :  { %p2361_p1 = scmp.ne.s32.totalorder %s70_s30, %s2360_s23  ;;  %p2365_p2 = scmp.lt.s32.totalorder %s70_s30, %s70_s30 }
  0x60   :  { %p2366_p3 = scmp.lt.s32.totalorder %s2364_s24, %s2360_s23 }
  0x62   :  { %p2367_p4 = por %p2366_p3, %p2365_p2 }
  0x64   :  { %p2368_p5 = pnand %p2367_p4, %p2361_p1 }
  0x66   :  { %2371 = shalt.err (!%p2368_p5)
}
  0x67   :  { %72 = dma.hbm_to_vmem [thread:$0]  %s3026_s4, 16, %s70_s30, [#allocation11]  }
  0x68   :  { %s2436_s5 = smov [#allocation15]   ;;  %s2372_s28 = scalar_lea.hbm %s3028_s6, 16 }
  0x69   :  { %s91_s25 = sshll.u32 %s2436_s5, 4  ;;  %p2373_p6 = scmp.ne.s32.totalorder %s3028_s6, %s2372_s28  ;;  %s92_s25 = int_to_ptr.vmem [resolvable:$true] %s91_s25 }
  0x6a   :  { %p2376_p7 = scmp.lt.u32.totalorder %s2372_s28, %s3028_s6 }
  0x6c   :  { %p2378_p8 = pnand %p2376_p7, %p2373_p6 }
  0x6e   :  { %2381 = shalt.err (!%p2378_p8)
}
  0x6f   :  { %s2382_s14 = scalar_lea.vmem %s92_s25, 16  ;;  %s2386_s4 = scalar_lea.vmem %s92_s25, 32 }
  0x70   :  { %p2383_p9 = scmp.ne.s32.totalorder %s92_s25, %s2382_s14  ;;  %p2387_p10 = scmp.lt.s32.totalorder %s92_s25, %s92_s25 }
  0x71   :  { %p2388_p11 = scmp.lt.s32.totalorder %s2386_s4, %s2382_s14 }
  0x73   :  { %p2389_p12 = por %p2388_p11, %p2387_p10 }
  0x75   :  { %p2390_p13 = pnand %p2389_p12, %p2383_p9 }
  0x77   :  { %2393 = shalt.err (!%p2390_p13)
}
  0x78   :  { %94 = dma.hbm_to_vmem [thread:$0]  %s3028_s6, 16, %s92_s25, [#allocation14]  }
  0x79   :  { %2416 = dma.done.wait [#allocation5], 512  }
  0x7a   :  { %2417 = vsyncadd [#allocation5], 4294966784 }
  0x7b   :  { %2418 = dma.done.wait [#allocation8], 3120  }
  0x7c   :  { %2419 = vsyncadd [#allocation8], 4294964176 }
  0x7d   :  { %2420 = dma.done.wait [#allocation11], 3088  }
  0x7e   :  { %2421 = vsyncadd [#allocation11], 4294964208 }
  0x7f   :  { %2422 = dma.done.wait [#allocation14], 1040  }
  0x80   :  { %2423 = vsyncadd [#allocation14], 4294966256  ;;  %v3030_v0 = vmov 0   ;;  %v2066_v1 = vld [vmem:[#allocation7 + $0x4] ss:$12 sps:$4 sm:$0xff]   ;;  %v2101_v31 = vld [vmem:[#allocation4 + $0x8] sm:$0xff]   ;;  %v164_v55 = vlaneseq }
  0x81   :  { %363 = vmatprep.mubr.bf16.mxu0 %v3030_v0  ;;  %v2068_v2 = vld [vmem:[#allocation7] ss:$12 sps:$4 sm:$0xff]   ;;  %331 = vmatprep.subr.bf16.mxu0 %v2066_v1  ;;  %v2069_v3 = vld [vmem:[#allocation7 + $0x1c] ss:$12 sps:$4 sm:$0xff]   ;;  %v2071_v4 = vld [vmem:[#allocation7 + $0x18] ss:$12 sps:$4 sm:$0xff]  }
  0x82   :  { %332 = vmatpush1.bf16.msra.mxu0 %v2068_v2  ;;  %v2072_v5 = vld [vmem:[#allocation7 + $0x34] ss:$12 sps:$4 sm:$0xff]   ;;  %v2074_v6 = vld [vmem:[#allocation7 + $0x30] ss:$12 sps:$4 sm:$0xff]   ;;  %v2075_v7 = vld [vmem:[#allocation7 + $0x4c] ss:$12 sps:$4 sm:$0xff]  }
  0x83   :  { %333 = vmatprep.subr.bf16.mxu0 %v2069_v3  ;;  %v2086_v8 = vld [vmem:[#allocation7 + $0x8] ss:$12 sps:$4 sm:$0xff]   ;;  %v2078_v10 = vld [vmem:[#allocation7 + $0x64] ss:$12 sps:$4 sm:$0xff]   ;;  %v2090_v11 = vld [vmem:[#allocation7 + $0x20] ss:$12 sps:$4 sm:$0xff]  }
  0x84   :  { %v2077_v9 = vld [vmem:[#allocation7 + $0x48] ss:$12 sps:$4 sm:$0xff]   ;;  %1846 = vmatprep.subr.bf16.mxu1 %v2086_v8  ;;  %v2092_v12 = vld [vmem:[#allocation4] sm:$0xff]   ;;  %v2097_v16 = vld [vmem:[#allocation7 + $0x50] ss:$12 sps:$4 sm:$0xff]   ;;  %v3032_v36 = vmov 0.0  }
  0x85   :  { %1847 = vmatpush3.bf16.msra.mxu1 %v2086_v8  ;;  %v2093_v13 = vld [vmem:[#allocation7 + $0x38] ss:$12 sps:$4 sm:$0xff]   ;;  %v2080_v14 = vld [vmem:[#allocation7 + $0x60] ss:$12 sps:$4 sm:$0xff]   ;;  %1862 = vmatprep.mubr.bf16.mxu1 %v2092_v12  ;;  %v2081_v15 = vld [vmem:[#allocation7 + $0x7c] ss:$12 sps:$4 sm:$0xff]  }
  0x86   :  { %334 = vmatpush1.bf16.msra.mxu0 %v2071_v4  ;;  %1848 = vmatprep.subr.bf16.mxu1 %v2090_v11  ;;  %v2083_v17 = vld [vmem:[#allocation7 + $0x78] ss:$12 sps:$4 sm:$0xff]   ;;  %v2084_v18 = vld [vmem:[#allocation7 + $0x94] ss:$12 sps:$4 sm:$0xff]   ;;  %v2087_v20 = vld [vmem:[#allocation7 + $0x90] ss:$12 sps:$4 sm:$0xff]  }
  0x87   :  { %335 = vmatprep.subr.bf16.mxu0 %v2072_v5  ;;  %v2102_v19 = vld [vmem:[#allocation7 + $0x68] ss:$12 sps:$4 sm:$0xff]   ;;  %v2088_v21 = vld [vmem:[#allocation7 + $0xac] ss:$12 sps:$4 sm:$0xff]   ;;  %v2576_v26 = vld [vmem:[#allocation10] ss:$12 sps:$4 sm:$0xff]  }
  0x88   :  { %v2106_v22 = vld [vmem:[#allocation7 + $0x80] ss:$12 sps:$4 sm:$0xff]   ;;  %v2091_v23 = vld [vmem:[#allocation7 + $0xa8] ss:$12 sps:$4 sm:$0xff]   ;;  %v2111_v25 = vld [vmem:[#allocation7 + $0x98] ss:$12 sps:$4 sm:$0xff]  }
  0x89   :  { %1849 = vmatpush3.bf16.msra.mxu1 %v2090_v11  ;;  %v2574_v24 = vld [vmem:[#allocation10 + $0x4] ss:$12 sps:$4 sm:$0xff]   ;;  %v2579_v27 = vld [vmem:[#allocation10 + $0x1c] ss:$12 sps:$4 sm:$0xff]   ;;  %v2115_v28 = vld [vmem:[#allocation7 + $0xb0] ss:$12 sps:$4 sm:$0xff]  }
  0x8a   :  { %336 = vmatpush1.bf16.msra.mxu0 %v2074_v6  ;;  %1850 = vmatprep.subr.bf16.mxu1 %v2093_v13  ;;  %v2582_v29 = vld [vmem:[#allocation10 + $0x18] ss:$12 sps:$4 sm:$0xff]   ;;  %v2586_v30 = vld [vmem:[#allocation10 + $0x34] ss:$12 sps:$4 sm:$0xff]   ;;  %v2589_v32 = vld [vmem:[#allocation10 + $0x30] ss:$12 sps:$4 sm:$0xff]  }
  0x8b   :  { %337 = vmatprep.subr.bf16.mxu0 %v2075_v7  ;;  %v2592_v33 = vld [vmem:[#allocation10 + $0x4c] ss:$12 sps:$4 sm:$0xff]   ;;  %v2594_v34 = vld [vmem:[#allocation10 + $0x48] ss:$12 sps:$4 sm:$0xff]   ;;  %v2599_v38 = vld [vmem:[#allocation10 + $0x64] ss:$12 sps:$4 sm:$0xff]  }
  0x8c   :  { %v2110_v35 = vld [vmem:[#allocation4 + $0x10] sm:$0xff]   ;;  %v2597_v37 = vld [vmem:[#allocation10 + $0x8] ss:$12 sps:$4 sm:$0xff]   ;;  %v2615_v42 = vld [vmem:[#allocation10 + $0x38] ss:$12 sps:$4 sm:$0xff]   ;;  %vm2439_vm0 = vmmov 0  }
  0x8d   :  { %1851 = vmatpush3.bf16.msra.mxu1 %v2093_v13  ;;  %v2603_v39 = vld [vmem:[#allocation10 + $0x20] ss:$12 sps:$4 sm:$0xff]   ;;  %v2612_v41 = vld [vmem:[#allocation10 + $0x7c] ss:$12 sps:$4 sm:$0xff]   ;;  %v2119_v43 = vld [vmem:[#allocation4 + $0x18] sm:$0xff]   ;;  %v2440_v53 = vmov 0.0|0.0  }
  0x8e   :  { %338 = vmatpush1.bf16.msra.mxu0 %v2077_v9  ;;  %1852 = vmatprep.subr.bf16.mxu1 %v2097_v16  ;;  %v2609_v40 = vld [vmem:[#allocation10 + $0x60] ss:$12 sps:$4 sm:$0xff]   ;;  %v2619_v44 = vld [vmem:[#allocation10 + $0x78] ss:$12 sps:$4 sm:$0xff]   ;;  %v2626_v46 = vld [vmem:[#allocation10 + $0x50] ss:$12 sps:$4 sm:$0xff]  }
  0x8f   :  { %339 = vmatprep.subr.bf16.mxu0 %v2078_v10  ;;  %v2623_v45 = vld [vmem:[#allocation10 + $0x94] ss:$12 sps:$4 sm:$0xff]   ;;  %v2632_v47 = vld [vmem:[#allocation10 + $0x90] ss:$12 sps:$4 sm:$0xff]   ;;  %v2635_v48 = vld [vmem:[#allocation10 + $0xac] ss:$12 sps:$4 sm:$0xff]  }
  0x90   :  { %v2638_v49 = vld [vmem:[#allocation10 + $0x68] ss:$12 sps:$4 sm:$0xff]   ;;  %v2647_v51 = vld [vmem:[#allocation10 + $0x80] ss:$12 sps:$4 sm:$0xff]   ;;  %v2653_v52 = vld [vmem:[#allocation10 + $0x98] ss:$12 sps:$4 sm:$0xff]  }
  0x91   :  { %1853 = vmatpush3.bf16.msra.mxu1 %v2097_v16  ;;  %v2642_v50 = vld [vmem:[#allocation10 + $0xa8] ss:$12 sps:$4 sm:$0xff]   ;;  %v2660_v54 = vld [vmem:[#allocation10 + $0xb0] ss:$12 sps:$4 sm:$0xff]   ;;  %v165_v56 = vshrl.u32 %v164_v55, 7  ;;  %s2441_s6 = smov [#allocation16]  }
  0x92   :  { %340 = vmatpush1.bf16.msra.mxu0 %v2080_v14  ;;  %1854 = vmatprep.subr.bf16.mxu1 %v2102_v19  ;;  %v162_v58 = vld [vmem:[#allocation9] sm:$0x7]  ;;  %s1656_s3 = sshll.u32 %s2441_s6, 4  ;;  %s1657_s3 = int_to_ptr.vmem [resolvable:$true] %s1656_s3 }
  0x93   :  { %341 = vmatprep.subr.bf16.mxu0 %v2081_v15  ;;  %v166_v57 = vsub.s32 0, %v165_v56  ;;  %v170_v59 = vsub.s32 1, %v165_v56  ;;  %v174_v4 = vsub.s32 2, %v165_v56  ;;  %s2394_s0 = scalar_lea.vmem %s1657_s3, 128  ;;  %p2399_p1 = scmp.lt.s32.totalorder %s1657_s3, %s1657_s3 }
  0x94   :  { %p2395_p0 = scmp.ne.s32.totalorder %s1657_s3, %s2394_s0  ;;  %p2400_p2 = scmp.lt.s32.totalorder %s2394_s0, %s2394_s0 }
  0x95   :  { %1855 = vmatpush3.bf16.msra.mxu1 %v2102_v19  ;;  %v167_v61 = vrot.slane %v162_v58, %v166_v57  ;;  %v171_v63 = vrot.slane %v162_v58, %v170_v59  ;;  %v2701_v6 = vrot.slane %v162_v58, %v174_v4 }
  0x96   :  { %342 = vmatpush1.bf16.msra.mxu0 %v2083_v17  ;;  %1856 = vmatprep.subr.bf16.mxu1 %v2106_v22  ;;  %p2401_p3 = por %p2400_p2, %p2399_p1 }
  0x97   :  { %343 = vmatprep.subr.bf16.mxu0 %v2084_v18 }
  0x98   :  { %p2402_p4 = pnand %p2401_p3, %p2395_p0 }
  0x99   :  { %1857 = vmatpush3.bf16.msra.mxu1 %v2106_v22 }
  0x9a   :  { %344 = vmatpush1.bf16.msra.mxu0 %v2087_v20  ;;  %1858 = vmatprep.subr.bf16.mxu1 %v2111_v25 }
  0x9b   :  { %345 = vmatprep.subr.bf16.mxu0 %v2088_v21 }
  0x9d   :  { %1859 = vmatpush3.bf16.msra.mxu1 %v2111_v25 }
  0x9e   :  { %346 = vmatpush1.bf16.msra.mxu0 %v2091_v23  ;;  %1860 = vmatprep.subr.bf16.mxu1 %v2115_v28 }
  0x9f   :  { %668 = vmatprep.subr.bf16.mxu0 %v2574_v24 }
  0xa1   :  { %364 = vmatmul.mubr.bf16.vlgmr.msra.gmra.mrb[0].mxu0 %v2092_v12  ;;  %1861 = vmatpush3.bf16.msra.mxu1 %v2115_v28 }
  0xa2   :  { %669 = vmatpush1.bf16.msra.mxu0 %v2576_v26  ;;  %373 = vmatprep.mubr.bf16.mxu0 %v3030_v0 }
  0xa3   :  { %670 = vmatprep.subr.bf16.mxu0 %v2579_v27  ;;  %1870 = vmatprep.subr.bf16.mxu1 %v3032_v36 }
  0xa4   :  { %1863 = vmatmul.mubr.bf16.vlgmr.msra.gmra.mrb[0].mxu1 %v2101_v31 }
  0xa5   :  { %1871 = vmatpush3.bf16.msra.mxu1 %v2597_v37  ;;  %1866 = vmatprep.mubr.bf16.mxu1 %v2110_v35 }
  0xa6   :  { %671 = vmatpush1.bf16.msra.mxu0 %v2582_v29  ;;  %1872 = vmatprep.subr.bf16.mxu1 %v3032_v36 }
  0xa7   :  { %672 = vmatprep.subr.bf16.mxu0 %v2586_v30 }
  0xa9   :  { %374 = vmatmul.mubr.bf16.gmra.mrb[4].mxu0 %v2101_v31  ;;  %1873 = vmatpush3.bf16.msra.mxu1 %v2603_v39 }
  0xaa   :  { %673 = vmatpush1.bf16.msra.mxu0 %v2589_v32  ;;  %383 = vmatprep.mubr.bf16.mxu0 %v3030_v0 }
  0xab   :  { %674 = vmatprep.subr.bf16.mxu0 %v2592_v33  ;;  %1874 = vmatprep.subr.bf16.mxu1 %v3032_v36 }
  0xac   :  { %1867 = vmatmul.mubr.bf16.gmra.mrb[4].mxu1 %v2119_v43 }
  0xad   :  { %1875 = vmatpush3.bf16.msra.mxu1 %v2615_v42  ;;  %1886 = vmatprep.mubr.msk.bf16.mxu1 %vm2439_vm0, %v3032_v36 }
  0xae   :  { %675 = vmatpush1.bf16.msra.mxu0 %v2594_v34  ;;  %1876 = vmatprep.subr.bf16.mxu1 %v3032_v36 }
  0xaf   :  { %676 = vmatprep.subr.bf16.mxu0 %v2599_v38 }
  0xb1   :  { %384 = vmatmul.mubr.bf16.gmra.mrb[8].mxu0 %v2110_v35  ;;  %1877 = vmatpush3.bf16.msra.mxu1 %v2626_v46 }
  0xb2   :  { %677 = vmatpush1.bf16.msra.mxu0 %v2609_v40  ;;  %393 = vmatprep.mubr.bf16.mxu0 %v3030_v0 }
  0xb3   :  { %678 = vmatprep.subr.bf16.mxu0 %v2612_v41  ;;  %1878 = vmatprep.subr.bf16.mxu1 %v3032_v36 }
  0xb5   :  { %1879 = vmatpush3.bf16.msra.mxu1 %v2638_v49 }
  0xb6   :  { %679 = vmatpush1.bf16.msra.mxu0 %v2619_v44  ;;  %1880 = vmatprep.subr.bf16.mxu1 %v3032_v36 }
  0xb7   :  { %680 = vmatprep.subr.bf16.mxu0 %v2623_v45 }
  0xb9   :  { %394 = vmatmul.mubr.bf16.gmra.mrb[12].mxu0 %v2119_v43  ;;  %1881 = vmatpush3.bf16.msra.mxu1 %v2647_v51 }
  0xba   :  { %681 = vmatpush1.bf16.msra.mxu0 %v2632_v47  ;;  %700 = vmatprep.mubr.bf16.mxu0 %v3030_v0 }
  0xbb   :  { %682 = vmatprep.subr.bf16.mxu0 %v2635_v48  ;;  %1882 = vmatprep.subr.bf16.mxu1 %v3032_v36 }
  0xbd   :  { %1883 = vmatpush3.bf16.msra.mxu1 %v2653_v52 }
  0xbe   :  { %683 = vmatpush1.bf16.msra.mxu0 %v2642_v50  ;;  %1884 = vmatprep.subr.bf16.mxu1 %v3032_v36 }
  0xbf   :  { %777 = vmatprep.subr.bf16.mxu0 %v2574_v24 }
  0xc1   :  { %701 = vmatmul.mubr.bf16.vlgmr.msra.gmra.mrb[16].mxu0 %v2440_v53  ;;  %1885 = vmatpush3.bf16.msra.mxu1 %v2660_v54 }
  0xc2   :  { %778 = vmatpush1.bf16.msra.mxu0 %v2576_v26  ;;  %809 = vmatprep.mubr.bf16.mxu0 %v3030_v0 }
  0xc3   :  { %779 = vmatprep.subr.bf16.mxu0 %v2579_v27  ;;  %1890 = vmatprep.subr.bf16.mxu1 %v3032_v36 }
  0xc4   :  { %1887 = vmatmul.mubr.bf16.vlgmr.msra.gmra.mrb[8].mxu1 %v2440_v53 }
  0xc5   :  { %1891 = vmatpush3.bf16.msra.mxu1 %v2597_v37  ;;  %1906 = vmatprep.mubr.msk.bf16.mxu1 %vm2439_vm0, %v3032_v36 }
  0xc6   :  { %780 = vmatpush1.bf16.msra.mxu0 %v2582_v29  ;;  %1892 = vmatprep.subr.bf16.mxu1 %v3032_v36 }
  0xc7   :  { %781 = vmatprep.subr.bf16.mxu0 %v2586_v30 }
  0xc9   :  { %1893 = vmatpush3.bf16.msra.mxu1 %v2603_v39 }
  0xca   :  { %782 = vmatpush1.bf16.msra.mxu0 %v2589_v32  ;;  %1894 = vmatprep.subr.bf16.mxu1 %v3032_v36 }
  0xcb   :  { %783 = vmatprep.subr.bf16.mxu0 %v2592_v33 }
  0xcd   :  { %1895 = vmatpush3.bf16.msra.mxu1 %v2615_v42 }
  0xce   :  { %784 = vmatpush1.bf16.msra.mxu0 %v2594_v34  ;;  %1896 = vmatprep.subr.bf16.mxu1 %v3032_v36 }
  0xcf   :  { %785 = vmatprep.subr.bf16.mxu0 %v2599_v38 }
  0xd1   :  { %1897 = vmatpush3.bf16.msra.mxu1 %v2626_v46 }
  0xd2   :  { %786 = vmatpush1.bf16.msra.mxu0 %v2609_v40  ;;  %1898 = vmatprep.subr.bf16.mxu1 %v3032_v36 }
  0xd3   :  { %787 = vmatprep.subr.bf16.mxu0 %v2612_v41 }
  0xd5   :  { %1899 = vmatpush3.bf16.msra.mxu1 %v2638_v49 }
  0xd6   :  { %788 = vmatpush1.bf16.msra.mxu0 %v2619_v44  ;;  %1900 = vmatprep.subr.bf16.mxu1 %v3032_v36 }
  0xd7   :  { %789 = vmatprep.subr.bf16.mxu0 %v2623_v45 }
  0xd9   :  { %1901 = vmatpush3.bf16.msra.mxu1 %v2647_v51 }
  0xda   :  { %790 = vmatpush1.bf16.msra.mxu0 %v2632_v47  ;;  %1902 = vmatprep.subr.bf16.mxu1 %v3032_v36 }
  0xdb   :  { %791 = vmatprep.subr.bf16.mxu0 %v2635_v48 }
  0xdd   :  { %1903 = vmatpush3.bf16.msra.mxu1 %v2653_v52 }
  0xde   :  { %792 = vmatpush1.bf16.msra.mxu0 %v2642_v50  ;;  %1904 = vmatprep.subr.bf16.mxu1 %v3032_v36 }
  0xdf   :  { %886 = vmatprep.subr.bf16.mxu0 %v2574_v24 }
  0xe1   :  { %1905 = vmatpush3.bf16.msra.mxu1 %v2660_v54 }
  0xe2   :  { %1910 = vmatprep.subr.bf16.mxu1 %v3032_v36 }
 0x174   :  { %v365_v60 = vpop.f32.mrb[0].mxu0 }
 0x175   :  { %v367_v62 = vpop.f32.mrb[1].mxu0 }
 0x176   :  { %v369_v1 = vpop.f32.mrb[2].mxu0 }
 0x177   :  { %v2697_v2 = vadd.f32 %v369_v1, %v167_v61  ;;  %v371_v3 = vpop.f32.mrb[3].mxu0  ;;  %v1864_v12 = vpop.f32.mrb[0].mxu1 }
 0x178   :  { %v2699_v5 = vadd.f32 %v371_v3, %v171_v63  ;;  %v2710_v15 = vadd.f32 %v1864_v12, %v2701_v6  ;;  %v438_v16 = vpop.f32.mrb[1].mxu1 }
 0x179   :  { %v1865_v18 = vpop.f32.mrb[2].mxu1 }
 0x17a   :  { %v2715_v19 = vadd.f32 %v1865_v18, %v2701_v6  ;;  %v441_v20 = vpop.f32.mrb[3].mxu1 }
 0x17b   :  { %v2718_v21 = vadd.f32 %v441_v20, %v2701_v6 }
 0x17c   :  { %v375_v7 = vpop.f32.mrb[4].mxu0 }
 0x17d   :  { %v2703_v8 = vadd.f32 %v375_v7, %v167_v61  ;;  %v377_v9 = vpop.f32.mrb[5].mxu0 }
 0x17e   :  { %v2705_v10 = vadd.f32 %v377_v9, %v171_v63  ;;  %v379_v11 = vpop.f32.mrb[6].mxu0 }
 0x17f   :  { %v2707_v13 = vadd.f32 %v379_v11, %v167_v61  ;;  %v381_v14 = vpop.f32.mrb[7].mxu0  ;;  %v1868_v35 = vpop.f32.mrb[4].mxu1 }
 0x180   :  { %v2712_v17 = vadd.f32 %v381_v14, %v171_v63  ;;  %v2727_v55 = vadd.f32 %v1868_v35, %v2701_v6  ;;  %v454_v56 = vpop.f32.mrb[5].mxu1 }
 0x181   :  { %v2732_v58 = vadd.f32 %v454_v56, %v2701_v6  ;;  %v1869_v59 = vpop.f32.mrb[6].mxu1 }
 0x182   :  { %3034 = vst [vmem:[#allocation22_spill] sm:$0xff] %v2727_v55  ;;  %v2735_v1 = vadd.f32 %v1869_v59, %v2701_v6  ;;  %v457_v3 = vpop.f32.mrb[7].mxu1 }
 0x183   :  { %v2738_v4 = vadd.f32 %v457_v3, %v2701_v6 }
 0x184   :  { %v385_v22 = vpop.f32.mrb[8].mxu0  ;;  %3035 = vst [vmem:[#allocation23_spill] sm:$0xff] %v2735_v1 }
 0x185   :  { %v2720_v23 = vadd.f32 %v385_v22, %v167_v61  ;;  %v387_v25 = vpop.f32.mrb[9].mxu0 }
 0x186   :  { %v2722_v28 = vadd.f32 %v387_v25, %v171_v63  ;;  %v389_v31 = vpop.f32.mrb[10].mxu0  ;;  %v366_v25 = vadd.f32 %v365_v60, %v167_v61 }
 0x187   :  { %v2724_v43 = vadd.f32 %v389_v31, %v167_v61  ;;  %v391_v53 = vpop.f32.mrb[11].mxu0  ;;  %v368_v31 = vadd.f32 %v367_v62, %v171_v63 }
 0x188   :  { %v2729_v57 = vadd.f32 %v391_v53, %v171_v63 }
 0x18c   :  { %v395_v7 = vpop.f32.mrb[12].mxu0 }
 0x18d   :  { %v2740_v9 = vadd.f32 %v395_v7, %v167_v61  ;;  %v397_v11 = vpop.f32.mrb[13].mxu0 }
 0x18e   :  { %v2742_v12 = vadd.f32 %v397_v11, %v171_v63  ;;  %v399_v14 = vpop.f32.mrb[14].mxu0 }
 0x18f   :  { %v2744_v18 = vadd.f32 %v399_v14, %v167_v61  ;;  %v401_v20 = vpop.f32.mrb[15].mxu0 }
 0x190   :  { %3036 = vst [vmem:[#allocation24_spill] sm:$0xff] %v2742_v12  ;;  %v2746_v22 = vadd.f32 %v401_v20, %v171_v63  ;;  %v2748_v20 = vld [vmem:[#allocation12] ss:$0 sm:$0xff]  ;;  %v439_v63 = vadd.f32 %v438_v16, %v2701_v6  ;;  %v3038_v6 = vmov 0.0   ;;  %v3039_v16 = vmov 0  }
 0x191   :  { %3037 = vst [vmem:[#allocation25_spill] sm:$0xff] %v2744_v18 }
 0x194   :  { %v702_v35 = vpop.f32.mrb[16].mxu0 }
 0x195   :  { %v749_v53 = vadd.f32 %v702_v35, %v366_v25  ;;  %v704_v56 = vpop.f32.mrb[17].mxu0 }
 0x196   :  { %v756_v59 = vadd.f32 %v704_v56, %v368_v31  ;;  %v706_v3 = vpop.f32.mrb[18].mxu0 }
 0x197   :  { %v1728_v0 = vmul.f32 -1.442695, %v749_v53  ;;  %v707_v36 = vpop.f32.mrb[19].mxu0  ;;  %v743_v7 = vpop.f32.mrb[8].mxu1 }
 0x198   :  { %v1888_v1 = vpop.f32.mrb[9].mxu1  ;;  %v1729_v55 = vmul.f32 -1.442695, %v756_v59  ;;  %v763_v60 = vadd.f32 %v2748_v20, %v743_v7 }
 0x199   :  { %2142 = vpow2.f32 %v1728_v0  ;;  %v746_v11 = vpop.f32.mrb[10].mxu1 }
 0x19a   :  { %v1889_v12 = vpop.f32.mrb[11].mxu1  ;;  %2144 = vpow2.f32 %v1729_v55 }
 0x1a3   :  { %v2143_v14 = vpop.eup %2142 }
 0x1a4   :  { %v753_v18 = vadd.f32 1.0, %v2143_v14  ;;  %v2145_v61 = vpop.eup %2144 }
 0x1a5   :  { %v760_v36 = vadd.f32 1.0, %v2145_v61 }
 0x1a6   :  { %2146 = vrcp.f32 %v753_v18 }
 0x1b0   :  { %v2147_v62 = vpop.eup %2146 }
 0x1b1   :  { %v764_v25 = vmul.f32 %v2147_v62, %v763_v60 }
 0x1b3   :  { %v765_v0 = vadd.f32 %v764_v25, %v439_v63 }
 0x1b5   :  { %2148 = vtanh.f32 %v765_v0 }
 0x1b6   :  { %2150 = vrcp.f32 %v760_v36 }
 0x1bf   :  { %v2149_v1 = vpop.eup %2148 }
 0x1c0   :  { %v767_v31 = vsub.f32 0.0, %v2149_v1  ;;  %v2151_v12 = vpop.eup %2150 }
 0x1c2   :  { %v768_v35 = vmul.f32 %v2151_v12, %v767_v31 }
 0x1c4   :  { %v2752_v53 = vadd.f32 %v2149_v1, %v768_v35 }
 0x1c6   :  { %v776_v55 = vpack.c.bf16 %v2752_v53, %v2752_v53 }
 0x1c8   :  { %810 = vmatmul.mubr.bf16.vlgmr.msra.gmra.mrb[20].mxu0 %v776_v55  ;;  %1907 = vmatmul.mubr.bf16.vlgmr.msra.gmra.mrb[12].mxu1 %v776_v55 }
 0x1c9   :  { %887 = vmatpush1.bf16.msra.mxu0 %v2576_v26  ;;  %1911 = vmatpush3.bf16.msra.mxu1 %v2597_v37 }
 0x1ca   :  { %888 = vmatprep.subr.bf16.mxu0 %v2579_v27  ;;  %1912 = vmatprep.subr.bf16.mxu1 %v3038_v6 }
 0x1cb   :  { %918 = vmatprep.mubr.bf16.mxu0 %v3039_v16  ;;  %1926 = vmatprep.mubr.msk.bf16.mxu1 %vm2439_vm0, %v3038_v6 }
 0x1cd   :  { %889 = vmatpush1.bf16.msra.mxu0 %v2582_v29  ;;  %1913 = vmatpush3.bf16.msra.mxu1 %v2603_v39 }
 0x1ce   :  { %890 = vmatprep.subr.bf16.mxu0 %v2586_v30  ;;  %1914 = vmatprep.subr.bf16.mxu1 %v3038_v6 }
 0x1d1   :  { %891 = vmatpush1.bf16.msra.mxu0 %v2589_v32  ;;  %1915 = vmatpush3.bf16.msra.mxu1 %v2615_v42 }
 0x1d2   :  { %892 = vmatprep.subr.bf16.mxu0 %v2592_v33  ;;  %1916 = vmatprep.subr.bf16.mxu1 %v3038_v6 }
 0x1d5   :  { %893 = vmatpush1.bf16.msra.mxu0 %v2594_v34  ;;  %1917 = vmatpush3.bf16.msra.mxu1 %v2626_v46 }
 0x1d6   :  { %894 = vmatprep.subr.bf16.mxu0 %v2599_v38  ;;  %1918 = vmatprep.subr.bf16.mxu1 %v3038_v6 }
 0x1d9   :  { %895 = vmatpush1.bf16.msra.mxu0 %v2609_v40  ;;  %1919 = vmatpush3.bf16.msra.mxu1 %v2638_v49 }
 0x1da   :  { %896 = vmatprep.subr.bf16.mxu0 %v2612_v41  ;;  %1920 = vmatprep.subr.bf16.mxu1 %v3038_v6 }
 0x1dd   :  { %897 = vmatpush1.bf16.msra.mxu0 %v2619_v44  ;;  %1921 = vmatpush3.bf16.msra.mxu1 %v2647_v51 }
 0x1de   :  { %898 = vmatprep.subr.bf16.mxu0 %v2623_v45  ;;  %1922 = vmatprep.subr.bf16.mxu1 %v3038_v6 }
 0x1e1   :  { %899 = vmatpush1.bf16.msra.mxu0 %v2632_v47  ;;  %1923 = vmatpush3.bf16.msra.mxu1 %v2653_v52 }
 0x1e2   :  { %900 = vmatprep.subr.bf16.mxu0 %v2635_v48  ;;  %1924 = vmatprep.subr.bf16.mxu1 %v3038_v6 }
 0x1e5   :  { %901 = vmatpush1.bf16.msra.mxu0 %v2642_v50  ;;  %1925 = vmatpush3.bf16.msra.mxu1 %v2660_v54 }
 0x1e6   :  { %995 = vmatprep.subr.bf16.mxu0 %v2574_v24  ;;  %1930 = vmatprep.subr.bf16.mxu1 %v3038_v6 }
 0x29b   :  { %v811_v18 = vpop.f32.mrb[20].mxu0  ;;  %v852_v56 = vpop.f32.mrb[12].mxu1 }
 0x29c   :  { %v858_v59 = vadd.f32 %v811_v18, %v2697_v2  ;;  %v813_v3 = vpop.f32.mrb[21].mxu0  ;;  %v1908_v7 = vpop.f32.mrb[13].mxu1  ;;  %v872_v31 = vadd.f32 %v2748_v20, %v852_v56 }
 0x29d   :  { %v865_v11 = vadd.f32 %v813_v3, %v2699_v5  ;;  %v815_v14 = vpop.f32.mrb[22].mxu0  ;;  %v855_v60 = vpop.f32.mrb[14].mxu1 }
 0x29e   :  { %v1730_v61 = vmul.f32 -1.442695, %v858_v59  ;;  %v816_v62 = vpop.f32.mrb[23].mxu0  ;;  %v1909_v63 = vpop.f32.mrb[15].mxu1 }
 0x29f   :  { %v1731_v25 = vmul.f32 -1.442695, %v865_v11 }
 0x2a0   :  { %2152 = vpow2.f32 %v1730_v61 }
 0x2a1   :  { %2154 = vpow2.f32 %v1731_v25 }
 0x2aa   :  { %v2153_v36 = vpop.eup %2152 }
 0x2ab   :  { %v862_v0 = vadd.f32 1.0, %v2153_v36  ;;  %v2155_v1 = vpop.eup %2154 }
 0x2ac   :  { %v869_v55 = vadd.f32 1.0, %v2155_v1 }
 0x2ad   :  { %2156 = vrcp.f32 %v862_v0 }
 0x2b7   :  { %v2157_v12 = vpop.eup %2156 }
 0x2b8   :  { %v873_v2 = vmul.f32 %v2157_v12, %v872_v31 }
 0x2ba   :  { %v874_v35 = vadd.f32 %v873_v2, %v2718_v21 }
 0x2bc   :  { %2158 = vtanh.f32 %v874_v35 }
 0x2bd   :  { %2160 = vrcp.f32 %v869_v55 }
 0x2c6   :  { %v2159_v5 = vpop.eup %2158 }
 0x2c7   :  { %v876_v18 = vsub.f32 %v2752_v53, %v2159_v5  ;;  %v2161_v59 = vpop.eup %2160 }
 0x2c9   :  { %v877_v3 = vmul.f32 %v2161_v59, %v876_v18 }
 0x2cb   :  { %v2796_v7 = vadd.f32 %v2159_v5, %v877_v3 }
 0x2cd   :  { %v885_v11 = vpack.c.bf16 %v2796_v7, %v2796_v7 }
 0x2cf   :  { %919 = vmatmul.mubr.bf16.vlgmr.msra.gmra.mrb[24].mxu0 %v885_v11  ;;  %1927 = vmatmul.mubr.bf16.vlgmr.msra.gmra.mrb[16].mxu1 %v885_v11 }
 0x2d0   :  { %996 = vmatpush1.bf16.msra.mxu0 %v2576_v26  ;;  %1931 = vmatpush3.bf16.msra.mxu1 %v2597_v37 }
 0x2d1   :  { %997 = vmatprep.subr.bf16.mxu0 %v2579_v27  ;;  %1932 = vmatprep.subr.bf16.mxu1 %v3038_v6 }
 0x2d2   :  { %1027 = vmatprep.mubr.bf16.mxu0 %v3039_v16  ;;  %1946 = vmatprep.mubr.msk.bf16.mxu1 %vm2439_vm0, %v3038_v6 }
 0x2d4   :  { %998 = vmatpush1.bf16.msra.mxu0 %v2582_v29  ;;  %1933 = vmatpush3.bf16.msra.mxu1 %v2603_v39 }
 0x2d5   :  { %999 = vmatprep.subr.bf16.mxu0 %v2586_v30  ;;  %1934 = vmatprep.subr.bf16.mxu1 %v3038_v6 }
 0x2d8   :  { %1000 = vmatpush1.bf16.msra.mxu0 %v2589_v32  ;;  %1935 = vmatpush3.bf16.msra.mxu1 %v2615_v42 }
 0x2d9   :  { %1001 = vmatprep.subr.bf16.mxu0 %v2592_v33  ;;  %1936 = vmatprep.subr.bf16.mxu1 %v3038_v6 }
 0x2dc   :  { %1002 = vmatpush1.bf16.msra.mxu0 %v2594_v34  ;;  %1937 = vmatpush3.bf16.msra.mxu1 %v2626_v46 }
 0x2dd   :  { %1003 = vmatprep.subr.bf16.mxu0 %v2599_v38  ;;  %1938 = vmatprep.subr.bf16.mxu1 %v3038_v6 }
 0x2e0   :  { %1004 = vmatpush1.bf16.msra.mxu0 %v2609_v40  ;;  %1939 = vmatpush3.bf16.msra.mxu1 %v2638_v49 }
 0x2e1   :  { %1005 = vmatprep.subr.bf16.mxu0 %v2612_v41  ;;  %1940 = vmatprep.subr.bf16.mxu1 %v3038_v6 }
 0x2e4   :  { %1006 = vmatpush1.bf16.msra.mxu0 %v2619_v44  ;;  %1941 = vmatpush3.bf16.msra.mxu1 %v2647_v51 }
 0x2e5   :  { %1007 = vmatprep.subr.bf16.mxu0 %v2623_v45  ;;  %1942 = vmatprep.subr.bf16.mxu1 %v3038_v6 }
 0x2e8   :  { %1008 = vmatpush1.bf16.msra.mxu0 %v2632_v47  ;;  %1943 = vmatpush3.bf16.msra.mxu1 %v2653_v52 }
 0x2e9   :  { %1009 = vmatprep.subr.bf16.mxu0 %v2635_v48  ;;  %1944 = vmatprep.subr.bf16.mxu1 %v3038_v6 }
 0x2ec   :  { %1010 = vmatpush1.bf16.msra.mxu0 %v2642_v50  ;;  %1945 = vmatpush3.bf16.msra.mxu1 %v2660_v54 }
 0x2ed   :  { %1104 = vmatprep.subr.bf16.mxu0 %v2574_v24  ;;  %1950 = vmatprep.subr.bf16.mxu1 %v3038_v6 }
 0x3a2   :  { %v920_v21 = vpop.f32.mrb[24].mxu0  ;;  %v961_v53 = vpop.f32.mrb[16].mxu1 }
 0x3a3   :  { %v967_v56 = vadd.f32 %v920_v21, %v2703_v8  ;;  %v922_v14 = vpop.f32.mrb[25].mxu0  ;;  %v1928_v60 = vpop.f32.mrb[17].mxu1  ;;  %v981_v35 = vadd.f32 %v2748_v20, %v961_v53 }
 0x3a4   :  { %v974_v61 = vadd.f32 %v922_v14, %v2705_v10  ;;  %v924_v62 = vpop.f32.mrb[26].mxu0  ;;  %v964_v63 = vpop.f32.mrb[18].mxu1 }
 0x3a5   :  { %v1732_v25 = vmul.f32 -1.442695, %v967_v56  ;;  %v925_v36 = vpop.f32.mrb[27].mxu0  ;;  %v1929_v0 = vpop.f32.mrb[19].mxu1 }
 0x3a6   :  { %v1733_v1 = vmul.f32 -1.442695, %v974_v61 }
 0x3a7   :  { %2162 = vpow2.f32 %v1732_v25 }
 0x3a8   :  { %2164 = vpow2.f32 %v1733_v1 }
 0x3b1   :  { %v2163_v31 = vpop.eup %2162 }
 0x3b2   :  { %v971_v12 = vadd.f32 1.0, %v2163_v31  ;;  %v2165_v2 = vpop.eup %2164 }
 0x3b3   :  { %v978_v18 = vadd.f32 1.0, %v2165_v2 }
 0x3b4   :  { %2166 = vrcp.f32 %v971_v12 }
 0x3be   :  { %v2167_v55 = vpop.eup %2166 }
 0x3bf   :  { %v982_v8 = vmul.f32 %v2167_v55, %v981_v35 }
 0x3c1   :  { %v983_v5 = vadd.f32 %v982_v8, %v2710_v15 }
 0x3c3   :  { %2168 = vtanh.f32 %v983_v5 }
 0x3c4   :  { %2170 = vrcp.f32 %v978_v18 }
 0x3cd   :  { %v2169_v10 = vpop.eup %2168 }
 0x3ce   :  { %v985_v59 = vsub.f32 %v2796_v7, %v2169_v10  ;;  %v2171_v3 = vpop.eup %2170 }
 0x3d0   :  { %v986_v11 = vmul.f32 %v2171_v3, %v985_v59 }
 0x3d2   :  { %v2840_v21 = vadd.f32 %v2169_v10, %v986_v11 }
 0x3d4   :  { %v994_v56 = vpack.c.bf16 %v2840_v21, %v2840_v21 }
 0x3d6   :  { %1028 = vmatmul.mubr.bf16.vlgmr.msra.gmra.mrb[28].mxu0 %v994_v56  ;;  %1947 = vmatmul.mubr.bf16.vlgmr.msra.gmra.mrb[20].mxu1 %v994_v56 }
 0x3d7   :  { %1105 = vmatpush1.bf16.msra.mxu0 %v2576_v26  ;;  %1951 = vmatpush3.bf16.msra.mxu1 %v2597_v37 }
 0x3d8   :  { %1106 = vmatprep.subr.bf16.mxu0 %v2579_v27  ;;  %1952 = vmatprep.subr.bf16.mxu1 %v3038_v6 }
 0x3d9   :  { %1136 = vmatprep.mubr.bf16.mxu0 %v3039_v16  ;;  %1966 = vmatprep.mubr.msk.bf16.mxu1 %vm2439_vm0, %v3038_v6 }
 0x3db   :  { %1107 = vmatpush1.bf16.msra.mxu0 %v2582_v29  ;;  %1953 = vmatpush3.bf16.msra.mxu1 %v2603_v39 }
 0x3dc   :  { %1108 = vmatprep.subr.bf16.mxu0 %v2586_v30  ;;  %1954 = vmatprep.subr.bf16.mxu1 %v3038_v6 }
 0x3df   :  { %1109 = vmatpush1.bf16.msra.mxu0 %v2589_v32  ;;  %1955 = vmatpush3.bf16.msra.mxu1 %v2615_v42 }
 0x3e0   :  { %1110 = vmatprep.subr.bf16.mxu0 %v2592_v33  ;;  %1956 = vmatprep.subr.bf16.mxu1 %v3038_v6 }
 0x3e3   :  { %1111 = vmatpush1.bf16.msra.mxu0 %v2594_v34  ;;  %1957 = vmatpush3.bf16.msra.mxu1 %v2626_v46 }
 0x3e4   :  { %1112 = vmatprep.subr.bf16.mxu0 %v2599_v38  ;;  %1958 = vmatprep.subr.bf16.mxu1 %v3038_v6 }
 0x3e7   :  { %1113 = vmatpush1.bf16.msra.mxu0 %v2609_v40  ;;  %1959 = vmatpush3.bf16.msra.mxu1 %v2638_v49 }
 0x3e8   :  { %1114 = vmatprep.subr.bf16.mxu0 %v2612_v41  ;;  %1960 = vmatprep.subr.bf16.mxu1 %v3038_v6 }
 0x3eb   :  { %1115 = vmatpush1.bf16.msra.mxu0 %v2619_v44  ;;  %1961 = vmatpush3.bf16.msra.mxu1 %v2647_v51 }
 0x3ec   :  { %1116 = vmatprep.subr.bf16.mxu0 %v2623_v45  ;;  %1962 = vmatprep.subr.bf16.mxu1 %v3038_v6 }
 0x3ef   :  { %1117 = vmatpush1.bf16.msra.mxu0 %v2632_v47  ;;  %1963 = vmatpush3.bf16.msra.mxu1 %v2653_v52 }
 0x3f0   :  { %1118 = vmatprep.subr.bf16.mxu0 %v2635_v48  ;;  %1964 = vmatprep.subr.bf16.mxu1 %v3038_v6 }
 0x3f3   :  { %1119 = vmatpush1.bf16.msra.mxu0 %v2642_v50  ;;  %1965 = vmatpush3.bf16.msra.mxu1 %v2660_v54 }
 0x3f4   :  { %1213 = vmatprep.subr.bf16.mxu0 %v2574_v24  ;;  %1970 = vmatprep.subr.bf16.mxu1 %v3038_v6 }
 0x4a9   :  { %v1029_v15 = vpop.f32.mrb[28].mxu0  ;;  %v1070_v7 = vpop.f32.mrb[20].mxu1 }
 0x4aa   :  { %v1076_v53 = vadd.f32 %v1029_v15, %v2707_v13  ;;  %v1031_v14 = vpop.f32.mrb[29].mxu0  ;;  %v1948_v60 = vpop.f32.mrb[21].mxu1  ;;  %v1090_v35 = vadd.f32 %v2748_v20, %v1070_v7 }
 0x4ab   :  { %v1083_v61 = vadd.f32 %v1031_v14, %v2712_v17  ;;  %v1033_v62 = vpop.f32.mrb[30].mxu0  ;;  %v1073_v63 = vpop.f32.mrb[22].mxu1 }
 0x4ac   :  { %v1734_v25 = vmul.f32 -1.442695, %v1076_v53  ;;  %v1034_v36 = vpop.f32.mrb[31].mxu0  ;;  %v1949_v0 = vpop.f32.mrb[23].mxu1 }
 0x4ad   :  { %v1735_v1 = vmul.f32 -1.442695, %v1083_v61 }
 0x4ae   :  { %2172 = vpow2.f32 %v1734_v25 }
 0x4af   :  { %2174 = vpow2.f32 %v1735_v1 }
 0x4b8   :  { %v2173_v31 = vpop.eup %2172 }
 0x4b9   :  { %v1080_v12 = vadd.f32 1.0, %v2173_v31  ;;  %v2175_v2 = vpop.eup %2174 }
 0x4ba   :  { %v1087_v5 = vadd.f32 1.0, %v2175_v2 }
 0x4bb   :  { %2176 = vrcp.f32 %v1080_v12 }
 0x4c5   :  { %v2177_v55 = vpop.eup %2176 }
 0x4c6   :  { %v1091_v13 = vmul.f32 %v2177_v55, %v1090_v35 }
 0x4c8   :  { %v1092_v8 = vadd.f32 %v1091_v13, %v2715_v19 }
 0x4ca   :  { %2178 = vtanh.f32 %v1092_v8 }
 0x4cb   :  { %2180 = vrcp.f32 %v1087_v5 }
 0x4d4   :  { %v2179_v17 = vpop.eup %2178 }
 0x4d5   :  { %v1094_v18 = vsub.f32 %v2840_v21, %v2179_v17  ;;  %v2181_v10 = vpop.eup %2180 }
 0x4d7   :  { %v1095_v59 = vmul.f32 %v2181_v10, %v1094_v18 }
 0x4d9   :  { %v2884_v3 = vadd.f32 %v2179_v17, %v1095_v59 }
 0x4db   :  { %v1103_v11 = vpack.c.bf16 %v2884_v3, %v2884_v3 }
 0x4dd   :  { %1137 = vmatmul.mubr.bf16.vlgmr.msra.gmra.mrb[32].mxu0 %v1103_v11  ;;  %1967 = vmatmul.mubr.bf16.vlgmr.msra.gmra.mrb[24].mxu1 %v1103_v11 }
 0x4de   :  { %1214 = vmatpush1.bf16.msra.mxu0 %v2576_v26  ;;  %1971 = vmatpush3.bf16.msra.mxu1 %v2597_v37 }
 0x4df   :  { %1215 = vmatprep.subr.bf16.mxu0 %v2579_v27  ;;  %1972 = vmatprep.subr.bf16.mxu1 %v3038_v6 }
 0x4e0   :  { %1245 = vmatprep.mubr.bf16.mxu0 %v3039_v16  ;;  %1986 = vmatprep.mubr.msk.bf16.mxu1 %vm2439_vm0, %v3038_v6 }
 0x4e2   :  { %1216 = vmatpush1.bf16.msra.mxu0 %v2582_v29  ;;  %1973 = vmatpush3.bf16.msra.mxu1 %v2603_v39 }
 0x4e3   :  { %1217 = vmatprep.subr.bf16.mxu0 %v2586_v30  ;;  %1974 = vmatprep.subr.bf16.mxu1 %v3038_v6 }
 0x4e6   :  { %1218 = vmatpush1.bf16.msra.mxu0 %v2589_v32  ;;  %1975 = vmatpush3.bf16.msra.mxu1 %v2615_v42 }
 0x4e7   :  { %1219 = vmatprep.subr.bf16.mxu0 %v2592_v33  ;;  %1976 = vmatprep.subr.bf16.mxu1 %v3038_v6 }
 0x4ea   :  { %1220 = vmatpush1.bf16.msra.mxu0 %v2594_v34  ;;  %1977 = vmatpush3.bf16.msra.mxu1 %v2626_v46 }
 0x4eb   :  { %1221 = vmatprep.subr.bf16.mxu0 %v2599_v38  ;;  %1978 = vmatprep.subr.bf16.mxu1 %v3038_v6 }
 0x4ee   :  { %1222 = vmatpush1.bf16.msra.mxu0 %v2609_v40  ;;  %1979 = vmatpush3.bf16.msra.mxu1 %v2638_v49 }
 0x4ef   :  { %1223 = vmatprep.subr.bf16.mxu0 %v2612_v41  ;;  %1980 = vmatprep.subr.bf16.mxu1 %v3038_v6 }
 0x4f2   :  { %1224 = vmatpush1.bf16.msra.mxu0 %v2619_v44  ;;  %1981 = vmatpush3.bf16.msra.mxu1 %v2647_v51 }
 0x4f3   :  { %1225 = vmatprep.subr.bf16.mxu0 %v2623_v45  ;;  %1982 = vmatprep.subr.bf16.mxu1 %v3038_v6 }
 0x4f6   :  { %1226 = vmatpush1.bf16.msra.mxu0 %v2632_v47  ;;  %1983 = vmatpush3.bf16.msra.mxu1 %v2653_v52 }
 0x4f7   :  { %1227 = vmatprep.subr.bf16.mxu0 %v2635_v48  ;;  %1984 = vmatprep.subr.bf16.mxu1 %v3038_v6 }
 0x4fa   :  { %1228 = vmatpush1.bf16.msra.mxu0 %v2642_v50  ;;  %1985 = vmatpush3.bf16.msra.mxu1 %v2660_v54 }
 0x4fb   :  { %1322 = vmatprep.subr.bf16.mxu0 %v2574_v24  ;;  %1990 = vmatprep.subr.bf16.mxu1 %v3038_v6 }
 0x5b0   :  { %v1138_v19 = vpop.f32.mrb[32].mxu0  ;;  %v1179_v21 = vpop.f32.mrb[24].mxu1 }
 0x5b1   :  { %v1185_v56 = vadd.f32 %v1138_v19, %v2720_v23  ;;  %v1140_v15 = vpop.f32.mrb[33].mxu0  ;;  %v1968_v7 = vpop.f32.mrb[25].mxu1  ;;  %v1199_v1 = vadd.f32 %v2748_v20, %v1179_v21  ;;  %v2223_v21 = vld [vmem:[#allocation10] ss:$12 sps:$4 sm:$0xff]  }
 0x5b2   :  { %v1192_v53 = vadd.f32 %v1140_v15, %v2722_v28  ;;  %v1142_v14 = vpop.f32.mrb[34].mxu0  ;;  %v1182_v60 = vpop.f32.mrb[26].mxu1  ;;  %v2226_v15 = vld [vmem:[#allocation10 + $0x18] ss:$12 sps:$4 sm:$0xff]   ;;  %v2227_v7 = vld [vmem:[#allocation10 + $0x20] ss:$12 sps:$4 sm:$0xff]  }
 0x5b3   :  { %v1736_v61 = vmul.f32 -1.442695, %v1185_v56  ;;  %v1143_v62 = vpop.f32.mrb[35].mxu0  ;;  %v1969_v63 = vpop.f32.mrb[27].mxu1  ;;  %v2224_v56 = vld [vmem:[#allocation10 + $0x8] ss:$12 sps:$4 sm:$0xff]  }
 0x5b4   :  { %v1737_v25 = vmul.f32 -1.442695, %v1192_v53  ;;  %v2228_v53 = vld [vmem:[#allocation10 + $0x34] ss:$12 sps:$4 sm:$0xff]   ;;  %v2229_v14 = vld [vmem:[#allocation10 + $0x30] ss:$12 sps:$4 sm:$0xff]  }
 0x5b5   :  { %2182 = vpow2.f32 %v1736_v61  ;;  %v2230_v60 = vld [vmem:[#allocation10 + $0x38] ss:$12 sps:$4 sm:$0xff]   ;;  %v2234_v63 = vld [vmem:[#allocation10 + $0x60] ss:$12 sps:$4 sm:$0xff]  }
 0x5b6   :  { %2184 = vpow2.f32 %v1737_v25  ;;  %v2231_v61 = vld [vmem:[#allocation10 + $0x4c] ss:$12 sps:$4 sm:$0xff]   ;;  %v2233_v62 = vld [vmem:[#allocation10 + $0x64] ss:$12 sps:$4 sm:$0xff]   ;;  %v2235_v25 = vld [vmem:[#allocation10 + $0x7c] ss:$12 sps:$4 sm:$0xff]  }
 0x5bf   :  { %v2183_v36 = vpop.eup %2182 }
 0x5c0   :  { %v1189_v0 = vadd.f32 1.0, %v2183_v36  ;;  %v2185_v24 = vpop.eup %2184  ;;  %v2236_v36 = vld [vmem:[#allocation10 + $0x78] ss:$12 sps:$4 sm:$0xff]  }
 0x5c1   :  { %v1196_v2 = vadd.f32 1.0, %v2185_v24  ;;  %v2239_v24 = vld [vmem:[#allocation10 + $0xac] ss:$12 sps:$4 sm:$0xff]  }
 0x5c2   :  { %2186 = vrcp.f32 %v1189_v0  ;;  %v2237_v0 = vld [vmem:[#allocation10 + $0x94] ss:$12 sps:$4 sm:$0xff]  }
 0x5cc   :  { %v2187_v31 = vpop.eup %2186 }
 0x5cd   :  { %v1200_v23 = vmul.f32 %v2187_v31, %v1199_v1 }
 0x5cf   :  { %v1201_v12 = vadd.f32 %v1200_v23, %v2732_v58 }
 0x5d1   :  { %2188 = vtanh.f32 %v1201_v12  ;;  %v3040_v12 = vld [vmem:[#allocation24_spill] sm:$0xff] }
 0x5d2   :  { %2190 = vrcp.f32 %v1196_v2 }
 0x5db   :  { %v2189_v28 = vpop.eup %2188 }
 0x5dc   :  { %v1203_v35 = vsub.f32 %v2884_v3, %v2189_v28  ;;  %v2191_v55 = vpop.eup %2190 }
 0x5de   :  { %v1204_v13 = vmul.f32 %v2191_v55, %v1203_v35 }
 0x5e0   :  { %v2928_v8 = vadd.f32 %v2189_v28, %v1204_v13 }
 0x5e2   :  { %v1212_v5 = vpack.c.bf16 %v2928_v8, %v2928_v8 }
 0x5e4   :  { %1246 = vmatmul.mubr.bf16.vlgmr.msra.gmra.mrb[36].mxu0 %v1212_v5  ;;  %1987 = vmatmul.mubr.bf16.vlgmr.msra.gmra.mrb[28].mxu1 %v1212_v5 }
 0x5e5   :  { %1323 = vmatpush1.bf16.msra.mxu0 %v2576_v26  ;;  %1991 = vmatpush3.bf16.msra.mxu1 %v2597_v37  ;;  %v2222_v26 = vld [vmem:[#allocation10 + $0x4] ss:$12 sps:$4 sm:$0xff]  }
 0x5e6   :  { %1324 = vmatprep.subr.bf16.mxu0 %v2579_v27  ;;  %1992 = vmatprep.subr.bf16.mxu1 %v3038_v6 }
 0x5e7   :  { %1354 = vmatprep.mubr.bf16.mxu0 %v3039_v16  ;;  %2006 = vmatprep.mubr.msk.bf16.mxu1 %vm2439_vm0, %v3038_v6 }
 0x5e9   :  { %1325 = vmatpush1.bf16.msra.mxu0 %v2582_v29  ;;  %1993 = vmatpush3.bf16.msra.mxu1 %v2603_v39 }
 0x5ea   :  { %1326 = vmatprep.subr.bf16.mxu0 %v2586_v30  ;;  %1994 = vmatprep.subr.bf16.mxu1 %v3038_v6 }
 0x5ed   :  { %1327 = vmatpush1.bf16.msra.mxu0 %v2589_v32  ;;  %1995 = vmatpush3.bf16.msra.mxu1 %v2615_v42 }
 0x5ee   :  { %1328 = vmatprep.subr.bf16.mxu0 %v2592_v33  ;;  %1996 = vmatprep.subr.bf16.mxu1 %v3038_v6 }
 0x5f1   :  { %1329 = vmatpush1.bf16.msra.mxu0 %v2594_v34  ;;  %1997 = vmatpush3.bf16.msra.mxu1 %v2626_v46 }
 0x5f2   :  { %1330 = vmatprep.subr.bf16.mxu0 %v2599_v38  ;;  %1998 = vmatprep.subr.bf16.mxu1 %v3038_v6 }
 0x5f5   :  { %1331 = vmatpush1.bf16.msra.mxu0 %v2609_v40  ;;  %1999 = vmatpush3.bf16.msra.mxu1 %v2638_v49 }
 0x5f6   :  { %1332 = vmatprep.subr.bf16.mxu0 %v2612_v41  ;;  %2000 = vmatprep.subr.bf16.mxu1 %v3038_v6 }
 0x5f9   :  { %1333 = vmatpush1.bf16.msra.mxu0 %v2619_v44  ;;  %2001 = vmatpush3.bf16.msra.mxu1 %v2647_v51 }
 0x5fa   :  { %1334 = vmatprep.subr.bf16.mxu0 %v2623_v45  ;;  %2002 = vmatprep.subr.bf16.mxu1 %v3038_v6 }
 0x5fd   :  { %1335 = vmatpush1.bf16.msra.mxu0 %v2632_v47  ;;  %2003 = vmatpush3.bf16.msra.mxu1 %v2653_v52 }
 0x5fe   :  { %1336 = vmatprep.subr.bf16.mxu0 %v2635_v48  ;;  %2004 = vmatprep.subr.bf16.mxu1 %v3038_v6 }
 0x601   :  { %1337 = vmatpush1.bf16.msra.mxu0 %v2642_v50  ;;  %2005 = vmatpush3.bf16.msra.mxu1 %v2660_v54 }
 0x602   :  { %1431 = vmatprep.subr.bf16.mxu0 %v2222_v26  ;;  %2010 = vmatprep.subr.bf16.mxu1 %v3038_v6 }
 0x6b7   :  { %v1247_v27 = vpop.f32.mrb[36].mxu0  ;;  %v1288_v29 = vpop.f32.mrb[28].mxu1 }
 0x6b8   :  { %v1294_v30 = vadd.f32 %v1247_v27, %v2724_v43  ;;  %v1249_v32 = vpop.f32.mrb[37].mxu0  ;;  %v1988_v33 = vpop.f32.mrb[29].mxu1  ;;  %v1308_v48 = vadd.f32 %v2748_v20, %v1288_v29  ;;  %v3041_v29 = vld [vmem:[#allocation22_spill] sm:$0xff] }
 0x6b9   :  { %v1301_v34 = vadd.f32 %v1249_v32, %v2729_v57  ;;  %v1251_v37 = vpop.f32.mrb[38].mxu0  ;;  %v1291_v38 = vpop.f32.mrb[30].mxu1 }
 0x6ba   :  { %v1738_v39 = vmul.f32 -1.442695, %v1294_v30  ;;  %v1252_v40 = vpop.f32.mrb[39].mxu0  ;;  %v1989_v41 = vpop.f32.mrb[31].mxu1 }
 0x6bb   :  { %v1739_v42 = vmul.f32 -1.442695, %v1301_v34  ;;  %v2134_v41 = vld [vmem:[#allocation13] sm:$0xff]  }
 0x6bc   :  { %2192 = vpow2.f32 %v1738_v39 }
 0x6bd   :  { %2194 = vpow2.f32 %v1739_v42  ;;  %v2135_v42 = vld [vmem:[#allocation13 + $0x8] sm:$0xff]  }
 0x6c6   :  { %v2193_v44 = vpop.eup %2192 }
 0x6c7   :  { %v1298_v45 = vadd.f32 1.0, %v2193_v44  ;;  %v2195_v47 = vpop.eup %2194  ;;  %v2136_v44 = vld [vmem:[#allocation13 + $0x10] sm:$0xff]  }
 0x6c8   :  { %v1305_v18 = vadd.f32 1.0, %v2195_v47  ;;  %v2138_v47 = vld [vmem:[#allocation13 + $0x20] sm:$0xff]  }
 0x6c9   :  { %2196 = vrcp.f32 %v1298_v45  ;;  %v2137_v45 = vld [vmem:[#allocation13 + $0x18] sm:$0xff]  }
 0x6d3   :  { %v2197_v58 = vpop.eup %2196 }
 0x6d4   :  { %v1309_v43 = vmul.f32 %v2197_v58, %v1308_v48  ;;  %v2139_v48 = vld [vmem:[#allocation13 + $0x28] sm:$0xff]   ;;  %v2140_v58 = vld [vmem:[#allocation13 + $0x30] sm:$0xff]  }
 0x6d6   :  { %v1310_v17 = vadd.f32 %v1309_v43, %v2738_v4  ;;  %v2225_v4 = vld [vmem:[#allocation10 + $0x1c] ss:$12 sps:$4 sm:$0xff]  }
 0x6d7   :  { %v2141_v43 = vld [vmem:[#allocation13 + $0x38] sm:$0xff]  }
 0x6d8   :  { %2198 = vtanh.f32 %v1310_v17 }
 0x6d9   :  { %2200 = vrcp.f32 %v1305_v18 }
 0x6e2   :  { %v2199_v57 = vpop.eup %2198 }
 0x6e3   :  { %v1312_v10 = vsub.f32 %v2928_v8, %v2199_v57  ;;  %v2201_v59 = vpop.eup %2200 }
 0x6e5   :  { %v1313_v3 = vmul.f32 %v2201_v59, %v1312_v10 }
 0x6e7   :  { %v2971_v11 = vadd.f32 %v2199_v57, %v1313_v3  ;;  %v3042_v57 = vld [vmem:[#allocation25_spill] sm:$0xff] }
 0x6e9   :  { %v1321_v19 = vpack.c.bf16 %v2971_v11, %v2971_v11 }
 0x6eb   :  { %1355 = vmatmul.mubr.bf16.vlgmr.msra.gmra.mrb[40].mxu0 %v1321_v19  ;;  %2007 = vmatmul.mubr.bf16.vlgmr.msra.gmra.mrb[32].mxu1 %v1321_v19 }
 0x6ec   :  { %1432 = vmatpush1.bf16.msra.mxu0 %v2223_v21  ;;  %2011 = vmatpush3.bf16.msra.mxu1 %v2224_v56 }
 0x6ed   :  { %1433 = vmatprep.subr.bf16.mxu0 %v2225_v4  ;;  %2012 = vmatprep.subr.bf16.mxu1 %v3038_v6 }
 0x6ee   :  { %1463 = vmatprep.mubr.bf16.mxu0 %v3039_v16  ;;  %2026 = vmatprep.mubr.msk.bf16.mxu1 %vm2439_vm0, %v3038_v6  ;;  %v2232_v16 = vld [vmem:[#allocation10 + $0x48] ss:$12 sps:$4 sm:$0xff]  }
 0x6f0   :  { %1434 = vmatpush1.bf16.msra.mxu0 %v2226_v15  ;;  %2013 = vmatpush3.bf16.msra.mxu1 %v2227_v7 }
 0x6f1   :  { %1435 = vmatprep.subr.bf16.mxu0 %v2228_v53  ;;  %2014 = vmatprep.subr.bf16.mxu1 %v3038_v6 }
 0x6f4   :  { %1436 = vmatpush1.bf16.msra.mxu0 %v2229_v14  ;;  %2015 = vmatpush3.bf16.msra.mxu1 %v2230_v60 }
 0x6f5   :  { %1437 = vmatprep.subr.bf16.mxu0 %v2231_v61  ;;  %2016 = vmatprep.subr.bf16.mxu1 %v3038_v6 }
 0x6f8   :  { %1438 = vmatpush1.bf16.msra.mxu0 %v2232_v16  ;;  %2017 = vmatpush3.bf16.msra.mxu1 %v2626_v46  ;;  %v2238_v46 = vld [vmem:[#allocation10 + $0x90] ss:$12 sps:$4 sm:$0xff]  }
 0x6f9   :  { %1439 = vmatprep.subr.bf16.mxu0 %v2233_v62  ;;  %2018 = vmatprep.subr.bf16.mxu1 %v3038_v6  ;;  %v3043_v62 = vld [vmem:[#allocation23_spill] sm:$0xff] }
 0x6fc   :  { %1440 = vmatpush1.bf16.msra.mxu0 %v2234_v63  ;;  %2019 = vmatpush3.bf16.msra.mxu1 %v2638_v49 }
 0x6fd   :  { %1441 = vmatprep.subr.bf16.mxu0 %v2235_v25  ;;  %2020 = vmatprep.subr.bf16.mxu1 %v3038_v6 }
 0x700   :  { %1442 = vmatpush1.bf16.msra.mxu0 %v2236_v36  ;;  %2021 = vmatpush3.bf16.msra.mxu1 %v2647_v51 }
 0x701   :  { %1443 = vmatprep.subr.bf16.mxu0 %v2237_v0  ;;  %2022 = vmatprep.subr.bf16.mxu1 %v3038_v6 }
 0x704   :  { %1444 = vmatpush1.bf16.msra.mxu0 %v2238_v46  ;;  %2023 = vmatpush3.bf16.msra.mxu1 %v2653_v52 }
 0x705   :  { %1445 = vmatprep.subr.bf16.mxu0 %v2239_v24  ;;  %2024 = vmatprep.subr.bf16.mxu1 %v3038_v6 }
 0x708   :  { %1446 = vmatpush1.bf16.msra.mxu0 %v2642_v50  ;;  %2025 = vmatpush3.bf16.msra.mxu1 %v2660_v54 }
 0x709   :  { %2030 = vmatprep.subr.bf16.mxu0 %v3038_v6 }
 0x7be   :  { %v1356_v49 = vpop.f32.mrb[40].mxu0  ;;  %v1397_v51 = vpop.f32.mrb[32].mxu1 }
 0x7bf   :  { %v1403_v1 = vadd.f32 %v1356_v49, %v2740_v9  ;;  %v1358_v31 = vpop.f32.mrb[41].mxu0  ;;  %v2008_v23 = vpop.f32.mrb[33].mxu1  ;;  %v1417_v26 = vadd.f32 %v2748_v20, %v1397_v51  ;;  %v1744_v51 = vld [vmem:[#allocation15] ss:$0 sm:$0xff] }
 0x7c0   :  { %v1410_v2 = vadd.f32 %v1358_v31, %v3040_v12  ;;  %v1360_v28 = vpop.f32.mrb[42].mxu0  ;;  %v1400_v52 = vpop.f32.mrb[34].mxu1 }
 0x7c1   :  { %v1740_v35 = vmul.f32 -1.442695, %v1403_v1  ;;  %v1361_v55 = vpop.f32.mrb[43].mxu0  ;;  %v2009_v13 = vpop.f32.mrb[35].mxu1 }
 0x7c2   :  { %v1741_v8 = vmul.f32 -1.442695, %v1410_v2 }
 0x7c3   :  { %2202 = vpow2.f32 %v1740_v35 }
 0x7c4   :  { %2204 = vpow2.f32 %v1741_v8 }
 0x7cd   :  { %v2203_v50 = vpop.eup %2202 }
 0x7ce   :  { %v1407_v5 = vadd.f32 1.0, %v2203_v50  ;;  %v2205_v54 = vpop.eup %2204 }
 0x7cf   :  { %v1414_v32 = vadd.f32 1.0, %v2205_v54 }
 0x7d0   :  { %2206 = vrcp.f32 %v1407_v5 }
 0x7da   :  { %v2207_v27 = vpop.eup %2206 }
 0x7db   :  { %v1418_v9 = vmul.f32 %v2207_v27, %v1417_v26 }
 0x7dd   :  { %v1419_v30 = vadd.f32 %v1418_v9, %v3041_v29 }
 0x7df   :  { %2208 = vtanh.f32 %v1419_v30 }
 0x7e0   :  { %2210 = vrcp.f32 %v1414_v32 }
 0x7e9   :  { %v2209_v33 = vpop.eup %2208 }
 0x7ea   :  { %v1421_v34 = vsub.f32 %v2971_v11, %v2209_v33  ;;  %v2211_v37 = vpop.eup %2210 }
 0x7ec   :  { %v1422_v38 = vmul.f32 %v2211_v37, %v1421_v34 }
 0x7ee   :  { %v1423_v39 = vadd.f32 %v2209_v33, %v1422_v38 }
 0x7f0   :  { %v1430_v40 = vpack.c.bf16 %v1423_v39, %v1423_v39 }
 0x7f2   :  { %1464 = vmatmul.mubr.bf16.vlgmr.msra.gmra.mrb[44].mxu0 %v1430_v40  ;;  %2027 = vmatmul.mubr.bf16.vlgmr.msra.gmra.mrb[36].mxu1 %v1430_v40 }
 0x7f3   :  { %2046 = vmatprep.mubr.msk.bf16.mxu0 %vm2439_vm0, %v3038_v6  ;;  %2031 = vmatpush3.bf16.msra.mxu0 %v2134_v41 }
 0x7f4   :  { %2032 = vmatprep.subr.bf16.mxu0 %v3038_v6 }
 0x7f7   :  { %2033 = vmatpush3.bf16.msra.mxu0 %v2135_v42 }
 0x7f8   :  { %2034 = vmatprep.subr.bf16.mxu0 %v3038_v6 }
 0x7fb   :  { %2035 = vmatpush3.bf16.msra.mxu0 %v2136_v44 }
 0x7fc   :  { %2036 = vmatprep.subr.bf16.mxu0 %v3038_v6 }
 0x7ff   :  { %2037 = vmatpush3.bf16.msra.mxu0 %v2137_v45 }
 0x800   :  { %2038 = vmatprep.subr.bf16.mxu0 %v3038_v6 }
 0x803   :  { %2039 = vmatpush3.bf16.msra.mxu0 %v2138_v47 }
 0x804   :  { %2040 = vmatprep.subr.bf16.mxu0 %v3038_v6 }
 0x807   :  { %2041 = vmatpush3.bf16.msra.mxu0 %v2139_v48 }
 0x808   :  { %2042 = vmatprep.subr.bf16.mxu0 %v3038_v6 }
 0x80b   :  { %2043 = vmatpush3.bf16.msra.mxu0 %v2140_v58 }
 0x80c   :  { %2044 = vmatprep.subr.bf16.mxu0 %v3038_v6 }
 0x80f   :  { %2045 = vmatpush3.bf16.msra.mxu0 %v2141_v43 }
 0x8c5   :  { %v1465_v17 = vpop.f32.mrb[44].mxu0  ;;  %v1506_v18 = vpop.f32.mrb[36].mxu1 }
 0x8c6   :  { %v1512_v10 = vadd.f32 %v1465_v17, %v3042_v57  ;;  %v1467_v59 = vpop.f32.mrb[45].mxu0  ;;  %v2028_v3 = vpop.f32.mrb[37].mxu1  ;;  %v1526_v60 = vadd.f32 %v2748_v20, %v1506_v18 }
 0x8c7   :  { %v1519_v11 = vadd.f32 %v1467_v59, %v2746_v22  ;;  %v1469_v19 = vpop.f32.mrb[46].mxu0  ;;  %v1509_v21 = vpop.f32.mrb[38].mxu1 }
 0x8c8   :  { %v1742_v56 = vmul.f32 -1.442695, %v1512_v10  ;;  %v1470_v4 = vpop.f32.mrb[47].mxu0  ;;  %v2029_v15 = vpop.f32.mrb[39].mxu1 }
 0x8c9   :  { %v1743_v7 = vmul.f32 -1.442695, %v1519_v11 }
 0x8ca   :  { %2212 = vpow2.f32 %v1742_v56 }
 0x8cb   :  { %2214 = vpow2.f32 %v1743_v7 }
 0x8d4   :  { %v2213_v53 = vpop.eup %2212 }
 0x8d5   :  { %v1516_v14 = vadd.f32 1.0, %v2213_v53  ;;  %v2215_v6 = vpop.eup %2214 }
 0x8d6   :  { %v1523_v25 = vadd.f32 1.0, %v2215_v6 }
 0x8d7   :  { %2216 = vrcp.f32 %v1516_v14 }
 0x8e1   :  { %v2217_v61 = vpop.eup %2216 }
 0x8e2   :  { %v1527_v16 = vmul.f32 %v2217_v61, %v1526_v60 }
 0x8e4   :  { %v1528_v63 = vadd.f32 %v1527_v16, %v3043_v62 }
 0x8e6   :  { %2218 = vtanh.f32 %v1528_v63 }
 0x8e7   :  { %2220 = vrcp.f32 %v1523_v25 }
 0x8f0   :  { %v2219_v22 = vpop.eup %2218 }
 0x8f1   :  { %v1530_v36 = vsub.f32 %v1423_v39, %v2219_v22  ;;  %v2221_v0 = vpop.eup %2220 }
 0x8f3   :  { %v1531_v46 = vmul.f32 %v2221_v0, %v1530_v36 }
 0x8f5   :  { %v1532_v24 = vadd.f32 %v2219_v22, %v1531_v46 }
 0x8f7   :  { %v1537_v49 = vpack.c.bf16 %v1532_v24, %v1532_v24 }
 0x8f9   :  { %2047 = vmatmul.mubr.bf16.vlgmr.msra.gmra.mrb[48].mxu0 %v1537_v49 }
 0x9cc   :  { %v1643_v1 = vpop.f32.mrb[48].mxu0 }
 0x9cd   :  { %v1644_v31 = vadd.f32 %v1744_v51, %v1643_v1  ;;  %v2048_v20 = vpop.f32.mrb[49].mxu0 }
 0x9ce   :  { %v1646_v23 = vpop.f32.mrb[50].mxu0 }
 0x9cf   :  { %1649 = vst [vmem:[#allocation16] sm:$0xff] %v1644_v31  ;;  %v2049_v12 = vpop.f32.mrb[51].mxu0 }
 0x9d0   :  { %2405 = shalt.err (!%p2402_p4)
}
 0x9d1   :  { %s2406_s12 = scalar_lea.hbm %s3029_s7, 128 }
 0x9d2   :  { %p2407_p5 = scmp.ne.s32.totalorder %s3029_s7, %s2406_s12  ;;  %p2410_p6 = scmp.lt.u32.totalorder %s2406_s12, %s3029_s7 }
 0x9d4   :  { %p2412_p7 = pnand %p2410_p6, %p2407_p5 }
 0x9d6   :  { %2415 = shalt.err (!%p2412_p7)
}
 0x9d7   :  { %1659 = dma.vmem_to_hbm [thread:$0]  %s1657_s3, 128, %s3029_s7, [#allocation6]  }
 0x9d8   :  { %2424 = dma.done.wait [#allocation6], 128  }
 0x9d9   :  { %2425 = vsyncadd [#allocation6], 4294967168 }
 0x9da   :  { %1663 = vsyncpa [#allocation5], 1 }
 0x9db   :  { %1664 = vsyncpa [#allocation8], 1 }
 0x9dc   :  { %1665 = vsyncpa [#allocation11], 1 }
 0x9dd   :  { %1666 = vsyncpa [#allocation14], 1 }
 0x9de   :  { %1667 = vsyncpa [#allocation6], 1 }

// kernel: grunet_forward.3
= control target key start
LH: loop header
LB: loop body
LE: loop exit
PB: predicated region body
PF: predicated region fallthrough
CT: control target
= control target key end

     0   :  { %12 = vsyncpa [#allocation5], 0  ;;  %s3022_s0 = inlined_call_operand.hbm [shape: bf16[8,8,128], index: 0, kind: input, shape index: {}]   ;;  %s3023_s1 = inlined_call_operand.hbm [shape: bf16[128,384], index: 1, kind: input, shape index: {}]   ;;  %s3024_s2 = inlined_call_operand.hbm [shape: f32[1,384], index: 2, kind: input, shape index: {}]   ;;  %s3025_s3 = inlined_call_operand.hbm [shape: bf16[128,384], index: 3, kind: input, shape index: {}]   ;;  %s3026_s4 = inlined_call_operand.hbm [shape: f32[1,128], index: 4, kind: input, shape index: {}]   ;;  %s3027_s5 = inlined_call_operand.hbm [shape: bf16[128,128], index: 5, kind: input, shape index: {}]   ;;  %s3028_s6 = inlined_call_operand.hbm [shape: f32[1,128], index: 6, kind: input, shape index: {}]   ;;  %s3029_s7 = inlined_call_operand.hbm [shape: f32[8,128], index: 7, kind: output, shape index: {}]  }
   0x1   :  { %13 = vsyncpa [#allocation8], 0 }
   0x2   :  { %14 = vsyncpa [#allocation11], 0 }
   0x3   :  { %15 = vsyncpa [#allocation14], 0 }
   0x4   :  { %16 = vsyncpa [#allocation6], 0  ;;  %s2426_s24 = smov [#allocation7]   ;;  %s2240_s28 = scalar_lea.hbm %s3023_s1, 3072 }
   0x5   :  { %s34_s25 = sshll.u32 %s2426_s24, 4  ;;  %p2241_p0 = scmp.ne.s32.totalorder %s3023_s1, %s2240_s28  ;;  %s35_s25 = int_to_ptr.vmem [resolvable:$true] %s34_s25 }
   0x6   :  { %p2244_p1 = scmp.lt.u32.totalorder %s2240_s28, %s3023_s1 }
   0x8   :  { %p2246_p2 = pnand %p2244_p1, %p2241_p0 }
   0xa   :  { %2249 = shalt.err (!%p2246_p2)
}
   0xb   :  { %s2250_s10 = scalar_lea.vmem %s35_s25, 3072  ;;  %p2255_p4 = scmp.lt.s32.totalorder %s35_s25, %s35_s25 }
   0xc   :  { %p2251_p3 = scmp.ne.s32.totalorder %s35_s25, %s2250_s10  ;;  %p2256_p5 = scmp.lt.s32.totalorder %s2250_s10, %s2250_s10 }
   0xe   :  { %p2257_p6 = por %p2256_p5, %p2255_p4 }
  0x10   :  { %p2258_p7 = pnand %p2257_p6, %p2251_p3 }
  0x12   :  { %2261 = shalt.err (!%p2258_p7)
}
  0x13   :  { %s2427_s11 = smov 192   ;;  %s2428_s12 = smov 12  }
  0x14   :  { %40 = dma.hbm_to_vmem [thread:$0]  %s3023_s1, 3072, %s35_s25, [#allocation8], %s2427_s11, %s2427_s11, %s2428_s12  }
  0x15   :  { %s2429_s15 = smov [#allocation10]   ;;  %s2262_s19 = scalar_lea.hbm %s3025_s3, 3072 }
  0x16   :  { %s56_s16 = sshll.u32 %s2429_s15, 4  ;;  %p2263_p8 = scmp.ne.s32.totalorder %s3025_s3, %s2262_s19  ;;  %s57_s16 = int_to_ptr.vmem [resolvable:$true] %s56_s16 }
  0x17   :  { %p2266_p9 = scmp.lt.u32.totalorder %s2262_s19, %s3025_s3 }
  0x19   :  { %p2268_p10 = pnand %p2266_p9, %p2263_p8 }
  0x1b   :  { %2271 = shalt.err (!%p2268_p10)
}
  0x1c   :  { %s2272_s24 = scalar_lea.vmem %s57_s16, 3072  ;;  %p2277_p12 = scmp.lt.s32.totalorder %s57_s16, %s57_s16 }
  0x1d   :  { %p2273_p11 = scmp.ne.s32.totalorder %s57_s16, %s2272_s24  ;;  %p2278_p13 = scmp.lt.s32.totalorder %s2272_s24, %s2272_s24 }
  0x1f   :  { %p2279_p0 = por %p2278_p13, %p2277_p12 }
  0x21   :  { %p2280_p1 = pnand %p2279_p0, %p2273_p11 }
  0x23   :  { %2283 = shalt.err (!%p2280_p1)
}
  0x24   :  { %62 = dma.hbm_to_vmem [thread:$0]  %s3025_s3, 3072, %s57_s16, [#allocation11], %s2427_s11, %s2427_s11, %s2428_s12  }
  0x25   :  { %s2430_s26 = smov [#allocation13]   ;;  %s2431_s28 = smov [#allocation4]  }
  0x26   :  { %s78_s27 = sshll.u32 %s2430_s26, 4  ;;  %s22_s29 = sshll.u32 %s2431_s28, 4  ;;  %s79_s27 = int_to_ptr.vmem [resolvable:$true] %s78_s27  ;;  %s2506_s29 = int_to_ptr.vmem [resolvable:$true] %s22_s29 }
  0x27   :  { %s2284_s9 = scalar_lea.hbm %s3027_s5, 1024 }
  0x28   :  { %p2285_p2 = scmp.ne.s32.totalorder %s3027_s5, %s2284_s9  ;;  %p2288_p3 = scmp.lt.u32.totalorder %s2284_s9, %s3027_s5 }
  0x2a   :  { %p2290_p4 = pnand %p2288_p3, %p2285_p2 }
  0x2c   :  { %2293 = shalt.err (!%p2290_p4)
}
  0x2d   :  { %s2294_s3 = scalar_lea.vmem %s79_s27, 1024  ;;  %p2299_p6 = scmp.lt.s32.totalorder %s79_s27, %s79_s27 }
  0x2e   :  { %p2295_p5 = scmp.ne.s32.totalorder %s79_s27, %s2294_s3  ;;  %p2300_p7 = scmp.lt.s32.totalorder %s2294_s3, %s2294_s3 }
  0x30   :  { %p2301_p8 = por %p2300_p7, %p2299_p6 }
  0x32   :  { %p2302_p9 = pnand %p2301_p8, %p2295_p5 }
  0x34   :  { %2305 = shalt.err (!%p2302_p9)
}
  0x35   :  { %s2432_s11 = smov 64   ;;  %s2433_s12 = smov 4  }
  0x36   :  { %84 = dma.hbm_to_vmem [thread:$0]  %s3027_s5, 1024, %s79_s27, [#allocation14], %s2432_s11, %s2432_s11, %s2433_s12  }
  0x37   :  { %s2306_s20 = scalar_lea.hbm %s3022_s0, 512 }
  0x38   :  { %p2307_p10 = scmp.ne.s32.totalorder %s3022_s0, %s2306_s20  ;;  %p2310_p11 = scmp.lt.u32.totalorder %s2306_s20, %s3022_s0 }
  0x3a   :  { %p2312_p12 = pnand %p2310_p11, %p2307_p10 }
  0x3c   :  { %2315 = shalt.err (!%p2312_p12)
}
  0x3d   :  { %s2316_s1 = scalar_lea.vmem %s2506_s29, 512  ;;  %p2321_p0 = scmp.lt.s32.totalorder %s2506_s29, %s2506_s29 }
  0x3e   :  { %p2317_p13 = scmp.ne.s32.totalorder %s2506_s29, %s2316_s1  ;;  %p2322_p1 = scmp.lt.s32.totalorder %s2316_s1, %s2316_s1 }
  0x40   :  { %p2323_p2 = por %p2322_p1, %p2321_p0 }
  0x42   :  { %p2324_p3 = pnand %p2323_p2, %p2317_p13 }
  0x44   :  { %2327 = shalt.err (!%p2324_p3)
}
  0x45   :  { %28 = dma.hbm_to_vmem [thread:$0]  %s3022_s0, 512, %s2506_s29, [#allocation5], %s2432_s11, %s2432_s11, %s2433_s12  }
  0x46   :  { %s2434_s26 = smov [#allocation9]   ;;  %s2435_s28 = smov [#allocation12]  }
  0x47   :  { %s47_s27 = sshll.u32 %s2434_s26, 4  ;;  %s69_s30 = sshll.u32 %s2435_s28, 4  ;;  %s48_s27 = int_to_ptr.vmem [resolvable:$true] %s47_s27  ;;  %s70_s30 = int_to_ptr.vmem [resolvable:$true] %s69_s30 }
  0x48   :  { %s2328_s10 = scalar_lea.hbm %s3024_s2, 48 }
  0x49   :  { %p2329_p4 = scmp.ne.s32.totalorder %s3024_s2, %s2328_s10  ;;  %p2332_p5 = scmp.lt.u32.totalorder %s2328_s10, %s3024_s2 }
  0x4b   :  { %p2334_p6 = pnand %p2332_p5, %p2329_p4 }
  0x4d   :  { %2337 = shalt.err (!%p2334_p6)
}
  0x4e   :  { %s2338_s0 = scalar_lea.vmem %s48_s27, 48  ;;  %s2342_s29 = scalar_lea.vmem %s48_s27, 64 }
  0x4f   :  { %p2339_p7 = scmp.ne.s32.totalorder %s48_s27, %s2338_s0  ;;  %p2343_p8 = scmp.lt.s32.totalorder %s48_s27, %s48_s27 }
  0x50   :  { %p2344_p9 = scmp.lt.s32.totalorder %s2342_s29, %s2338_s0 }
  0x52   :  { %p2345_p10 = por %p2344_p9, %p2343_p8 }
  0x54   :  { %p2346_p11 = pnand %p2345_p10, %p2339_p7 }
  0x56   :  { %2349 = shalt.err (!%p2346_p11)
}
  0x57   :  { %50 = dma.hbm_to_vmem [thread:$0]  %s3024_s2, 48, %s48_s27, [#allocation8]  }
  0x58   :  { %s2350_s18 = scalar_lea.hbm %s3026_s4, 16 }
  0x59   :  { %p2351_p12 = scmp.ne.s32.totalorder %s3026_s4, %s2350_s18  ;;  %p2354_p13 = scmp.lt.u32.totalorder %s2350_s18, %s3026_s4 }
  0x5b   :  { %p2356_p0 = pnand %p2354_p13, %p2351_p12 }
  0x5d   :  { %2359 = shalt.err (!%p2356_p0)
}
  0x5e   :  { %s2360_s23 = scalar_lea.vmem %s70_s30, 16  ;;  %s2364_s24 = scalar_lea.vmem %s70_s30, 32 }
  0x5f   :  { %p2361_p1 = scmp.ne.s32.totalorder %s70_s30, %s2360_s23  ;;  %p2365_p2 = scmp.lt.s32.totalorder %s70_s30, %s70_s30 }
  0x60   :  { %p2366_p3 = scmp.lt.s32.totalorder %s2364_s24, %s2360_s23 }
  0x62   :  { %p2367_p4 = por %p2366_p3, %p2365_p2 }
  0x64   :  { %p2368_p5 = pnand %p2367_p4, %p2361_p1 }
  0x66   :  { %2371 = shalt.err (!%p2368_p5)
}
  0x67   :  { %72 = dma.hbm_to_vmem [thread:$0]  %s3026_s4, 16, %s70_s30, [#allocation11]  }
  0x68   :  { %s2436_s5 = smov [#allocation15]   ;;  %s2372_s28 = scalar_lea.hbm %s3028_s6, 16 }
  0x69   :  { %s91_s25 = sshll.u32 %s2436_s5, 4  ;;  %p2373_p6 = scmp.ne.s32.totalorder %s3028_s6, %s2372_s28  ;;  %s92_s25 = int_to_ptr.vmem [resolvable:$true] %s91_s25 }
  0x6a   :  { %p2376_p7 = scmp.lt.u32.totalorder %s2372_s28, %s3028_s6 }
  0x6c   :  { %p2378_p8 = pnand %p2376_p7, %p2373_p6 }
  0x6e   :  { %2381 = shalt.err (!%p2378_p8)
}
  0x6f   :  { %s2382_s14 = scalar_lea.vmem %s92_s25, 16  ;;  %s2386_s4 = scalar_lea.vmem %s92_s25, 32 }
  0x70   :  { %p2383_p9 = scmp.ne.s32.totalorder %s92_s25, %s2382_s14  ;;  %p2387_p10 = scmp.lt.s32.totalorder %s92_s25, %s92_s25 }
  0x71   :  { %p2388_p11 = scmp.lt.s32.totalorder %s2386_s4, %s2382_s14 }
  0x73   :  { %p2389_p12 = por %p2388_p11, %p2387_p10 }
  0x75   :  { %p2390_p13 = pnand %p2389_p12, %p2383_p9 }
  0x77   :  { %2393 = shalt.err (!%p2390_p13)
}
  0x78   :  { %94 = dma.hbm_to_vmem [thread:$0]  %s3028_s6, 16, %s92_s25, [#allocation14]  }
  0x79   :  { %2416 = dma.done.wait [#allocation5], 512  }
  0x7a   :  { %2417 = vsyncadd [#allocation5], 4294966784 }
  0x7b   :  { %2418 = dma.done.wait [#allocation8], 3120  }
  0x7c   :  { %2419 = vsyncadd [#allocation8], 4294964176 }
  0x7d   :  { %2420 = dma.done.wait [#allocation11], 3088  }
  0x7e   :  { %2421 = vsyncadd [#allocation11], 4294964208 }
  0x7f   :  { %2422 = dma.done.wait [#allocation14], 1040  }
  0x80   :  { %2423 = vsyncadd [#allocation14], 4294966256  ;;  %v3030_v0 = vmov 0   ;;  %v2066_v1 = vld [vmem:[#allocation7 + $0x4] ss:$12 sps:$4 sm:$0xff]   ;;  %v2101_v31 = vld [vmem:[#allocation4 + $0x8] sm:$0xff]   ;;  %v164_v55 = vlaneseq }
  0x81   :  { %363 = vmatprep.mubr.bf16.mxu0 %v3030_v0  ;;  %v2068_v2 = vld [vmem:[#allocation7] ss:$12 sps:$4 sm:$0xff]   ;;  %331 = vmatprep.subr.bf16.mxu0 %v2066_v1  ;;  %v2069_v3 = vld [vmem:[#allocation7 + $0x1c] ss:$12 sps:$4 sm:$0xff]   ;;  %v2071_v4 = vld [vmem:[#allocation7 + $0x18] ss:$12 sps:$4 sm:$0xff]  }
  0x82   :  { %332 = vmatpush1.bf16.msra.mxu0 %v2068_v2  ;;  %v2072_v5 = vld [vmem:[#allocation7 + $0x34] ss:$12 sps:$4 sm:$0xff]   ;;  %v2074_v6 = vld [vmem:[#allocation7 + $0x30] ss:$12 sps:$4 sm:$0xff]   ;;  %v2075_v7 = vld [vmem:[#allocation7 + $0x4c] ss:$12 sps:$4 sm:$0xff]  }
  0x83   :  { %333 = vmatprep.subr.bf16.mxu0 %v2069_v3  ;;  %v2086_v8 = vld [vmem:[#allocation7 + $0x8] ss:$12 sps:$4 sm:$0xff]   ;;  %v2078_v10 = vld [vmem:[#allocation7 + $0x64] ss:$12 sps:$4 sm:$0xff]   ;;  %v2090_v11 = vld [vmem:[#allocation7 + $0x20] ss:$12 sps:$4 sm:$0xff]  }
  0x84   :  { %v2077_v9 = vld [vmem:[#allocation7 + $0x48] ss:$12 sps:$4 sm:$0xff]   ;;  %1846 = vmatprep.subr.bf16.mxu1 %v2086_v8  ;;  %v2092_v12 = vld [vmem:[#allocation4] sm:$0xff]   ;;  %v2097_v16 = vld [vmem:[#allocation7 + $0x50] ss:$12 sps:$4 sm:$0xff]   ;;  %v3032_v36 = vmov 0.0  }
  0x85   :  { %1847 = vmatpush3.bf16.msra.mxu1 %v2086_v8  ;;  %v2093_v13 = vld [vmem:[#allocation7 + $0x38] ss:$12 sps:$4 sm:$0xff]   ;;  %v2080_v14 = vld [vmem:[#allocation7 + $0x60] ss:$12 sps:$4 sm:$0xff]   ;;  %1862 = vmatprep.mubr.bf16.mxu1 %v2092_v12  ;;  %v2081_v15 = vld [vmem:[#allocation7 + $0x7c] ss:$12 sps:$4 sm:$0xff]  }
  0x86   :  { %334 = vmatpush1.bf16.msra.mxu0 %v2071_v4  ;;  %1848 = vmatprep.subr.bf16.mxu1 %v2090_v11  ;;  %v2083_v17 = vld [vmem:[#allocation7 + $0x78] ss:$12 sps:$4 sm:$0xff]   ;;  %v2084_v18 = vld [vmem:[#allocation7 + $0x94] ss:$12 sps:$4 sm:$0xff]   ;;  %v2087_v20 = vld [vmem:[#allocation7 + $0x90] ss:$12 sps:$4 sm:$0xff]  }
  0x87   :  { %335 = vmatprep.subr.bf16.mxu0 %v2072_v5  ;;  %v2102_v19 = vld [vmem:[#allocation7 + $0x68] ss:$12 sps:$4 sm:$0xff]   ;;  %v2088_v21 = vld [vmem:[#allocation7 + $0xac] ss:$12 sps:$4 sm:$0xff]   ;;  %v2576_v26 = vld [vmem:[#allocation10] ss:$12 sps:$4 sm:$0xff]  }
  0x88   :  { %v2106_v22 = vld [vmem:[#allocation7 + $0x80] ss:$12 sps:$4 sm:$0xff]   ;;  %v2091_v23 = vld [vmem:[#allocation7 + $0xa8] ss:$12 sps:$4 sm:$0xff]   ;;  %v2111_v25 = vld [vmem:[#allocation7 + $0x98] ss:$12 sps:$4 sm:$0xff]  }
  0x89   :  { %1849 = vmatpush3.bf16.msra.mxu1 %v2090_v11  ;;  %v2574_v24 = vld [vmem:[#allocation10 + $0x4] ss:$12 sps:$4 sm:$0xff]   ;;  %v2579_v27 = vld [vmem:[#allocation10 + $0x1c] ss:$12 sps:$4 sm:$0xff]   ;;  %v2115_v28 = vld [vmem:[#allocation7 + $0xb0] ss:$12 sps:$4 sm:$0xff]  }
  0x8a   :  { %336 = vmatpush1.bf16.msra.mxu0 %v2074_v6  ;;  %1850 = vmatprep.subr.bf16.mxu1 %v2093_v13  ;;  %v2582_v29 = vld [vmem:[#allocation10 + $0x18] ss:$12 sps:$4 sm:$0xff]   ;;  %v2586_v30 = vld [vmem:[#allocation10 + $0x34] ss:$12 sps:$4 sm:$0xff]   ;;  %v2589_v32 = vld [vmem:[#allocation10 + $0x30] ss:$12 sps:$4 sm:$0xff]  }
  0x8b   :  { %337 = vmatprep.subr.bf16.mxu0 %v2075_v7  ;;  %v2592_v33 = vld [vmem:[#allocation10 + $0x4c] ss:$12 sps:$4 sm:$0xff]   ;;  %v2594_v34 = vld [vmem:[#allocation10 + $0x48] ss:$12 sps:$4 sm:$0xff]   ;;  %v2599_v38 = vld [vmem:[#allocation10 + $0x64] ss:$12 sps:$4 sm:$0xff]  }
  0x8c   :  { %v2110_v35 = vld [vmem:[#allocation4 + $0x10] sm:$0xff]   ;;  %v2597_v37 = vld [vmem:[#allocation10 + $0x8] ss:$12 sps:$4 sm:$0xff]   ;;  %v2615_v42 = vld [vmem:[#allocation10 + $0x38] ss:$12 sps:$4 sm:$0xff]   ;;  %vm2439_vm0 = vmmov 0  }
  0x8d   :  { %1851 = vmatpush3.bf16.msra.mxu1 %v2093_v13  ;;  %v2603_v39 = vld [vmem:[#allocation10 + $0x20] ss:$12 sps:$4 sm:$0xff]   ;;  %v2612_v41 = vld [vmem:[#allocation10 + $0x7c] ss:$12 sps:$4 sm:$0xff]   ;;  %v2119_v43 = vld [vmem:[#allocation4 + $0x18] sm:$0xff]   ;;  %v2440_v53 = vmov 0.0|0.0  }
  0x8e   :  { %338 = vmatpush1.bf16.msra.mxu0 %v2077_v9  ;;  %1852 = vmatprep.subr.bf16.mxu1 %v2097_v16  ;;  %v2609_v40 = vld [vmem:[#allocation10 + $0x60] ss:$12 sps:$4 sm:$0xff]   ;;  %v2619_v44 = vld [vmem:[#allocation10 + $0x78] ss:$12 sps:$4 sm:$0xff]   ;;  %v2626_v46 = vld [vmem:[#allocation10 + $0x50] ss:$12 sps:$4 sm:$0xff]  }
  0x8f   :  { %339 = vmatprep.subr.bf16.mxu0 %v2078_v10  ;;  %v2623_v45 = vld [vmem:[#allocation10 + $0x94] ss:$12 sps:$4 sm:$0xff]   ;;  %v2632_v47 = vld [vmem:[#allocation10 + $0x90] ss:$12 sps:$4 sm:$0xff]   ;;  %v2635_v48 = vld [vmem:[#allocation10 + $0xac] ss:$12 sps:$4 sm:$0xff]  }
  0x90   :  { %v2638_v49 = vld [vmem:[#allocation10 + $0x68] ss:$12 sps:$4 sm:$0xff]   ;;  %v2647_v51 = vld [vmem:[#allocation10 + $0x80] ss:$12 sps:$4 sm:$0xff]   ;;  %v2653_v52 = vld [vmem:[#allocation10 + $0x98] ss:$12 sps:$4 sm:$0xff]  }
  0x91   :  { %1853 = vmatpush3.bf16.msra.mxu1 %v2097_v16  ;;  %v2642_v50 = vld [vmem:[#allocation10 + $0xa8] ss:$12 sps:$4 sm:$0xff]   ;;  %v2660_v54 = vld [vmem:[#allocation10 + $0xb0] ss:$12 sps:$4 sm:$0xff]   ;;  %v165_v56 = vshrl.u32 %v164_v55, 7  ;;  %s2441_s6 = smov [#allocation16]  }
  0x92   :  { %340 = vmatpush1.bf16.msra.mxu0 %v2080_v14  ;;  %1854 = vmatprep.subr.bf16.mxu1 %v2102_v19  ;;  %v162_v58 = vld [vmem:[#allocation9] sm:$0x7]  ;;  %s1656_s3 = sshll.u32 %s2441_s6, 4  ;;  %s1657_s3 = int_to_ptr.vmem [resolvable:$true] %s1656_s3 }
  0x93   :  { %341 = vmatprep.subr.bf16.mxu0 %v2081_v15  ;;  %v166_v57 = vsub.s32 0, %v165_v56  ;;  %v170_v59 = vsub.s32 1, %v165_v56  ;;  %v174_v4 = vsub.s32 2, %v165_v56  ;;  %s2394_s0 = scalar_lea.vmem %s1657_s3, 128  ;;  %p2399_p1 = scmp.lt.s32.totalorder %s1657_s3, %s1657_s3 }
  0x94   :  { %p2395_p0 = scmp.ne.s32.totalorder %s1657_s3, %s2394_s0  ;;  %p2400_p2 = scmp.lt.s32.totalorder %s2394_s0, %s2394_s0 }
  0x95   :  { %1855 = vmatpush3.bf16.msra.mxu1 %v2102_v19  ;;  %v167_v61 = vrot.slane %v162_v58, %v166_v57  ;;  %v171_v63 = vrot.slane %v162_v58, %v170_v59  ;;  %v2701_v6 = vrot.slane %v162_v58, %v174_v4 }
  0x96   :  { %342 = vmatpush1.bf16.msra.mxu0 %v2083_v17  ;;  %1856 = vmatprep.subr.bf16.mxu1 %v2106_v22  ;;  %p2401_p3 = por %p2400_p2, %p2399_p1 }
  0x97   :  { %343 = vmatprep.subr.bf16.mxu0 %v2084_v18 }
  0x98   :  { %p2402_p4 = pnand %p2401_p3, %p2395_p0 }
  0x99   :  { %1857 = vmatpush3.bf16.msra.mxu1 %v2106_v22 }
  0x9a   :  { %344 = vmatpush1.bf16.msra.mxu0 %v2087_v20  ;;  %1858 = vmatprep.subr.bf16.mxu1 %v2111_v25 }
  0x9b   :  { %345 = vmatprep.subr.bf16.mxu0 %v2088_v21 }
  0x9d   :  { %1859 = vmatpush3.bf16.msra.mxu1 %v2111_v25 }
  0x9e   :  { %346 = vmatpush1.bf16.msra.mxu0 %v2091_v23  ;;  %1860 = vmatprep.subr.bf16.mxu1 %v2115_v28 }
  0x9f   :  { %668 = vmatprep.subr.bf16.mxu0 %v2574_v24 }
  0xa1   :  { %364 = vmatmul.mubr.bf16.vlgmr.msra.gmra.mrb[0].mxu0 %v2092_v12  ;;  %1861 = vmatpush3.bf16.msra.mxu1 %v2115_v28 }
  0xa2   :  { %669 = vmatpush1.bf16.msra.mxu0 %v2576_v26  ;;  %373 = vmatprep.mubr.bf16.mxu0 %v3030_v0 }
  0xa3   :  { %670 = vmatprep.subr.bf16.mxu0 %v2579_v27  ;;  %1870 = vmatprep.subr.bf16.mxu1 %v3032_v36 }
  0xa4   :  { %1863 = vmatmul.mubr.bf16.vlgmr.msra.gmra.mrb[0].mxu1 %v2101_v31 }
  0xa5   :  { %1871 = vmatpush3.bf16.msra.mxu1 %v2597_v37  ;;  %1866 = vmatprep.mubr.bf16.mxu1 %v2110_v35 }
  0xa6   :  { %671 = vmatpush1.bf16.msra.mxu0 %v2582_v29  ;;  %1872 = vmatprep.subr.bf16.mxu1 %v3032_v36 }
  0xa7   :  { %672 = vmatprep.subr.bf16.mxu0 %v2586_v30 }
  0xa9   :  { %374 = vmatmul.mubr.bf16.gmra.mrb[4].mxu0 %v2101_v31  ;;  %1873 = vmatpush3.bf16.msra.mxu1 %v2603_v39 }
  0xaa   :  { %673 = vmatpush1.bf16.msra.mxu0 %v2589_v32  ;;  %383 = vmatprep.mubr.bf16.mxu0 %v3030_v0 }
  0xab   :  { %674 = vmatprep.subr.bf16.mxu0 %v2592_v33  ;;  %1874 = vmatprep.subr.bf16.mxu1 %v3032_v36 }
  0xac   :  { %1867 = vmatmul.mubr.bf16.gmra.mrb[4].mxu1 %v2119_v43 }
  0xad   :  { %1875 = vmatpush3.bf16.msra.mxu1 %v2615_v42  ;;  %1886 = vmatprep.mubr.msk.bf16.mxu1 %vm2439_vm0, %v3032_v36 }
  0xae   :  { %675 = vmatpush1.bf16.msra.mxu0 %v2594_v34  ;;  %1876 = vmatprep.subr.bf16.mxu1 %v3032_v36 }
  0xaf   :  { %676 = vmatprep.subr.bf16.mxu0 %v2599_v38 }
  0xb1   :  { %384 = vmatmul.mubr.bf16.gmra.mrb[8].mxu0 %v2110_v35  ;;  %1877 = vmatpush3.bf16.msra.mxu1 %v2626_v46 }
  0xb2   :  { %677 = vmatpush1.bf16.msra.mxu0 %v2609_v40  ;;  %393 = vmatprep.mubr.bf16.mxu0 %v3030_v0 }
  0xb3   :  { %678 = vmatprep.subr.bf16.mxu0 %v2612_v41  ;;  %1878 = vmatprep.subr.bf16.mxu1 %v3032_v36 }
  0xb5   :  { %1879 = vmatpush3.bf16.msra.mxu1 %v2638_v49 }
  0xb6   :  { %679 = vmatpush1.bf16.msra.mxu0 %v2619_v44  ;;  %1880 = vmatprep.subr.bf16.mxu1 %v3032_v36 }
  0xb7   :  { %680 = vmatprep.subr.bf16.mxu0 %v2623_v45 }
  0xb9   :  { %394 = vmatmul.mubr.bf16.gmra.mrb[12].mxu0 %v2119_v43  ;;  %1881 = vmatpush3.bf16.msra.mxu1 %v2647_v51 }
  0xba   :  { %681 = vmatpush1.bf16.msra.mxu0 %v2632_v47  ;;  %700 = vmatprep.mubr.bf16.mxu0 %v3030_v0 }
  0xbb   :  { %682 = vmatprep.subr.bf16.mxu0 %v2635_v48  ;;  %1882 = vmatprep.subr.bf16.mxu1 %v3032_v36 }
  0xbd   :  { %1883 = vmatpush3.bf16.msra.mxu1 %v2653_v52 }
  0xbe   :  { %683 = vmatpush1.bf16.msra.mxu0 %v2642_v50  ;;  %1884 = vmatprep.subr.bf16.mxu1 %v3032_v36 }
  0xbf   :  { %777 = vmatprep.subr.bf16.mxu0 %v2574_v24 }
  0xc1   :  { %701 = vmatmul.mubr.bf16.vlgmr.msra.gmra.mrb[16].mxu0 %v2440_v53  ;;  %1885 = vmatpush3.bf16.msra.mxu1 %v2660_v54 }
  0xc2   :  { %778 = vmatpush1.bf16.msra.mxu0 %v2576_v26  ;;  %809 = vmatprep.mubr.bf16.mxu0 %v3030_v0 }
  0xc3   :  { %779 = vmatprep.subr.bf16.mxu0 %v2579_v27  ;;  %1890 = vmatprep.subr.bf16.mxu1 %v3032_v36 }
  0xc4   :  { %1887 = vmatmul.mubr.bf16.vlgmr.msra.gmra.mrb[8].mxu1 %v2440_v53 }
  0xc5   :  { %1891 = vmatpush3.bf16.msra.mxu1 %v2597_v37  ;;  %1906 = vmatprep.mubr.msk.bf16.mxu1 %vm2439_vm0, %v3032_v36 }
  0xc6   :  { %780 = vmatpush1.bf16.msra.mxu0 %v2582_v29  ;;  %1892 = vmatprep.subr.bf16.mxu1 %v3032_v36 }
  0xc7   :  { %781 = vmatprep.subr.bf16.mxu0 %v2586_v30 }
  0xc9   :  { %1893 = vmatpush3.bf16.msra.mxu1 %v2603_v39 }
  0xca   :  { %782 = vmatpush1.bf16.msra.mxu0 %v2589_v32  ;;  %1894 = vmatprep.subr.bf16.mxu1 %v3032_v36 }
  0xcb   :  { %783 = vmatprep.subr.bf16.mxu0 %v2592_v33 }
  0xcd   :  { %1895 = vmatpush3.bf16.msra.mxu1 %v2615_v42 }
  0xce   :  { %784 = vmatpush1.bf16.msra.mxu0 %v2594_v34  ;;  %1896 = vmatprep.subr.bf16.mxu1 %v3032_v36 }
  0xcf   :  { %785 = vmatprep.subr.bf16.mxu0 %v2599_v38 }
  0xd1   :  { %1897 = vmatpush3.bf16.msra.mxu1 %v2626_v46 }
  0xd2   :  { %786 = vmatpush1.bf16.msra.mxu0 %v2609_v40  ;;  %1898 = vmatprep.subr.bf16.mxu1 %v3032_v36 }
  0xd3   :  { %787 = vmatprep.subr.bf16.mxu0 %v2612_v41 }
  0xd5   :  { %1899 = vmatpush3.bf16.msra.mxu1 %v2638_v49 }
  0xd6   :  { %788 = vmatpush1.bf16.msra.mxu0 %v2619_v44  ;;  %1900 = vmatprep.subr.bf16.mxu1 %v3032_v36 }
  0xd7   :  { %789 = vmatprep.subr.bf16.mxu0 %v2623_v45 }
  0xd9   :  { %1901 = vmatpush3.bf16.msra.mxu1 %v2647_v51 }
  0xda   :  { %790 = vmatpush1.bf16.msra.mxu0 %v2632_v47  ;;  %1902 = vmatprep.subr.bf16.mxu1 %v3032_v36 }
  0xdb   :  { %791 = vmatprep.subr.bf16.mxu0 %v2635_v48 }
  0xdd   :  { %1903 = vmatpush3.bf16.msra.mxu1 %v2653_v52 }
  0xde   :  { %792 = vmatpush1.bf16.msra.mxu0 %v2642_v50  ;;  %1904 = vmatprep.subr.bf16.mxu1 %v3032_v36 }
  0xdf   :  { %886 = vmatprep.subr.bf16.mxu0 %v2574_v24 }
  0xe1   :  { %1905 = vmatpush3.bf16.msra.mxu1 %v2660_v54 }
  0xe2   :  { %1910 = vmatprep.subr.bf16.mxu1 %v3032_v36 }
 0x174   :  { %v365_v60 = vpop.f32.mrb[0].mxu0 }
 0x175   :  { %v367_v62 = vpop.f32.mrb[1].mxu0 }
 0x176   :  { %v369_v1 = vpop.f32.mrb[2].mxu0 }
 0x177   :  { %v2697_v2 = vadd.f32 %v369_v1, %v167_v61  ;;  %v371_v3 = vpop.f32.mrb[3].mxu0  ;;  %v1864_v12 = vpop.f32.mrb[0].mxu1 }
 0x178   :  { %v2699_v5 = vadd.f32 %v371_v3, %v171_v63  ;;  %v2710_v15 = vadd.f32 %v1864_v12, %v2701_v6  ;;  %v438_v16 = vpop.f32.mrb[1].mxu1 }
 0x179   :  { %v1865_v18 = vpop.f32.mrb[2].mxu1 }
 0x17a   :  { %v2715_v19 = vadd.f32 %v1865_v18, %v2701_v6  ;;  %v441_v20 = vpop.f32.mrb[3].mxu1 }
 0x17b   :  { %v2718_v21 = vadd.f32 %v441_v20, %v2701_v6 }
 0x17c   :  { %v375_v7 = vpop.f32.mrb[4].mxu0 }
 0x17d   :  { %v2703_v8 = vadd.f32 %v375_v7, %v167_v61  ;;  %v377_v9 = vpop.f32.mrb[5].mxu0 }
 0x17e   :  { %v2705_v10 = vadd.f32 %v377_v9, %v171_v63  ;;  %v379_v11 = vpop.f32.mrb[6].mxu0 }
 0x17f   :  { %v2707_v13 = vadd.f32 %v379_v11, %v167_v61  ;;  %v381_v14 = vpop.f32.mrb[7].mxu0  ;;  %v1868_v35 = vpop.f32.mrb[4].mxu1 }
 0x180   :  { %v2712_v17 = vadd.f32 %v381_v14, %v171_v63  ;;  %v2727_v55 = vadd.f32 %v1868_v35, %v2701_v6  ;;  %v454_v56 = vpop.f32.mrb[5].mxu1 }
 0x181   :  { %v2732_v58 = vadd.f32 %v454_v56, %v2701_v6  ;;  %v1869_v59 = vpop.f32.mrb[6].mxu1 }
 0x182   :  { %3034 = vst [vmem:[#allocation22_spill] sm:$0xff] %v2727_v55  ;;  %v2735_v1 = vadd.f32 %v1869_v59, %v2701_v6  ;;  %v457_v3 = vpop.f32.mrb[7].mxu1 }
 0x183   :  { %v2738_v4 = vadd.f32 %v457_v3, %v2701_v6 }
 0x184   :  { %v385_v22 = vpop.f32.mrb[8].mxu0  ;;  %3035 = vst [vmem:[#allocation23_spill] sm:$0xff] %v2735_v1 }
 0x185   :  { %v2720_v23 = vadd.f32 %v385_v22, %v167_v61  ;;  %v387_v25 = vpop.f32.mrb[9].mxu0 }
 0x186   :  { %v2722_v28 = vadd.f32 %v387_v25, %v171_v63  ;;  %v389_v31 = vpop.f32.mrb[10].mxu0  ;;  %v366_v25 = vadd.f32 %v365_v60, %v167_v61 }
 0x187   :  { %v2724_v43 = vadd.f32 %v389_v31, %v167_v61  ;;  %v391_v53 = vpop.f32.mrb[11].mxu0  ;;  %v368_v31 = vadd.f32 %v367_v62, %v171_v63 }
 0x188   :  { %v2729_v57 = vadd.f32 %v391_v53, %v171_v63 }
 0x18c   :  { %v395_v7 = vpop.f32.mrb[12].mxu0 }
 0x18d   :  { %v2740_v9 = vadd.f32 %v395_v7, %v167_v61  ;;  %v397_v11 = vpop.f32.mrb[13].mxu0 }
 0x18e   :  { %v2742_v12 = vadd.f32 %v397_v11, %v171_v63  ;;  %v399_v14 = vpop.f32.mrb[14].mxu0 }
 0x18f   :  { %v2744_v18 = vadd.f32 %v399_v14, %v167_v61  ;;  %v401_v20 = vpop.f32.mrb[15].mxu0 }
 0x190   :  { %3036 = vst [vmem:[#allocation24_spill] sm:$0xff] %v2742_v12  ;;  %v2746_v22 = vadd.f32 %v401_v20, %v171_v63  ;;  %v2748_v20 = vld [vmem:[#allocation12] ss:$0 sm:$0xff]  ;;  %v439_v63 = vadd.f32 %v438_v16, %v2701_v6  ;;  %v3038_v6 = vmov 0.0   ;;  %v3039_v16 = vmov 0  }
 0x191   :  { %3037 = vst [vmem:[#allocation25_spill] sm:$0xff] %v2744_v18 }
 0x194   :  { %v702_v35 = vpop.f32.mrb[16].mxu0 }
 0x195   :  { %v749_v53 = vadd.f32 %v702_v35, %v366_v25  ;;  %v704_v56 = vpop.f32.mrb[17].mxu0 }
 0x196   :  { %v756_v59 = vadd.f32 %v704_v56, %v368_v31  ;;  %v706_v3 = vpop.f32.mrb[18].mxu0 }
 0x197   :  { %v1728_v0 = vmul.f32 -1.442695, %v749_v53  ;;  %v707_v36 = vpop.f32.mrb[19].mxu0  ;;  %v743_v7 = vpop.f32.mrb[8].mxu1 }
 0x198   :  { %v1888_v1 = vpop.f32.mrb[9].mxu1  ;;  %v1729_v55 = vmul.f32 -1.442695, %v756_v59  ;;  %v763_v60 = vadd.f32 %v2748_v20, %v743_v7 }
 0x199   :  { %2142 = vpow2.f32 %v1728_v0  ;;  %v746_v11 = vpop.f32.mrb[10].mxu1 }
 0x19a   :  { %v1889_v12 = vpop.f32.mrb[11].mxu1  ;;  %2144 = vpow2.f32 %v1729_v55 }
 0x1a3   :  { %v2143_v14 = vpop.eup %2142 }
 0x1a4   :  { %v753_v18 = vadd.f32 1.0, %v2143_v14  ;;  %v2145_v61 = vpop.eup %2144 }
 0x1a5   :  { %v760_v36 = vadd.f32 1.0, %v2145_v61 }
 0x1a6   :  { %2146 = vrcp.f32 %v753_v18 }
 0x1b0   :  { %v2147_v62 = vpop.eup %2146 }
 0x1b1   :  { %v764_v25 = vmul.f32 %v2147_v62, %v763_v60 }
 0x1b3   :  { %v765_v0 = vadd.f32 %v764_v25, %v439_v63 }
 0x1b5   :  { %2148 = vtanh.f32 %v765_v0 }
 0x1b6   :  { %2150 = vrcp.f32 %v760_v36 }
 0x1bf   :  { %v2149_v1 = vpop.eup %2148 }
 0x1c0   :  { %v767_v31 = vsub.f32 0.0, %v2149_v1  ;;  %v2151_v12 = vpop.eup %2150 }
 0x1c2   :  { %v768_v35 = vmul.f32 %v2151_v12, %v767_v31 }
 0x1c4   :  { %v2752_v53 = vadd.f32 %v2149_v1, %v768_v35 }
 0x1c6   :  { %v776_v55 = vpack.c.bf16 %v2752_v53, %v2752_v53 }
 0x1c8   :  { %810 = vmatmul.mubr.bf16.vlgmr.msra.gmra.mrb[20].mxu0 %v776_v55  ;;  %1907 = vmatmul.mubr.bf16.vlgmr.msra.gmra.mrb[12].mxu1 %v776_v55 }
 0x1c9   :  { %887 = vmatpush1.bf16.msra.mxu0 %v2576_v26  ;;  %1911 = vmatpush3.bf16.msra.mxu1 %v2597_v37 }
 0x1ca   :  { %888 = vmatprep.subr.bf16.mxu0 %v2579_v27  ;;  %1912 = vmatprep.subr.bf16.mxu1 %v3038_v6 }
 0x1cb   :  { %918 = vmatprep.mubr.bf16.mxu0 %v3039_v16  ;;  %1926 = vmatprep.mubr.msk.bf16.mxu1 %vm2439_vm0, %v3038_v6 }
 0x1cd   :  { %889 = vmatpush1.bf16.msra.mxu0 %v2582_v29  ;;  %1913 = vmatpush3.bf16.msra.mxu1 %v2603_v39 }
 0x1ce   :  { %890 = vmatprep.subr.bf16.mxu0 %v2586_v30  ;;  %1914 = vmatprep.subr.bf16.mxu1 %v3038_v6 }
 0x1d1   :  { %891 = vmatpush1.bf16.msra.mxu0 %v2589_v32  ;;  %1915 = vmatpush3.bf16.msra.mxu1 %v2615_v42 }
 0x1d2   :  { %892 = vmatprep.subr.bf16.mxu0 %v2592_v33  ;;  %1916 = vmatprep.subr.bf16.mxu1 %v3038_v6 }
 0x1d5   :  { %893 = vmatpush1.bf16.msra.mxu0 %v2594_v34  ;;  %1917 = vmatpush3.bf16.msra.mxu1 %v2626_v46 }
 0x1d6   :  { %894 = vmatprep.subr.bf16.mxu0 %v2599_v38  ;;  %1918 = vmatprep.subr.bf16.mxu1 %v3038_v6 }
 0x1d9   :  { %895 = vmatpush1.bf16.msra.mxu0 %v2609_v40  ;;  %1919 = vmatpush3.bf16.msra.mxu1 %v2638_v49 }
 0x1da   :  { %896 = vmatprep.subr.bf16.mxu0 %v2612_v41  ;;  %1920 = vmatprep.subr.bf16.mxu1 %v3038_v6 }
 0x1dd   :  { %897 = vmatpush1.bf16.msra.mxu0 %v2619_v44  ;;  %1921 = vmatpush3.bf16.msra.mxu1 %v2647_v51 }
 0x1de   :  { %898 = vmatprep.subr.bf16.mxu0 %v2623_v45  ;;  %1922 = vmatprep.subr.bf16.mxu1 %v3038_v6 }
 0x1e1   :  { %899 = vmatpush1.bf16.msra.mxu0 %v2632_v47  ;;  %1923 = vmatpush3.bf16.msra.mxu1 %v2653_v52 }
 0x1e2   :  { %900 = vmatprep.subr.bf16.mxu0 %v2635_v48  ;;  %1924 = vmatprep.subr.bf16.mxu1 %v3038_v6 }
 0x1e5   :  { %901 = vmatpush1.bf16.msra.mxu0 %v2642_v50  ;;  %1925 = vmatpush3.bf16.msra.mxu1 %v2660_v54 }
 0x1e6   :  { %995 = vmatprep.subr.bf16.mxu0 %v2574_v24  ;;  %1930 = vmatprep.subr.bf16.mxu1 %v3038_v6 }
 0x29b   :  { %v811_v18 = vpop.f32.mrb[20].mxu0  ;;  %v852_v56 = vpop.f32.mrb[12].mxu1 }
 0x29c   :  { %v858_v59 = vadd.f32 %v811_v18, %v2697_v2  ;;  %v813_v3 = vpop.f32.mrb[21].mxu0  ;;  %v1908_v7 = vpop.f32.mrb[13].mxu1  ;;  %v872_v31 = vadd.f32 %v2748_v20, %v852_v56 }
 0x29d   :  { %v865_v11 = vadd.f32 %v813_v3, %v2699_v5  ;;  %v815_v14 = vpop.f32.mrb[22].mxu0  ;;  %v855_v60 = vpop.f32.mrb[14].mxu1 }
 0x29e   :  { %v1730_v61 = vmul.f32 -1.442695, %v858_v59  ;;  %v816_v62 = vpop.f32.mrb[23].mxu0  ;;  %v1909_v63 = vpop.f32.mrb[15].mxu1 }
 0x29f   :  { %v1731_v25 = vmul.f32 -1.442695, %v865_v11 }
 0x2a0   :  { %2152 = vpow2.f32 %v1730_v61 }
 0x2a1   :  { %2154 = vpow2.f32 %v1731_v25 }
 0x2aa   :  { %v2153_v36 = vpop.eup %2152 }
 0x2ab   :  { %v862_v0 = vadd.f32 1.0, %v2153_v36  ;;  %v2155_v1 = vpop.eup %2154 }
 0x2ac   :  { %v869_v55 = vadd.f32 1.0, %v2155_v1 }
 0x2ad   :  { %2156 = vrcp.f32 %v862_v0 }
 0x2b7   :  { %v2157_v12 = vpop.eup %2156 }
 0x2b8   :  { %v873_v2 = vmul.f32 %v2157_v12, %v872_v31 }
 0x2ba   :  { %v874_v35 = vadd.f32 %v873_v2, %v2718_v21 }
 0x2bc   :  { %2158 = vtanh.f32 %v874_v35 }
 0x2bd   :  { %2160 = vrcp.f32 %v869_v55 }
 0x2c6   :  { %v2159_v5 = vpop.eup %2158 }
 0x2c7   :  { %v876_v18 = vsub.f32 %v2752_v53, %v2159_v5  ;;  %v2161_v59 = vpop.eup %2160 }
 0x2c9   :  { %v877_v3 = vmul.f32 %v2161_v59, %v876_v18 }
 0x2cb   :  { %v2796_v7 = vadd.f32 %v2159_v5, %v877_v3 }
 0x2cd   :  { %v885_v11 = vpack.c.bf16 %v2796_v7, %v2796_v7 }
 0x2cf   :  { %919 = vmatmul.mubr.bf16.vlgmr.msra.gmra.mrb[24].mxu0 %v885_v11  ;;  %1927 = vmatmul.mubr.bf16.vlgmr.msra.gmra.mrb[16].mxu1 %v885_v11 }
 0x2d0   :  { %996 = vmatpush1.bf16.msra.mxu0 %v2576_v26  ;;  %1931 = vmatpush3.bf16.msra.mxu1 %v2597_v37 }
 0x2d1   :  { %997 = vmatprep.subr.bf16.mxu0 %v2579_v27  ;;  %1932 = vmatprep.subr.bf16.mxu1 %v3038_v6 }
 0x2d2   :  { %1027 = vmatprep.mubr.bf16.mxu0 %v3039_v16  ;;  %1946 = vmatprep.mubr.msk.bf16.mxu1 %vm2439_vm0, %v3038_v6 }
 0x2d4   :  { %998 = vmatpush1.bf16.msra.mxu0 %v2582_v29  ;;  %1933 = vmatpush3.bf16.msra.mxu1 %v2603_v39 }
 0x2d5   :  { %999 = vmatprep.subr.bf16.mxu0 %v2586_v30  ;;  %1934 = vmatprep.subr.bf16.mxu1 %v3038_v6 }
 0x2d8   :  { %1000 = vmatpush1.bf16.msra.mxu0 %v2589_v32  ;;  %1935 = vmatpush3.bf16.msra.mxu1 %v2615_v42 }
 0x2d9   :  { %1001 = vmatprep.subr.bf16.mxu0 %v2592_v33  ;;  %1936 = vmatprep.subr.bf16.mxu1 %v3038_v6 }
 0x2dc   :  { %1002 = vmatpush1.bf16.msra.mxu0 %v2594_v34  ;;  %1937 = vmatpush3.bf16.msra.mxu1 %v2626_v46 }
 0x2dd   :  { %1003 = vmatprep.subr.bf16.mxu0 %v2599_v38  ;;  %1938 = vmatprep.subr.bf16.mxu1 %v3038_v6 }
 0x2e0   :  { %1004 = vmatpush1.bf16.msra.mxu0 %v2609_v40  ;;  %1939 = vmatpush3.bf16.msra.mxu1 %v2638_v49 }
 0x2e1   :  { %1005 = vmatprep.subr.bf16.mxu0 %v2612_v41  ;;  %1940 = vmatprep.subr.bf16.mxu1 %v3038_v6 }
 0x2e4   :  { %1006 = vmatpush1.bf16.msra.mxu0 %v2619_v44  ;;  %1941 = vmatpush3.bf16.msra.mxu1 %v2647_v51 }
 0x2e5   :  { %1007 = vmatprep.subr.bf16.mxu0 %v2623_v45  ;;  %1942 = vmatprep.subr.bf16.mxu1 %v3038_v6 }
 0x2e8   :  { %1008 = vmatpush1.bf16.msra.mxu0 %v2632_v47  ;;  %1943 = vmatpush3.bf16.msra.mxu1 %v2653_v52 }
 0x2e9   :  { %1009 = vmatprep.subr.bf16.mxu0 %v2635_v48  ;;  %1944 = vmatprep.subr.bf16.mxu1 %v3038_v6 }
 0x2ec   :  { %1010 = vmatpush1.bf16.msra.mxu0 %v2642_v50  ;;  %1945 = vmatpush3.bf16.msra.mxu1 %v2660_v54 }
 0x2ed   :  { %1104 = vmatprep.subr.bf16.mxu0 %v2574_v24  ;;  %1950 = vmatprep.subr.bf16.mxu1 %v3038_v6 }
 0x3a2   :  { %v920_v21 = vpop.f32.mrb[24].mxu0  ;;  %v961_v53 = vpop.f32.mrb[16].mxu1 }
 0x3a3   :  { %v967_v56 = vadd.f32 %v920_v21, %v2703_v8  ;;  %v922_v14 = vpop.f32.mrb[25].mxu0  ;;  %v1928_v60 = vpop.f32.mrb[17].mxu1  ;;  %v981_v35 = vadd.f32 %v2748_v20, %v961_v53 }
 0x3a4   :  { %v974_v61 = vadd.f32 %v922_v14, %v2705_v10  ;;  %v924_v62 = vpop.f32.mrb[26].mxu0  ;;  %v964_v63 = vpop.f32.mrb[18].mxu1 }
 0x3a5   :  { %v1732_v25 = vmul.f32 -1.442695, %v967_v56  ;;  %v925_v36 = vpop.f32.mrb[27].mxu0  ;;  %v1929_v0 = vpop.f32.mrb[19].mxu1 }
 0x3a6   :  { %v1733_v1 = vmul.f32 -1.442695, %v974_v61 }
 0x3a7   :  { %2162 = vpow2.f32 %v1732_v25 }
 0x3a8   :  { %2164 = vpow2.f32 %v1733_v1 }
 0x3b1   :  { %v2163_v31 = vpop.eup %2162 }
 0x3b2   :  { %v971_v12 = vadd.f32 1.0, %v2163_v31  ;;  %v2165_v2 = vpop.eup %2164 }
 0x3b3   :  { %v978_v18 = vadd.f32 1.0, %v2165_v2 }
 0x3b4   :  { %2166 = vrcp.f32 %v971_v12 }
 0x3be   :  { %v2167_v55 = vpop.eup %2166 }
 0x3bf   :  { %v982_v8 = vmul.f32 %v2167_v55, %v981_v35 }
 0x3c1   :  { %v983_v5 = vadd.f32 %v982_v8, %v2710_v15 }
 0x3c3   :  { %2168 = vtanh.f32 %v983_v5 }
 0x3c4   :  { %2170 = vrcp.f32 %v978_v18 }
 0x3cd   :  { %v2169_v10 = vpop.eup %2168 }
 0x3ce   :  { %v985_v59 = vsub.f32 %v2796_v7, %v2169_v10  ;;  %v2171_v3 = vpop.eup %2170 }
 0x3d0   :  { %v986_v11 = vmul.f32 %v2171_v3, %v985_v59 }
 0x3d2   :  { %v2840_v21 = vadd.f32 %v2169_v10, %v986_v11 }
 0x3d4   :  { %v994_v56 = vpack.c.bf16 %v2840_v21, %v2840_v21 }
 0x3d6   :  { %1028 = vmatmul.mubr.bf16.vlgmr.msra.gmra.mrb[28].mxu0 %v994_v56  ;;  %1947 = vmatmul.mubr.bf16.vlgmr.msra.gmra.mrb[20].mxu1 %v994_v56 }
 0x3d7   :  { %1105 = vmatpush1.bf16.msra.mxu0 %v2576_v26  ;;  %1951 = vmatpush3.bf16.msra.mxu1 %v2597_v37 }
 0x3d8   :  { %1106 = vmatprep.subr.bf16.mxu0 %v2579_v27  ;;  %1952 = vmatprep.subr.bf16.mxu1 %v3038_v6 }
 0x3d9   :  { %1136 = vmatprep.mubr.bf16.mxu0 %v3039_v16  ;;  %1966 = vmatprep.mubr.msk.bf16.mxu1 %vm2439_vm0, %v3038_v6 }
 0x3db   :  { %1107 = vmatpush1.bf16.msra.mxu0 %v2582_v29  ;;  %1953 = vmatpush3.bf16.msra.mxu1 %v2603_v39 }
 0x3dc   :  { %1108 = vmatprep.subr.bf16.mxu0 %v2586_v30  ;;  %1954 = vmatprep.subr.bf16.mxu1 %v3038_v6 }
 0x3df   :  { %1109 = vmatpush1.bf16.msra.mxu0 %v2589_v32  ;;  %1955 = vmatpush3.bf16.msra.mxu1 %v2615_v42 }
 0x3e0   :  { %1110 = vmatprep.subr.bf16.mxu0 %v2592_v33  ;;  %1956 = vmatprep.subr.bf16.mxu1 %v3038_v6 }
 0x3e3   :  { %1111 = vmatpush1.bf16.msra.mxu0 %v2594_v34  ;;  %1957 = vmatpush3.bf16.msra.mxu1 %v2626_v46 }
 0x3e4   :  { %1112 = vmatprep.subr.bf16.mxu0 %v2599_v38  ;;  %1958 = vmatprep.subr.bf16.mxu1 %v3038_v6 }
 0x3e7   :  { %1113 = vmatpush1.bf16.msra.mxu0 %v2609_v40  ;;  %1959 = vmatpush3.bf16.msra.mxu1 %v2638_v49 }
 0x3e8   :  { %1114 = vmatprep.subr.bf16.mxu0 %v2612_v41  ;;  %1960 = vmatprep.subr.bf16.mxu1 %v3038_v6 }
 0x3eb   :  { %1115 = vmatpush1.bf16.msra.mxu0 %v2619_v44  ;;  %1961 = vmatpush3.bf16.msra.mxu1 %v2647_v51 }
 0x3ec   :  { %1116 = vmatprep.subr.bf16.mxu0 %v2623_v45  ;;  %1962 = vmatprep.subr.bf16.mxu1 %v3038_v6 }
 0x3ef   :  { %1117 = vmatpush1.bf16.msra.mxu0 %v2632_v47  ;;  %1963 = vmatpush3.bf16.msra.mxu1 %v2653_v52 }
 0x3f0   :  { %1118 = vmatprep.subr.bf16.mxu0 %v2635_v48  ;;  %1964 = vmatprep.subr.bf16.mxu1 %v3038_v6 }
 0x3f3   :  { %1119 = vmatpush1.bf16.msra.mxu0 %v2642_v50  ;;  %1965 = vmatpush3.bf16.msra.mxu1 %v2660_v54 }
 0x3f4   :  { %1213 = vmatprep.subr.bf16.mxu0 %v2574_v24  ;;  %1970 = vmatprep.subr.bf16.mxu1 %v3038_v6 }
 0x4a9   :  { %v1029_v15 = vpop.f32.mrb[28].mxu0  ;;  %v1070_v7 = vpop.f32.mrb[20].mxu1 }
 0x4aa   :  { %v1076_v53 = vadd.f32 %v1029_v15, %v2707_v13  ;;  %v1031_v14 = vpop.f32.mrb[29].mxu0  ;;  %v1948_v60 = vpop.f32.mrb[21].mxu1  ;;  %v1090_v35 = vadd.f32 %v2748_v20, %v1070_v7 }
 0x4ab   :  { %v1083_v61 = vadd.f32 %v1031_v14, %v2712_v17  ;;  %v1033_v62 = vpop.f32.mrb[30].mxu0  ;;  %v1073_v63 = vpop.f32.mrb[22].mxu1 }
 0x4ac   :  { %v1734_v25 = vmul.f32 -1.442695, %v1076_v53  ;;  %v1034_v36 = vpop.f32.mrb[31].mxu0  ;;  %v1949_v0 = vpop.f32.mrb[23].mxu1 }
 0x4ad   :  { %v1735_v1 = vmul.f32 -1.442695, %v1083_v61 }
 0x4ae   :  { %2172 = vpow2.f32 %v1734_v25 }
 0x4af   :  { %2174 = vpow2.f32 %v1735_v1 }
 0x4b8   :  { %v2173_v31 = vpop.eup %2172 }
 0x4b9   :  { %v1080_v12 = vadd.f32 1.0, %v2173_v31  ;;  %v2175_v2 = vpop.eup %2174 }
 0x4ba   :  { %v1087_v5 = vadd.f32 1.0, %v2175_v2 }
 0x4bb   :  { %2176 = vrcp.f32 %v1080_v12 }
 0x4c5   :  { %v2177_v55 = vpop.eup %2176 }
 0x4c6   :  { %v1091_v13 = vmul.f32 %v2177_v55, %v1090_v35 }
 0x4c8   :  { %v1092_v8 = vadd.f32 %v1091_v13, %v2715_v19 }
 0x4ca   :  { %2178 = vtanh.f32 %v1092_v8 }
 0x4cb   :  { %2180 = vrcp.f32 %v1087_v5 }
 0x4d4   :  { %v2179_v17 = vpop.eup %2178 }
 0x4d5   :  { %v1094_v18 = vsub.f32 %v2840_v21, %v2179_v17  ;;  %v2181_v10 = vpop.eup %2180 }
 0x4d7   :  { %v1095_v59 = vmul.f32 %v2181_v10, %v1094_v18 }
 0x4d9   :  { %v2884_v3 = vadd.f32 %v2179_v17, %v1095_v59 }
 0x4db   :  { %v1103_v11 = vpack.c.bf16 %v2884_v3, %v2884_v3 }
 0x4dd   :  { %1137 = vmatmul.mubr.bf16.vlgmr.msra.gmra.mrb[32].mxu0 %v1103_v11  ;;  %1967 = vmatmul.mubr.bf16.vlgmr.msra.gmra.mrb[24].mxu1 %v1103_v11 }
 0x4de   :  { %1214 = vmatpush1.bf16.msra.mxu0 %v2576_v26  ;;  %1971 = vmatpush3.bf16.msra.mxu1 %v2597_v37 }
 0x4df   :  { %1215 = vmatprep.subr.bf16.mxu0 %v2579_v27  ;;  %1972 = vmatprep.subr.bf16.mxu1 %v3038_v6 }
 0x4e0   :  { %1245 = vmatprep.mubr.bf16.mxu0 %v3039_v16  ;;  %1986 = vmatprep.mubr.msk.bf16.mxu1 %vm2439_vm0, %v3038_v6 }
 0x4e2   :  { %1216 = vmatpush1.bf16.msra.mxu0 %v2582_v29  ;;  %1973 = vmatpush3.bf16.msra.mxu1 %v2603_v39 }
 0x4e3   :  { %1217 = vmatprep.subr.bf16.mxu0 %v2586_v30  ;;  %1974 = vmatprep.subr.bf16.mxu1 %v3038_v6 }
 0x4e6   :  { %1218 = vmatpush1.bf16.msra.mxu0 %v2589_v32  ;;  %1975 = vmatpush3.bf16.msra.mxu1 %v2615_v42 }
 0x4e7   :  { %1219 = vmatprep.subr.bf16.mxu0 %v2592_v33  ;;  %1976 = vmatprep.subr.bf16.mxu1 %v3038_v6 }
 0x4ea   :  { %1220 = vmatpush1.bf16.msra.mxu0 %v2594_v34  ;;  %1977 = vmatpush3.bf16.msra.mxu1 %v2626_v46 }
 0x4eb   :  { %1221 = vmatprep.subr.bf16.mxu0 %v2599_v38  ;;  %1978 = vmatprep.subr.bf16.mxu1 %v3038_v6 }
 0x4ee   :  { %1222 = vmatpush1.bf16.msra.mxu0 %v2609_v40  ;;  %1979 = vmatpush3.bf16.msra.mxu1 %v2638_v49 }
 0x4ef   :  { %1223 = vmatprep.subr.bf16.mxu0 %v2612_v41  ;;  %1980 = vmatprep.subr.bf16.mxu1 %v3038_v6 }
 0x4f2   :  { %1224 = vmatpush1.bf16.msra.mxu0 %v2619_v44  ;;  %1981 = vmatpush3.bf16.msra.mxu1 %v2647_v51 }
 0x4f3   :  { %1225 = vmatprep.subr.bf16.mxu0 %v2623_v45  ;;  %1982 = vmatprep.subr.bf16.mxu1 %v3038_v6 }
 0x4f6   :  { %1226 = vmatpush1.bf16.msra.mxu0 %v2632_v47  ;;  %1983 = vmatpush3.bf16.msra.mxu1 %v2653_v52 }
 0x4f7   :  { %1227 = vmatprep.subr.bf16.mxu0 %v2635_v48  ;;  %1984 = vmatprep.subr.bf16.mxu1 %v3038_v6 }
 0x4fa   :  { %1228 = vmatpush1.bf16.msra.mxu0 %v2642_v50  ;;  %1985 = vmatpush3.bf16.msra.mxu1 %v2660_v54 }
 0x4fb   :  { %1322 = vmatprep.subr.bf16.mxu0 %v2574_v24  ;;  %1990 = vmatprep.subr.bf16.mxu1 %v3038_v6 }
 0x5b0   :  { %v1138_v19 = vpop.f32.mrb[32].mxu0  ;;  %v1179_v21 = vpop.f32.mrb[24].mxu1 }
 0x5b1   :  { %v1185_v56 = vadd.f32 %v1138_v19, %v2720_v23  ;;  %v1140_v15 = vpop.f32.mrb[33].mxu0  ;;  %v1968_v7 = vpop.f32.mrb[25].mxu1  ;;  %v1199_v1 = vadd.f32 %v2748_v20, %v1179_v21  ;;  %v2223_v21 = vld [vmem:[#allocation10] ss:$12 sps:$4 sm:$0xff]  }
 0x5b2   :  { %v1192_v53 = vadd.f32 %v1140_v15, %v2722_v28  ;;  %v1142_v14 = vpop.f32.mrb[34].mxu0  ;;  %v1182_v60 = vpop.f32.mrb[26].mxu1  ;;  %v2226_v15 = vld [vmem:[#allocation10 + $0x18] ss:$12 sps:$4 sm:$0xff]   ;;  %v2227_v7 = vld [vmem:[#allocation10 + $0x20] ss:$12 sps:$4 sm:$0xff]  }
 0x5b3   :  { %v1736_v61 = vmul.f32 -1.442695, %v1185_v56  ;;  %v1143_v62 = vpop.f32.mrb[35].mxu0  ;;  %v1969_v63 = vpop.f32.mrb[27].mxu1  ;;  %v2224_v56 = vld [vmem:[#allocation10 + $0x8] ss:$12 sps:$4 sm:$0xff]  }
 0x5b4   :  { %v1737_v25 = vmul.f32 -1.442695, %v1192_v53  ;;  %v2228_v53 = vld [vmem:[#allocation10 + $0x34] ss:$12 sps:$4 sm:$0xff]   ;;  %v2229_v14 = vld [vmem:[#allocation10 + $0x30] ss:$12 sps:$4 sm:$0xff]  }
 0x5b5   :  { %2182 = vpow2.f32 %v1736_v61  ;;  %v2230_v60 = vld [vmem:[#allocation10 + $0x38] ss:$12 sps:$4 sm:$0xff]   ;;  %v2234_v63 = vld [vmem:[#allocation10 + $0x60] ss:$12 sps:$4 sm:$0xff]  }
 0x5b6   :  { %2184 = vpow2.f32 %v1737_v25  ;;  %v2231_v61 = vld [vmem:[#allocation10 + $0x4c] ss:$12 sps:$4 sm:$0xff]   ;;  %v2233_v62 = vld [vmem:[#allocation10 + $0x64] ss:$12 sps:$4 sm:$0xff]   ;;  %v2235_v25 = vld [vmem:[#allocation10 + $0x7c] ss:$12 sps:$4 sm:$0xff]  }
 0x5bf   :  { %v2183_v36 = vpop.eup %2182 }
 0x5c0   :  { %v1189_v0 = vadd.f32 1.0, %v2183_v36  ;;  %v2185_v24 = vpop.eup %2184  ;;  %v2236_v36 = vld [vmem:[#allocation10 + $0x78] ss:$12 sps:$4 sm:$0xff]  }
 0x5c1   :  { %v1196_v2 = vadd.f32 1.0, %v2185_v24  ;;  %v2239_v24 = vld [vmem:[#allocation10 + $0xac] ss:$12 sps:$4 sm:$0xff]  }
 0x5c2   :  { %2186 = vrcp.f32 %v1189_v0  ;;  %v2237_v0 = vld [vmem:[#allocation10 + $0x94] ss:$12 sps:$4 sm:$0xff]  }
 0x5cc   :  { %v2187_v31 = vpop.eup %2186 }
 0x5cd   :  { %v1200_v23 = vmul.f32 %v2187_v31, %v1199_v1 }
 0x5cf   :  { %v1201_v12 = vadd.f32 %v1200_v23, %v2732_v58 }
 0x5d1   :  { %2188 = vtanh.f32 %v1201_v12  ;;  %v3040_v12 = vld [vmem:[#allocation24_spill] sm:$0xff] }
 0x5d2   :  { %2190 = vrcp.f32 %v1196_v2 }
 0x5db   :  { %v2189_v28 = vpop.eup %2188 }
 0x5dc   :  { %v1203_v35 = vsub.f32 %v2884_v3, %v2189_v28  ;;  %v2191_v55 = vpop.eup %2190 }
 0x5de   :  { %v1204_v13 = vmul.f32 %v2191_v55, %v1203_v35 }
 0x5e0   :  { %v2928_v8 = vadd.f32 %v2189_v28, %v1204_v13 }
 0x5e2   :  { %v1212_v5 = vpack.c.bf16 %v2928_v8, %v2928_v8 }
 0x5e4   :  { %1246 = vmatmul.mubr.bf16.vlgmr.msra.gmra.mrb[36].mxu0 %v1212_v5  ;;  %1987 = vmatmul.mubr.bf16.vlgmr.msra.gmra.mrb[28].mxu1 %v1212_v5 }
 0x5e5   :  { %1323 = vmatpush1.bf16.msra.mxu0 %v2576_v26  ;;  %1991 = vmatpush3.bf16.msra.mxu1 %v2597_v37  ;;  %v2222_v26 = vld [vmem:[#allocation10 + $0x4] ss:$12 sps:$4 sm:$0xff]  }
 0x5e6   :  { %1324 = vmatprep.subr.bf16.mxu0 %v2579_v27  ;;  %1992 = vmatprep.subr.bf16.mxu1 %v3038_v6 }
 0x5e7   :  { %1354 = vmatprep.mubr.bf16.mxu0 %v3039_v16  ;;  %2006 = vmatprep.mubr.msk.bf16.mxu1 %vm2439_vm0, %v3038_v6 }
 0x5e9   :  { %1325 = vmatpush1.bf16.msra.mxu0 %v2582_v29  ;;  %1993 = vmatpush3.bf16.msra.mxu1 %v2603_v39 }
 0x5ea   :  { %1326 = vmatprep.subr.bf16.mxu0 %v2586_v30  ;;  %1994 = vmatprep.subr.bf16.mxu1 %v3038_v6 }
 0x5ed   :  { %1327 = vmatpush1.bf16.msra.mxu0 %v2589_v32  ;;  %1995 = vmatpush3.bf16.msra.mxu1 %v2615_v42 }
 0x5ee   :  { %1328 = vmatprep.subr.bf16.mxu0 %v2592_v33  ;;  %1996 = vmatprep.subr.bf16.mxu1 %v3038_v6 }
 0x5f1   :  { %1329 = vmatpush1.bf16.msra.mxu0 %v2594_v34  ;;  %1997 = vmatpush3.bf16.msra.mxu1 %v2626_v46 }
 0x5f2   :  { %1330 = vmatprep.subr.bf16.mxu0 %v2599_v38  ;;  %1998 = vmatprep.subr.bf16.mxu1 %v3038_v6 }
 0x5f5   :  { %1331 = vmatpush1.bf16.msra.mxu0 %v2609_v40  ;;  %1999 = vmatpush3.bf16.msra.mxu1 %v2638_v49 }
 0x5f6   :  { %1332 = vmatprep.subr.bf16.mxu0 %v2612_v41  ;;  %2000 = vmatprep.subr.bf16.mxu1 %v3038_v6 }
 0x5f9   :  { %1333 = vmatpush1.bf16.msra.mxu0 %v2619_v44  ;;  %2001 = vmatpush3.bf16.msra.mxu1 %v2647_v51 }
 0x5fa   :  { %1334 = vmatprep.subr.bf16.mxu0 %v2623_v45  ;;  %2002 = vmatprep.subr.bf16.mxu1 %v3038_v6 }
 0x5fd   :  { %1335 = vmatpush1.bf16.msra.mxu0 %v2632_v47  ;;  %2003 = vmatpush3.bf16.msra.mxu1 %v2653_v52 }
 0x5fe   :  { %1336 = vmatprep.subr.bf16.mxu0 %v2635_v48  ;;  %2004 = vmatprep.subr.bf16.mxu1 %v3038_v6 }
 0x601   :  { %1337 = vmatpush1.bf16.msra.mxu0 %v2642_v50  ;;  %2005 = vmatpush3.bf16.msra.mxu1 %v2660_v54 }
 0x602   :  { %1431 = vmatprep.subr.bf16.mxu0 %v2222_v26  ;;  %2010 = vmatprep.subr.bf16.mxu1 %v3038_v6 }
 0x6b7   :  { %v1247_v27 = vpop.f32.mrb[36].mxu0  ;;  %v1288_v29 = vpop.f32.mrb[28].mxu1 }
 0x6b8   :  { %v1294_v30 = vadd.f32 %v1247_v27, %v2724_v43  ;;  %v1249_v32 = vpop.f32.mrb[37].mxu0  ;;  %v1988_v33 = vpop.f32.mrb[29].mxu1  ;;  %v1308_v48 = vadd.f32 %v2748_v20, %v1288_v29  ;;  %v3041_v29 = vld [vmem:[#allocation22_spill] sm:$0xff] }
 0x6b9   :  { %v1301_v34 = vadd.f32 %v1249_v32, %v2729_v57  ;;  %v1251_v37 = vpop.f32.mrb[38].mxu0  ;;  %v1291_v38 = vpop.f32.mrb[30].mxu1 }
 0x6ba   :  { %v1738_v39 = vmul.f32 -1.442695, %v1294_v30  ;;  %v1252_v40 = vpop.f32.mrb[39].mxu0  ;;  %v1989_v41 = vpop.f32.mrb[31].mxu1 }
 0x6bb   :  { %v1739_v42 = vmul.f32 -1.442695, %v1301_v34  ;;  %v2134_v41 = vld [vmem:[#allocation13] sm:$0xff]  }
 0x6bc   :  { %2192 = vpow2.f32 %v1738_v39 }
 0x6bd   :  { %2194 = vpow2.f32 %v1739_v42  ;;  %v2135_v42 = vld [vmem:[#allocation13 + $0x8] sm:$0xff]  }
 0x6c6   :  { %v2193_v44 = vpop.eup %2192 }
 0x6c7   :  { %v1298_v45 = vadd.f32 1.0, %v2193_v44  ;;  %v2195_v47 = vpop.eup %2194  ;;  %v2136_v44 = vld [vmem:[#allocation13 + $0x10] sm:$0xff]  }
 0x6c8   :  { %v1305_v18 = vadd.f32 1.0, %v2195_v47  ;;  %v2138_v47 = vld [vmem:[#allocation13 + $0x20] sm:$0xff]  }
 0x6c9   :  { %2196 = vrcp.f32 %v1298_v45  ;;  %v2137_v45 = vld [vmem:[#allocation13 + $0x18] sm:$0xff]  }
 0x6d3   :  { %v2197_v58 = vpop.eup %2196 }
 0x6d4   :  { %v1309_v43 = vmul.f32 %v2197_v58, %v1308_v48  ;;  %v2139_v48 = vld [vmem:[#allocation13 + $0x28] sm:$0xff]   ;;  %v2140_v58 = vld [vmem:[#allocation13 + $0x30] sm:$0xff]  }
 0x6d6   :  { %v1310_v17 = vadd.f32 %v1309_v43, %v2738_v4  ;;  %v2225_v4 = vld [vmem:[#allocation10 + $0x1c] ss:$12 sps:$4 sm:$0xff]  }
 0x6d7   :  { %v2141_v43 = vld [vmem:[#allocation13 + $0x38] sm:$0xff]  }
 0x6d8   :  { %2198 = vtanh.f32 %v1310_v17 }
 0x6d9   :  { %2200 = vrcp.f32 %v1305_v18 }
 0x6e2   :  { %v2199_v57 = vpop.eup %2198 }
 0x6e3   :  { %v1312_v10 = vsub.f32 %v2928_v8, %v2199_v57  ;;  %v2201_v59 = vpop.eup %2200 }
 0x6e5   :  { %v1313_v3 = vmul.f32 %v2201_v59, %v1312_v10 }
 0x6e7   :  { %v2971_v11 = vadd.f32 %v2199_v57, %v1313_v3  ;;  %v3042_v57 = vld [vmem:[#allocation25_spill] sm:$0xff] }
 0x6e9   :  { %v1321_v19 = vpack.c.bf16 %v2971_v11, %v2971_v11 }
 0x6eb   :  { %1355 = vmatmul.mubr.bf16.vlgmr.msra.gmra.mrb[40].mxu0 %v1321_v19  ;;  %2007 = vmatmul.mubr.bf16.vlgmr.msra.gmra.mrb[32].mxu1 %v1321_v19 }
 0x6ec   :  { %1432 = vmatpush1.bf16.msra.mxu0 %v2223_v21  ;;  %2011 = vmatpush3.bf16.msra.mxu1 %v2224_v56 }
 0x6ed   :  { %1433 = vmatprep.subr.bf16.mxu0 %v2225_v4  ;;  %2012 = vmatprep.subr.bf16.mxu1 %v3038_v6 }
 0x6ee   :  { %1463 = vmatprep.mubr.bf16.mxu0 %v3039_v16  ;;  %2026 = vmatprep.mubr.msk.bf16.mxu1 %vm2439_vm0, %v3038_v6  ;;  %v2232_v16 = vld [vmem:[#allocation10 + $0x48] ss:$12 sps:$4 sm:$0xff]  }
 0x6f0   :  { %1434 = vmatpush1.bf16.msra.mxu0 %v2226_v15  ;;  %2013 = vmatpush3.bf16.msra.mxu1 %v2227_v7 }
 0x6f1   :  { %1435 = vmatprep.subr.bf16.mxu0 %v2228_v53  ;;  %2014 = vmatprep.subr.bf16.mxu1 %v3038_v6 }
 0x6f4   :  { %1436 = vmatpush1.bf16.msra.mxu0 %v2229_v14  ;;  %2015 = vmatpush3.bf16.msra.mxu1 %v2230_v60 }
 0x6f5   :  { %1437 = vmatprep.subr.bf16.mxu0 %v2231_v61  ;;  %2016 = vmatprep.subr.bf16.mxu1 %v3038_v6 }
 0x6f8   :  { %1438 = vmatpush1.bf16.msra.mxu0 %v2232_v16  ;;  %2017 = vmatpush3.bf16.msra.mxu1 %v2626_v46  ;;  %v2238_v46 = vld [vmem:[#allocation10 + $0x90] ss:$12 sps:$4 sm:$0xff]  }
 0x6f9   :  { %1439 = vmatprep.subr.bf16.mxu0 %v2233_v62  ;;  %2018 = vmatprep.subr.bf16.mxu1 %v3038_v6  ;;  %v3043_v62 = vld [vmem:[#allocation23_spill] sm:$0xff] }
 0x6fc   :  { %1440 = vmatpush1.bf16.msra.mxu0 %v2234_v63  ;;  %2019 = vmatpush3.bf16.msra.mxu1 %v2638_v49 }
 0x6fd   :  { %1441 = vmatprep.subr.bf16.mxu0 %v2235_v25  ;;  %2020 = vmatprep.subr.bf16.mxu1 %v3038_v6 }
 0x700   :  { %1442 = vmatpush1.bf16.msra.mxu0 %v2236_v36  ;;  %2021 = vmatpush3.bf16.msra.mxu1 %v2647_v51 }
 0x701   :  { %1443 = vmatprep.subr.bf16.mxu0 %v2237_v0  ;;  %2022 = vmatprep.subr.bf16.mxu1 %v3038_v6 }
 0x704   :  { %1444 = vmatpush1.bf16.msra.mxu0 %v2238_v46  ;;  %2023 = vmatpush3.bf16.msra.mxu1 %v2653_v52 }
 0x705   :  { %1445 = vmatprep.subr.bf16.mxu0 %v2239_v24  ;;  %2024 = vmatprep.subr.bf16.mxu1 %v3038_v6 }
 0x708   :  { %1446 = vmatpush1.bf16.msra.mxu0 %v2642_v50  ;;  %2025 = vmatpush3.bf16.msra.mxu1 %v2660_v54 }
 0x709   :  { %2030 = vmatprep.subr.bf16.mxu0 %v3038_v6 }
 0x7be   :  { %v1356_v49 = vpop.f32.mrb[40].mxu0  ;;  %v1397_v51 = vpop.f32.mrb[32].mxu1 }
 0x7bf   :  { %v1403_v1 = vadd.f32 %v1356_v49, %v2740_v9  ;;  %v1358_v31 = vpop.f32.mrb[41].mxu0  ;;  %v2008_v23 = vpop.f32.mrb[33].mxu1  ;;  %v1417_v26 = vadd.f32 %v2748_v20, %v1397_v51  ;;  %v1744_v51 = vld [vmem:[#allocation15] ss:$0 sm:$0xff] }
 0x7c0   :  { %v1410_v2 = vadd.f32 %v1358_v31, %v3040_v12  ;;  %v1360_v28 = vpop.f32.mrb[42].mxu0  ;;  %v1400_v52 = vpop.f32.mrb[34].mxu1 }
 0x7c1   :  { %v1740_v35 = vmul.f32 -1.442695, %v1403_v1  ;;  %v1361_v55 = vpop.f32.mrb[43].mxu0  ;;  %v2009_v13 = vpop.f32.mrb[35].mxu1 }
 0x7c2   :  { %v1741_v8 = vmul.f32 -1.442695, %v1410_v2 }
 0x7c3   :  { %2202 = vpow2.f32 %v1740_v35 }
 0x7c4   :  { %2204 = vpow2.f32 %v1741_v8 }
 0x7cd   :  { %v2203_v50 = vpop.eup %2202 }
 0x7ce   :  { %v1407_v5 = vadd.f32 1.0, %v2203_v50  ;;  %v2205_v54 = vpop.eup %2204 }
 0x7cf   :  { %v1414_v32 = vadd.f32 1.0, %v2205_v54 }
 0x7d0   :  { %2206 = vrcp.f32 %v1407_v5 }
 0x7da   :  { %v2207_v27 = vpop.eup %2206 }
 0x7db   :  { %v1418_v9 = vmul.f32 %v2207_v27, %v1417_v26 }
 0x7dd   :  { %v1419_v30 = vadd.f32 %v1418_v9, %v3041_v29 }
 0x7df   :  { %2208 = vtanh.f32 %v1419_v30 }
 0x7e0   :  { %2210 = vrcp.f32 %v1414_v32 }
 0x7e9   :  { %v2209_v33 = vpop.eup %2208 }
 0x7ea   :  { %v1421_v34 = vsub.f32 %v2971_v11, %v2209_v33  ;;  %v2211_v37 = vpop.eup %2210 }
 0x7ec   :  { %v1422_v38 = vmul.f32 %v2211_v37, %v1421_v34 }
 0x7ee   :  { %v1423_v39 = vadd.f32 %v2209_v33, %v1422_v38 }
 0x7f0   :  { %v1430_v40 = vpack.c.bf16 %v1423_v39, %v1423_v39 }
 0x7f2   :  { %1464 = vmatmul.mubr.bf16.vlgmr.msra.gmra.mrb[44].mxu0 %v1430_v40  ;;  %2027 = vmatmul.mubr.bf16.vlgmr.msra.gmra.mrb[36].mxu1 %v1430_v40 }
 0x7f3   :  { %2046 = vmatprep.mubr.msk.bf16.mxu0 %vm2439_vm0, %v3038_v6  ;;  %2031 = vmatpush3.bf16.msra.mxu0 %v2134_v41 }
 0x7f4   :  { %2032 = vmatprep.subr.bf16.mxu0 %v3038_v6 }
 0x7f7   :  { %2033 = vmatpush3.bf16.msra.mxu0 %v2135_v42 }
 0x7f8   :  { %2034 = vmatprep.subr.bf16.mxu0 %v3038_v6 }
 0x7fb   :  { %2035 = vmatpush3.bf16.msra.mxu0 %v2136_v44 }
 0x7fc   :  { %2036 = vmatprep.subr.bf16.mxu0 %v3038_v6 }
 0x7ff   :  { %2037 = vmatpush3.bf16.msra.mxu0 %v2137_v45 }
 0x800   :  { %2038 = vmatprep.subr.bf16.mxu0 %v3038_v6 }
 0x803   :  { %2039 = vmatpush3.bf16.msra.mxu0 %v2138_v47 }
 0x804   :  { %2040 = vmatprep.subr.bf16.mxu0 %v3038_v6 }
 0x807   :  { %2041 = vmatpush3.bf16.msra.mxu0 %v2139_v48 }
 0x808   :  { %2042 = vmatprep.subr.bf16.mxu0 %v3038_v6 }
 0x80b   :  { %2043 = vmatpush3.bf16.msra.mxu0 %v2140_v58 }
 0x80c   :  { %2044 = vmatprep.subr.bf16.mxu0 %v3038_v6 }
 0x80f   :  { %2045 = vmatpush3.bf16.msra.mxu0 %v2141_v43 }
 0x8c5   :  { %v1465_v17 = vpop.f32.mrb[44].mxu0  ;;  %v1506_v18 = vpop.f32.mrb[36].mxu1 }
 0x8c6   :  { %v1512_v10 = vadd.f32 %v1465_v17, %v3042_v57  ;;  %v1467_v59 = vpop.f32.mrb[45].mxu0  ;;  %v2028_v3 = vpop.f32.mrb[37].mxu1  ;;  %v1526_v60 = vadd.f32 %v2748_v20, %v1506_v18 }
 0x8c7   :  { %v1519_v11 = vadd.f32 %v1467_v59, %v2746_v22  ;;  %v1469_v19 = vpop.f32.mrb[46].mxu0  ;;  %v1509_v21 = vpop.f32.mrb[38].mxu1 }
 0x8c8   :  { %v1742_v56 = vmul.f32 -1.442695, %v1512_v10  ;;  %v1470_v4 = vpop.f32.mrb[47].mxu0  ;;  %v2029_v15 = vpop.f32.mrb[39].mxu1 }
 0x8c9   :  { %v1743_v7 = vmul.f32 -1.442695, %v1519_v11 }
 0x8ca   :  { %2212 = vpow2.f32 %v1742_v56 }
 0x8cb   :  { %2214 = vpow2.f32 %v1743_v7 }
 0x8d4   :  { %v2213_v53 = vpop.eup %2212 }
 0x8d5   :  { %v1516_v14 = vadd.f32 1.0, %v2213_v53  ;;  %v2215_v6 = vpop.eup %2214 }
 0x8d6   :  { %v1523_v25 = vadd.f32 1.0, %v2215_v6 }
 0x8d7   :  { %2216 = vrcp.f32 %v1516_v14 }
 0x8e1   :  { %v2217_v61 = vpop.eup %2216 }
 0x8e2   :  { %v1527_v16 = vmul.f32 %v2217_v61, %v1526_v60 }
 0x8e4   :  { %v1528_v63 = vadd.f32 %v1527_v16, %v3043_v62 }
 0x8e6   :  { %2218 = vtanh.f32 %v1528_v63 }
 0x8e7   :  { %2220 = vrcp.f32 %v1523_v25 }
 0x8f0   :  { %v2219_v22 = vpop.eup %2218 }
 0x8f1   :  { %v1530_v36 = vsub.f32 %v1423_v39, %v2219_v22  ;;  %v2221_v0 = vpop.eup %2220 }
 0x8f3   :  { %v1531_v46 = vmul.f32 %v2221_v0, %v1530_v36 }
 0x8f5   :  { %v1532_v24 = vadd.f32 %v2219_v22, %v1531_v46 }
 0x8f7   :  { %v1537_v49 = vpack.c.bf16 %v1532_v24, %v1532_v24 }
 0x8f9   :  { %2047 = vmatmul.mubr.bf16.vlgmr.msra.gmra.mrb[48].mxu0 %v1537_v49 }
 0x9cc   :  { %v1643_v1 = vpop.f32.mrb[48].mxu0 }
 0x9cd   :  { %v1644_v31 = vadd.f32 %v1744_v51, %v1643_v1  ;;  %v2048_v20 = vpop.f32.mrb[49].mxu0 }
 0x9ce   :  { %v1646_v23 = vpop.f32.mrb[50].mxu0 }
 0x9cf   :  { %1649 = vst [vmem:[#allocation16] sm:$0xff] %v1644_v31  ;;  %v2049_v12 = vpop.f32.mrb[51].mxu0 }
 0x9d0   :  { %2405 = shalt.err (!%p2402_p4)
}
 0x9d1   :  { %s2406_s12 = scalar_lea.hbm %s3029_s7, 128 }
 0x9d2   :  { %p2407_p5 = scmp.ne.s32.totalorder %s3029_s7, %s2406_s12  ;;  %p2410_p6 = scmp.lt.u32.totalorder %s2406_s12, %s3029_s7 }
 0x9d4   :  { %p2412_p7 = pnand %p2410_p6, %p2407_p5 }
 0x9d6   :  { %2415 = shalt.err (!%p2412_p7)
}
 0x9d7   :  { %1659 = dma.vmem_to_hbm [thread:$0]  %s1657_s3, 128, %s3029_s7, [#allocation6]  }
 0x9d8   :  { %2424 = dma.done.wait [#allocation6], 128  }
 0x9d9   :  { %2425 = vsyncadd [#allocation6], 4294967168 }
 0x9da   :  { %1663 = vsyncpa [#allocation5], 1 }
 0x9db   :  { %1664 = vsyncpa [#allocation8], 1 }
 0x9dc   :  { %1665 = vsyncpa [#allocation11], 1 }
 0x9dd   :  { %1666 = vsyncpa [#allocation14], 1 }
 0x9de   :  { %1667 = vsyncpa [#allocation6], 1 }

// kernel: grunet_forward.2
= control target key start
LH: loop header
LB: loop body
LE: loop exit
PB: predicated region body
PF: predicated region fallthrough
CT: control target
= control target key end

     0   :  { %10 = vsyncpa [#allocation5], 0  ;;  %s2751_s0 = inlined_call_operand.hbm [shape: bf16[8,8,128], index: 0, kind: input, shape index: {}]   ;;  %s2752_s1 = inlined_call_operand.hbm [shape: bf16[128,384], index: 1, kind: input, shape index: {}]   ;;  %s2753_s2 = inlined_call_operand.hbm [shape: f32[1,384], index: 2, kind: input, shape index: {}]   ;;  %s2754_s3 = inlined_call_operand.hbm [shape: bf16[128,384], index: 3, kind: input, shape index: {}]   ;;  %s2755_s4 = inlined_call_operand.hbm [shape: f32[1,128], index: 4, kind: input, shape index: {}]   ;;  %s2756_s5 = inlined_call_operand.hbm [shape: bf16[8,8,128], index: 5, kind: output, shape index: {}]  }
   0x1   :  { %11 = vsyncpa [#allocation8], 0 }
   0x2   :  { %12 = vsyncpa [#allocation11], 0 }
   0x3   :  { %13 = vsyncpa [#allocation6], 0  ;;  %s2204_s18 = smov [#allocation7]   ;;  %s2064_s22 = scalar_lea.hbm %s2752_s1, 3072 }
   0x4   :  { %s31_s19 = sshll.u32 %s2204_s18, 4  ;;  %p2065_p0 = scmp.ne.s32.totalorder %s2752_s1, %s2064_s22  ;;  %s32_s19 = int_to_ptr.vmem [resolvable:$true] %s31_s19 }
   0x5   :  { %p2068_p1 = scmp.lt.u32.totalorder %s2064_s22, %s2752_s1 }
   0x7   :  { %p2070_p2 = pnand %p2068_p1, %p2065_p0 }
   0x9   :  { %2073 = shalt.err (!%p2070_p2)
}
   0xa   :  { %s2074_s27 = scalar_lea.vmem %s32_s19, 3072  ;;  %p2079_p4 = scmp.lt.s32.totalorder %s32_s19, %s32_s19 }
   0xb   :  { %p2075_p3 = scmp.ne.s32.totalorder %s32_s19, %s2074_s27  ;;  %p2080_p5 = scmp.lt.s32.totalorder %s2074_s27, %s2074_s27 }
   0xd   :  { %p2081_p6 = por %p2080_p5, %p2079_p4 }
   0xf   :  { %p2082_p7 = pnand %p2081_p6, %p2075_p3 }
  0x11   :  { %2085 = shalt.err (!%p2082_p7)
}
  0x12   :  { %s2205_s28 = smov 192   ;;  %s2206_s29 = smov 12  }
  0x13   :  { %37 = dma.hbm_to_vmem [thread:$0]  %s2752_s1, 3072, %s32_s19, [#allocation8], %s2205_s28, %s2205_s28, %s2206_s29  }
  0x14   :  { %s2207_s7 = smov [#allocation10]   ;;  %s2208_s9 = smov [#allocation4]  }
  0x15   :  { %s53_s8 = sshll.u32 %s2207_s7, 4  ;;  %s19_s10 = sshll.u32 %s2208_s9, 4  ;;  %s54_s8 = int_to_ptr.vmem [resolvable:$true] %s53_s8  ;;  %s20_s10 = int_to_ptr.vmem [resolvable:$true] %s19_s10 }
  0x16   :  { %s2086_s13 = scalar_lea.hbm %s2754_s3, 3072 }
  0x17   :  { %p2087_p8 = scmp.ne.s32.totalorder %s2754_s3, %s2086_s13  ;;  %p2090_p9 = scmp.lt.u32.totalorder %s2086_s13, %s2754_s3 }
  0x19   :  { %p2092_p10 = pnand %p2090_p9, %p2087_p8 }
  0x1b   :  { %2095 = shalt.err (!%p2092_p10)
}
  0x1c   :  { %s2096_s1 = scalar_lea.vmem %s54_s8, 3072  ;;  %p2101_p12 = scmp.lt.s32.totalorder %s54_s8, %s54_s8 }
  0x1d   :  { %p2097_p11 = scmp.ne.s32.totalorder %s54_s8, %s2096_s1  ;;  %p2102_p13 = scmp.lt.s32.totalorder %s2096_s1, %s2096_s1 }
  0x1f   :  { %p2103_p0 = por %p2102_p13, %p2101_p12 }
  0x21   :  { %p2104_p1 = pnand %p2103_p0, %p2097_p11 }
  0x23   :  { %2107 = shalt.err (!%p2104_p1)
}
  0x24   :  { %59 = dma.hbm_to_vmem [thread:$0]  %s2754_s3, 3072, %s54_s8, [#allocation11], %s2205_s28, %s2205_s28, %s2206_s29  }
  0x25   :  { %s2108_s22 = scalar_lea.hbm %s2751_s0, 512 }
  0x26   :  { %p2109_p2 = scmp.ne.s32.totalorder %s2751_s0, %s2108_s22  ;;  %p2112_p3 = scmp.lt.u32.totalorder %s2108_s22, %s2751_s0 }
  0x28   :  { %p2114_p4 = pnand %p2112_p3, %p2109_p2 }
  0x2a   :  { %2117 = shalt.err (!%p2114_p4)
}
  0x2b   :  { %s2118_s27 = scalar_lea.vmem %s20_s10, 512  ;;  %p2123_p6 = scmp.lt.s32.totalorder %s20_s10, %s20_s10 }
  0x2c   :  { %p2119_p5 = scmp.ne.s32.totalorder %s20_s10, %s2118_s27  ;;  %p2124_p7 = scmp.lt.s32.totalorder %s2118_s27, %s2118_s27 }
  0x2e   :  { %p2125_p8 = por %p2124_p7, %p2123_p6 }
  0x30   :  { %p2126_p9 = pnand %p2125_p8, %p2119_p5 }
  0x32   :  { %2129 = shalt.err (!%p2126_p9)
}
  0x33   :  { %s2209_s3 = smov 64   ;;  %s2210_s28 = smov 4  }
  0x34   :  { %25 = dma.hbm_to_vmem [thread:$0]  %s2751_s0, 512, %s20_s10, [#allocation5], %s2209_s3, %s2209_s3, %s2210_s28  }
  0x35   :  { %s2211_s6 = smov [#allocation9]   ;;  %s2212_s8 = smov [#allocation12]  }
  0x36   :  { %s44_s7 = sshll.u32 %s2211_s6, 4  ;;  %s66_s9 = sshll.u32 %s2212_s8, 4  ;;  %s45_s7 = int_to_ptr.vmem [resolvable:$true] %s44_s7  ;;  %s67_s9 = int_to_ptr.vmem [resolvable:$true] %s66_s9 }
  0x37   :  { %s2130_s13 = scalar_lea.hbm %s2753_s2, 48 }
  0x38   :  { %p2131_p10 = scmp.ne.s32.totalorder %s2753_s2, %s2130_s13  ;;  %p2134_p11 = scmp.lt.u32.totalorder %s2130_s13, %s2753_s2 }
  0x3a   :  { %p2136_p12 = pnand %p2134_p11, %p2131_p10 }
  0x3c   :  { %2139 = shalt.err (!%p2136_p12)
}
  0x3d   :  { %s2140_s0 = scalar_lea.vmem %s45_s7, 48  ;;  %s2144_s10 = scalar_lea.vmem %s45_s7, 64 }
  0x3e   :  { %p2141_p13 = scmp.ne.s32.totalorder %s45_s7, %s2140_s0  ;;  %p2145_p0 = scmp.lt.s32.totalorder %s45_s7, %s45_s7 }
  0x3f   :  { %p2146_p1 = scmp.lt.s32.totalorder %s2144_s10, %s2140_s0 }
  0x41   :  { %p2147_p2 = por %p2146_p1, %p2145_p0 }
  0x43   :  { %p2148_p3 = pnand %p2147_p2, %p2141_p13 }
  0x45   :  { %2151 = shalt.err (!%p2148_p3)
}
  0x46   :  { %47 = dma.hbm_to_vmem [thread:$0]  %s2753_s2, 48, %s45_s7, [#allocation8]  }
  0x47   :  { %s2152_s21 = scalar_lea.hbm %s2755_s4, 16 }
  0x48   :  { %p2153_p4 = scmp.ne.s32.totalorder %s2755_s4, %s2152_s21  ;;  %p2156_p5 = scmp.lt.u32.totalorder %s2152_s21, %s2755_s4 }
  0x4a   :  { %p2158_p6 = pnand %p2156_p5, %p2153_p4 }
  0x4c   :  { %2161 = shalt.err (!%p2158_p6)
}
  0x4d   :  { %s2162_s26 = scalar_lea.vmem %s67_s9, 16  ;;  %s2166_s27 = scalar_lea.vmem %s67_s9, 32 }
  0x4e   :  { %p2163_p7 = scmp.ne.s32.totalorder %s67_s9, %s2162_s26  ;;  %p2167_p8 = scmp.lt.s32.totalorder %s67_s9, %s67_s9 }
  0x4f   :  { %p2168_p9 = scmp.lt.s32.totalorder %s2166_s27, %s2162_s26 }
  0x51   :  { %p2169_p10 = por %p2168_p9, %p2167_p8 }
  0x53   :  { %p2170_p11 = pnand %p2169_p10, %p2163_p7 }
  0x55   :  { %2173 = shalt.err (!%p2170_p11)
}
  0x56   :  { %69 = dma.hbm_to_vmem [thread:$0]  %s2755_s4, 16, %s67_s9, [#allocation11]  }
  0x57   :  { %2196 = dma.done.wait [#allocation5], 512  }
  0x58   :  { %2197 = vsyncadd [#allocation5], 4294966784 }
  0x59   :  { %2198 = dma.done.wait [#allocation8], 3120  }
  0x5a   :  { %2199 = vsyncadd [#allocation8], 4294964176 }
  0x5b   :  { %2200 = dma.done.wait [#allocation11], 3088  }
  0x5c   :  { %2201 = vsyncadd [#allocation11], 4294964208  ;;  %v2757_v0 = vmov 0   ;;  %v1896_v1 = vld [vmem:[#allocation7 + $0x4] ss:$12 sps:$4 sm:$0xff]   ;;  %v1931_v31 = vld [vmem:[#allocation4 + $0x8] sm:$0xff]   ;;  %v133_v55 = vlaneseq }
  0x5d   :  { %332 = vmatprep.mubr.bf16.mxu0 %v2757_v0  ;;  %v1898_v2 = vld [vmem:[#allocation7] ss:$12 sps:$4 sm:$0xff]   ;;  %300 = vmatprep.subr.bf16.mxu0 %v1896_v1  ;;  %v1899_v3 = vld [vmem:[#allocation7 + $0x1c] ss:$12 sps:$4 sm:$0xff]   ;;  %v1901_v4 = vld [vmem:[#allocation7 + $0x18] ss:$12 sps:$4 sm:$0xff]  }
  0x5e   :  { %301 = vmatpush1.bf16.msra.mxu0 %v1898_v2  ;;  %v1902_v5 = vld [vmem:[#allocation7 + $0x34] ss:$12 sps:$4 sm:$0xff]   ;;  %v1904_v6 = vld [vmem:[#allocation7 + $0x30] ss:$12 sps:$4 sm:$0xff]   ;;  %v1905_v7 = vld [vmem:[#allocation7 + $0x4c] ss:$12 sps:$4 sm:$0xff]  }
  0x5f   :  { %302 = vmatprep.subr.bf16.mxu0 %v1899_v3  ;;  %v1916_v8 = vld [vmem:[#allocation7 + $0x8] ss:$12 sps:$4 sm:$0xff]   ;;  %v1908_v10 = vld [vmem:[#allocation7 + $0x64] ss:$12 sps:$4 sm:$0xff]   ;;  %v1920_v11 = vld [vmem:[#allocation7 + $0x20] ss:$12 sps:$4 sm:$0xff]  }
  0x60   :  { %v1907_v9 = vld [vmem:[#allocation7 + $0x48] ss:$12 sps:$4 sm:$0xff]   ;;  %1698 = vmatprep.subr.bf16.mxu1 %v1916_v8  ;;  %v1922_v12 = vld [vmem:[#allocation4] sm:$0xff]   ;;  %v1927_v16 = vld [vmem:[#allocation7 + $0x50] ss:$12 sps:$4 sm:$0xff]   ;;  %v2759_v34 = vmov 0.0  }
  0x61   :  { %1699 = vmatpush3.bf16.msra.mxu1 %v1916_v8  ;;  %v1923_v13 = vld [vmem:[#allocation7 + $0x38] ss:$12 sps:$4 sm:$0xff]   ;;  %v1910_v14 = vld [vmem:[#allocation7 + $0x60] ss:$12 sps:$4 sm:$0xff]   ;;  %1714 = vmatprep.mubr.bf16.mxu1 %v1922_v12  ;;  %v1911_v15 = vld [vmem:[#allocation7 + $0x7c] ss:$12 sps:$4 sm:$0xff]  }
  0x62   :  { %303 = vmatpush1.bf16.msra.mxu0 %v1901_v4  ;;  %1700 = vmatprep.subr.bf16.mxu1 %v1920_v11  ;;  %v1913_v17 = vld [vmem:[#allocation7 + $0x78] ss:$12 sps:$4 sm:$0xff]   ;;  %v1914_v18 = vld [vmem:[#allocation7 + $0x94] ss:$12 sps:$4 sm:$0xff]   ;;  %v1917_v20 = vld [vmem:[#allocation7 + $0x90] ss:$12 sps:$4 sm:$0xff]  }
  0x63   :  { %304 = vmatprep.subr.bf16.mxu0 %v1902_v5  ;;  %v1932_v19 = vld [vmem:[#allocation7 + $0x68] ss:$12 sps:$4 sm:$0xff]   ;;  %v1918_v21 = vld [vmem:[#allocation7 + $0xac] ss:$12 sps:$4 sm:$0xff]   ;;  %v2314_v26 = vld [vmem:[#allocation10] ss:$12 sps:$4 sm:$0xff]  }
  0x64   :  { %v1936_v22 = vld [vmem:[#allocation7 + $0x80] ss:$12 sps:$4 sm:$0xff]   ;;  %v1921_v23 = vld [vmem:[#allocation7 + $0xa8] ss:$12 sps:$4 sm:$0xff]   ;;  %v1941_v25 = vld [vmem:[#allocation7 + $0x98] ss:$12 sps:$4 sm:$0xff]  }
  0x65   :  { %1701 = vmatpush3.bf16.msra.mxu1 %v1920_v11  ;;  %v2312_v24 = vld [vmem:[#allocation10 + $0x4] ss:$12 sps:$4 sm:$0xff]   ;;  %v2317_v27 = vld [vmem:[#allocation10 + $0x1c] ss:$12 sps:$4 sm:$0xff]   ;;  %v1945_v28 = vld [vmem:[#allocation7 + $0xb0] ss:$12 sps:$4 sm:$0xff]  }
  0x66   :  { %305 = vmatpush1.bf16.msra.mxu0 %v1904_v6  ;;  %1702 = vmatprep.subr.bf16.mxu1 %v1923_v13  ;;  %v2320_v29 = vld [vmem:[#allocation10 + $0x18] ss:$12 sps:$4 sm:$0xff]   ;;  %v2324_v30 = vld [vmem:[#allocation10 + $0x34] ss:$12 sps:$4 sm:$0xff]   ;;  %v2327_v32 = vld [vmem:[#allocation10 + $0x30] ss:$12 sps:$4 sm:$0xff]  }
  0x67   :  { %306 = vmatprep.subr.bf16.mxu0 %v1905_v7  ;;  %v2330_v33 = vld [vmem:[#allocation10 + $0x4c] ss:$12 sps:$4 sm:$0xff]   ;;  %v2333_v35 = vld [vmem:[#allocation10 + $0x8] ss:$12 sps:$4 sm:$0xff]   ;;  %v2340_v38 = vld [vmem:[#allocation10 + $0x64] ss:$12 sps:$4 sm:$0xff]  }
  0x68   :  { %v2336_v36 = vld [vmem:[#allocation10 + $0x48] ss:$12 sps:$4 sm:$0xff]   ;;  %v1940_v37 = vld [vmem:[#allocation4 + $0x10] sm:$0xff]   ;;  %v2353_v42 = vld [vmem:[#allocation10 + $0x38] ss:$12 sps:$4 sm:$0xff]   ;;  %vm2215_vm0 = vmmov 0  }
  0x69   :  { %1703 = vmatpush3.bf16.msra.mxu1 %v1923_v13  ;;  %v2343_v39 = vld [vmem:[#allocation10 + $0x20] ss:$12 sps:$4 sm:$0xff]   ;;  %v2350_v41 = vld [vmem:[#allocation10 + $0x7c] ss:$12 sps:$4 sm:$0xff]   ;;  %v1949_v43 = vld [vmem:[#allocation4 + $0x18] sm:$0xff]   ;;  %v2216_v53 = vmov 0.0|0.0  }
  0x6a   :  { %307 = vmatpush1.bf16.msra.mxu0 %v1907_v9  ;;  %1704 = vmatprep.subr.bf16.mxu1 %v1927_v16  ;;  %v2347_v40 = vld [vmem:[#allocation10 + $0x60] ss:$12 sps:$4 sm:$0xff]   ;;  %v2357_v44 = vld [vmem:[#allocation10 + $0x78] ss:$12 sps:$4 sm:$0xff]   ;;  %v2364_v46 = vld [vmem:[#allocation10 + $0x50] ss:$12 sps:$4 sm:$0xff]  }
  0x6b   :  { %308 = vmatprep.subr.bf16.mxu0 %v1908_v10  ;;  %v2361_v45 = vld [vmem:[#allocation10 + $0x94] ss:$12 sps:$4 sm:$0xff]   ;;  %v2370_v47 = vld [vmem:[#allocation10 + $0x90] ss:$12 sps:$4 sm:$0xff]   ;;  %v2373_v48 = vld [vmem:[#allocation10 + $0xac] ss:$12 sps:$4 sm:$0xff]  }
  0x6c   :  { %v2376_v49 = vld [vmem:[#allocation10 + $0x68] ss:$12 sps:$4 sm:$0xff]   ;;  %v2385_v51 = vld [vmem:[#allocation10 + $0x80] ss:$12 sps:$4 sm:$0xff]   ;;  %v2391_v52 = vld [vmem:[#allocation10 + $0x98] ss:$12 sps:$4 sm:$0xff]  }
  0x6d   :  { %1705 = vmatpush3.bf16.msra.mxu1 %v1927_v16  ;;  %v2380_v50 = vld [vmem:[#allocation10 + $0xa8] ss:$12 sps:$4 sm:$0xff]   ;;  %v2398_v54 = vld [vmem:[#allocation10 + $0xb0] ss:$12 sps:$4 sm:$0xff]   ;;  %v134_v56 = vshrl.u32 %v133_v55, 7  ;;  %s2217_s4 = smov [#allocation13]  }
  0x6e   :  { %309 = vmatpush1.bf16.msra.mxu0 %v1910_v14  ;;  %1706 = vmatprep.subr.bf16.mxu1 %v1932_v19  ;;  %v131_v58 = vld [vmem:[#allocation9] sm:$0x7]  ;;  %s1524_s30 = sshll.u32 %s2217_s4, 4  ;;  %s1525_s30 = int_to_ptr.vmem [resolvable:$true] %s1524_s30 }
  0x6f   :  { %310 = vmatprep.subr.bf16.mxu0 %v1911_v15  ;;  %v135_v57 = vsub.s32 0, %v134_v56  ;;  %v139_v59 = vsub.s32 1, %v134_v56  ;;  %v143_v4 = vsub.s32 2, %v134_v56  ;;  %s2174_s6 = scalar_lea.vmem %s1525_s30, 512  ;;  %p2179_p13 = scmp.lt.s32.totalorder %s1525_s30, %s1525_s30 }
  0x70   :  { %p2175_p12 = scmp.ne.s32.totalorder %s1525_s30, %s2174_s6  ;;  %p2180_p0 = scmp.lt.s32.totalorder %s2174_s6, %s2174_s6 }
  0x71   :  { %1707 = vmatpush3.bf16.msra.mxu1 %v1932_v19  ;;  %v136_v61 = vrot.slane %v131_v58, %v135_v57  ;;  %v140_v63 = vrot.slane %v131_v58, %v139_v59  ;;  %v2439_v6 = vrot.slane %v131_v58, %v143_v4 }
  0x72   :  { %311 = vmatpush1.bf16.msra.mxu0 %v1913_v17  ;;  %1708 = vmatprep.subr.bf16.mxu1 %v1936_v22  ;;  %p2181_p1 = por %p2180_p0, %p2179_p13 }
  0x73   :  { %312 = vmatprep.subr.bf16.mxu0 %v1914_v18 }
  0x74   :  { %p2182_p2 = pnand %p2181_p1, %p2175_p12 }
  0x75   :  { %1709 = vmatpush3.bf16.msra.mxu1 %v1936_v22 }
  0x76   :  { %313 = vmatpush1.bf16.msra.mxu0 %v1917_v20  ;;  %1710 = vmatprep.subr.bf16.mxu1 %v1941_v25 }
  0x77   :  { %314 = vmatprep.subr.bf16.mxu0 %v1918_v21 }
  0x79   :  { %1711 = vmatpush3.bf16.msra.mxu1 %v1941_v25 }
  0x7a   :  { %315 = vmatpush1.bf16.msra.mxu0 %v1921_v23  ;;  %1712 = vmatprep.subr.bf16.mxu1 %v1945_v28 }
  0x7b   :  { %637 = vmatprep.subr.bf16.mxu0 %v2312_v24 }
  0x7d   :  { %333 = vmatmul.mubr.bf16.vlgmr.msra.gmra.mrb[0].mxu0 %v1922_v12  ;;  %1713 = vmatpush3.bf16.msra.mxu1 %v1945_v28 }
  0x7e   :  { %638 = vmatpush1.bf16.msra.mxu0 %v2314_v26  ;;  %342 = vmatprep.mubr.bf16.mxu0 %v2757_v0 }
  0x7f   :  { %639 = vmatprep.subr.bf16.mxu0 %v2317_v27  ;;  %1722 = vmatprep.subr.bf16.mxu1 %v2759_v34 }
  0x80   :  { %1715 = vmatmul.mubr.bf16.vlgmr.msra.gmra.mrb[0].mxu1 %v1931_v31 }
  0x81   :  { %1723 = vmatpush3.bf16.msra.mxu1 %v2333_v35  ;;  %1718 = vmatprep.mubr.bf16.mxu1 %v1940_v37 }
  0x82   :  { %640 = vmatpush1.bf16.msra.mxu0 %v2320_v29  ;;  %1724 = vmatprep.subr.bf16.mxu1 %v2759_v34 }
  0x83   :  { %641 = vmatprep.subr.bf16.mxu0 %v2324_v30 }
  0x85   :  { %343 = vmatmul.mubr.bf16.gmra.mrb[4].mxu0 %v1931_v31  ;;  %1725 = vmatpush3.bf16.msra.mxu1 %v2343_v39 }
  0x86   :  { %642 = vmatpush1.bf16.msra.mxu0 %v2327_v32  ;;  %352 = vmatprep.mubr.bf16.mxu0 %v2757_v0 }
  0x87   :  { %643 = vmatprep.subr.bf16.mxu0 %v2330_v33  ;;  %1726 = vmatprep.subr.bf16.mxu1 %v2759_v34 }
  0x88   :  { %1719 = vmatmul.mubr.bf16.gmra.mrb[4].mxu1 %v1949_v43 }
  0x89   :  { %1727 = vmatpush3.bf16.msra.mxu1 %v2353_v42  ;;  %1738 = vmatprep.mubr.msk.bf16.mxu1 %vm2215_vm0, %v2759_v34 }
  0x8a   :  { %644 = vmatpush1.bf16.msra.mxu0 %v2336_v36  ;;  %1728 = vmatprep.subr.bf16.mxu1 %v2759_v34 }
  0x8b   :  { %645 = vmatprep.subr.bf16.mxu0 %v2340_v38 }
  0x8d   :  { %353 = vmatmul.mubr.bf16.gmra.mrb[8].mxu0 %v1940_v37  ;;  %1729 = vmatpush3.bf16.msra.mxu1 %v2364_v46 }
  0x8e   :  { %646 = vmatpush1.bf16.msra.mxu0 %v2347_v40  ;;  %362 = vmatprep.mubr.bf16.mxu0 %v2757_v0 }
  0x8f   :  { %647 = vmatprep.subr.bf16.mxu0 %v2350_v41  ;;  %1730 = vmatprep.subr.bf16.mxu1 %v2759_v34 }
  0x91   :  { %1731 = vmatpush3.bf16.msra.mxu1 %v2376_v49 }
  0x92   :  { %648 = vmatpush1.bf16.msra.mxu0 %v2357_v44  ;;  %1732 = vmatprep.subr.bf16.mxu1 %v2759_v34 }
  0x93   :  { %649 = vmatprep.subr.bf16.mxu0 %v2361_v45 }
  0x95   :  { %363 = vmatmul.mubr.bf16.gmra.mrb[12].mxu0 %v1949_v43  ;;  %1733 = vmatpush3.bf16.msra.mxu1 %v2385_v51 }
  0x96   :  { %650 = vmatpush1.bf16.msra.mxu0 %v2370_v47  ;;  %669 = vmatprep.mubr.bf16.mxu0 %v2757_v0 }
  0x97   :  { %651 = vmatprep.subr.bf16.mxu0 %v2373_v48  ;;  %1734 = vmatprep.subr.bf16.mxu1 %v2759_v34 }
  0x99   :  { %1735 = vmatpush3.bf16.msra.mxu1 %v2391_v52 }
  0x9a   :  { %652 = vmatpush1.bf16.msra.mxu0 %v2380_v50  ;;  %1736 = vmatprep.subr.bf16.mxu1 %v2759_v34 }
  0x9b   :  { %747 = vmatprep.subr.bf16.mxu0 %v2312_v24 }
  0x9d   :  { %670 = vmatmul.mubr.bf16.vlgmr.msra.gmra.mrb[16].mxu0 %v2216_v53  ;;  %1737 = vmatpush3.bf16.msra.mxu1 %v2398_v54 }
  0x9e   :  { %748 = vmatpush1.bf16.msra.mxu0 %v2314_v26  ;;  %779 = vmatprep.mubr.bf16.mxu0 %v2757_v0 }
  0x9f   :  { %749 = vmatprep.subr.bf16.mxu0 %v2317_v27  ;;  %1742 = vmatprep.subr.bf16.mxu1 %v2759_v34 }
  0xa0   :  { %1739 = vmatmul.mubr.bf16.vlgmr.msra.gmra.mrb[8].mxu1 %v2216_v53 }
  0xa1   :  { %1743 = vmatpush3.bf16.msra.mxu1 %v2333_v35  ;;  %1758 = vmatprep.mubr.msk.bf16.mxu1 %vm2215_vm0, %v2759_v34 }
  0xa2   :  { %750 = vmatpush1.bf16.msra.mxu0 %v2320_v29  ;;  %1744 = vmatprep.subr.bf16.mxu1 %v2759_v34 }
  0xa3   :  { %751 = vmatprep.subr.bf16.mxu0 %v2324_v30 }
  0xa5   :  { %1745 = vmatpush3.bf16.msra.mxu1 %v2343_v39 }
  0xa6   :  { %752 = vmatpush1.bf16.msra.mxu0 %v2327_v32  ;;  %1746 = vmatprep.subr.bf16.mxu1 %v2759_v34 }
  0xa7   :  { %753 = vmatprep.subr.bf16.mxu0 %v2330_v33 }
  0xa9   :  { %1747 = vmatpush3.bf16.msra.mxu1 %v2353_v42 }
  0xaa   :  { %754 = vmatpush1.bf16.msra.mxu0 %v2336_v36  ;;  %1748 = vmatprep.subr.bf16.mxu1 %v2759_v34 }
  0xab   :  { %755 = vmatprep.subr.bf16.mxu0 %v2340_v38 }
  0xad   :  { %1749 = vmatpush3.bf16.msra.mxu1 %v2364_v46 }
  0xae   :  { %756 = vmatpush1.bf16.msra.mxu0 %v2347_v40  ;;  %1750 = vmatprep.subr.bf16.mxu1 %v2759_v34 }
  0xaf   :  { %757 = vmatprep.subr.bf16.mxu0 %v2350_v41 }
  0xb1   :  { %1751 = vmatpush3.bf16.msra.mxu1 %v2376_v49 }
  0xb2   :  { %758 = vmatpush1.bf16.msra.mxu0 %v2357_v44  ;;  %1752 = vmatprep.subr.bf16.mxu1 %v2759_v34 }
  0xb3   :  { %759 = vmatprep.subr.bf16.mxu0 %v2361_v45 }
  0xb5   :  { %1753 = vmatpush3.bf16.msra.mxu1 %v2385_v51 }
  0xb6   :  { %760 = vmatpush1.bf16.msra.mxu0 %v2370_v47  ;;  %1754 = vmatprep.subr.bf16.mxu1 %v2759_v34 }
  0xb7   :  { %761 = vmatprep.subr.bf16.mxu0 %v2373_v48 }
  0xb9   :  { %1755 = vmatpush3.bf16.msra.mxu1 %v2391_v52 }
  0xba   :  { %762 = vmatpush1.bf16.msra.mxu0 %v2380_v50  ;;  %1756 = vmatprep.subr.bf16.mxu1 %v2759_v34 }
  0xbb   :  { %858 = vmatprep.subr.bf16.mxu0 %v2312_v24 }
  0xbd   :  { %1757 = vmatpush3.bf16.msra.mxu1 %v2398_v54 }
  0xbe   :  { %1762 = vmatprep.subr.bf16.mxu1 %v2759_v34 }
 0x150   :  { %v334_v60 = vpop.f32.mrb[0].mxu0 }
 0x151   :  { %v336_v62 = vpop.f32.mrb[1].mxu0 }
 0x152   :  { %v338_v1 = vpop.f32.mrb[2].mxu0 }
 0x153   :  { %v2435_v2 = vadd.f32 %v338_v1, %v136_v61  ;;  %v340_v3 = vpop.f32.mrb[3].mxu0  ;;  %v1716_v12 = vpop.f32.mrb[0].mxu1 }
 0x154   :  { %v2437_v5 = vadd.f32 %v340_v3, %v140_v63  ;;  %v2448_v15 = vadd.f32 %v1716_v12, %v2439_v6  ;;  %v407_v16 = vpop.f32.mrb[1].mxu1 }
 0x155   :  { %v1717_v18 = vpop.f32.mrb[2].mxu1 }
 0x156   :  { %v2453_v19 = vadd.f32 %v1717_v18, %v2439_v6  ;;  %v410_v20 = vpop.f32.mrb[3].mxu1 }
 0x157   :  { %v2456_v21 = vadd.f32 %v410_v20, %v2439_v6 }
 0x158   :  { %v344_v7 = vpop.f32.mrb[4].mxu0 }
 0x159   :  { %v2441_v8 = vadd.f32 %v344_v7, %v136_v61  ;;  %v346_v9 = vpop.f32.mrb[5].mxu0 }
 0x15a   :  { %v2443_v10 = vadd.f32 %v346_v9, %v140_v63  ;;  %v348_v11 = vpop.f32.mrb[6].mxu0 }
 0x15b   :  { %v2445_v13 = vadd.f32 %v348_v11, %v136_v61  ;;  %v350_v14 = vpop.f32.mrb[7].mxu0  ;;  %v1720_v37 = vpop.f32.mrb[4].mxu1 }
 0x15c   :  { %v2450_v17 = vadd.f32 %v350_v14, %v140_v63  ;;  %v2465_v55 = vadd.f32 %v1720_v37, %v2439_v6  ;;  %v423_v56 = vpop.f32.mrb[5].mxu1 }
 0x15d   :  { %v2470_v58 = vadd.f32 %v423_v56, %v2439_v6  ;;  %v1721_v59 = vpop.f32.mrb[6].mxu1 }
 0x15e   :  { %2761 = vst [vmem:[#allocation18_spill] sm:$0xff] %v2465_v55  ;;  %v2473_v1 = vadd.f32 %v1721_v59, %v2439_v6  ;;  %v426_v3 = vpop.f32.mrb[7].mxu1 }
 0x15f   :  { %v2476_v4 = vadd.f32 %v426_v3, %v2439_v6 }
 0x160   :  { %v354_v22 = vpop.f32.mrb[8].mxu0  ;;  %2762 = vst [vmem:[#allocation19_spill] sm:$0xff] %v2473_v1 }
 0x161   :  { %v2458_v23 = vadd.f32 %v354_v22, %v136_v61  ;;  %v356_v25 = vpop.f32.mrb[9].mxu0 }
 0x162   :  { %v2460_v28 = vadd.f32 %v356_v25, %v140_v63  ;;  %v358_v31 = vpop.f32.mrb[10].mxu0  ;;  %v335_v25 = vadd.f32 %v334_v60, %v136_v61 }
 0x163   :  { %v2462_v43 = vadd.f32 %v358_v31, %v136_v61  ;;  %v360_v53 = vpop.f32.mrb[11].mxu0  ;;  %v337_v31 = vadd.f32 %v336_v62, %v140_v63 }
 0x164   :  { %v2467_v57 = vadd.f32 %v360_v53, %v140_v63 }
 0x168   :  { %v364_v7 = vpop.f32.mrb[12].mxu0 }
 0x169   :  { %v2478_v9 = vadd.f32 %v364_v7, %v136_v61  ;;  %v366_v11 = vpop.f32.mrb[13].mxu0 }
 0x16a   :  { %v2480_v12 = vadd.f32 %v366_v11, %v140_v63  ;;  %v368_v14 = vpop.f32.mrb[14].mxu0 }
 0x16b   :  { %v2482_v18 = vadd.f32 %v368_v14, %v136_v61  ;;  %v370_v20 = vpop.f32.mrb[15].mxu0 }
 0x16c   :  { %2763 = vst [vmem:[#allocation20_spill] sm:$0xff] %v2480_v12  ;;  %v2484_v22 = vadd.f32 %v370_v20, %v140_v63  ;;  %v2486_v20 = vld [vmem:[#allocation12] ss:$0 sm:$0xff]  ;;  %v408_v63 = vadd.f32 %v407_v16, %v2439_v6  ;;  %v2765_v6 = vmov 0.0   ;;  %v2766_v16 = vmov 0  }
 0x16d   :  { %2764 = vst [vmem:[#allocation21_spill] sm:$0xff] %v2482_v18 }
 0x170   :  { %v671_v37 = vpop.f32.mrb[16].mxu0 }
 0x171   :  { %v718_v53 = vadd.f32 %v671_v37, %v335_v25  ;;  %v673_v56 = vpop.f32.mrb[17].mxu0 }
 0x172   :  { %v725_v59 = vadd.f32 %v673_v56, %v337_v31  ;;  %v675_v3 = vpop.f32.mrb[18].mxu0 }
 0x173   :  { %v1598_v0 = vmul.f32 -1.442695, %v718_v53  ;;  %v676_v34 = vpop.f32.mrb[19].mxu0  ;;  %v712_v7 = vpop.f32.mrb[8].mxu1 }
 0x174   :  { %v1740_v1 = vpop.f32.mrb[9].mxu1  ;;  %v1599_v55 = vmul.f32 -1.442695, %v725_v59  ;;  %v732_v60 = vadd.f32 %v2486_v20, %v712_v7 }
 0x175   :  { %1964 = vpow2.f32 %v1598_v0  ;;  %v715_v11 = vpop.f32.mrb[10].mxu1 }
 0x176   :  { %v1741_v12 = vpop.f32.mrb[11].mxu1  ;;  %1966 = vpow2.f32 %v1599_v55 }
 0x17f   :  { %v1965_v14 = vpop.eup %1964 }
 0x180   :  { %v722_v18 = vadd.f32 1.0, %v1965_v14  ;;  %v1967_v61 = vpop.eup %1966 }
 0x181   :  { %v729_v34 = vadd.f32 1.0, %v1967_v61 }
 0x182   :  { %1968 = vrcp.f32 %v722_v18 }
 0x18c   :  { %v1969_v62 = vpop.eup %1968 }
 0x18d   :  { %v733_v25 = vmul.f32 %v1969_v62, %v732_v60 }
 0x18f   :  { %v734_v0 = vadd.f32 %v733_v25, %v408_v63 }
 0x191   :  { %1970 = vtanh.f32 %v734_v0 }
 0x192   :  { %1972 = vrcp.f32 %v729_v34 }
 0x19b   :  { %v1971_v1 = vpop.eup %1970 }
 0x19c   :  { %v736_v31 = vsub.f32 0.0, %v1971_v1  ;;  %v1973_v12 = vpop.eup %1972 }
 0x19e   :  { %v737_v37 = vmul.f32 %v1973_v12, %v736_v31 }
 0x1a0   :  { %v2490_v53 = vadd.f32 %v1971_v1, %v737_v37 }
 0x1a2   :  { %v739_v55 = vpack.c.bf16 %v2490_v53, %v2490_v53 }
 0x1a4   :  { %740 = vst [vmem:[#allocation13] sm:$0xf] %v739_v55  ;;  %780 = vmatmul.mubr.bf16.vlgmr.msra.gmra.mrb[20].mxu0 %v739_v55  ;;  %1759 = vmatmul.mubr.bf16.vlgmr.msra.gmra.mrb[12].mxu1 %v739_v55 }
 0x1a5   :  { %859 = vmatpush1.bf16.msra.mxu0 %v2314_v26  ;;  %1763 = vmatpush3.bf16.msra.mxu1 %v2333_v35 }
 0x1a6   :  { %860 = vmatprep.subr.bf16.mxu0 %v2317_v27  ;;  %1764 = vmatprep.subr.bf16.mxu1 %v2765_v6 }
 0x1a7   :  { %890 = vmatprep.mubr.bf16.mxu0 %v2766_v16  ;;  %1778 = vmatprep.mubr.msk.bf16.mxu1 %vm2215_vm0, %v2765_v6 }
 0x1a9   :  { %861 = vmatpush1.bf16.msra.mxu0 %v2320_v29  ;;  %1765 = vmatpush3.bf16.msra.mxu1 %v2343_v39 }
 0x1aa   :  { %862 = vmatprep.subr.bf16.mxu0 %v2324_v30  ;;  %1766 = vmatprep.subr.bf16.mxu1 %v2765_v6 }
 0x1ad   :  { %863 = vmatpush1.bf16.msra.mxu0 %v2327_v32  ;;  %1767 = vmatpush3.bf16.msra.mxu1 %v2353_v42 }
 0x1ae   :  { %864 = vmatprep.subr.bf16.mxu0 %v2330_v33  ;;  %1768 = vmatprep.subr.bf16.mxu1 %v2765_v6 }
 0x1b1   :  { %865 = vmatpush1.bf16.msra.mxu0 %v2336_v36  ;;  %1769 = vmatpush3.bf16.msra.mxu1 %v2364_v46 }
 0x1b2   :  { %866 = vmatprep.subr.bf16.mxu0 %v2340_v38  ;;  %1770 = vmatprep.subr.bf16.mxu1 %v2765_v6 }
 0x1b5   :  { %867 = vmatpush1.bf16.msra.mxu0 %v2347_v40  ;;  %1771 = vmatpush3.bf16.msra.mxu1 %v2376_v49 }
 0x1b6   :  { %868 = vmatprep.subr.bf16.mxu0 %v2350_v41  ;;  %1772 = vmatprep.subr.bf16.mxu1 %v2765_v6 }
 0x1b9   :  { %869 = vmatpush1.bf16.msra.mxu0 %v2357_v44  ;;  %1773 = vmatpush3.bf16.msra.mxu1 %v2385_v51 }
 0x1ba   :  { %870 = vmatprep.subr.bf16.mxu0 %v2361_v45  ;;  %1774 = vmatprep.subr.bf16.mxu1 %v2765_v6 }
 0x1bd   :  { %871 = vmatpush1.bf16.msra.mxu0 %v2370_v47  ;;  %1775 = vmatpush3.bf16.msra.mxu1 %v2391_v52 }
 0x1be   :  { %872 = vmatprep.subr.bf16.mxu0 %v2373_v48  ;;  %1776 = vmatprep.subr.bf16.mxu1 %v2765_v6 }
 0x1c1   :  { %873 = vmatpush1.bf16.msra.mxu0 %v2380_v50  ;;  %1777 = vmatpush3.bf16.msra.mxu1 %v2398_v54 }
 0x1c2   :  { %969 = vmatprep.subr.bf16.mxu0 %v2312_v24  ;;  %1782 = vmatprep.subr.bf16.mxu1 %v2765_v6 }
 0x277   :  { %v781_v18 = vpop.f32.mrb[20].mxu0  ;;  %v822_v56 = vpop.f32.mrb[12].mxu1 }
 0x278   :  { %v828_v59 = vadd.f32 %v781_v18, %v2435_v2  ;;  %v783_v3 = vpop.f32.mrb[21].mxu0  ;;  %v1760_v7 = vpop.f32.mrb[13].mxu1  ;;  %v842_v31 = vadd.f32 %v2486_v20, %v822_v56 }
 0x279   :  { %v835_v11 = vadd.f32 %v783_v3, %v2437_v5  ;;  %v785_v14 = vpop.f32.mrb[22].mxu0  ;;  %v825_v60 = vpop.f32.mrb[14].mxu1 }
 0x27a   :  { %v1600_v61 = vmul.f32 -1.442695, %v828_v59  ;;  %v786_v62 = vpop.f32.mrb[23].mxu0  ;;  %v1761_v63 = vpop.f32.mrb[15].mxu1 }
 0x27b   :  { %v1601_v25 = vmul.f32 -1.442695, %v835_v11 }
 0x27c   :  { %1974 = vpow2.f32 %v1600_v61 }
 0x27d   :  { %1976 = vpow2.f32 %v1601_v25 }
 0x286   :  { %v1975_v34 = vpop.eup %1974 }
 0x287   :  { %v832_v0 = vadd.f32 1.0, %v1975_v34  ;;  %v1977_v1 = vpop.eup %1976 }
 0x288   :  { %v839_v55 = vadd.f32 1.0, %v1977_v1 }
 0x289   :  { %1978 = vrcp.f32 %v832_v0 }
 0x293   :  { %v1979_v12 = vpop.eup %1978 }
 0x294   :  { %v843_v2 = vmul.f32 %v1979_v12, %v842_v31 }
 0x296   :  { %v844_v37 = vadd.f32 %v843_v2, %v2456_v21 }
 0x298   :  { %1980 = vtanh.f32 %v844_v37 }
 0x299   :  { %1982 = vrcp.f32 %v839_v55 }
 0x2a2   :  { %v1981_v5 = vpop.eup %1980 }
 0x2a3   :  { %v846_v18 = vsub.f32 %v2490_v53, %v1981_v5  ;;  %v1983_v59 = vpop.eup %1982 }
 0x2a5   :  { %v847_v3 = vmul.f32 %v1983_v59, %v846_v18 }
 0x2a7   :  { %v2534_v7 = vadd.f32 %v1981_v5, %v847_v3 }
 0x2a9   :  { %v849_v11 = vpack.c.bf16 %v2534_v7, %v2534_v7 }
 0x2ab   :  { %851 = vst [vmem:[#allocation13 + $0x4] sm:$0xf] %v849_v11  ;;  %891 = vmatmul.mubr.bf16.vlgmr.msra.gmra.mrb[24].mxu0 %v849_v11  ;;  %1779 = vmatmul.mubr.bf16.vlgmr.msra.gmra.mrb[16].mxu1 %v849_v11 }
 0x2ac   :  { %970 = vmatpush1.bf16.msra.mxu0 %v2314_v26  ;;  %1783 = vmatpush3.bf16.msra.mxu1 %v2333_v35 }
 0x2ad   :  { %971 = vmatprep.subr.bf16.mxu0 %v2317_v27  ;;  %1784 = vmatprep.subr.bf16.mxu1 %v2765_v6 }
 0x2ae   :  { %1001 = vmatprep.mubr.bf16.mxu0 %v2766_v16  ;;  %1798 = vmatprep.mubr.msk.bf16.mxu1 %vm2215_vm0, %v2765_v6 }
 0x2b0   :  { %972 = vmatpush1.bf16.msra.mxu0 %v2320_v29  ;;  %1785 = vmatpush3.bf16.msra.mxu1 %v2343_v39 }
 0x2b1   :  { %973 = vmatprep.subr.bf16.mxu0 %v2324_v30  ;;  %1786 = vmatprep.subr.bf16.mxu1 %v2765_v6 }
 0x2b4   :  { %974 = vmatpush1.bf16.msra.mxu0 %v2327_v32  ;;  %1787 = vmatpush3.bf16.msra.mxu1 %v2353_v42 }
 0x2b5   :  { %975 = vmatprep.subr.bf16.mxu0 %v2330_v33  ;;  %1788 = vmatprep.subr.bf16.mxu1 %v2765_v6 }
 0x2b8   :  { %976 = vmatpush1.bf16.msra.mxu0 %v2336_v36  ;;  %1789 = vmatpush3.bf16.msra.mxu1 %v2364_v46 }
 0x2b9   :  { %977 = vmatprep.subr.bf16.mxu0 %v2340_v38  ;;  %1790 = vmatprep.subr.bf16.mxu1 %v2765_v6 }
 0x2bc   :  { %978 = vmatpush1.bf16.msra.mxu0 %v2347_v40  ;;  %1791 = vmatpush3.bf16.msra.mxu1 %v2376_v49 }
 0x2bd   :  { %979 = vmatprep.subr.bf16.mxu0 %v2350_v41  ;;  %1792 = vmatprep.subr.bf16.mxu1 %v2765_v6 }
 0x2c0   :  { %980 = vmatpush1.bf16.msra.mxu0 %v2357_v44  ;;  %1793 = vmatpush3.bf16.msra.mxu1 %v2385_v51 }
 0x2c1   :  { %981 = vmatprep.subr.bf16.mxu0 %v2361_v45  ;;  %1794 = vmatprep.subr.bf16.mxu1 %v2765_v6 }
 0x2c4   :  { %982 = vmatpush1.bf16.msra.mxu0 %v2370_v47  ;;  %1795 = vmatpush3.bf16.msra.mxu1 %v2391_v52 }
 0x2c5   :  { %983 = vmatprep.subr.bf16.mxu0 %v2373_v48  ;;  %1796 = vmatprep.subr.bf16.mxu1 %v2765_v6 }
 0x2c8   :  { %984 = vmatpush1.bf16.msra.mxu0 %v2380_v50  ;;  %1797 = vmatpush3.bf16.msra.mxu1 %v2398_v54 }
 0x2c9   :  { %1080 = vmatprep.subr.bf16.mxu0 %v2312_v24  ;;  %1802 = vmatprep.subr.bf16.mxu1 %v2765_v6 }
 0x37e   :  { %v892_v21 = vpop.f32.mrb[24].mxu0  ;;  %v933_v53 = vpop.f32.mrb[16].mxu1 }
 0x37f   :  { %v939_v56 = vadd.f32 %v892_v21, %v2441_v8  ;;  %v894_v14 = vpop.f32.mrb[25].mxu0  ;;  %v1780_v60 = vpop.f32.mrb[17].mxu1  ;;  %v953_v37 = vadd.f32 %v2486_v20, %v933_v53 }
 0x380   :  { %v946_v61 = vadd.f32 %v894_v14, %v2443_v10  ;;  %v896_v62 = vpop.f32.mrb[26].mxu0  ;;  %v936_v63 = vpop.f32.mrb[18].mxu1 }
 0x381   :  { %v1602_v25 = vmul.f32 -1.442695, %v939_v56  ;;  %v897_v34 = vpop.f32.mrb[27].mxu0  ;;  %v1781_v0 = vpop.f32.mrb[19].mxu1 }
 0x382   :  { %v1603_v1 = vmul.f32 -1.442695, %v946_v61 }
 0x383   :  { %1984 = vpow2.f32 %v1602_v25 }
 0x384   :  { %1986 = vpow2.f32 %v1603_v1 }
 0x38d   :  { %v1985_v31 = vpop.eup %1984 }
 0x38e   :  { %v943_v12 = vadd.f32 1.0, %v1985_v31  ;;  %v1987_v2 = vpop.eup %1986 }
 0x38f   :  { %v950_v18 = vadd.f32 1.0, %v1987_v2 }
 0x390   :  { %1988 = vrcp.f32 %v943_v12 }
 0x39a   :  { %v1989_v55 = vpop.eup %1988 }
 0x39b   :  { %v954_v8 = vmul.f32 %v1989_v55, %v953_v37 }
 0x39d   :  { %v955_v5 = vadd.f32 %v954_v8, %v2448_v15 }
 0x39f   :  { %1990 = vtanh.f32 %v955_v5 }
 0x3a0   :  { %1992 = vrcp.f32 %v950_v18 }
 0x3a9   :  { %v1991_v10 = vpop.eup %1990 }
 0x3aa   :  { %v957_v59 = vsub.f32 %v2534_v7, %v1991_v10  ;;  %v1993_v3 = vpop.eup %1992 }
 0x3ac   :  { %v958_v11 = vmul.f32 %v1993_v3, %v957_v59 }
 0x3ae   :  { %v2578_v21 = vadd.f32 %v1991_v10, %v958_v11 }
 0x3b0   :  { %v960_v56 = vpack.c.bf16 %v2578_v21, %v2578_v21 }
 0x3b2   :  { %962 = vst [vmem:[#allocation13 + $0x8] sm:$0xf] %v960_v56  ;;  %1002 = vmatmul.mubr.bf16.vlgmr.msra.gmra.mrb[28].mxu0 %v960_v56  ;;  %1799 = vmatmul.mubr.bf16.vlgmr.msra.gmra.mrb[20].mxu1 %v960_v56 }
 0x3b3   :  { %1081 = vmatpush1.bf16.msra.mxu0 %v2314_v26  ;;  %1803 = vmatpush3.bf16.msra.mxu1 %v2333_v35 }
 0x3b4   :  { %1082 = vmatprep.subr.bf16.mxu0 %v2317_v27  ;;  %1804 = vmatprep.subr.bf16.mxu1 %v2765_v6 }
 0x3b5   :  { %1112 = vmatprep.mubr.bf16.mxu0 %v2766_v16  ;;  %1818 = vmatprep.mubr.msk.bf16.mxu1 %vm2215_vm0, %v2765_v6 }
 0x3b7   :  { %1083 = vmatpush1.bf16.msra.mxu0 %v2320_v29  ;;  %1805 = vmatpush3.bf16.msra.mxu1 %v2343_v39 }
 0x3b8   :  { %1084 = vmatprep.subr.bf16.mxu0 %v2324_v30  ;;  %1806 = vmatprep.subr.bf16.mxu1 %v2765_v6 }
 0x3bb   :  { %1085 = vmatpush1.bf16.msra.mxu0 %v2327_v32  ;;  %1807 = vmatpush3.bf16.msra.mxu1 %v2353_v42 }
 0x3bc   :  { %1086 = vmatprep.subr.bf16.mxu0 %v2330_v33  ;;  %1808 = vmatprep.subr.bf16.mxu1 %v2765_v6 }
 0x3bf   :  { %1087 = vmatpush1.bf16.msra.mxu0 %v2336_v36  ;;  %1809 = vmatpush3.bf16.msra.mxu1 %v2364_v46 }
 0x3c0   :  { %1088 = vmatprep.subr.bf16.mxu0 %v2340_v38  ;;  %1810 = vmatprep.subr.bf16.mxu1 %v2765_v6 }
 0x3c3   :  { %1089 = vmatpush1.bf16.msra.mxu0 %v2347_v40  ;;  %1811 = vmatpush3.bf16.msra.mxu1 %v2376_v49 }
 0x3c4   :  { %1090 = vmatprep.subr.bf16.mxu0 %v2350_v41  ;;  %1812 = vmatprep.subr.bf16.mxu1 %v2765_v6 }
 0x3c7   :  { %1091 = vmatpush1.bf16.msra.mxu0 %v2357_v44  ;;  %1813 = vmatpush3.bf16.msra.mxu1 %v2385_v51 }
 0x3c8   :  { %1092 = vmatprep.subr.bf16.mxu0 %v2361_v45  ;;  %1814 = vmatprep.subr.bf16.mxu1 %v2765_v6 }
 0x3cb   :  { %1093 = vmatpush1.bf16.msra.mxu0 %v2370_v47  ;;  %1815 = vmatpush3.bf16.msra.mxu1 %v2391_v52 }
 0x3cc   :  { %1094 = vmatprep.subr.bf16.mxu0 %v2373_v48  ;;  %1816 = vmatprep.subr.bf16.mxu1 %v2765_v6 }
 0x3cf   :  { %1095 = vmatpush1.bf16.msra.mxu0 %v2380_v50  ;;  %1817 = vmatpush3.bf16.msra.mxu1 %v2398_v54 }
 0x3d0   :  { %1191 = vmatprep.subr.bf16.mxu0 %v2312_v24  ;;  %1822 = vmatprep.subr.bf16.mxu1 %v2765_v6 }
 0x485   :  { %v1003_v15 = vpop.f32.mrb[28].mxu0  ;;  %v1044_v7 = vpop.f32.mrb[20].mxu1 }
 0x486   :  { %v1050_v53 = vadd.f32 %v1003_v15, %v2445_v13  ;;  %v1005_v14 = vpop.f32.mrb[29].mxu0  ;;  %v1800_v60 = vpop.f32.mrb[21].mxu1  ;;  %v1064_v37 = vadd.f32 %v2486_v20, %v1044_v7 }
 0x487   :  { %v1057_v61 = vadd.f32 %v1005_v14, %v2450_v17  ;;  %v1007_v62 = vpop.f32.mrb[30].mxu0  ;;  %v1047_v63 = vpop.f32.mrb[22].mxu1 }
 0x488   :  { %v1604_v25 = vmul.f32 -1.442695, %v1050_v53  ;;  %v1008_v34 = vpop.f32.mrb[31].mxu0  ;;  %v1801_v0 = vpop.f32.mrb[23].mxu1 }
 0x489   :  { %v1605_v1 = vmul.f32 -1.442695, %v1057_v61 }
 0x48a   :  { %1994 = vpow2.f32 %v1604_v25 }
 0x48b   :  { %1996 = vpow2.f32 %v1605_v1 }
 0x494   :  { %v1995_v31 = vpop.eup %1994 }
 0x495   :  { %v1054_v12 = vadd.f32 1.0, %v1995_v31  ;;  %v1997_v2 = vpop.eup %1996 }
 0x496   :  { %v1061_v5 = vadd.f32 1.0, %v1997_v2 }
 0x497   :  { %1998 = vrcp.f32 %v1054_v12 }
 0x4a1   :  { %v1999_v55 = vpop.eup %1998 }
 0x4a2   :  { %v1065_v13 = vmul.f32 %v1999_v55, %v1064_v37 }
 0x4a4   :  { %v1066_v8 = vadd.f32 %v1065_v13, %v2453_v19 }
 0x4a6   :  { %2000 = vtanh.f32 %v1066_v8 }
 0x4a7   :  { %2002 = vrcp.f32 %v1061_v5 }
 0x4b0   :  { %v2001_v17 = vpop.eup %2000 }
 0x4b1   :  { %v1068_v18 = vsub.f32 %v2578_v21, %v2001_v17  ;;  %v2003_v10 = vpop.eup %2002 }
 0x4b3   :  { %v1069_v59 = vmul.f32 %v2003_v10, %v1068_v18 }
 0x4b5   :  { %v2622_v3 = vadd.f32 %v2001_v17, %v1069_v59 }
 0x4b7   :  { %v1071_v11 = vpack.c.bf16 %v2622_v3, %v2622_v3 }
 0x4b9   :  { %1073 = vst [vmem:[#allocation13 + $0xc] sm:$0xf] %v1071_v11  ;;  %1113 = vmatmul.mubr.bf16.vlgmr.msra.gmra.mrb[32].mxu0 %v1071_v11  ;;  %1819 = vmatmul.mubr.bf16.vlgmr.msra.gmra.mrb[24].mxu1 %v1071_v11  ;;  %v2045_v11 = vld [vmem:[#allocation10] ss:$12 sps:$4 sm:$0xff]  }
 0x4ba   :  { %1192 = vmatpush1.bf16.msra.mxu0 %v2314_v26  ;;  %1823 = vmatpush3.bf16.msra.mxu1 %v2333_v35 }
 0x4bb   :  { %1193 = vmatprep.subr.bf16.mxu0 %v2317_v27  ;;  %1824 = vmatprep.subr.bf16.mxu1 %v2765_v6 }
 0x4bc   :  { %1223 = vmatprep.mubr.bf16.mxu0 %v2766_v16  ;;  %1838 = vmatprep.mubr.msk.bf16.mxu1 %vm2215_vm0, %v2765_v6 }
 0x4be   :  { %1194 = vmatpush1.bf16.msra.mxu0 %v2320_v29  ;;  %1825 = vmatpush3.bf16.msra.mxu1 %v2343_v39 }
 0x4bf   :  { %1195 = vmatprep.subr.bf16.mxu0 %v2324_v30  ;;  %1826 = vmatprep.subr.bf16.mxu1 %v2765_v6 }
 0x4c2   :  { %1196 = vmatpush1.bf16.msra.mxu0 %v2327_v32  ;;  %1827 = vmatpush3.bf16.msra.mxu1 %v2353_v42 }
 0x4c3   :  { %1197 = vmatprep.subr.bf16.mxu0 %v2330_v33  ;;  %1828 = vmatprep.subr.bf16.mxu1 %v2765_v6 }
 0x4c6   :  { %1198 = vmatpush1.bf16.msra.mxu0 %v2336_v36  ;;  %1829 = vmatpush3.bf16.msra.mxu1 %v2364_v46 }
 0x4c7   :  { %1199 = vmatprep.subr.bf16.mxu0 %v2340_v38  ;;  %1830 = vmatprep.subr.bf16.mxu1 %v2765_v6 }
 0x4ca   :  { %1200 = vmatpush1.bf16.msra.mxu0 %v2347_v40  ;;  %1831 = vmatpush3.bf16.msra.mxu1 %v2376_v49 }
 0x4cb   :  { %1201 = vmatprep.subr.bf16.mxu0 %v2350_v41  ;;  %1832 = vmatprep.subr.bf16.mxu1 %v2765_v6 }
 0x4ce   :  { %1202 = vmatpush1.bf16.msra.mxu0 %v2357_v44  ;;  %1833 = vmatpush3.bf16.msra.mxu1 %v2385_v51 }
 0x4cf   :  { %1203 = vmatprep.subr.bf16.mxu0 %v2361_v45  ;;  %1834 = vmatprep.subr.bf16.mxu1 %v2765_v6 }
 0x4d2   :  { %1204 = vmatpush1.bf16.msra.mxu0 %v2370_v47  ;;  %1835 = vmatpush3.bf16.msra.mxu1 %v2391_v52 }
 0x4d3   :  { %1205 = vmatprep.subr.bf16.mxu0 %v2373_v48  ;;  %1836 = vmatprep.subr.bf16.mxu1 %v2765_v6 }
 0x4d6   :  { %1206 = vmatpush1.bf16.msra.mxu0 %v2380_v50  ;;  %1837 = vmatpush3.bf16.msra.mxu1 %v2398_v54 }
 0x4d7   :  { %1302 = vmatprep.subr.bf16.mxu0 %v2312_v24  ;;  %1842 = vmatprep.subr.bf16.mxu1 %v2765_v6 }
 0x58c   :  { %v1114_v19 = vpop.f32.mrb[32].mxu0  ;;  %v1155_v21 = vpop.f32.mrb[24].mxu1 }
 0x58d   :  { %v1161_v56 = vadd.f32 %v1114_v19, %v2458_v23  ;;  %v1116_v15 = vpop.f32.mrb[33].mxu0  ;;  %v1820_v7 = vpop.f32.mrb[25].mxu1  ;;  %v1175_v1 = vadd.f32 %v2486_v20, %v1155_v21  ;;  %v2046_v19 = vld [vmem:[#allocation10 + $0x8] ss:$12 sps:$4 sm:$0xff]   ;;  %v2048_v21 = vld [vmem:[#allocation10 + $0x18] ss:$12 sps:$4 sm:$0xff]  }
 0x58e   :  { %v1168_v53 = vadd.f32 %v1116_v15, %v2460_v28  ;;  %v1118_v14 = vpop.f32.mrb[34].mxu0  ;;  %v1158_v60 = vpop.f32.mrb[26].mxu1  ;;  %v2050_v15 = vld [vmem:[#allocation10 + $0x34] ss:$12 sps:$4 sm:$0xff]   ;;  %v2051_v7 = vld [vmem:[#allocation10 + $0x30] ss:$12 sps:$4 sm:$0xff]  }
 0x58f   :  { %v1606_v61 = vmul.f32 -1.442695, %v1161_v56  ;;  %v1119_v62 = vpop.f32.mrb[35].mxu0  ;;  %v1821_v63 = vpop.f32.mrb[27].mxu1  ;;  %v2049_v56 = vld [vmem:[#allocation10 + $0x20] ss:$12 sps:$4 sm:$0xff]  }
 0x590   :  { %v1607_v25 = vmul.f32 -1.442695, %v1168_v53  ;;  %v2052_v53 = vld [vmem:[#allocation10 + $0x38] ss:$12 sps:$4 sm:$0xff]   ;;  %v2055_v60 = vld [vmem:[#allocation10 + $0x50] ss:$12 sps:$4 sm:$0xff]  }
 0x591   :  { %2004 = vpow2.f32 %v1606_v61  ;;  %v2053_v14 = vld [vmem:[#allocation10 + $0x4c] ss:$12 sps:$4 sm:$0xff]   ;;  %v2056_v61 = vld [vmem:[#allocation10 + $0x64] ss:$12 sps:$4 sm:$0xff]   ;;  %v2058_v63 = vld [vmem:[#allocation10 + $0x7c] ss:$12 sps:$4 sm:$0xff]  }
 0x592   :  { %2006 = vpow2.f32 %v1607_v25  ;;  %v2057_v62 = vld [vmem:[#allocation10 + $0x60] ss:$12 sps:$4 sm:$0xff]   ;;  %v2059_v25 = vld [vmem:[#allocation10 + $0x78] ss:$12 sps:$4 sm:$0xff]  }
 0x59b   :  { %v2005_v34 = vpop.eup %2004 }
 0x59c   :  { %v1165_v0 = vadd.f32 1.0, %v2005_v34  ;;  %v2007_v24 = vpop.eup %2006  ;;  %v2060_v34 = vld [vmem:[#allocation10 + $0x94] ss:$12 sps:$4 sm:$0xff]  }
 0x59d   :  { %v1172_v2 = vadd.f32 1.0, %v2007_v24  ;;  %v2062_v24 = vld [vmem:[#allocation10 + $0xac] ss:$12 sps:$4 sm:$0xff]  }
 0x59e   :  { %2008 = vrcp.f32 %v1165_v0  ;;  %v2061_v0 = vld [vmem:[#allocation10 + $0x90] ss:$12 sps:$4 sm:$0xff]  }
 0x5a8   :  { %v2009_v31 = vpop.eup %2008 }
 0x5a9   :  { %v1176_v23 = vmul.f32 %v2009_v31, %v1175_v1 }
 0x5ab   :  { %v1177_v12 = vadd.f32 %v1176_v23, %v2470_v58 }
 0x5ad   :  { %2010 = vtanh.f32 %v1177_v12 }
 0x5ae   :  { %2012 = vrcp.f32 %v1172_v2  ;;  %v2767_v2 = vld [vmem:[#allocation20_spill] sm:$0xff] }
 0x5b7   :  { %v2011_v28 = vpop.eup %2010 }
 0x5b8   :  { %v1179_v37 = vsub.f32 %v2622_v3, %v2011_v28  ;;  %v2013_v55 = vpop.eup %2012 }
 0x5ba   :  { %v1180_v13 = vmul.f32 %v2013_v55, %v1179_v37 }
 0x5bc   :  { %v2666_v8 = vadd.f32 %v2011_v28, %v1180_v13 }
 0x5be   :  { %v1182_v5 = vpack.c.bf16 %v2666_v8, %v2666_v8 }
 0x5c0   :  { %1184 = vst [vmem:[#allocation13 + $0x10] sm:$0xf] %v1182_v5  ;;  %1224 = vmatmul.mubr.bf16.vlgmr.msra.gmra.mrb[36].mxu0 %v1182_v5  ;;  %1839 = vmatmul.mubr.bf16.vlgmr.msra.gmra.mrb[28].mxu1 %v1182_v5 }
 0x5c1   :  { %1303 = vmatpush1.bf16.msra.mxu0 %v2314_v26  ;;  %1843 = vmatpush3.bf16.msra.mxu1 %v2333_v35  ;;  %v2044_v26 = vld [vmem:[#allocation10 + $0x4] ss:$12 sps:$4 sm:$0xff]  }
 0x5c2   :  { %1304 = vmatprep.subr.bf16.mxu0 %v2317_v27  ;;  %1844 = vmatprep.subr.bf16.mxu1 %v2765_v6 }
 0x5c3   :  { %1334 = vmatprep.mubr.bf16.mxu0 %v2766_v16  ;;  %1858 = vmatprep.mubr.msk.bf16.mxu1 %vm2215_vm0, %v2765_v6 }
 0x5c5   :  { %1305 = vmatpush1.bf16.msra.mxu0 %v2320_v29  ;;  %1845 = vmatpush3.bf16.msra.mxu1 %v2343_v39 }
 0x5c6   :  { %1306 = vmatprep.subr.bf16.mxu0 %v2324_v30  ;;  %1846 = vmatprep.subr.bf16.mxu1 %v2765_v6 }
 0x5c9   :  { %1307 = vmatpush1.bf16.msra.mxu0 %v2327_v32  ;;  %1847 = vmatpush3.bf16.msra.mxu1 %v2353_v42 }
 0x5ca   :  { %1308 = vmatprep.subr.bf16.mxu0 %v2330_v33  ;;  %1848 = vmatprep.subr.bf16.mxu1 %v2765_v6 }
 0x5cd   :  { %1309 = vmatpush1.bf16.msra.mxu0 %v2336_v36  ;;  %1849 = vmatpush3.bf16.msra.mxu1 %v2364_v46 }
 0x5ce   :  { %1310 = vmatprep.subr.bf16.mxu0 %v2340_v38  ;;  %1850 = vmatprep.subr.bf16.mxu1 %v2765_v6 }
 0x5d1   :  { %1311 = vmatpush1.bf16.msra.mxu0 %v2347_v40  ;;  %1851 = vmatpush3.bf16.msra.mxu1 %v2376_v49 }
 0x5d2   :  { %1312 = vmatprep.subr.bf16.mxu0 %v2350_v41  ;;  %1852 = vmatprep.subr.bf16.mxu1 %v2765_v6 }
 0x5d5   :  { %1313 = vmatpush1.bf16.msra.mxu0 %v2357_v44  ;;  %1853 = vmatpush3.bf16.msra.mxu1 %v2385_v51 }
 0x5d6   :  { %1314 = vmatprep.subr.bf16.mxu0 %v2361_v45  ;;  %1854 = vmatprep.subr.bf16.mxu1 %v2765_v6 }
 0x5d9   :  { %1315 = vmatpush1.bf16.msra.mxu0 %v2370_v47  ;;  %1855 = vmatpush3.bf16.msra.mxu1 %v2391_v52 }
 0x5da   :  { %1316 = vmatprep.subr.bf16.mxu0 %v2373_v48  ;;  %1856 = vmatprep.subr.bf16.mxu1 %v2765_v6 }
 0x5dd   :  { %1317 = vmatpush1.bf16.msra.mxu0 %v2380_v50  ;;  %1857 = vmatpush3.bf16.msra.mxu1 %v2398_v54 }
 0x5de   :  { %1413 = vmatprep.subr.bf16.mxu0 %v2044_v26  ;;  %1862 = vmatprep.subr.bf16.mxu1 %v2765_v6 }
 0x693   :  { %v1225_v27 = vpop.f32.mrb[36].mxu0  ;;  %v1266_v29 = vpop.f32.mrb[28].mxu1 }
 0x694   :  { %v1272_v30 = vadd.f32 %v1225_v27, %v2462_v43  ;;  %v1227_v32 = vpop.f32.mrb[37].mxu0  ;;  %v1840_v33 = vpop.f32.mrb[29].mxu1  ;;  %v1286_v47 = vadd.f32 %v2486_v20, %v1266_v29 }
 0x695   :  { %v1279_v35 = vadd.f32 %v1227_v32, %v2467_v57  ;;  %v1229_v36 = vpop.f32.mrb[38].mxu0  ;;  %v1269_v38 = vpop.f32.mrb[30].mxu1 }
 0x696   :  { %v1608_v39 = vmul.f32 -1.442695, %v1272_v30  ;;  %v1230_v40 = vpop.f32.mrb[39].mxu0  ;;  %v1841_v41 = vpop.f32.mrb[31].mxu1  ;;  %v2768_v30 = vld [vmem:[#allocation18_spill] sm:$0xff] }
 0x697   :  { %v1609_v42 = vmul.f32 -1.442695, %v1279_v35 }
 0x698   :  { %2014 = vpow2.f32 %v1608_v39 }
 0x699   :  { %2016 = vpow2.f32 %v1609_v42 }
 0x6a2   :  { %v2015_v44 = vpop.eup %2014 }
 0x6a3   :  { %v1276_v45 = vadd.f32 1.0, %v2015_v44  ;;  %v2017_v46 = vpop.eup %2016 }
 0x6a4   :  { %v1283_v58 = vadd.f32 1.0, %v2017_v46 }
 0x6a5   :  { %2018 = vrcp.f32 %v1276_v45  ;;  %v2769_v45 = vld [vmem:[#allocation21_spill] sm:$0xff] }
 0x6af   :  { %v2019_v48 = vpop.eup %2018 }
 0x6b0   :  { %v1287_v50 = vmul.f32 %v2019_v48, %v1286_v47 }
 0x6b2   :  { %v1288_v43 = vadd.f32 %v1287_v50, %v2476_v4  ;;  %v2047_v4 = vld [vmem:[#allocation10 + $0x1c] ss:$12 sps:$4 sm:$0xff]  }
 0x6b4   :  { %2020 = vtanh.f32 %v1288_v43 }
 0x6b5   :  { %2022 = vrcp.f32 %v1283_v58 }
 0x6be   :  { %v2021_v57 = vpop.eup %2020 }
 0x6bf   :  { %v1290_v17 = vsub.f32 %v2666_v8, %v2021_v57  ;;  %v2023_v18 = vpop.eup %2022 }
 0x6c1   :  { %v1291_v10 = vmul.f32 %v2023_v18, %v1290_v17 }
 0x6c3   :  { %v2709_v59 = vadd.f32 %v2021_v57, %v1291_v10 }
 0x6c5   :  { %v1293_v3 = vpack.c.bf16 %v2709_v59, %v2709_v59 }
 0x6c7   :  { %1295 = vst [vmem:[#allocation13 + $0x14] sm:$0xf] %v1293_v3  ;;  %1335 = vmatmul.mubr.bf16.vlgmr.msra.gmra.mrb[40].mxu0 %v1293_v3  ;;  %1859 = vmatmul.mubr.bf16.vlgmr.msra.gmra.mrb[32].mxu1 %v1293_v3 }
 0x6c8   :  { %1414 = vmatpush1.bf16.msra.mxu0 %v2045_v11  ;;  %1863 = vmatpush3.bf16.msra.mxu1 %v2046_v19 }
 0x6c9   :  { %1415 = vmatprep.subr.bf16.mxu0 %v2047_v4  ;;  %1864 = vmatprep.subr.bf16.mxu1 %v2765_v6 }
 0x6ca   :  { %1445 = vmatprep.mubr.bf16.mxu0 %v2766_v16  ;;  %1878 = vmatprep.mubr.msk.bf16.mxu1 %vm2215_vm0, %v2765_v6  ;;  %v2054_v16 = vld [vmem:[#allocation10 + $0x48] ss:$12 sps:$4 sm:$0xff]  }
 0x6cc   :  { %1416 = vmatpush1.bf16.msra.mxu0 %v2048_v21  ;;  %1865 = vmatpush3.bf16.msra.mxu1 %v2049_v56  ;;  %v2770_v56 = vld [vmem:[#allocation19_spill] sm:$0xff] }
 0x6cd   :  { %1417 = vmatprep.subr.bf16.mxu0 %v2050_v15  ;;  %1866 = vmatprep.subr.bf16.mxu1 %v2765_v6 }
 0x6d0   :  { %1418 = vmatpush1.bf16.msra.mxu0 %v2051_v7  ;;  %1867 = vmatpush3.bf16.msra.mxu1 %v2052_v53 }
 0x6d1   :  { %1419 = vmatprep.subr.bf16.mxu0 %v2053_v14  ;;  %1868 = vmatprep.subr.bf16.mxu1 %v2765_v6 }
 0x6d4   :  { %1420 = vmatpush1.bf16.msra.mxu0 %v2054_v16  ;;  %1869 = vmatpush3.bf16.msra.mxu1 %v2055_v60 }
 0x6d5   :  { %1421 = vmatprep.subr.bf16.mxu0 %v2056_v61  ;;  %1870 = vmatprep.subr.bf16.mxu1 %v2765_v6 }
 0x6d8   :  { %1422 = vmatpush1.bf16.msra.mxu0 %v2057_v62  ;;  %1871 = vmatpush3.bf16.msra.mxu1 %v2376_v49  ;;  %v2063_v49 = vld [vmem:[#allocation10 + $0xa8] ss:$12 sps:$4 sm:$0xff]  }
 0x6d9   :  { %1423 = vmatprep.subr.bf16.mxu0 %v2058_v63  ;;  %1872 = vmatprep.subr.bf16.mxu1 %v2765_v6 }
 0x6dc   :  { %1424 = vmatpush1.bf16.msra.mxu0 %v2059_v25  ;;  %1873 = vmatpush3.bf16.msra.mxu1 %v2385_v51 }
 0x6dd   :  { %1425 = vmatprep.subr.bf16.mxu0 %v2060_v34  ;;  %1874 = vmatprep.subr.bf16.mxu1 %v2765_v6 }
 0x6e0   :  { %1426 = vmatpush1.bf16.msra.mxu0 %v2061_v0  ;;  %1875 = vmatpush3.bf16.msra.mxu1 %v2391_v52 }
 0x6e1   :  { %1427 = vmatprep.subr.bf16.mxu0 %v2062_v24  ;;  %1876 = vmatprep.subr.bf16.mxu1 %v2765_v6 }
 0x6e4   :  { %1428 = vmatpush1.bf16.msra.mxu0 %v2063_v49  ;;  %1877 = vmatpush3.bf16.msra.mxu1 %v2398_v54 }
 0x79a   :  { %v1336_v1 = vpop.f32.mrb[40].mxu0  ;;  %v1377_v31 = vpop.f32.mrb[32].mxu1 }
 0x79b   :  { %v1383_v51 = vadd.f32 %v1336_v1, %v2478_v9  ;;  %v1338_v23 = vpop.f32.mrb[41].mxu0  ;;  %v1860_v12 = vpop.f32.mrb[33].mxu1  ;;  %v1397_v27 = vadd.f32 %v2486_v20, %v1377_v31 }
 0x79c   :  { %v1390_v28 = vadd.f32 %v1338_v23, %v2767_v2  ;;  %v1340_v37 = vpop.f32.mrb[42].mxu0  ;;  %v1380_v55 = vpop.f32.mrb[34].mxu1 }
 0x79d   :  { %v1610_v13 = vmul.f32 -1.442695, %v1383_v51  ;;  %v1341_v52 = vpop.f32.mrb[43].mxu0  ;;  %v1861_v8 = vpop.f32.mrb[35].mxu1 }
 0x79e   :  { %v1611_v5 = vmul.f32 -1.442695, %v1390_v28 }
 0x79f   :  { %2024 = vpow2.f32 %v1610_v13 }
 0x7a0   :  { %2026 = vpow2.f32 %v1611_v5 }
 0x7a9   :  { %v2025_v6 = vpop.eup %2024 }
 0x7aa   :  { %v1387_v26 = vadd.f32 1.0, %v2025_v6  ;;  %v2027_v54 = vpop.eup %2026 }
 0x7ab   :  { %v1394_v33 = vadd.f32 1.0, %v2027_v54 }
 0x7ac   :  { %2028 = vrcp.f32 %v1387_v26 }
 0x7b6   :  { %v2029_v29 = vpop.eup %2028 }
 0x7b7   :  { %v1398_v9 = vmul.f32 %v2029_v29, %v1397_v27 }
 0x7b9   :  { %v1399_v32 = vadd.f32 %v1398_v9, %v2768_v30 }
 0x7bb   :  { %2030 = vtanh.f32 %v1399_v32 }
 0x7bc   :  { %2032 = vrcp.f32 %v1394_v33 }
 0x7c5   :  { %v2031_v35 = vpop.eup %2030 }
 0x7c6   :  { %v1401_v36 = vsub.f32 %v2709_v59, %v2031_v35  ;;  %v2033_v38 = vpop.eup %2032 }
 0x7c8   :  { %v1402_v39 = vmul.f32 %v2033_v38, %v1401_v36 }
 0x7ca   :  { %v1403_v40 = vadd.f32 %v2031_v35, %v1402_v39 }
 0x7cc   :  { %v1404_v41 = vpack.c.bf16 %v1403_v40, %v1403_v40 }
 0x7ce   :  { %1406 = vst [vmem:[#allocation13 + $0x18] sm:$0xf] %v1404_v41  ;;  %1446 = vmatmul.mubr.bf16.vlgmr.msra.gmra.mrb[44].mxu0 %v1404_v41  ;;  %1879 = vmatmul.mubr.bf16.vlgmr.msra.gmra.mrb[36].mxu1 %v1404_v41 }
 0x8a1   :  { %v1447_v42 = vpop.f32.mrb[44].mxu0  ;;  %v1488_v44 = vpop.f32.mrb[36].mxu1 }
 0x8a2   :  { %v1494_v46 = vadd.f32 %v1447_v42, %v2769_v45  ;;  %v1449_v47 = vpop.f32.mrb[45].mxu0  ;;  %v1880_v48 = vpop.f32.mrb[37].mxu1  ;;  %v1508_v19 = vadd.f32 %v2486_v20, %v1488_v44 }
 0x8a3   :  { %v1501_v50 = vadd.f32 %v1449_v47, %v2484_v22  ;;  %v1451_v43 = vpop.f32.mrb[46].mxu0  ;;  %v1491_v58 = vpop.f32.mrb[38].mxu1 }
 0x8a4   :  { %v1612_v57 = vmul.f32 -1.442695, %v1494_v46  ;;  %v1452_v17 = vpop.f32.mrb[47].mxu0  ;;  %v1881_v18 = vpop.f32.mrb[39].mxu1 }
 0x8a5   :  { %v1613_v10 = vmul.f32 -1.442695, %v1501_v50 }
 0x8a6   :  { %2034 = vpow2.f32 %v1612_v57 }
 0x8a7   :  { %2036 = vpow2.f32 %v1613_v10 }
 0x8b0   :  { %v2035_v59 = vpop.eup %2034 }
 0x8b1   :  { %v1498_v3 = vadd.f32 1.0, %v2035_v59  ;;  %v2037_v11 = vpop.eup %2036 }
 0x8b2   :  { %v1505_v7 = vadd.f32 1.0, %v2037_v11 }
 0x8b3   :  { %2038 = vrcp.f32 %v1498_v3 }
 0x8bd   :  { %v2039_v4 = vpop.eup %2038 }
 0x8be   :  { %v1509_v21 = vmul.f32 %v2039_v4, %v1508_v19 }
 0x8c0   :  { %v1510_v15 = vadd.f32 %v1509_v21, %v2770_v56 }
 0x8c2   :  { %2040 = vtanh.f32 %v1510_v15 }
 0x8c3   :  { %2042 = vrcp.f32 %v1505_v7 }
 0x8cc   :  { %v2041_v22 = vpop.eup %2040 }
 0x8cd   :  { %v1512_v53 = vsub.f32 %v1403_v40, %v2041_v22  ;;  %v2043_v14 = vpop.eup %2042 }
 0x8cf   :  { %v1513_v16 = vmul.f32 %v2043_v14, %v1512_v53 }
 0x8d1   :  { %v1514_v60 = vadd.f32 %v2041_v22, %v1513_v16 }
 0x8d3   :  { %v1515_v61 = vpack.c.bf16 %v1514_v60, %v1514_v60 }
 0x8d5   :  { %1517 = vst [vmem:[#allocation13 + $0x1c] sm:$0xf] %v1515_v61 }
 0x8d6   :  { %2185 = shalt.err (!%p2182_p2)
}
 0x8d7   :  { %s2186_s9 = scalar_lea.hbm %s2756_s5, 512 }
 0x8d8   :  { %p2187_p3 = scmp.ne.s32.totalorder %s2756_s5, %s2186_s9  ;;  %p2190_p4 = scmp.lt.u32.totalorder %s2186_s9, %s2756_s5 }
 0x8da   :  { %p2192_p5 = pnand %p2190_p4, %p2187_p3 }
 0x8dc   :  { %2195 = shalt.err (!%p2192_p5)
}
 0x8dd   :  { %1530 = dma.vmem_to_hbm [thread:$0]  %s1525_s30, 512, %s2756_s5, [#allocation6], %s2209_s3, %s2209_s3, %s2210_s28  }
 0x8de   :  { %2202 = dma.done.wait [#allocation6], 512  }
 0x8df   :  { %2203 = vsyncadd [#allocation6], 4294966784 }
 0x8e0   :  { %1534 = vsyncpa [#allocation5], 1 }
 0x8e1   :  { %1535 = vsyncpa [#allocation8], 1 }
 0x8e2   :  { %1536 = vsyncpa [#allocation11], 1 }
 0x8e3   :  { %1537 = vsyncpa [#allocation6], 1 }

</bundles_post_ra>
